<compile_context>
chip_gen: v7x
topology: tpu7x:2x2x1
jax: 0.10.0
libtpu: 0.0.40
codegen_flags: <defaults>
</compile_context>

<pallas_src>
import math

import numpy as np
import jax
import jax.numpy as jnp
from jax.experimental import pallas as pl
from jax.experimental.pallas import tpu as pltpu

_CHANS = [(3, 16), (16, 32), (32, 64), (64, 128)]
_EPS = 1e-5
_SLOPE = 0.2


# -----------------------------------------------------------------------------
# Fused whole-network kernel
# -----------------------------------------------------------------------------
def _nca_kernel(*refs):
    """refs = (x0, [R, M, P, Pt, AFF] * 4, A, pf, fcb, out)."""
    x_ref = refs[0]
    layer_refs = [refs[1 + 5 * l: 1 + 5 * (l + 1)] for l in range(4)]
    a_ref, pf_ref, fcb_ref = refs[21], refs[22], refs[23]
    out_ref = refs[24]

    x = x_ref[...]                                              # (B*H0, W0*3) bf16
    y = None
    for r_ref, m_ref, p_ref, pt_ref, aff_ref in layer_refs:
        rows_out = r_ref.shape[1]                               # B*Hout
        cout = p_ref.shape[1]
        wout = m_ref.shape[2] // cout
        inv_n = 1.0 / float(rows_out * wout)                    # 1/(B*Hout*Wout)

        # ---- 3x3 / stride-2 / pad-1 conv: 3 tap pairs of matmuls on the MXU ----
        acc = None
        for ky in range(3):
            rows = jnp.dot(r_ref[ky], x,
                           preferred_element_type=jnp.float32).astype(jnp.bfloat16)
            part = jnp.dot(rows, m_ref[ky], preferred_element_type=jnp.float32)
            acc = part if acc is None else acc + part           # (B*Hout, Wout*Cout) f32

        # ---- conv bias + LeakyReLU(0.2)  (f32 VPU) ----
        y = acc + aff_ref[0:1, :]
        y = jnp.where(y > 0, y, _SLOPE * y)

        # ---- BatchNorm2d: training-mode batch stats, centered (two-pass) variance ----
        s = jnp.sum(y, axis=0, keepdims=True)                   # (1, Wout*Cout)
        mean_c = jnp.dot(s, p_ref[...], preferred_element_type=jnp.float32) * inv_n
        mean_b = jnp.dot(mean_c, pt_ref[...], preferred_element_type=jnp.float32)
        d = y - mean_b
        var_c = jnp.dot(jnp.sum(d * d, axis=0, keepdims=True), p_ref[...],
                        preferred_element_type=jnp.float32) * inv_n      # (1, Cout)
        inv_std = jax.lax.rsqrt(jnp.maximum(var_c, 0.0) + _EPS)
        inv_b = jnp.dot(inv_std, pt_ref[...], preferred_element_type=jnp.float32)
        y = d * inv_b * aff_ref[1:2, :] + aff_ref[2:3, :]

        x = y.astype(jnp.bfloat16)        # bf16 feed for the next layer's matmuls

    # ---- AdaptiveAvgPool2d(1) + Linear(128,1) + Sigmoid ----
    pooled = jnp.dot(a_ref[...], y, preferred_element_type=jnp.float32)  # (B, W4*C4)
    logit = jnp.sum(pooled * pf_ref[...], axis=1, keepdims=True) + fcb_ref[...]
    out_ref[...] = 1.0 / (1.0 + jnp.exp(-logit))


# -----------------------------------------------------------------------------
# Parameter initialization (deterministic, matches the PyTorch _init_weights)
# -----------------------------------------------------------------------------
def init_params(key):
    a = _SLOPE
    gain = math.sqrt(2.0 / (1.0 + a * a))                       # kaiming_normal_(a=0.2)
    keys = jax.random.split(key, len(_CHANS) + 1)
    layers = []
    for (cin, cout), k in zip(_CHANS, keys[:-1]):
        std = gain / math.sqrt(cin * 9)                         # fan_in = Cin*3*3
        layers.append(dict(
            w=jax.random.normal(k, (3, 3, cin, cout), jnp.float32) * std,
            b=jnp.zeros((cout,), jnp.float32),                  # conv bias = 0
            gamma=jnp.ones((cout,), jnp.float32),               # BN weight = 1
            beta=jnp.zeros((cout,), jnp.float32),               # BN bias = 0
        ))
    fc_w = jax.random.normal(keys[-1], (128, 1), jnp.float32) * (gain / math.sqrt(128))
    fc_b = jnp.zeros((1, 1), jnp.float32)
    return dict(layers=layers, fc_w=fc_w, fc_b=fc_b)


# -----------------------------------------------------------------------------
# One-time host-side preparation of the constant kernel operands
# -----------------------------------------------------------------------------
def prepare_operands(params, img_size, batch):
    ops = []
    h_in = img_size
    for layer, (cin, cout) in zip(params["layers"], _CHANS):
        w_in = h_in
        h_out = (h_in - 1) // 2 + 1
        w_out = h_out

        # R_ky: (3, B*Hout, B*Hin) block-diagonal row selector (input row 2i+ky-1).
        r = np.zeros((3, batch * h_out, batch * h_in), np.float32)
        for ky in range(3):
            for b in range(batch):
                for i in range(h_out):
                    h = 2 * i + ky - 1
                    if 0 <= h < h_in:
                        r[ky, b * h_out + i, b * h_in + h] = 1.0

        # M_ky: (3, Win*Cin, Wout*Cout) conv weights scattered over folded indices.
        w_np = np.asarray(layer["w"], np.float32)               # (3, 3, Cin, Cout)
        m = np.zeros((3, w_in, cin, w_out, cout), np.float32)
        for ky in range(3):
            for kx in range(3):
                for j in range(w_out):
                    wq = 2 * j + kx - 1
                    if 0 <= wq < w_in:
                        m[ky, wq, :, j, :] += w_np[ky, kx]
        m = m.reshape(3, w_in * cin, w_out * cout)

        # P / P^T: fold the (Wout*Cout) lane columns to per-channel stats and back.
        p = np.tile(np.eye(cout, dtype=np.float32), (w_out, 1))  # (Wout*Cout, Cout)

        # Packed per-position affine params: conv bias, BN gamma, BN beta.
        aff = np.stack([np.tile(np.asarray(layer["b"], np.float32), w_out),
                        np.tile(np.asarray(layer["gamma"], np.float32), w_out),
                        np.tile(np.asarray(layer["beta"], np.float32), w_out)])

        ops += [jnp.asarray(r, jnp.bfloat16), jnp.asarray(m, jnp.bfloat16),
                jnp.asarray(p, jnp.float32), jnp.asarray(p.T, jnp.float32),
                jnp.asarray(aff, jnp.float32)]
        h_in = h_out

    # Head: per-sample row-sum matrix + (fc_w / pool_size) tiled over positions.
    h4 = h_in
    a = np.zeros((batch, batch * h4), np.float32)
    for b in range(batch):
        a[b, b * h4:(b + 1) * h4] = 1.0
    fc_w = np.asarray(params["fc_w"], np.float32)               # (128, 1)
    pf = np.tile(fc_w[:, 0], h4)[None, :] / float(h4 * h4)      # (1, W4*128)
    ops += [jnp.asarray(a, jnp.float32), jnp.asarray(pf, jnp.float32),
            jnp.asarray(params["fc_b"], jnp.float32)]
    return tuple(ops)


# -----------------------------------------------------------------------------
# Forward pass (single pallas_call)
# -----------------------------------------------------------------------------
def _full_spec(shape):
    n = len(shape)
    return pl.BlockSpec(shape, lambda *_: (0,) * n)


def nca_evaluator_forward(ops, img):
    """img: (B, 3, H, W) NCHW float32 (PyTorch layout). Returns sigmoid scores."""
    B, C, H, W = img.shape
    x0 = jnp.transpose(img, (0, 2, 3, 1)).reshape(B * H, W * C).astype(jnp.bfloat16)
    inputs = (x0,) + tuple(ops)

    flops = 0
    for l in range(4):
        r, m = inputs[1 + 5 * l], inputs[2 + 5 * l]
        ro, ri = r.shape[1], r.shape[2]
        k, n = m.shape[1], m.shape[2]
        flops += 2 * 3 * (ro * ri * k + ro * k * n)
    bytes_accessed = sum(int(np.prod(a.shape)) * a.dtype.itemsize for a in inputs) + B * 4
    cost = pl.CostEstimate(flops=flops, transcendentals=8 * 128 + 2 * B,
                           bytes_accessed=bytes_accessed)

    out = pl.pallas_call(
        _nca_kernel,
        out_shape=jax.ShapeDtypeStruct((B, 1), jnp.float32),
        grid=(1,),
        in_specs=[_full_spec(a.shape) for a in inputs],
        out_specs=_full_spec((B, 1)),
        compiler_params=pltpu.CompilerParams(
            dimension_semantics=("arbitrary",),
            vmem_limit_bytes=32 * 1024 * 1024),
        cost_estimate=cost,
    )(*inputs)
    return jnp.squeeze(out)                                     # matches .squeeze()


# -----------------------------------------------------------------------------
# Demo
# -----------------------------------------------------------------------------
if __name__ == "__main__":
    B, IMG = 2, 64                                              # module default img_size=64
    k_params, k_img = jax.random.split(jax.random.PRNGKey(0))
    params = init_params(k_params)
    ops = prepare_operands(params, IMG, B)                      # host-side, once
    img = jax.random.normal(k_img, (B, 3, IMG, IMG), jnp.float32)

    fwd = jax.jit(nca_evaluator_forward)
    out = jax.block_until_ready(fwd(ops, img))

    assert out.shape == (B,), out.shape
    assert bool(jnp.all(jnp.isfinite(out)))
    assert bool(jnp.all((out > 0.0) & (out < 1.0)))             # sigmoid range
    print("KERNEL_OK")
</pallas_src>

<mosaic_0001>
module attributes {stable_mosaic.version = 11 : i64} {
  func.func @_nca_kernel(%arg0: i32, %arg1: memref<128x192xbf16, #tpu.memory_space<vmem>>, %arg2: memref<3x64x128xbf16, #tpu.memory_space<vmem>>, %arg3: memref<3x192x512xbf16, #tpu.memory_space<vmem>>, %arg4: memref<512x16xf32, #tpu.memory_space<vmem>>, %arg5: memref<16x512xf32, #tpu.memory_space<vmem>>, %arg6: memref<3x512xf32, #tpu.memory_space<vmem>>, %arg7: memref<3x32x64xbf16, #tpu.memory_space<vmem>>, %arg8: memref<3x512x512xbf16, #tpu.memory_space<vmem>>, %arg9: memref<512x32xf32, #tpu.memory_space<vmem>>, %arg10: memref<32x512xf32, #tpu.memory_space<vmem>>, %arg11: memref<3x512xf32, #tpu.memory_space<vmem>>, %arg12: memref<3x16x32xbf16, #tpu.memory_space<vmem>>, %arg13: memref<3x512x512xbf16, #tpu.memory_space<vmem>>, %arg14: memref<512x64xf32, #tpu.memory_space<vmem>>, %arg15: memref<64x512xf32, #tpu.memory_space<vmem>>, %arg16: memref<3x512xf32, #tpu.memory_space<vmem>>, %arg17: memref<3x8x16xbf16, #tpu.memory_space<vmem>>, %arg18: memref<3x512x512xbf16, #tpu.memory_space<vmem>>, %arg19: memref<512x128xf32, #tpu.memory_space<vmem>>, %arg20: memref<128x512xf32, #tpu.memory_space<vmem>>, %arg21: memref<3x512xf32, #tpu.memory_space<vmem>>, %arg22: memref<2x8xf32, #tpu.memory_space<vmem>>, %arg23: memref<1x512xf32, #tpu.memory_space<vmem>>, %arg24: memref<1x1xf32, #tpu.memory_space<vmem>>, %arg25: memref<2x1xf32, #tpu.memory_space<vmem>>) attributes {dimension_semantics = [#tpu.dimension_semantics<arbitrary>], iteration_bounds = array<i64: 1>, scalar_prefetch = 0 : i64, scratch_operands = 0 : i64, tpu.core_type = #tpu.core_type<tc>, window_params = [{pipeline_mode = #tpu.pipeline_mode<synchronous>, transform_indices = @transform_0, window_bounds = array<i64: 128, 192>}, {pipeline_mode = #tpu.pipeline_mode<synchronous>, transform_indices = @transform_1, window_bounds = array<i64: 3, 64, 128>}, {pipeline_mode = #tpu.pipeline_mode<synchronous>, transform_indices = @transform_2, window_bounds = array<i64: 3, 192, 512>}, {pipeline_mode = #tpu.pipeline_mode<synchronous>, transform_indices = @transform_3, window_bounds = array<i64: 512, 16>}, {pipeline_mode = #tpu.pipeline_mode<synchronous>, transform_indices = @transform_4, window_bounds = array<i64: 16, 512>}, {pipeline_mode = #tpu.pipeline_mode<synchronous>, transform_indices = @transform_5, window_bounds = array<i64: 3, 512>}, {pipeline_mode = #tpu.pipeline_mode<synchronous>, transform_indices = @transform_6, window_bounds = array<i64: 3, 32, 64>}, {pipeline_mode = #tpu.pipeline_mode<synchronous>, transform_indices = @transform_7, window_bounds = array<i64: 3, 512, 512>}, {pipeline_mode = #tpu.pipeline_mode<synchronous>, transform_indices = @transform_8, window_bounds = array<i64: 512, 32>}, {pipeline_mode = #tpu.pipeline_mode<synchronous>, transform_indices = @transform_9, window_bounds = array<i64: 32, 512>}, {pipeline_mode = #tpu.pipeline_mode<synchronous>, transform_indices = @transform_10, window_bounds = array<i64: 3, 512>}, {pipeline_mode = #tpu.pipeline_mode<synchronous>, transform_indices = @transform_11, window_bounds = array<i64: 3, 16, 32>}, {pipeline_mode = #tpu.pipeline_mode<synchronous>, transform_indices = @transform_12, window_bounds = array<i64: 3, 512, 512>}, {pipeline_mode = #tpu.pipeline_mode<synchronous>, transform_indices = @transform_13, window_bounds = array<i64: 512, 64>}, {pipeline_mode = #tpu.pipeline_mode<synchronous>, transform_indices = @transform_14, window_bounds = array<i64: 64, 512>}, {pipeline_mode = #tpu.pipeline_mode<synchronous>, transform_indices = @transform_15, window_bounds = array<i64: 3, 512>}, {pipeline_mode = #tpu.pipeline_mode<synchronous>, transform_indices = @transform_16, window_bounds = array<i64: 3, 8, 16>}, {pipeline_mode = #tpu.pipeline_mode<synchronous>, transform_indices = @transform_17, window_bounds = array<i64: 3, 512, 512>}, {pipeline_mode = #tpu.pipeline_mode<synchronous>, transform_indices = @transform_18, window_bounds = array<i64: 512, 128>}, {pipeline_mode = #tpu.pipeline_mode<synchronous>, transform_indices = @transform_19, window_bounds = array<i64: 128, 512>}, {pipeline_mode = #tpu.pipeline_mode<synchronous>, transform_indices = @transform_20, window_bounds = array<i64: 3, 512>}, {pipeline_mode = #tpu.pipeline_mode<synchronous>, transform_indices = @transform_21, window_bounds = array<i64: 2, 8>}, {pipeline_mode = #tpu.pipeline_mode<synchronous>, transform_indices = @transform_22, window_bounds = array<i64: 1, 512>}, {pipeline_mode = #tpu.pipeline_mode<synchronous>, transform_indices = @transform_23, window_bounds = array<i64: 1, 1>}, {pipeline_mode = #tpu.pipeline_mode<synchronous>, transform_indices = @transform_24, window_bounds = array<i64: 2, 1>}]} {
    %c0 = arith.constant 0 : index
    %c0_0 = arith.constant 0 : index
    %0 = vector.load %arg1[%c0, %c0_0] : memref<128x192xbf16, #tpu.memory_space<vmem>>, vector<128x192xbf16>
    %c0_1 = arith.constant 0 : index
    %c0_2 = arith.constant 0 : index
    %c0_3 = arith.constant 0 : index
    %1 = vector.load %arg2[%c0_1, %c0_2, %c0_3] : memref<3x64x128xbf16, #tpu.memory_space<vmem>>, vector<1x64x128xbf16>
    %2 = vector.shape_cast %1 : vector<1x64x128xbf16> to vector<64x128xbf16>
    %cst = arith.constant dense<0.000000e+00> : vector<64x192xf32>
    %3 = tpu.matmul %2, %0, %cst {dimension_numbers = #tpu.dot_dimension_numbers<[1], [0], [0], [1], [0, 0, 1, 1], [], []>} : vector<64x128xbf16>, vector<128x192xbf16>, vector<64x192xf32> -> vector<64x192xf32>
    %4 = arith.truncf %3 : vector<64x192xf32> to vector<64x192xbf16>
    %c0_4 = arith.constant 0 : index
    %c0_5 = arith.constant 0 : index
    %c0_6 = arith.constant 0 : index
    %5 = vector.load %arg3[%c0_4, %c0_5, %c0_6] : memref<3x192x512xbf16, #tpu.memory_space<vmem>>, vector<1x192x512xbf16>
    %6 = vector.shape_cast %5 : vector<1x192x512xbf16> to vector<192x512xbf16>
    %cst_7 = arith.constant dense<0.000000e+00> : vector<64x512xf32>
    %7 = tpu.matmul %4, %6, %cst_7 {dimension_numbers = #tpu.dot_dimension_numbers<[1], [0], [0], [1], [0, 0, 1, 1], [], []>} : vector<64x192xbf16>, vector<192x512xbf16>, vector<64x512xf32> -> vector<64x512xf32>
    %c1 = arith.constant 1 : index
    %c0_8 = arith.constant 0 : index
    %c0_9 = arith.constant 0 : index
    %8 = vector.load %arg2[%c1, %c0_8, %c0_9] : memref<3x64x128xbf16, #tpu.memory_space<vmem>>, vector<1x64x128xbf16>
    %9 = vector.shape_cast %8 : vector<1x64x128xbf16> to vector<64x128xbf16>
    %cst_10 = arith.constant dense<0.000000e+00> : vector<64x192xf32>
    %10 = tpu.matmul %9, %0, %cst_10 {dimension_numbers = #tpu.dot_dimension_numbers<[1], [0], [0], [1], [0, 0, 1, 1], [], []>} : vector<64x128xbf16>, vector<128x192xbf16>, vector<64x192xf32> -> vector<64x192xf32>
    %11 = arith.truncf %10 : vector<64x192xf32> to vector<64x192xbf16>
    %c1_11 = arith.constant 1 : index
    %c0_12 = arith.constant 0 : index
    %c0_13 = arith.constant 0 : index
    %12 = vector.load %arg3[%c1_11, %c0_12, %c0_13] : memref<3x192x512xbf16, #tpu.memory_space<vmem>>, vector<1x192x512xbf16>
    %13 = vector.shape_cast %12 : vector<1x192x512xbf16> to vector<192x512xbf16>
    %cst_14 = arith.constant dense<0.000000e+00> : vector<64x512xf32>
    %14 = tpu.matmul %11, %13, %cst_14 {dimension_numbers = #tpu.dot_dimension_numbers<[1], [0], [0], [1], [0, 0, 1, 1], [], []>} : vector<64x192xbf16>, vector<192x512xbf16>, vector<64x512xf32> -> vector<64x512xf32>
    %15 = arith.addf %7, %14 : vector<64x512xf32>
    %c2 = arith.constant 2 : index
    %c0_15 = arith.constant 0 : index
    %c0_16 = arith.constant 0 : index
    %16 = vector.load %arg2[%c2, %c0_15, %c0_16] : memref<3x64x128xbf16, #tpu.memory_space<vmem>>, vector<1x64x128xbf16>
    %17 = vector.shape_cast %16 : vector<1x64x128xbf16> to vector<64x128xbf16>
    %cst_17 = arith.constant dense<0.000000e+00> : vector<64x192xf32>
    %18 = tpu.matmul %17, %0, %cst_17 {dimension_numbers = #tpu.dot_dimension_numbers<[1], [0], [0], [1], [0, 0, 1, 1], [], []>} : vector<64x128xbf16>, vector<128x192xbf16>, vector<64x192xf32> -> vector<64x192xf32>
    %19 = arith.truncf %18 : vector<64x192xf32> to vector<64x192xbf16>
    %c2_18 = arith.constant 2 : index
    %c0_19 = arith.constant 0 : index
    %c0_20 = arith.constant 0 : index
    %20 = vector.load %arg3[%c2_18, %c0_19, %c0_20] : memref<3x192x512xbf16, #tpu.memory_space<vmem>>, vector<1x192x512xbf16>
    %21 = vector.shape_cast %20 : vector<1x192x512xbf16> to vector<192x512xbf16>
    %cst_21 = arith.constant dense<0.000000e+00> : vector<64x512xf32>
    %22 = tpu.matmul %19, %21, %cst_21 {dimension_numbers = #tpu.dot_dimension_numbers<[1], [0], [0], [1], [0, 0, 1, 1], [], []>} : vector<64x192xbf16>, vector<192x512xbf16>, vector<64x512xf32> -> vector<64x512xf32>
    %23 = arith.addf %15, %22 : vector<64x512xf32>
    %c0_22 = arith.constant 0 : index
    %c0_23 = arith.constant 0 : index
    %24 = vector.load %arg6[%c0_22, %c0_23] : memref<3x512xf32, #tpu.memory_space<vmem>>, vector<1x512xf32>
    %25 = vector.broadcast %24 : vector<1x512xf32> to vector<64x512xf32>
    %26 = arith.addf %23, %25 : vector<64x512xf32>
    %cst_24 = arith.constant 0.000000e+00 : f32
    %27 = vector.broadcast %cst_24 : f32 to vector<64x512xf32>
    %28 = arith.cmpf ogt, %26, %27 : vector<64x512xf32>
    %cst_25 = arith.constant 2.000000e-01 : f32
    %29 = vector.broadcast %cst_25 : f32 to vector<64x512xf32>
    %30 = arith.mulf %29, %26 : vector<64x512xf32>
    %31 = arith.select %28, %26, %30 : vector<64x512xi1>, vector<64x512xf32>
    %cst_26 = arith.constant dense<0.000000e+00> : vector<512xf32>
    %32 = vector.multi_reduction <add>, %31, %cst_26 [0] : vector<64x512xf32> to vector<512xf32>
    %33 = vector.shape_cast %32 : vector<512xf32> to vector<1x512xf32>
    %c0_27 = arith.constant 0 : index
    %c0_28 = arith.constant 0 : index
    %34 = vector.load %arg4[%c0_27, %c0_28] : memref<512x16xf32, #tpu.memory_space<vmem>>, vector<512x16xf32>
    %cst_29 = arith.constant dense<0.000000e+00> : vector<1x16xf32>
    %35 = tpu.matmul %33, %34, %cst_29 {dimension_numbers = #tpu.dot_dimension_numbers<[1], [0], [0], [1], [0, 0, 1, 1], [], []>} : vector<1x512xf32>, vector<512x16xf32>, vector<1x16xf32> -> vector<1x16xf32>
    %cst_30 = arith.constant 4.8828125E-4 : f32
    %36 = vector.broadcast %cst_30 : f32 to vector<1x16xf32>
    %37 = arith.mulf %35, %36 : vector<1x16xf32>
    %c0_31 = arith.constant 0 : index
    %c0_32 = arith.constant 0 : index
    %38 = vector.load %arg5[%c0_31, %c0_32] : memref<16x512xf32, #tpu.memory_space<vmem>>, vector<16x512xf32>
    %cst_33 = arith.constant dense<0.000000e+00> : vector<1x512xf32>
    %39 = tpu.matmul %37, %38, %cst_33 {dimension_numbers = #tpu.dot_dimension_numbers<[1], [0], [0], [1], [0, 0, 1, 1], [], []>} : vector<1x16xf32>, vector<16x512xf32>, vector<1x512xf32> -> vector<1x512xf32>
    %40 = vector.broadcast %39 : vector<1x512xf32> to vector<64x512xf32>
    %41 = arith.subf %31, %40 : vector<64x512xf32>
    %42 = arith.mulf %41, %41 : vector<64x512xf32>
    %cst_34 = arith.constant dense<0.000000e+00> : vector<512xf32>
    %43 = vector.multi_reduction <add>, %42, %cst_34 [0] : vector<64x512xf32> to vector<512xf32>
    %44 = vector.shape_cast %43 : vector<512xf32> to vector<1x512xf32>
    %c0_35 = arith.constant 0 : index
    %c0_36 = arith.constant 0 : index
    %45 = vector.load %arg4[%c0_35, %c0_36] : memref<512x16xf32, #tpu.memory_space<vmem>>, vector<512x16xf32>
    %cst_37 = arith.constant dense<0.000000e+00> : vector<1x16xf32>
    %46 = tpu.matmul %44, %45, %cst_37 {dimension_numbers = #tpu.dot_dimension_numbers<[1], [0], [0], [1], [0, 0, 1, 1], [], []>} : vector<1x512xf32>, vector<512x16xf32>, vector<1x16xf32> -> vector<1x16xf32>
    %cst_38 = arith.constant 4.8828125E-4 : f32
    %47 = vector.broadcast %cst_38 : f32 to vector<1x16xf32>
    %48 = arith.mulf %46, %47 : vector<1x16xf32>
    %cst_39 = arith.constant 0.000000e+00 : f32
    %49 = vector.broadcast %cst_39 : f32 to vector<1x16xf32>
    %50 = arith.maximumf %48, %49 : vector<1x16xf32>
    %cst_40 = arith.constant 9.99999974E-6 : f32
    %51 = vector.broadcast %cst_40 : f32 to vector<1x16xf32>
    %52 = arith.addf %50, %51 : vector<1x16xf32>
    %53 = math.rsqrt %52 : vector<1x16xf32>
    %c0_41 = arith.constant 0 : index
    %c0_42 = arith.constant 0 : index
    %54 = vector.load %arg5[%c0_41, %c0_42] : memref<16x512xf32, #tpu.memory_space<vmem>>, vector<16x512xf32>
    %cst_43 = arith.constant dense<0.000000e+00> : vector<1x512xf32>
    %55 = tpu.matmul %53, %54, %cst_43 {dimension_numbers = #tpu.dot_dimension_numbers<[1], [0], [0], [1], [0, 0, 1, 1], [], []>} : vector<1x16xf32>, vector<16x512xf32>, vector<1x512xf32> -> vector<1x512xf32>
    %56 = vector.broadcast %55 : vector<1x512xf32> to vector<64x512xf32>
    %57 = arith.mulf %41, %56 : vector<64x512xf32>
    %c1_44 = arith.constant 1 : index
    %c0_45 = arith.constant 0 : index
    %58 = vector.load %arg6[%c1_44, %c0_45] : memref<3x512xf32, #tpu.memory_space<vmem>>, vector<1x512xf32>
    %59 = vector.broadcast %58 : vector<1x512xf32> to vector<64x512xf32>
    %60 = arith.mulf %57, %59 : vector<64x512xf32>
    %c2_46 = arith.constant 2 : index
    %c0_47 = arith.constant 0 : index
    %61 = vector.load %arg6[%c2_46, %c0_47] : memref<3x512xf32, #tpu.memory_space<vmem>>, vector<1x512xf32>
    %62 = vector.broadcast %61 : vector<1x512xf32> to vector<64x512xf32>
    %63 = arith.addf %60, %62 : vector<64x512xf32>
    %64 = arith.truncf %63 : vector<64x512xf32> to vector<64x512xbf16>
    %c0_48 = arith.constant 0 : index
    %c0_49 = arith.constant 0 : index
    %c0_50 = arith.constant 0 : index
    %65 = vector.load %arg7[%c0_48, %c0_49, %c0_50] : memref<3x32x64xbf16, #tpu.memory_space<vmem>>, vector<1x32x64xbf16>
    %66 = vector.shape_cast %65 : vector<1x32x64xbf16> to vector<32x64xbf16>
    %cst_51 = arith.constant dense<0.000000e+00> : vector<32x512xf32>
    %67 = tpu.matmul %66, %64, %cst_51 {dimension_numbers = #tpu.dot_dimension_numbers<[1], [0], [0], [1], [0, 0, 1, 1], [], []>} : vector<32x64xbf16>, vector<64x512xbf16>, vector<32x512xf32> -> vector<32x512xf32>
    %68 = arith.truncf %67 : vector<32x512xf32> to vector<32x512xbf16>
    %c0_52 = arith.constant 0 : index
    %c0_53 = arith.constant 0 : index
    %c0_54 = arith.constant 0 : index
    %69 = vector.load %arg8[%c0_52, %c0_53, %c0_54] : memref<3x512x512xbf16, #tpu.memory_space<vmem>>, vector<1x512x512xbf16>
    %70 = vector.shape_cast %69 : vector<1x512x512xbf16> to vector<512x512xbf16>
    %cst_55 = arith.constant dense<0.000000e+00> : vector<32x512xf32>
    %71 = tpu.matmul %68, %70, %cst_55 {dimension_numbers = #tpu.dot_dimension_numbers<[1], [0], [0], [1], [0, 0, 1, 1], [], []>} : vector<32x512xbf16>, vector<512x512xbf16>, vector<32x512xf32> -> vector<32x512xf32>
    %c1_56 = arith.constant 1 : index
    %c0_57 = arith.constant 0 : index
    %c0_58 = arith.constant 0 : index
    %72 = vector.load %arg7[%c1_56, %c0_57, %c0_58] : memref<3x32x64xbf16, #tpu.memory_space<vmem>>, vector<1x32x64xbf16>
    %73 = vector.shape_cast %72 : vector<1x32x64xbf16> to vector<32x64xbf16>
    %cst_59 = arith.constant dense<0.000000e+00> : vector<32x512xf32>
    %74 = tpu.matmul %73, %64, %cst_59 {dimension_numbers = #tpu.dot_dimension_numbers<[1], [0], [0], [1], [0, 0, 1, 1], [], []>} : vector<32x64xbf16>, vector<64x512xbf16>, vector<32x512xf32> -> vector<32x512xf32>
    %75 = arith.truncf %74 : vector<32x512xf32> to vector<32x512xbf16>
    %c1_60 = arith.constant 1 : index
    %c0_61 = arith.constant 0 : index
    %c0_62 = arith.constant 0 : index
    %76 = vector.load %arg8[%c1_60, %c0_61, %c0_62] : memref<3x512x512xbf16, #tpu.memory_space<vmem>>, vector<1x512x512xbf16>
    %77 = vector.shape_cast %76 : vector<1x512x512xbf16> to vector<512x512xbf16>
    %cst_63 = arith.constant dense<0.000000e+00> : vector<32x512xf32>
    %78 = tpu.matmul %75, %77, %cst_63 {dimension_numbers = #tpu.dot_dimension_numbers<[1], [0], [0], [1], [0, 0, 1, 1], [], []>} : vector<32x512xbf16>, vector<512x512xbf16>, vector<32x512xf32> -> vector<32x512xf32>
    %79 = arith.addf %71, %78 : vector<32x512xf32>
    %c2_64 = arith.constant 2 : index
    %c0_65 = arith.constant 0 : index
    %c0_66 = arith.constant 0 : index
    %80 = vector.load %arg7[%c2_64, %c0_65, %c0_66] : memref<3x32x64xbf16, #tpu.memory_space<vmem>>, vector<1x32x64xbf16>
    %81 = vector.shape_cast %80 : vector<1x32x64xbf16> to vector<32x64xbf16>
    %cst_67 = arith.constant dense<0.000000e+00> : vector<32x512xf32>
    %82 = tpu.matmul %81, %64, %cst_67 {dimension_numbers = #tpu.dot_dimension_numbers<[1], [0], [0], [1], [0, 0, 1, 1], [], []>} : vector<32x64xbf16>, vector<64x512xbf16>, vector<32x512xf32> -> vector<32x512xf32>
    %83 = arith.truncf %82 : vector<32x512xf32> to vector<32x512xbf16>
    %c2_68 = arith.constant 2 : index
    %c0_69 = arith.constant 0 : index
    %c0_70 = arith.constant 0 : index
    %84 = vector.load %arg8[%c2_68, %c0_69, %c0_70] : memref<3x512x512xbf16, #tpu.memory_space<vmem>>, vector<1x512x512xbf16>
    %85 = vector.shape_cast %84 : vector<1x512x512xbf16> to vector<512x512xbf16>
    %cst_71 = arith.constant dense<0.000000e+00> : vector<32x512xf32>
    %86 = tpu.matmul %83, %85, %cst_71 {dimension_numbers = #tpu.dot_dimension_numbers<[1], [0], [0], [1], [0, 0, 1, 1], [], []>} : vector<32x512xbf16>, vector<512x512xbf16>, vector<32x512xf32> -> vector<32x512xf32>
    %87 = arith.addf %79, %86 : vector<32x512xf32>
    %c0_72 = arith.constant 0 : index
    %c0_73 = arith.constant 0 : index
    %88 = vector.load %arg11[%c0_72, %c0_73] : memref<3x512xf32, #tpu.memory_space<vmem>>, vector<1x512xf32>
    %89 = vector.broadcast %88 : vector<1x512xf32> to vector<32x512xf32>
    %90 = arith.addf %87, %89 : vector<32x512xf32>
    %cst_74 = arith.constant 0.000000e+00 : f32
    %91 = vector.broadcast %cst_74 : f32 to vector<32x512xf32>
    %92 = arith.cmpf ogt, %90, %91 : vector<32x512xf32>
    %cst_75 = arith.constant 2.000000e-01 : f32
    %93 = vector.broadcast %cst_75 : f32 to vector<32x512xf32>
    %94 = arith.mulf %93, %90 : vector<32x512xf32>
    %95 = arith.select %92, %90, %94 : vector<32x512xi1>, vector<32x512xf32>
    %cst_76 = arith.constant dense<0.000000e+00> : vector<512xf32>
    %96 = vector.multi_reduction <add>, %95, %cst_76 [0] : vector<32x512xf32> to vector<512xf32>
    %97 = vector.shape_cast %96 : vector<512xf32> to vector<1x512xf32>
    %c0_77 = arith.constant 0 : index
    %c0_78 = arith.constant 0 : index
    %98 = vector.load %arg9[%c0_77, %c0_78] : memref<512x32xf32, #tpu.memory_space<vmem>>, vector<512x32xf32>
    %cst_79 = arith.constant dense<0.000000e+00> : vector<1x32xf32>
    %99 = tpu.matmul %97, %98, %cst_79 {dimension_numbers = #tpu.dot_dimension_numbers<[1], [0], [0], [1], [0, 0, 1, 1], [], []>} : vector<1x512xf32>, vector<512x32xf32>, vector<1x32xf32> -> vector<1x32xf32>
    %cst_80 = arith.constant 0.001953125 : f32
    %100 = vector.broadcast %cst_80 : f32 to vector<1x32xf32>
    %101 = arith.mulf %99, %100 : vector<1x32xf32>
    %c0_81 = arith.constant 0 : index
    %c0_82 = arith.constant 0 : index
    %102 = vector.load %arg10[%c0_81, %c0_82] : memref<32x512xf32, #tpu.memory_space<vmem>>, vector<32x512xf32>
    %cst_83 = arith.constant dense<0.000000e+00> : vector<1x512xf32>
    %103 = tpu.matmul %101, %102, %cst_83 {dimension_numbers = #tpu.dot_dimension_numbers<[1], [0], [0], [1], [0, 0, 1, 1], [], []>} : vector<1x32xf32>, vector<32x512xf32>, vector<1x512xf32> -> vector<1x512xf32>
    %104 = vector.broadcast %103 : vector<1x512xf32> to vector<32x512xf32>
    %105 = arith.subf %95, %104 : vector<32x512xf32>
    %106 = arith.mulf %105, %105 : vector<32x512xf32>
    %cst_84 = arith.constant dense<0.000000e+00> : vector<512xf32>
    %107 = vector.multi_reduction <add>, %106, %cst_84 [0] : vector<32x512xf32> to vector<512xf32>
    %108 = vector.shape_cast %107 : vector<512xf32> to vector<1x512xf32>
    %c0_85 = arith.constant 0 : index
    %c0_86 = arith.constant 0 : index
    %109 = vector.load %arg9[%c0_85, %c0_86] : memref<512x32xf32, #tpu.memory_space<vmem>>, vector<512x32xf32>
    %cst_87 = arith.constant dense<0.000000e+00> : vector<1x32xf32>
    %110 = tpu.matmul %108, %109, %cst_87 {dimension_numbers = #tpu.dot_dimension_numbers<[1], [0], [0], [1], [0, 0, 1, 1], [], []>} : vector<1x512xf32>, vector<512x32xf32>, vector<1x32xf32> -> vector<1x32xf32>
    %cst_88 = arith.constant 0.001953125 : f32
    %111 = vector.broadcast %cst_88 : f32 to vector<1x32xf32>
    %112 = arith.mulf %110, %111 : vector<1x32xf32>
    %cst_89 = arith.constant 0.000000e+00 : f32
    %113 = vector.broadcast %cst_89 : f32 to vector<1x32xf32>
    %114 = arith.maximumf %112, %113 : vector<1x32xf32>
    %cst_90 = arith.constant 9.99999974E-6 : f32
    %115 = vector.broadcast %cst_90 : f32 to vector<1x32xf32>
    %116 = arith.addf %114, %115 : vector<1x32xf32>
    %117 = math.rsqrt %116 : vector<1x32xf32>
    %c0_91 = arith.constant 0 : index
    %c0_92 = arith.constant 0 : index
    %118 = vector.load %arg10[%c0_91, %c0_92] : memref<32x512xf32, #tpu.memory_space<vmem>>, vector<32x512xf32>
    %cst_93 = arith.constant dense<0.000000e+00> : vector<1x512xf32>
    %119 = tpu.matmul %117, %118, %cst_93 {dimension_numbers = #tpu.dot_dimension_numbers<[1], [0], [0], [1], [0, 0, 1, 1], [], []>} : vector<1x32xf32>, vector<32x512xf32>, vector<1x512xf32> -> vector<1x512xf32>
    %120 = vector.broadcast %119 : vector<1x512xf32> to vector<32x512xf32>
    %121 = arith.mulf %105, %120 : vector<32x512xf32>
    %c1_94 = arith.constant 1 : index
    %c0_95 = arith.constant 0 : index
    %122 = vector.load %arg11[%c1_94, %c0_95] : memref<3x512xf32, #tpu.memory_space<vmem>>, vector<1x512xf32>
    %123 = vector.broadcast %122 : vector<1x512xf32> to vector<32x512xf32>
    %124 = arith.mulf %121, %123 : vector<32x512xf32>
    %c2_96 = arith.constant 2 : index
    %c0_97 = arith.constant 0 : index
    %125 = vector.load %arg11[%c2_96, %c0_97] : memref<3x512xf32, #tpu.memory_space<vmem>>, vector<1x512xf32>
    %126 = vector.broadcast %125 : vector<1x512xf32> to vector<32x512xf32>
    %127 = arith.addf %124, %126 : vector<32x512xf32>
    %128 = arith.truncf %127 : vector<32x512xf32> to vector<32x512xbf16>
    %c0_98 = arith.constant 0 : index
    %c0_99 = arith.constant 0 : index
    %c0_100 = arith.constant 0 : index
    %129 = vector.load %arg12[%c0_98, %c0_99, %c0_100] : memref<3x16x32xbf16, #tpu.memory_space<vmem>>, vector<1x16x32xbf16>
    %130 = vector.shape_cast %129 : vector<1x16x32xbf16> to vector<16x32xbf16>
    %cst_101 = arith.constant dense<0.000000e+00> : vector<16x512xf32>
    %131 = tpu.matmul %130, %128, %cst_101 {dimension_numbers = #tpu.dot_dimension_numbers<[1], [0], [0], [1], [0, 0, 1, 1], [], []>} : vector<16x32xbf16>, vector<32x512xbf16>, vector<16x512xf32> -> vector<16x512xf32>
    %132 = arith.truncf %131 : vector<16x512xf32> to vector<16x512xbf16>
    %c0_102 = arith.constant 0 : index
    %c0_103 = arith.constant 0 : index
    %c0_104 = arith.constant 0 : index
    %133 = vector.load %arg13[%c0_102, %c0_103, %c0_104] : memref<3x512x512xbf16, #tpu.memory_space<vmem>>, vector<1x512x512xbf16>
    %134 = vector.shape_cast %133 : vector<1x512x512xbf16> to vector<512x512xbf16>
    %cst_105 = arith.constant dense<0.000000e+00> : vector<16x512xf32>
    %135 = tpu.matmul %132, %134, %cst_105 {dimension_numbers = #tpu.dot_dimension_numbers<[1], [0], [0], [1], [0, 0, 1, 1], [], []>} : vector<16x512xbf16>, vector<512x512xbf16>, vector<16x512xf32> -> vector<16x512xf32>
    %c1_106 = arith.constant 1 : index
    %c0_107 = arith.constant 0 : index
    %c0_108 = arith.constant 0 : index
    %136 = vector.load %arg12[%c1_106, %c0_107, %c0_108] : memref<3x16x32xbf16, #tpu.memory_space<vmem>>, vector<1x16x32xbf16>
    %137 = vector.shape_cast %136 : vector<1x16x32xbf16> to vector<16x32xbf16>
    %cst_109 = arith.constant dense<0.000000e+00> : vector<16x512xf32>
    %138 = tpu.matmul %137, %128, %cst_109 {dimension_numbers = #tpu.dot_dimension_numbers<[1], [0], [0], [1], [0, 0, 1, 1], [], []>} : vector<16x32xbf16>, vector<32x512xbf16>, vector<16x512xf32> -> vector<16x512xf32>
    %139 = arith.truncf %138 : vector<16x512xf32> to vector<16x512xbf16>
    %c1_110 = arith.constant 1 : index
    %c0_111 = arith.constant 0 : index
    %c0_112 = arith.constant 0 : index
    %140 = vector.load %arg13[%c1_110, %c0_111, %c0_112] : memref<3x512x512xbf16, #tpu.memory_space<vmem>>, vector<1x512x512xbf16>
    %141 = vector.shape_cast %140 : vector<1x512x512xbf16> to vector<512x512xbf16>
    %cst_113 = arith.constant dense<0.000000e+00> : vector<16x512xf32>
    %142 = tpu.matmul %139, %141, %cst_113 {dimension_numbers = #tpu.dot_dimension_numbers<[1], [0], [0], [1], [0, 0, 1, 1], [], []>} : vector<16x512xbf16>, vector<512x512xbf16>, vector<16x512xf32> -> vector<16x512xf32>
    %143 = arith.addf %135, %142 : vector<16x512xf32>
    %c2_114 = arith.constant 2 : index
    %c0_115 = arith.constant 0 : index
    %c0_116 = arith.constant 0 : index
    %144 = vector.load %arg12[%c2_114, %c0_115, %c0_116] : memref<3x16x32xbf16, #tpu.memory_space<vmem>>, vector<1x16x32xbf16>
    %145 = vector.shape_cast %144 : vector<1x16x32xbf16> to vector<16x32xbf16>
    %cst_117 = arith.constant dense<0.000000e+00> : vector<16x512xf32>
    %146 = tpu.matmul %145, %128, %cst_117 {dimension_numbers = #tpu.dot_dimension_numbers<[1], [0], [0], [1], [0, 0, 1, 1], [], []>} : vector<16x32xbf16>, vector<32x512xbf16>, vector<16x512xf32> -> vector<16x512xf32>
    %147 = arith.truncf %146 : vector<16x512xf32> to vector<16x512xbf16>
    %c2_118 = arith.constant 2 : index
    %c0_119 = arith.constant 0 : index
    %c0_120 = arith.constant 0 : index
    %148 = vector.load %arg13[%c2_118, %c0_119, %c0_120] : memref<3x512x512xbf16, #tpu.memory_space<vmem>>, vector<1x512x512xbf16>
    %149 = vector.shape_cast %148 : vector<1x512x512xbf16> to vector<512x512xbf16>
    %cst_121 = arith.constant dense<0.000000e+00> : vector<16x512xf32>
    %150 = tpu.matmul %147, %149, %cst_121 {dimension_numbers = #tpu.dot_dimension_numbers<[1], [0], [0], [1], [0, 0, 1, 1], [], []>} : vector<16x512xbf16>, vector<512x512xbf16>, vector<16x512xf32> -> vector<16x512xf32>
    %151 = arith.addf %143, %150 : vector<16x512xf32>
    %c0_122 = arith.constant 0 : index
    %c0_123 = arith.constant 0 : index
    %152 = vector.load %arg16[%c0_122, %c0_123] : memref<3x512xf32, #tpu.memory_space<vmem>>, vector<1x512xf32>
    %153 = vector.broadcast %152 : vector<1x512xf32> to vector<16x512xf32>
    %154 = arith.addf %151, %153 : vector<16x512xf32>
    %cst_124 = arith.constant 0.000000e+00 : f32
    %155 = vector.broadcast %cst_124 : f32 to vector<16x512xf32>
    %156 = arith.cmpf ogt, %154, %155 : vector<16x512xf32>
    %cst_125 = arith.constant 2.000000e-01 : f32
    %157 = vector.broadcast %cst_125 : f32 to vector<16x512xf32>
    %158 = arith.mulf %157, %154 : vector<16x512xf32>
    %159 = arith.select %156, %154, %158 : vector<16x512xi1>, vector<16x512xf32>
    %cst_126 = arith.constant dense<0.000000e+00> : vector<512xf32>
    %160 = vector.multi_reduction <add>, %159, %cst_126 [0] : vector<16x512xf32> to vector<512xf32>
    %161 = vector.shape_cast %160 : vector<512xf32> to vector<1x512xf32>
    %c0_127 = arith.constant 0 : index
    %c0_128 = arith.constant 0 : index
    %162 = vector.load %arg14[%c0_127, %c0_128] : memref<512x64xf32, #tpu.memory_space<vmem>>, vector<512x64xf32>
    %cst_129 = arith.constant dense<0.000000e+00> : vector<1x64xf32>
    %163 = tpu.matmul %161, %162, %cst_129 {dimension_numbers = #tpu.dot_dimension_numbers<[1], [0], [0], [1], [0, 0, 1, 1], [], []>} : vector<1x512xf32>, vector<512x64xf32>, vector<1x64xf32> -> vector<1x64xf32>
    %cst_130 = arith.constant 7.812500e-03 : f32
    %164 = vector.broadcast %cst_130 : f32 to vector<1x64xf32>
    %165 = arith.mulf %163, %164 : vector<1x64xf32>
    %c0_131 = arith.constant 0 : index
    %c0_132 = arith.constant 0 : index
    %166 = vector.load %arg15[%c0_131, %c0_132] : memref<64x512xf32, #tpu.memory_space<vmem>>, vector<64x512xf32>
    %cst_133 = arith.constant dense<0.000000e+00> : vector<1x512xf32>
    %167 = tpu.matmul %165, %166, %cst_133 {dimension_numbers = #tpu.dot_dimension_numbers<[1], [0], [0], [1], [0, 0, 1, 1], [], []>} : vector<1x64xf32>, vector<64x512xf32>, vector<1x512xf32> -> vector<1x512xf32>
    %168 = vector.broadcast %167 : vector<1x512xf32> to vector<16x512xf32>
    %169 = arith.subf %159, %168 : vector<16x512xf32>
    %170 = arith.mulf %169, %169 : vector<16x512xf32>
    %cst_134 = arith.constant dense<0.000000e+00> : vector<512xf32>
    %171 = vector.multi_reduction <add>, %170, %cst_134 [0] : vector<16x512xf32> to vector<512xf32>
    %172 = vector.shape_cast %171 : vector<512xf32> to vector<1x512xf32>
    %c0_135 = arith.constant 0 : index
    %c0_136 = arith.constant 0 : index
    %173 = vector.load %arg14[%c0_135, %c0_136] : memref<512x64xf32, #tpu.memory_space<vmem>>, vector<512x64xf32>
    %cst_137 = arith.constant dense<0.000000e+00> : vector<1x64xf32>
    %174 = tpu.matmul %172, %173, %cst_137 {dimension_numbers = #tpu.dot_dimension_numbers<[1], [0], [0], [1], [0, 0, 1, 1], [], []>} : vector<1x512xf32>, vector<512x64xf32>, vector<1x64xf32> -> vector<1x64xf32>
    %cst_138 = arith.constant 7.812500e-03 : f32
    %175 = vector.broadcast %cst_138 : f32 to vector<1x64xf32>
    %176 = arith.mulf %174, %175 : vector<1x64xf32>
    %cst_139 = arith.constant 0.000000e+00 : f32
    %177 = vector.broadcast %cst_139 : f32 to vector<1x64xf32>
    %178 = arith.maximumf %176, %177 : vector<1x64xf32>
    %cst_140 = arith.constant 9.99999974E-6 : f32
    %179 = vector.broadcast %cst_140 : f32 to vector<1x64xf32>
    %180 = arith.addf %178, %179 : vector<1x64xf32>
    %181 = math.rsqrt %180 : vector<1x64xf32>
    %c0_141 = arith.constant 0 : index
    %c0_142 = arith.constant 0 : index
    %182 = vector.load %arg15[%c0_141, %c0_142] : memref<64x512xf32, #tpu.memory_space<vmem>>, vector<64x512xf32>
    %cst_143 = arith.constant dense<0.000000e+00> : vector<1x512xf32>
    %183 = tpu.matmul %181, %182, %cst_143 {dimension_numbers = #tpu.dot_dimension_numbers<[1], [0], [0], [1], [0, 0, 1, 1], [], []>} : vector<1x64xf32>, vector<64x512xf32>, vector<1x512xf32> -> vector<1x512xf32>
    %184 = vector.broadcast %183 : vector<1x512xf32> to vector<16x512xf32>
    %185 = arith.mulf %169, %184 : vector<16x512xf32>
    %c1_144 = arith.constant 1 : index
    %c0_145 = arith.constant 0 : index
    %186 = vector.load %arg16[%c1_144, %c0_145] : memref<3x512xf32, #tpu.memory_space<vmem>>, vector<1x512xf32>
    %187 = vector.broadcast %186 : vector<1x512xf32> to vector<16x512xf32>
    %188 = arith.mulf %185, %187 : vector<16x512xf32>
    %c2_146 = arith.constant 2 : index
    %c0_147 = arith.constant 0 : index
    %189 = vector.load %arg16[%c2_146, %c0_147] : memref<3x512xf32, #tpu.memory_space<vmem>>, vector<1x512xf32>
    %190 = vector.broadcast %189 : vector<1x512xf32> to vector<16x512xf32>
    %191 = arith.addf %188, %190 : vector<16x512xf32>
    %192 = arith.truncf %191 : vector<16x512xf32> to vector<16x512xbf16>
    %c0_148 = arith.constant 0 : index
    %c0_149 = arith.constant 0 : index
    %c0_150 = arith.constant 0 : index
    %193 = vector.load %arg17[%c0_148, %c0_149, %c0_150] : memref<3x8x16xbf16, #tpu.memory_space<vmem>>, vector<1x8x16xbf16>
    %194 = vector.shape_cast %193 : vector<1x8x16xbf16> to vector<8x16xbf16>
    %cst_151 = arith.constant dense<0.000000e+00> : vector<8x512xf32>
    %195 = tpu.matmul %194, %192, %cst_151 {dimension_numbers = #tpu.dot_dimension_numbers<[1], [0], [0], [1], [0, 0, 1, 1], [], []>} : vector<8x16xbf16>, vector<16x512xbf16>, vector<8x512xf32> -> vector<8x512xf32>
    %196 = arith.truncf %195 : vector<8x512xf32> to vector<8x512xbf16>
    %c0_152 = arith.constant 0 : index
    %c0_153 = arith.constant 0 : index
    %c0_154 = arith.constant 0 : index
    %197 = vector.load %arg18[%c0_152, %c0_153, %c0_154] : memref<3x512x512xbf16, #tpu.memory_space<vmem>>, vector<1x512x512xbf16>
    %198 = vector.shape_cast %197 : vector<1x512x512xbf16> to vector<512x512xbf16>
    %cst_155 = arith.constant dense<0.000000e+00> : vector<8x512xf32>
    %199 = tpu.matmul %196, %198, %cst_155 {dimension_numbers = #tpu.dot_dimension_numbers<[1], [0], [0], [1], [0, 0, 1, 1], [], []>} : vector<8x512xbf16>, vector<512x512xbf16>, vector<8x512xf32> -> vector<8x512xf32>
    %c1_156 = arith.constant 1 : index
    %c0_157 = arith.constant 0 : index
    %c0_158 = arith.constant 0 : index
    %200 = vector.load %arg17[%c1_156, %c0_157, %c0_158] : memref<3x8x16xbf16, #tpu.memory_space<vmem>>, vector<1x8x16xbf16>
    %201 = vector.shape_cast %200 : vector<1x8x16xbf16> to vector<8x16xbf16>
    %cst_159 = arith.constant dense<0.000000e+00> : vector<8x512xf32>
    %202 = tpu.matmul %201, %192, %cst_159 {dimension_numbers = #tpu.dot_dimension_numbers<[1], [0], [0], [1], [0, 0, 1, 1], [], []>} : vector<8x16xbf16>, vector<16x512xbf16>, vector<8x512xf32> -> vector<8x512xf32>
    %203 = arith.truncf %202 : vector<8x512xf32> to vector<8x512xbf16>
    %c1_160 = arith.constant 1 : index
    %c0_161 = arith.constant 0 : index
    %c0_162 = arith.constant 0 : index
    %204 = vector.load %arg18[%c1_160, %c0_161, %c0_162] : memref<3x512x512xbf16, #tpu.memory_space<vmem>>, vector<1x512x512xbf16>
    %205 = vector.shape_cast %204 : vector<1x512x512xbf16> to vector<512x512xbf16>
    %cst_163 = arith.constant dense<0.000000e+00> : vector<8x512xf32>
    %206 = tpu.matmul %203, %205, %cst_163 {dimension_numbers = #tpu.dot_dimension_numbers<[1], [0], [0], [1], [0, 0, 1, 1], [], []>} : vector<8x512xbf16>, vector<512x512xbf16>, vector<8x512xf32> -> vector<8x512xf32>
    %207 = arith.addf %199, %206 : vector<8x512xf32>
    %c2_164 = arith.constant 2 : index
    %c0_165 = arith.constant 0 : index
    %c0_166 = arith.constant 0 : index
    %208 = vector.load %arg17[%c2_164, %c0_165, %c0_166] : memref<3x8x16xbf16, #tpu.memory_space<vmem>>, vector<1x8x16xbf16>
    %209 = vector.shape_cast %208 : vector<1x8x16xbf16> to vector<8x16xbf16>
    %cst_167 = arith.constant dense<0.000000e+00> : vector<8x512xf32>
    %210 = tpu.matmul %209, %192, %cst_167 {dimension_numbers = #tpu.dot_dimension_numbers<[1], [0], [0], [1], [0, 0, 1, 1], [], []>} : vector<8x16xbf16>, vector<16x512xbf16>, vector<8x512xf32> -> vector<8x512xf32>
    %211 = arith.truncf %210 : vector<8x512xf32> to vector<8x512xbf16>
    %c2_168 = arith.constant 2 : index
    %c0_169 = arith.constant 0 : index
    %c0_170 = arith.constant 0 : index
    %212 = vector.load %arg18[%c2_168, %c0_169, %c0_170] : memref<3x512x512xbf16, #tpu.memory_space<vmem>>, vector<1x512x512xbf16>
    %213 = vector.shape_cast %212 : vector<1x512x512xbf16> to vector<512x512xbf16>
    %cst_171 = arith.constant dense<0.000000e+00> : vector<8x512xf32>
    %214 = tpu.matmul %211, %213, %cst_171 {dimension_numbers = #tpu.dot_dimension_numbers<[1], [0], [0], [1], [0, 0, 1, 1], [], []>} : vector<8x512xbf16>, vector<512x512xbf16>, vector<8x512xf32> -> vector<8x512xf32>
    %215 = arith.addf %207, %214 : vector<8x512xf32>
    %c0_172 = arith.constant 0 : index
    %c0_173 = arith.constant 0 : index
    %216 = vector.load %arg21[%c0_172, %c0_173] : memref<3x512xf32, #tpu.memory_space<vmem>>, vector<1x512xf32>
    %217 = vector.broadcast %216 : vector<1x512xf32> to vector<8x512xf32>
    %218 = arith.addf %215, %217 : vector<8x512xf32>
    %cst_174 = arith.constant 0.000000e+00 : f32
    %219 = vector.broadcast %cst_174 : f32 to vector<8x512xf32>
    %220 = arith.cmpf ogt, %218, %219 : vector<8x512xf32>
    %cst_175 = arith.constant 2.000000e-01 : f32
    %221 = vector.broadcast %cst_175 : f32 to vector<8x512xf32>
    %222 = arith.mulf %221, %218 : vector<8x512xf32>
    %223 = arith.select %220, %218, %222 : vector<8x512xi1>, vector<8x512xf32>
    %cst_176 = arith.constant dense<0.000000e+00> : vector<512xf32>
    %224 = vector.multi_reduction <add>, %223, %cst_176 [0] : vector<8x512xf32> to vector<512xf32>
    %225 = vector.shape_cast %224 : vector<512xf32> to vector<1x512xf32>
    %c0_177 = arith.constant 0 : index
    %c0_178 = arith.constant 0 : index
    %226 = vector.load %arg19[%c0_177, %c0_178] : memref<512x128xf32, #tpu.memory_space<vmem>>, vector<512x128xf32>
    %cst_179 = arith.constant dense<0.000000e+00> : vector<1x128xf32>
    %227 = tpu.matmul %225, %226, %cst_179 {dimension_numbers = #tpu.dot_dimension_numbers<[1], [0], [0], [1], [0, 0, 1, 1], [], []>} : vector<1x512xf32>, vector<512x128xf32>, vector<1x128xf32> -> vector<1x128xf32>
    %cst_180 = arith.constant 3.125000e-02 : f32
    %228 = vector.broadcast %cst_180 : f32 to vector<1x128xf32>
    %229 = arith.mulf %227, %228 : vector<1x128xf32>
    %c0_181 = arith.constant 0 : index
    %c0_182 = arith.constant 0 : index
    %230 = vector.load %arg20[%c0_181, %c0_182] : memref<128x512xf32, #tpu.memory_space<vmem>>, vector<128x512xf32>
    %cst_183 = arith.constant dense<0.000000e+00> : vector<1x512xf32>
    %231 = tpu.matmul %229, %230, %cst_183 {dimension_numbers = #tpu.dot_dimension_numbers<[1], [0], [0], [1], [0, 0, 1, 1], [], []>} : vector<1x128xf32>, vector<128x512xf32>, vector<1x512xf32> -> vector<1x512xf32>
    %232 = vector.broadcast %231 : vector<1x512xf32> to vector<8x512xf32>
    %233 = arith.subf %223, %232 : vector<8x512xf32>
    %234 = arith.mulf %233, %233 : vector<8x512xf32>
    %cst_184 = arith.constant dense<0.000000e+00> : vector<512xf32>
    %235 = vector.multi_reduction <add>, %234, %cst_184 [0] : vector<8x512xf32> to vector<512xf32>
    %236 = vector.shape_cast %235 : vector<512xf32> to vector<1x512xf32>
    %c0_185 = arith.constant 0 : index
    %c0_186 = arith.constant 0 : index
    %237 = vector.load %arg19[%c0_185, %c0_186] : memref<512x128xf32, #tpu.memory_space<vmem>>, vector<512x128xf32>
    %cst_187 = arith.constant dense<0.000000e+00> : vector<1x128xf32>
    %238 = tpu.matmul %236, %237, %cst_187 {dimension_numbers = #tpu.dot_dimension_numbers<[1], [0], [0], [1], [0, 0, 1, 1], [], []>} : vector<1x512xf32>, vector<512x128xf32>, vector<1x128xf32> -> vector<1x128xf32>
    %cst_188 = arith.constant 3.125000e-02 : f32
    %239 = vector.broadcast %cst_188 : f32 to vector<1x128xf32>
    %240 = arith.mulf %238, %239 : vector<1x128xf32>
    %cst_189 = arith.constant 0.000000e+00 : f32
    %241 = vector.broadcast %cst_189 : f32 to vector<1x128xf32>
    %242 = arith.maximumf %240, %241 : vector<1x128xf32>
    %cst_190 = arith.constant 9.99999974E-6 : f32
    %243 = vector.broadcast %cst_190 : f32 to vector<1x128xf32>
    %244 = arith.addf %242, %243 : vector<1x128xf32>
    %245 = math.rsqrt %244 : vector<1x128xf32>
    %c0_191 = arith.constant 0 : index
    %c0_192 = arith.constant 0 : index
    %246 = vector.load %arg20[%c0_191, %c0_192] : memref<128x512xf32, #tpu.memory_space<vmem>>, vector<128x512xf32>
    %cst_193 = arith.constant dense<0.000000e+00> : vector<1x512xf32>
    %247 = tpu.matmul %245, %246, %cst_193 {dimension_numbers = #tpu.dot_dimension_numbers<[1], [0], [0], [1], [0, 0, 1, 1], [], []>} : vector<1x128xf32>, vector<128x512xf32>, vector<1x512xf32> -> vector<1x512xf32>
    %248 = vector.broadcast %247 : vector<1x512xf32> to vector<8x512xf32>
    %249 = arith.mulf %233, %248 : vector<8x512xf32>
    %c1_194 = arith.constant 1 : index
    %c0_195 = arith.constant 0 : index
    %250 = vector.load %arg21[%c1_194, %c0_195] : memref<3x512xf32, #tpu.memory_space<vmem>>, vector<1x512xf32>
    %251 = vector.broadcast %250 : vector<1x512xf32> to vector<8x512xf32>
    %252 = arith.mulf %249, %251 : vector<8x512xf32>
    %c2_196 = arith.constant 2 : index
    %c0_197 = arith.constant 0 : index
    %253 = vector.load %arg21[%c2_196, %c0_197] : memref<3x512xf32, #tpu.memory_space<vmem>>, vector<1x512xf32>
    %254 = vector.broadcast %253 : vector<1x512xf32> to vector<8x512xf32>
    %255 = arith.addf %252, %254 : vector<8x512xf32>
    %c0_198 = arith.constant 0 : index
    %c0_199 = arith.constant 0 : index
    %256 = vector.load %arg22[%c0_198, %c0_199] : memref<2x8xf32, #tpu.memory_space<vmem>>, vector<2x8xf32>
    %cst_200 = arith.constant dense<0.000000e+00> : vector<2x512xf32>
    %257 = tpu.matmul %256, %255, %cst_200 {dimension_numbers = #tpu.dot_dimension_numbers<[1], [0], [0], [1], [0, 0, 1, 1], [], []>} : vector<2x8xf32>, vector<8x512xf32>, vector<2x512xf32> -> vector<2x512xf32>
    %c0_201 = arith.constant 0 : index
    %c0_202 = arith.constant 0 : index
    %258 = vector.load %arg23[%c0_201, %c0_202] : memref<1x512xf32, #tpu.memory_space<vmem>>, vector<1x512xf32>
    %259 = vector.broadcast %258 : vector<1x512xf32> to vector<2x512xf32>
    %260 = arith.mulf %257, %259 : vector<2x512xf32>
    %cst_203 = arith.constant dense<0.000000e+00> : vector<2xf32>
    %261 = vector.multi_reduction <add>, %260, %cst_203 [1] : vector<2x512xf32> to vector<2xf32>
    %262 = vector.shape_cast %261 : vector<2xf32> to vector<2x1xf32>
    %c0_204 = arith.constant 0 : index
    %c0_205 = arith.constant 0 : index
    %263 = vector.load %arg24[%c0_204, %c0_205] : memref<1x1xf32, #tpu.memory_space<vmem>>, vector<1x1xf32>
    %264 = vector.broadcast %263 : vector<1x1xf32> to vector<2x1xf32>
    %265 = arith.addf %262, %264 : vector<2x1xf32>
    %cst_206 = arith.constant 0.000000e+00 : f32
    %266 = vector.broadcast %cst_206 : f32 to vector<2x1xf32>
    %267 = arith.subf %266, %265 : vector<2x1xf32>
    %268 = math.exp %267 : vector<2x1xf32>
    %cst_207 = arith.constant 1.000000e+00 : f32
    %269 = vector.broadcast %cst_207 : f32 to vector<2x1xf32>
    %270 = arith.addf %269, %268 : vector<2x1xf32>
    %cst_208 = arith.constant 1.000000e+00 : f32
    %271 = vector.broadcast %cst_208 : f32 to vector<2x1xf32>
    %272 = arith.divf %271, %270 : vector<2x1xf32>
    %c0_209 = arith.constant 0 : index
    %c0_210 = arith.constant 0 : index
    %273 = vector.load %arg25[%c0_209, %c0_210] : memref<2x1xf32, #tpu.memory_space<vmem>>, vector<2x1xf32>
    tpu.vector_store %arg25[%c0_209, %c0_210], %272 {strides = array<i32>} : memref<2x1xf32, #tpu.memory_space<vmem>>, vector<2x1xf32>,
    return
  }
  func.func @transform_0(%arg0: i32) -> (i32, i32) {
    %c0_i32 = arith.constant 0 : i32
    %c0_i32_0 = arith.constant 0 : i32
    %c0_i32_1 = arith.constant 0 : i32
    return %c0_i32, %c0_i32_0 : i32, i32
  }
  func.func @transform_1(%arg0: i32) -> (i32, i32, i32) {
    %c0_i32 = arith.constant 0 : i32
    %c0_i32_0 = arith.constant 0 : i32
    %c0_i32_1 = arith.constant 0 : i32
    %c0_i32_2 = arith.constant 0 : i32
    return %c0_i32, %c0_i32_0, %c0_i32_1 : i32, i32, i32
  }
  func.func @transform_2(%arg0: i32) -> (i32, i32, i32) {
    %c0_i32 = arith.constant 0 : i32
    %c0_i32_0 = arith.constant 0 : i32
    %c0_i32_1 = arith.constant 0 : i32
    %c0_i32_2 = arith.constant 0 : i32
    return %c0_i32, %c0_i32_0, %c0_i32_1 : i32, i32, i32
  }
  func.func @transform_3(%arg0: i32) -> (i32, i32) {
    %c0_i32 = arith.constant 0 : i32
    %c0_i32_0 = arith.constant 0 : i32
    %c0_i32_1 = arith.constant 0 : i32
    return %c0_i32, %c0_i32_0 : i32, i32
  }
  func.func @transform_4(%arg0: i32) -> (i32, i32) {
    %c0_i32 = arith.constant 0 : i32
    %c0_i32_0 = arith.constant 0 : i32
    %c0_i32_1 = arith.constant 0 : i32
    return %c0_i32, %c0_i32_0 : i32, i32
  }
  func.func @transform_5(%arg0: i32) -> (i32, i32) {
    %c0_i32 = arith.constant 0 : i32
    %c0_i32_0 = arith.constant 0 : i32
    %c0_i32_1 = arith.constant 0 : i32
    return %c0_i32, %c0_i32_0 : i32, i32
  }
  func.func @transform_6(%arg0: i32) -> (i32, i32, i32) {
    %c0_i32 = arith.constant 0 : i32
    %c0_i32_0 = arith.constant 0 : i32
    %c0_i32_1 = arith.constant 0 : i32
    %c0_i32_2 = arith.constant 0 : i32
    return %c0_i32, %c0_i32_0, %c0_i32_1 : i32, i32, i32
  }
  func.func @transform_7(%arg0: i32) -> (i32, i32, i32) {
    %c0_i32 = arith.constant 0 : i32
    %c0_i32_0 = arith.constant 0 : i32
    %c0_i32_1 = arith.constant 0 : i32
    %c0_i32_2 = arith.constant 0 : i32
    return %c0_i32, %c0_i32_0, %c0_i32_1 : i32, i32, i32
  }
  func.func @transform_8(%arg0: i32) -> (i32, i32) {
    %c0_i32 = arith.constant 0 : i32
    %c0_i32_0 = arith.constant 0 : i32
    %c0_i32_1 = arith.constant 0 : i32
    return %c0_i32, %c0_i32_0 : i32, i32
  }
  func.func @transform_9(%arg0: i32) -> (i32, i32) {
    %c0_i32 = arith.constant 0 : i32
    %c0_i32_0 = arith.constant 0 : i32
    %c0_i32_1 = arith.constant 0 : i32
    return %c0_i32, %c0_i32_0 : i32, i32
  }
  func.func @transform_10(%arg0: i32) -> (i32, i32) {
    %c0_i32 = arith.constant 0 : i32
    %c0_i32_0 = arith.constant 0 : i32
    %c0_i32_1 = arith.constant 0 : i32
    return %c0_i32, %c0_i32_0 : i32, i32
  }
  func.func @transform_11(%arg0: i32) -> (i32, i32, i32) {
    %c0_i32 = arith.constant 0 : i32
    %c0_i32_0 = arith.constant 0 : i32
    %c0_i32_1 = arith.constant 0 : i32
    %c0_i32_2 = arith.constant 0 : i32
    return %c0_i32, %c0_i32_0, %c0_i32_1 : i32, i32, i32
  }
  func.func @transform_12(%arg0: i32) -> (i32, i32, i32) {
    %c0_i32 = arith.constant 0 : i32
    %c0_i32_0 = arith.constant 0 : i32
    %c0_i32_1 = arith.constant 0 : i32
    %c0_i32_2 = arith.constant 0 : i32
    return %c0_i32, %c0_i32_0, %c0_i32_1 : i32, i32, i32
  }
  func.func @transform_13(%arg0: i32) -> (i32, i32) {
    %c0_i32 = arith.constant 0 : i32
    %c0_i32_0 = arith.constant 0 : i32
    %c0_i32_1 = arith.constant 0 : i32
    return %c0_i32, %c0_i32_0 : i32, i32
  }
  func.func @transform_14(%arg0: i32) -> (i32, i32) {
    %c0_i32 = arith.constant 0 : i32
    %c0_i32_0 = arith.constant 0 : i32
    %c0_i32_1 = arith.constant 0 : i32
    return %c0_i32, %c0_i32_0 : i32, i32
  }
  func.func @transform_15(%arg0: i32) -> (i32, i32) {
    %c0_i32 = arith.constant 0 : i32
    %c0_i32_0 = arith.constant 0 : i32
    %c0_i32_1 = arith.constant 0 : i32
    return %c0_i32, %c0_i32_0 : i32, i32
  }
  func.func @transform_16(%arg0: i32) -> (i32, i32, i32) {
    %c0_i32 = arith.constant 0 : i32
    %c0_i32_0 = arith.constant 0 : i32
    %c0_i32_1 = arith.constant 0 : i32
    %c0_i32_2 = arith.constant 0 : i32
    return %c0_i32, %c0_i32_0, %c0_i32_1 : i32, i32, i32
  }
  func.func @transform_17(%arg0: i32) -> (i32, i32, i32) {
    %c0_i32 = arith.constant 0 : i32
    %c0_i32_0 = arith.constant 0 : i32
    %c0_i32_1 = arith.constant 0 : i32
    %c0_i32_2 = arith.constant 0 : i32
    return %c0_i32, %c0_i32_0, %c0_i32_1 : i32, i32, i32
  }
  func.func @transform_18(%arg0: i32) -> (i32, i32) {
    %c0_i32 = arith.constant 0 : i32
    %c0_i32_0 = arith.constant 0 : i32
    %c0_i32_1 = arith.constant 0 : i32
    return %c0_i32, %c0_i32_0 : i32, i32
  }
  func.func @transform_19(%arg0: i32) -> (i32, i32) {
    %c0_i32 = arith.constant 0 : i32
    %c0_i32_0 = arith.constant 0 : i32
    %c0_i32_1 = arith.constant 0 : i32
    return %c0_i32, %c0_i32_0 : i32, i32
  }
  func.func @transform_20(%arg0: i32) -> (i32, i32) {
    %c0_i32 = arith.constant 0 : i32
    %c0_i32_0 = arith.constant 0 : i32
    %c0_i32_1 = arith.constant 0 : i32
    return %c0_i32, %c0_i32_0 : i32, i32
  }
  func.func @transform_21(%arg0: i32) -> (i32, i32) {
    %c0_i32 = arith.constant 0 : i32
    %c0_i32_0 = arith.constant 0 : i32
    %c0_i32_1 = arith.constant 0 : i32
    return %c0_i32, %c0_i32_0 : i32, i32
  }
  func.func @transform_22(%arg0: i32) -> (i32, i32) {
    %c0_i32 = arith.constant 0 : i32
    %c0_i32_0 = arith.constant 0 : i32
    %c0_i32_1 = arith.constant 0 : i32
    return %c0_i32, %c0_i32_0 : i32, i32
  }
  func.func @transform_23(%arg0: i32) -> (i32, i32) {
    %c0_i32 = arith.constant 0 : i32
    %c0_i32_0 = arith.constant 0 : i32
    %c0_i32_1 = arith.constant 0 : i32
    return %c0_i32, %c0_i32_0 : i32, i32
  }
  func.func @transform_24(%arg0: i32) -> (i32, i32) {
    %c0_i32 = arith.constant 0 : i32
    %c0_i32_0 = arith.constant 0 : i32
    %c0_i32_1 = arith.constant 0 : i32
    return %c0_i32, %c0_i32_0 : i32, i32
  }
}

</mosaic_0001>

<bundles_post_ra>
// kernel: nca_evaluator_forward.1
= control target key start
LH: loop header
LB: loop body
LE: loop exit
PB: predicated region body
PF: predicated region fallthrough
CT: control target
= control target key end

     0   :  { %s25552_s0 = inlined_call_operand.vmem [shape: bf16[128,192], index: 0, kind: input, shape index: {}]   ;;  %s25553_s1 = inlined_call_operand.hbm [shape: bf16[3,64,128], index: 1, kind: input, shape index: {}]   ;;  %s25554_s2 = inlined_call_operand.hbm [shape: bf16[3,192,512], index: 2, kind: input, shape index: {}]   ;;  %s25555_s3 = inlined_call_operand.vmem [shape: f32[512,16], index: 3, kind: input, shape index: {}]   ;;  %s25556_s4 = inlined_call_operand.hbm [shape: f32[16,512], index: 4, kind: input, shape index: {}]   ;;  %s25557_s5 = inlined_call_operand.hbm [shape: f32[3,512], index: 5, kind: input, shape index: {}]   ;;  %s25558_s6 = inlined_call_operand.vmem [shape: bf16[3,32,64], index: 6, kind: input, shape index: {}]   ;;  %s25559_s7 = inlined_call_operand.vmem [shape: bf16[3,512,512], index: 7, kind: input, shape index: {}]   ;;  %s25560_s8 = inlined_call_operand.vmem [shape: f32[512,32], index: 8, kind: input, shape index: {}]   ;;  %s25561_s9 = inlined_call_operand.vmem [shape: f32[32,512], index: 9, kind: input, shape index: {}]   ;;  %s25562_s10 = inlined_call_operand.hbm [shape: f32[3,512], index: 10, kind: input, shape index: {}]   ;;  %s25563_s11 = inlined_call_operand.hbm [shape: bf16[3,16,32], index: 11, kind: input, shape index: {}]   ;;  %s25564_s12 = inlined_call_operand.hbm [shape: bf16[3,512,512], index: 12, kind: input, shape index: {}]   ;;  %s25565_s13 = inlined_call_operand.vmem [shape: f32[512,64], index: 13, kind: input, shape index: {}]   ;;  %s25566_s14 = inlined_call_operand.vmem [shape: f32[64,512], index: 14, kind: input, shape index: {}]   ;;  %s25567_s15 = inlined_call_operand.hbm [shape: f32[3,512], index: 15, kind: input, shape index: {}]   ;;  %s25568_s16 = inlined_call_operand.hbm [shape: bf16[3,8,16], index: 16, kind: input, shape index: {}]   ;;  %s25569_s17 = inlined_call_operand.hbm [shape: bf16[3,512,512], index: 17, kind: input, shape index: {}]   ;;  %s25570_s18 = inlined_call_operand.hbm [shape: f32[512,128], index: 18, kind: input, shape index: {}]   ;;  %s25571_s19 = inlined_call_operand.hbm [shape: f32[128,512], index: 19, kind: input, shape index: {}]   ;;  %s25572_s20 = inlined_call_operand.vmem [shape: f32[3,512], index: 20, kind: input, shape index: {}]   ;;  %s25573_s21 = inlined_call_operand.vmem [shape: f32[2,8], index: 21, kind: input, shape index: {}]   ;;  %s25574_s22 = inlined_call_operand.vmem [shape: f32[1,512], index: 22, kind: input, shape index: {}]   ;;  %s25575_s23 = inlined_call_operand.<no memory space> [shape: f32[1,1], index: 23, kind: input, shape index: {}]   ;;  %s25576_s24 = inlined_call_operand.vmem [shape: f32[2,1], index: 24, kind: output, shape index: {}]  }
   0x1   :  { %25667 = sst [smem:[#allocation57_spill]] %s25552_s0  ;;  %v29_v0 = vstv %s25575_s23 }
   0x2   :  { %25668 = sst [smem:[#allocation58_spill]] %s25553_s1  ;;  %30 = vst [vmem:[#allocation2] sm:$0x1] %v29_v0 }
   0x3   :  { %25669 = sst [smem:[#allocation59_spill]] %s25554_s2 }
   0x4   :  { %25670 = sst [smem:[#allocation60_spill]] %s25555_s3 }
   0x5   :  { %25671 = sst [smem:[#allocation61_spill]] %s25556_s4 }
   0x6   :  { %25672 = sst [smem:[#allocation62_spill]] %s25557_s5 }
   0x7   :  { %25673 = sst [smem:[#allocation63_spill]] %s25558_s6 }
   0x8   :  { %25674 = sst [smem:[#allocation64_spill]] %s25559_s7 }
   0x9   :  { %25675 = sst [smem:[#allocation65_spill]] %s25560_s8 }
   0xa   :  { %25676 = sst [smem:[#allocation66_spill]] %s25576_s24 }
   0xb   :  { %31 = vsyncpa [#allocation4], 0 }
   0xc   :  { %32 = vsyncpa [#allocation6], 0 }
   0xd   :  { %33 = vsyncpa [#allocation9], 0 }
   0xe   :  { %34 = vsyncpa [#allocation12], 0 }
   0xf   :  { %35 = vsyncpa [#allocation15], 0 }
  0x10   :  { %36 = vsyncpa [#allocation18], 0 }
  0x11   :  { %37 = vsyncpa [#allocation21], 0  ;;  %s21220_s27 = smov [#allocation5]   ;;  %s25677_s29 = sld [smem:[#allocation59_spill]] }
  0x12   :  { %s57_s28 = sshll.u32 %s21220_s27, 4  ;;  %s58_s28 = int_to_ptr.vmem [resolvable:$true] %s57_s28 }
  0x17   :  { %s20942_s0 = scalar_lea.hbm %s25677_s29, 18432 }
  0x18   :  { %p20943_p0 = scmp.ne.s32.totalorder %s25677_s29, %s20942_s0  ;;  %p20946_p1 = scmp.lt.u32.totalorder %s20942_s0, %s25677_s29 }
  0x1a   :  { %p20948_p2 = pnand %p20946_p1, %p20943_p0 }
  0x1c   :  { %20951 = shalt.err (!%p20948_p2)
}
  0x1d   :  { %s20952_s25 = scalar_lea.vmem %s58_s28, 18432  ;;  %p20957_p4 = scmp.lt.s32.totalorder %s58_s28, %s58_s28 }
  0x1e   :  { %p20953_p3 = scmp.ne.s32.totalorder %s58_s28, %s20952_s25  ;;  %p20958_p5 = scmp.lt.s32.totalorder %s20952_s25, %s20952_s25 }
  0x20   :  { %p20959_p6 = por %p20958_p5, %p20957_p4 }
  0x22   :  { %p20960_p7 = pnand %p20959_p6, %p20953_p3 }
  0x24   :  { %20963 = shalt.err (!%p20960_p7)
}
  0x25   :  { %s21221_s8 = smov 256   ;;  %s21222_s4 = smov 16  }
  0x26   :  { %63 = dma.hbm_to_vmem [thread:$0]  %s25677_s29, 18432, %s58_s28, [#allocation6], %s21221_s8, %s21221_s8, %s21222_s4  }
  0x27   :  { %s21223_s26 = smov [#allocation8]   ;;  %s25678_s0 = sld [smem:[#allocation62_spill]] }
  0x28   :  { %s84_s27 = sshll.u32 %s21223_s26, 4  ;;  %s85_s27 = int_to_ptr.vmem [resolvable:$true] %s84_s27 }
  0x2d   :  { %s20964_s7 = scalar_lea.hbm %s25678_s0, 256 }
  0x2e   :  { %p20965_p8 = scmp.ne.s32.totalorder %s25678_s0, %s20964_s7  ;;  %p20968_p9 = scmp.lt.u32.totalorder %s20964_s7, %s25678_s0 }
  0x30   :  { %p20970_p10 = pnand %p20968_p9, %p20965_p8 }
  0x32   :  { %20973 = shalt.err (!%p20970_p10)
}
  0x33   :  { %s20974_s24 = scalar_lea.vmem %s85_s27, 256  ;;  %p20979_p12 = scmp.lt.s32.totalorder %s85_s27, %s85_s27 }
  0x34   :  { %p20975_p11 = scmp.ne.s32.totalorder %s85_s27, %s20974_s24  ;;  %p20980_p13 = scmp.lt.s32.totalorder %s20974_s24, %s20974_s24 }
  0x36   :  { %p20981_p0 = por %p20980_p13, %p20979_p12 }
  0x38   :  { %p20982_p1 = pnand %p20981_p0, %p20975_p11 }
  0x3a   :  { %20985 = shalt.err (!%p20982_p1)
}
  0x3b   :  { %87 = dma.hbm_to_vmem [thread:$0]  %s25678_s0, 256, %s85_s27, [#allocation9]  }
  0x3c   :  { %s21224_s1 = smov [#allocation11]   ;;  %s21225_s26 = smov [#allocation14]  }
  0x3d   :  { %s111_s5 = sshll.u32 %s21224_s1, 4  ;;  %s140_s6 = sshll.u32 %s21225_s26, 4  ;;  %s112_s5 = int_to_ptr.vmem [resolvable:$true] %s111_s5  ;;  %s141_s6 = int_to_ptr.vmem [resolvable:$true] %s140_s6 }
  0x3e   :  { %s20986_s30 = scalar_lea.hbm %s25563_s11, 384 }
  0x3f   :  { %p20987_p2 = scmp.ne.s32.totalorder %s25563_s11, %s20986_s30  ;;  %p20990_p3 = scmp.lt.u32.totalorder %s20986_s30, %s25563_s11 }
  0x41   :  { %p20992_p4 = pnand %p20990_p3, %p20987_p2 }
  0x43   :  { %20995 = shalt.err (!%p20992_p4)
}
  0x44   :  { %s20996_s27 = scalar_lea.vmem %s112_s5, 384  ;;  %p21001_p6 = scmp.lt.s32.totalorder %s112_s5, %s112_s5 }
  0x45   :  { %p20997_p5 = scmp.ne.s32.totalorder %s112_s5, %s20996_s27  ;;  %p21002_p7 = scmp.lt.s32.totalorder %s20996_s27, %s20996_s27 }
  0x47   :  { %p21003_p8 = por %p21002_p7, %p21001_p6 }
  0x49   :  { %p21004_p9 = pnand %p21003_p8, %p20997_p5 }
  0x4b   :  { %21007 = shalt.err (!%p21004_p9)
}
  0x4c   :  { %s25586_s0 = smov 64   ;;  %s21227_s28 = smov 4  }
  0x4d   :  { %117 = dma.hbm_to_vmem [thread:$0]  %s25563_s11, 384, %s112_s5, [#allocation12], %s25586_s0, %s25586_s0, %s21227_s28  }
  0x4e   :  { %s21008_s7 = scalar_lea.hbm %s25567_s15, 256 }
  0x4f   :  { %p21009_p10 = scmp.ne.s32.totalorder %s25567_s15, %s21008_s7  ;;  %p21012_p11 = scmp.lt.u32.totalorder %s21008_s7, %s25567_s15 }
  0x51   :  { %p21014_p12 = pnand %p21012_p11, %p21009_p10 }
  0x53   :  { %21017 = shalt.err (!%p21014_p12)
}
  0x54   :  { %s21018_s25 = scalar_lea.vmem %s141_s6, 256  ;;  %p21023_p0 = scmp.lt.s32.totalorder %s141_s6, %s141_s6 }
  0x55   :  { %p21019_p13 = scmp.ne.s32.totalorder %s141_s6, %s21018_s25  ;;  %p21024_p1 = scmp.lt.s32.totalorder %s21018_s25, %s21018_s25 }
  0x57   :  { %p21025_p2 = por %p21024_p1, %p21023_p0 }
  0x59   :  { %p21026_p3 = pnand %p21025_p2, %p21019_p13 }
  0x5b   :  { %21029 = shalt.err (!%p21026_p3)
}
  0x5c   :  { %143 = dma.hbm_to_vmem [thread:$0]  %s25567_s15, 256, %s141_s6, [#allocation15]  }
  0x5d   :  { %s21228_s27 = smov [#allocation17]   ;;  %s21229_s1 = smov [#allocation3]  }
  0x5e   :  { %s161_s29 = sshll.u32 %s21228_s27, 4  ;;  %s45_s26 = sshll.u32 %s21229_s1, 4  ;;  %s162_s29 = int_to_ptr.vmem [resolvable:$true] %s161_s29  ;;  %s21424_s26 = int_to_ptr.vmem [resolvable:$true] %s45_s26 }
  0x5f   :  { %s21030_s30 = scalar_lea.hbm %s25569_s17, 49152 }
  0x60   :  { %p21031_p4 = scmp.ne.s32.totalorder %s25569_s17, %s21030_s30  ;;  %p21034_p5 = scmp.lt.u32.totalorder %s21030_s30, %s25569_s17 }
  0x62   :  { %p21036_p6 = pnand %p21034_p5, %p21031_p4 }
  0x64   :  { %21039 = shalt.err (!%p21036_p6)
}
  0x65   :  { %s21040_s15 = scalar_lea.vmem %s162_s29, 49152  ;;  %p21045_p8 = scmp.lt.s32.totalorder %s162_s29, %s162_s29 }
  0x66   :  { %p21041_p7 = scmp.ne.s32.totalorder %s162_s29, %s21040_s15  ;;  %p21046_p9 = scmp.lt.s32.totalorder %s21040_s15, %s21040_s15 }
  0x68   :  { %p21047_p10 = por %p21046_p9, %p21045_p8 }
  0x6a   :  { %p21048_p11 = pnand %p21047_p10, %p21041_p7 }
  0x6c   :  { %21051 = shalt.err (!%p21048_p11)
}
  0x6d   :  { %167 = dma.hbm_to_vmem [thread:$0]  %s25569_s17, 49152, %s162_s29, [#allocation18], %s21221_s8, %s21221_s8, %s21222_s4  }
  0x6e   :  { %s25679_s1 = sld [smem:[#allocation58_spill]] }
  0x74   :  { %s21052_s2 = scalar_lea.hbm %s25679_s1, 1536 }
  0x75   :  { %p21053_p12 = scmp.ne.s32.totalorder %s25679_s1, %s21052_s2  ;;  %p21056_p13 = scmp.lt.u32.totalorder %s21052_s2, %s25679_s1 }
  0x77   :  { %p21058_p0 = pnand %p21056_p13, %p21053_p12 }
  0x79   :  { %21061 = shalt.err (!%p21058_p0)
}
  0x7a   :  { %s21062_s24 = scalar_lea.vmem %s21424_s26, 1536  ;;  %p21067_p2 = scmp.lt.s32.totalorder %s21424_s26, %s21424_s26 }
  0x7b   :  { %p21063_p1 = scmp.ne.s32.totalorder %s21424_s26, %s21062_s24  ;;  %p21068_p3 = scmp.lt.s32.totalorder %s21062_s24, %s21062_s24 }
  0x7d   :  { %p21069_p4 = por %p21068_p3, %p21067_p2 }
  0x7f   :  { %p21070_p5 = pnand %p21069_p4, %p21063_p1 }
  0x81   :  { %21073 = shalt.err (!%p21070_p5)
}
  0x82   :  { %51 = dma.hbm_to_vmem [thread:$0]  %s25679_s1, 1536, %s21424_s26, [#allocation4], %s25586_s0, %s25586_s0, %s21227_s28  }
  0x83   :  { %s21230_s25 = smov [#allocation7]   ;;  %s25680_s5 = sld [smem:[#allocation61_spill]] }
  0x84   :  { %s71_s15 = sshll.u32 %s21230_s25, 4  ;;  %s72_s15 = int_to_ptr.vmem [resolvable:$true] %s71_s15 }
  0x89   :  { %s21074_s27 = scalar_lea.hbm %s25680_s5, 1024 }
  0x8a   :  { %p21075_p6 = scmp.ne.s32.totalorder %s25680_s5, %s21074_s27  ;;  %p21078_p7 = scmp.lt.u32.totalorder %s21074_s27, %s25680_s5 }
  0x8c   :  { %p21080_p8 = pnand %p21078_p7, %p21075_p6 }
  0x8e   :  { %21083 = shalt.err (!%p21080_p8)
}
  0x8f   :  { %s21084_s3 = scalar_lea.vmem %s72_s15, 1024  ;;  %p21089_p10 = scmp.lt.s32.totalorder %s72_s15, %s72_s15 }
  0x90   :  { %p21085_p9 = scmp.ne.s32.totalorder %s72_s15, %s21084_s3  ;;  %p21090_p11 = scmp.lt.s32.totalorder %s21084_s3, %s21084_s3 }
  0x92   :  { %p21091_p12 = por %p21090_p11, %p21089_p10 }
  0x94   :  { %p21092_p13 = pnand %p21091_p12, %p21085_p9 }
  0x96   :  { %21095 = shalt.err (!%p21092_p13)
}
  0x97   :  { %s21231_s26 = smov 512   ;;  %s21232_s1 = smov 32  }
  0x98   :  { %77 = dma.hbm_to_vmem [thread:$0]  %s25680_s5, 1024, %s72_s15, [#allocation6], %s21231_s26, %s21231_s26, %s21232_s1  }
  0x99   :  { %s21233_s29 = smov [#allocation10]   ;;  %s21234_s6 = smov [#allocation13]  }
  0x9a   :  { %s102_s25 = sshll.u32 %s21233_s29, 4  ;;  %s123_s11 = sshll.u32 %s21234_s6, 4  ;;  %s103_s25 = int_to_ptr.vmem [resolvable:$true] %s102_s25  ;;  %s124_s11 = int_to_ptr.vmem [resolvable:$true] %s123_s11 }
  0x9b   :  { %s21096_s7 = scalar_lea.hbm %s25562_s10, 256 }
  0x9c   :  { %p21097_p0 = scmp.ne.s32.totalorder %s25562_s10, %s21096_s7  ;;  %p21100_p1 = scmp.lt.u32.totalorder %s21096_s7, %s25562_s10 }
  0x9e   :  { %p21102_p2 = pnand %p21100_p1, %p21097_p0 }
  0xa0   :  { %21105 = shalt.err (!%p21102_p2)
}
  0xa1   :  { %s21106_s15 = scalar_lea.vmem %s103_s25, 256  ;;  %p21111_p4 = scmp.lt.s32.totalorder %s103_s25, %s103_s25 }
  0xa2   :  { %p21107_p3 = scmp.ne.s32.totalorder %s103_s25, %s21106_s15  ;;  %p21112_p5 = scmp.lt.s32.totalorder %s21106_s15, %s21106_s15 }
  0xa4   :  { %p21113_p6 = por %p21112_p5, %p21111_p4 }
  0xa6   :  { %p21114_p7 = pnand %p21113_p6, %p21107_p3 }
  0xa8   :  { %21117 = shalt.err (!%p21114_p7)
}
  0xa9   :  { %105 = dma.hbm_to_vmem [thread:$0]  %s25562_s10, 256, %s103_s25, [#allocation9]  }
  0xaa   :  { %s21118_s6 = scalar_lea.hbm %s25564_s12, 49152 }
  0xab   :  { %p21119_p8 = scmp.ne.s32.totalorder %s25564_s12, %s21118_s6  ;;  %p21122_p9 = scmp.lt.u32.totalorder %s21118_s6, %s25564_s12 }
  0xad   :  { %p21124_p10 = pnand %p21122_p9, %p21119_p8 }
  0xaf   :  { %21127 = shalt.err (!%p21124_p10)
}
  0xb0   :  { %s21128_s30 = scalar_lea.vmem %s124_s11, 49152  ;;  %p21133_p12 = scmp.lt.s32.totalorder %s124_s11, %s124_s11 }
  0xb1   :  { %p21129_p11 = scmp.ne.s32.totalorder %s124_s11, %s21128_s30  ;;  %p21134_p13 = scmp.lt.s32.totalorder %s21128_s30, %s21128_s30 }
  0xb3   :  { %p21135_p0 = por %p21134_p13, %p21133_p12 }
  0xb5   :  { %p21136_p1 = pnand %p21135_p0, %p21129_p11 }
  0xb7   :  { %21139 = shalt.err (!%p21136_p1)
}
  0xb8   :  { %129 = dma.hbm_to_vmem [thread:$0]  %s25564_s12, 49152, %s124_s11, [#allocation12], %s21221_s8, %s21221_s8, %s21222_s4  }
  0xb9   :  { %s21235_s23 = smov [#allocation16]   ;;  %s21236_s15 = smov [#allocation19]  }
  0xba   :  { %s149_s3 = sshll.u32 %s21235_s23, 4  ;;  %s173_s5 = sshll.u32 %s21236_s15, 4  ;;  %s150_s3 = int_to_ptr.vmem [resolvable:$true] %s149_s3  ;;  %s174_s5 = int_to_ptr.vmem [resolvable:$true] %s173_s5 }
  0xbb   :  { %s21140_s29 = scalar_lea.hbm %s25568_s16, 192 }
  0xbc   :  { %p21141_p2 = scmp.ne.s32.totalorder %s25568_s16, %s21140_s29  ;;  %p21144_p3 = scmp.lt.u32.totalorder %s21140_s29, %s25568_s16 }
  0xbe   :  { %p21146_p4 = pnand %p21144_p3, %p21141_p2 }
  0xc0   :  { %21149 = shalt.err (!%p21146_p4)
}
  0xc1   :  { %s21150_s12 = scalar_lea.vmem %s150_s3, 192  ;;  %p21155_p6 = scmp.lt.s32.totalorder %s150_s3, %s150_s3 }
  0xc2   :  { %p21151_p5 = scmp.ne.s32.totalorder %s150_s3, %s21150_s12  ;;  %p21156_p7 = scmp.lt.s32.totalorder %s21150_s12, %s21150_s12 }
  0xc4   :  { %p21157_p8 = por %p21156_p7, %p21155_p6 }
  0xc6   :  { %p21158_p9 = pnand %p21157_p8, %p21151_p5 }
  0xc8   :  { %21161 = shalt.err (!%p21158_p9)
}
  0xc9   :  { %s25681_s8 = smov 64   ;;  %s21162_s10 = scalar_lea.hbm %s25570_s18, 8192 }
  0xca   :  { %155 = dma.hbm_to_vmem [thread:$0]  %s25568_s16, 192, %s150_s3, [#allocation15], %s25681_s8, %s25681_s8, %s21227_s28  }
  0xcb   :  { %p21163_p10 = scmp.ne.s32.totalorder %s25570_s18, %s21162_s10  ;;  %p21166_p11 = scmp.lt.u32.totalorder %s21162_s10, %s25570_s18 }
  0xcd   :  { %p21168_p12 = pnand %p21166_p11, %p21163_p10 }
  0xcf   :  { %21171 = shalt.err (!%p21168_p12)
}
  0xd0   :  { %s21172_s17 = scalar_lea.vmem %s174_s5, 8192  ;;  %p21177_p0 = scmp.lt.s32.totalorder %s174_s5, %s174_s5 }
  0xd1   :  { %p21173_p13 = scmp.ne.s32.totalorder %s174_s5, %s21172_s17  ;;  %p21178_p1 = scmp.lt.s32.totalorder %s21172_s17, %s21172_s17 }
  0xd3   :  { %p21179_p2 = por %p21178_p1, %p21177_p0 }
  0xd5   :  { %p21180_p3 = pnand %p21179_p2, %p21173_p13 }
  0xd7   :  { %21183 = shalt.err (!%p21180_p3)
}
  0xd8   :  { %s21237_s16 = smov 128   ;;  %s21238_s28 = smov 8  }
  0xd9   :  { %179 = dma.hbm_to_vmem [thread:$0]  %s25570_s18, 8192, %s174_s5, [#allocation18], %s21237_s16, %s21237_s16, %s21238_s28  }
  0xda   :  { %s21239_s6 = smov [#allocation20]   ;;  %s21184_s12 = scalar_lea.hbm %s25571_s19, 8192 }
  0xdb   :  { %s185_s0 = sshll.u32 %s21239_s6, 4  ;;  %p21185_p4 = scmp.ne.s32.totalorder %s25571_s19, %s21184_s12  ;;  %s186_s0 = int_to_ptr.vmem [resolvable:$true] %s185_s0 }
  0xdc   :  { %p21188_p5 = scmp.lt.u32.totalorder %s21184_s12, %s25571_s19 }
  0xde   :  { %p21190_p6 = pnand %p21188_p5, %p21185_p4 }
  0xe0   :  { %21193 = shalt.err (!%p21190_p6)
}
  0xe1   :  { %s21194_s30 = scalar_lea.vmem %s186_s0, 8192  ;;  %p21199_p8 = scmp.lt.s32.totalorder %s186_s0, %s186_s0 }
  0xe2   :  { %p21195_p7 = scmp.ne.s32.totalorder %s186_s0, %s21194_s30  ;;  %p21200_p9 = scmp.lt.s32.totalorder %s21194_s30, %s21194_s30 }
  0xe4   :  { %p21201_p10 = por %p21200_p9, %p21199_p8 }
  0xe6   :  { %p21202_p11 = pnand %p21201_p10, %p21195_p7 }
  0xe8   :  { %21205 = shalt.err (!%p21202_p11)
}
  0xe9   :  { %191 = dma.hbm_to_vmem [thread:$0]  %s25571_s19, 8192, %s186_s0, [#allocation21], %s21231_s26, %s21231_s26, %s21232_s1  }
  0xea   :  { %21206 = dma.done.wait [#allocation4], 1536  }
  0xeb   :  { %21207 = vsyncadd [#allocation4], 4294965760 }
  0xec   :  { %21208 = dma.done.wait [#allocation6], 19456  }
  0xed   :  { %21209 = vsyncadd [#allocation6], 4294947840 }
  0xee   :  { %21210 = dma.done.wait [#allocation9], 512  }
  0xef   :  { %21211 = vsyncadd [#allocation9], 4294966784 }
  0xf0   :  { %21212 = dma.done.wait [#allocation12], 49536  }
  0xf1   :  { %21213 = vsyncadd [#allocation12], 4294917760 }
  0xf2   :  { %21214 = dma.done.wait [#allocation15], 448  }
  0xf3   :  { %21215 = vsyncadd [#allocation15], 4294966848 }
  0xf4   :  { %21216 = dma.done.wait [#allocation18], 57344  }
  0xf5   :  { %21217 = vsyncadd [#allocation18], 4294909952 }
  0xf6   :  { %21218 = dma.done.wait [#allocation21], 8192  }
  0xf7   :  { %21219 = vsyncadd [#allocation21], 4294959104  ;;  %v25587_v1 = vmov 0   ;;  %s25682_s1 = sld [smem:[#allocation57_spill]]  ;;  %v18959_v18 = vld [vmem:[#allocation5 + $0x184] ss:$16 sps:$4 sm:$0xff]  }
  0xf8   :  { %559 = vmatprep.mubr.bf16.mxu1 %v25587_v1  ;;  %397 = vmatprep.mubr.bf16.mxu0 %v25587_v1  ;;  %v18962_v19 = vld [vmem:[#allocation5 + $0x18c] ss:$16 sps:$4 sm:$0xff]   ;;  %v18949_v20 = vld [vmem:[#allocation3 + $0x20] sm:$0xff]   ;;  %v18960_v23 = vld [vmem:[#allocation5 + $0x188] ss:$16 sps:$4 sm:$0xff]   ;;  %vm897_vm0 = vcmask 523264  }
  0xf9   :  { %v18953_v21 = vld [vmem:[#allocation3] sm:$0xff]   ;;  %v18968_v25 = vld [vmem:[#allocation5 + $0x1ac] ss:$16 sps:$4 sm:$0xff]   ;;  %v18966_v27 = vld [vmem:[#allocation5 + $0x1a8] ss:$16 sps:$4 sm:$0xff]   ;;  %s25683_s8 = sld [smem:[#allocation60_spill]] }
  0xfa   :  { %v18957_v22 = vld [vmem:[#allocation5 + $0x180] ss:$16 sps:$4 sm:$0xff]   ;;  %v18965_v24 = vld [vmem:[#allocation5 + $0x1a4] ss:$16 sps:$4 sm:$0xff]   ;;  %v18974_v29 = vld [vmem:[#allocation5 + $0x1cc] ss:$16 sps:$4 sm:$0xff]  }
  0xfb   :  { %v18963_v26 = vld [vmem:[#allocation5 + $0x1a0] ss:$16 sps:$4 sm:$0xff]   ;;  %v18971_v28 = vld [vmem:[#allocation5 + $0x1c4] ss:$16 sps:$4 sm:$0xff]   ;;  %v18950_v30 = vld [vmem:[#allocation3 + $0x28] sm:$0xff]   ;;  %s25741_s26 = sld [smem:[#allocation63_spill]] }
  0xfc   :  { %v18954_v31 = vld [vmem:[#allocation3 + $0x8] sm:$0xff]   ;;  %v18969_v32 = vld [vmem:[#allocation5 + $0x1c0] ss:$16 sps:$4 sm:$0xff]   ;;  %v18977_v34 = vld [vmem:[#allocation5 + $0x1e4] ss:$16 sps:$4 sm:$0xff]   ;;  %s25742_s24 = sld [smem:[#allocation64_spill]] }
  0xfd   :  { %v18925_v2 = vld [vmem:[%s25682_s1 + $0x4] ss:$8 sps:$4 sm:$0xff]   ;;  %v18927_v3 = vld [vmem:[%s25682_s1] ss:$8 sps:$4 sm:$0xff]   ;;  %v18928_v4 = vld [vmem:[%s25682_s1 + $0x14] ss:$8 sps:$4 sm:$0xff]  }
  0xfe   :  { %527 = vmatprep.subr.bf16.mxu1 %v18925_v2  ;;  %365 = vmatprep.subr.bf16.mxu0 %v18925_v2  ;;  %v18930_v5 = vld [vmem:[%s25682_s1 + $0x10] ss:$8 sps:$4 sm:$0xff]   ;;  %v18931_v6 = vld [vmem:[%s25682_s1 + $0x24] ss:$8 sps:$4 sm:$0xff]   ;;  %v18933_v7 = vld [vmem:[%s25682_s1 + $0x20] ss:$8 sps:$4 sm:$0xff]  }
  0xff   :  { %528 = vmatpush1.bf16.msra.mxu1 %v18927_v3  ;;  %366 = vmatpush1.bf16.msra.mxu0 %v18927_v3  ;;  %v18934_v8 = vld [vmem:[%s25682_s1 + $0x34] ss:$8 sps:$4 sm:$0xff]   ;;  %v18936_v9 = vld [vmem:[%s25682_s1 + $0x30] ss:$8 sps:$4 sm:$0xff]   ;;  %v18937_v10 = vld [vmem:[%s25682_s1 + $0x44] ss:$8 sps:$4 sm:$0xff]  }
 0x100   :  { %529 = vmatprep.subr.bf16.mxu1 %v18928_v4  ;;  %367 = vmatprep.subr.bf16.mxu0 %v18928_v4  ;;  %v18939_v11 = vld [vmem:[%s25682_s1 + $0x40] ss:$8 sps:$4 sm:$0xff]   ;;  %v18940_v12 = vld [vmem:[%s25682_s1 + $0x54] ss:$8 sps:$4 sm:$0xff]   ;;  %v18942_v13 = vld [vmem:[%s25682_s1 + $0x50] ss:$8 sps:$4 sm:$0xff]  }
 0x101   :  { %v18943_v14 = vld [vmem:[%s25682_s1 + $0x64] ss:$8 sps:$4 sm:$0xff]   ;;  %v18945_v15 = vld [vmem:[%s25682_s1 + $0x60] ss:$8 sps:$4 sm:$0xff]   ;;  %v18946_v16 = vld [vmem:[%s25682_s1 + $0x74] ss:$8 sps:$4 sm:$0xff]  }
 0x102   :  { %v18948_v17 = vld [vmem:[%s25682_s1 + $0x70] ss:$8 sps:$4 sm:$0xff]   ;;  %s25743_s27 = sld [smem:[#allocation65_spill]] }
 0x103   :  { %530 = vmatpush1.bf16.msra.mxu1 %v18930_v5  ;;  %368 = vmatpush1.bf16.msra.mxu0 %v18930_v5  ;;  %v18972_v33 = vld [vmem:[#allocation5 + $0x1c8] ss:$16 sps:$4 sm:$0xff]   ;;  %v18980_v35 = vld [vmem:[#allocation5 + $0x1ec] ss:$16 sps:$4 sm:$0xff]   ;;  %v18975_v36 = vld [vmem:[#allocation5 + $0x1e0] ss:$16 sps:$4 sm:$0xff]  }
 0x104   :  { %531 = vmatprep.subr.bf16.mxu1 %v18931_v6  ;;  %369 = vmatprep.subr.bf16.mxu0 %v18931_v6  ;;  %v18978_v37 = vld [vmem:[#allocation5 + $0x1e8] ss:$16 sps:$4 sm:$0xff]   ;;  %v18951_v38 = vld [vmem:[#allocation3 + $0x30] sm:$0xff]   ;;  %v18986_v41 = vld [vmem:[#allocation5 + $0x20c] ss:$16 sps:$4 sm:$0xff]  }
 0x105   :  { %v18955_v39 = vld [vmem:[#allocation3 + $0x10] sm:$0xff]   ;;  %v18984_v43 = vld [vmem:[#allocation5 + $0x208] ss:$16 sps:$4 sm:$0xff]   ;;  %v18992_v45 = vld [vmem:[#allocation5 + $0x22c] ss:$16 sps:$4 sm:$0xff]  }
 0x106   :  { %v18983_v40 = vld [vmem:[#allocation5 + $0x204] ss:$16 sps:$4 sm:$0xff]   ;;  %v18981_v42 = vld [vmem:[#allocation5 + $0x200] ss:$16 sps:$4 sm:$0xff]   ;;  %v18990_v47 = vld [vmem:[#allocation5 + $0x228] ss:$16 sps:$4 sm:$0xff]  }
 0x107   :  { %532 = vmatpush1.bf16.msra.mxu1 %v18933_v7  ;;  %370 = vmatpush1.bf16.msra.mxu0 %v18933_v7  ;;  %v18989_v44 = vld [vmem:[#allocation5 + $0x224] ss:$16 sps:$4 sm:$0xff]   ;;  %v18987_v46 = vld [vmem:[#allocation5 + $0x220] ss:$16 sps:$4 sm:$0xff]   ;;  %v18998_v49 = vld [vmem:[#allocation5 + $0x24c] ss:$16 sps:$4 sm:$0xff]  }
 0x108   :  { %533 = vmatprep.subr.bf16.mxu1 %v18934_v8  ;;  %371 = vmatprep.subr.bf16.mxu0 %v18934_v8  ;;  %v18995_v48 = vld [vmem:[#allocation5 + $0x244] ss:$16 sps:$4 sm:$0xff]   ;;  %v18952_v50 = vld [vmem:[#allocation3 + $0x38] sm:$0xff]   ;;  %v18993_v52 = vld [vmem:[#allocation5 + $0x240] ss:$16 sps:$4 sm:$0xff]  }
 0x109   :  { %v18956_v51 = vld [vmem:[#allocation3 + $0x18] sm:$0xff]   ;;  %v19001_v54 = vld [vmem:[#allocation5 + $0x264] ss:$16 sps:$4 sm:$0xff]   ;;  %v18999_v56 = vld [vmem:[#allocation5 + $0x260] ss:$16 sps:$4 sm:$0xff]  }
 0x10a   :  { %v18996_v53 = vld [vmem:[#allocation5 + $0x248] ss:$16 sps:$4 sm:$0xff]   ;;  %v19004_v55 = vld [vmem:[#allocation5 + $0x26c] ss:$16 sps:$4 sm:$0xff]   ;;  %v19007_v58 = vld [vmem:[#allocation5 + $0x284] ss:$16 sps:$4 sm:$0xff]  }
 0x10b   :  { %534 = vmatpush1.bf16.msra.mxu1 %v18936_v9  ;;  %372 = vmatpush1.bf16.msra.mxu0 %v18936_v9  ;;  %v19002_v57 = vld [vmem:[#allocation5 + $0x268] ss:$16 sps:$4 sm:$0xff]   ;;  %v19010_v59 = vld [vmem:[#allocation5 + $0x28c] ss:$16 sps:$4 sm:$0xff]   ;;  %v19005_v60 = vld [vmem:[#allocation5 + $0x280] ss:$16 sps:$4 sm:$0xff]  }
 0x10c   :  { %535 = vmatprep.subr.bf16.mxu1 %v18937_v10  ;;  %373 = vmatprep.subr.bf16.mxu0 %v18937_v10  ;;  %v19008_v61 = vld [vmem:[#allocation5 + $0x288] ss:$16 sps:$4 sm:$0xff]   ;;  %v19013_v62 = vld [vmem:[#allocation5 + $0x2a4] ss:$16 sps:$4 sm:$0xff]   ;;  %v19016_v63 = vld [vmem:[#allocation5 + $0x2ac] ss:$16 sps:$4 sm:$0xff]  }
 0x10d   :  { %v19011_v0 = vld [vmem:[#allocation5 + $0x2a0] ss:$16 sps:$4 sm:$0xff]   ;;  %v19014_v2 = vld [vmem:[#allocation5 + $0x2a8] ss:$16 sps:$4 sm:$0xff]   ;;  %v19019_v3 = vld [vmem:[#allocation5 + $0x2c4] ss:$16 sps:$4 sm:$0xff]  }
 0x10e   :  { %v19022_v4 = vld [vmem:[#allocation5 + $0x2cc] ss:$16 sps:$4 sm:$0xff]   ;;  %v19017_v5 = vld [vmem:[#allocation5 + $0x2c0] ss:$16 sps:$4 sm:$0xff]   ;;  %v19020_v6 = vld [vmem:[#allocation5 + $0x2c8] ss:$16 sps:$4 sm:$0xff]  }
 0x10f   :  { %536 = vmatpush1.bf16.msra.mxu1 %v18939_v11  ;;  %374 = vmatpush1.bf16.msra.mxu0 %v18939_v11  ;;  %v19025_v7 = vld [vmem:[#allocation5 + $0x2e4] ss:$16 sps:$4 sm:$0xff]   ;;  %v19028_v8 = vld [vmem:[#allocation5 + $0x2ec] ss:$16 sps:$4 sm:$0xff]   ;;  %v19023_v9 = vld [vmem:[#allocation5 + $0x2e0] ss:$16 sps:$4 sm:$0xff]  }
 0x110   :  { %537 = vmatprep.subr.bf16.mxu1 %v18940_v12  ;;  %375 = vmatprep.subr.bf16.mxu0 %v18940_v12  ;;  %v19026_v10 = vld [vmem:[#allocation5 + $0x2e8] ss:$16 sps:$4 sm:$0xff]   ;;  %v19031_v11 = vld [vmem:[#allocation5 + $0x4] ss:$16 sps:$4 sm:$0xff]   ;;  %v19034_v12 = vld [vmem:[#allocation5 + $0xc] ss:$16 sps:$4 sm:$0xff]  }
 0x113   :  { %538 = vmatpush1.bf16.msra.mxu1 %v18942_v13  ;;  %376 = vmatpush1.bf16.msra.mxu0 %v18942_v13 }
 0x114   :  { %539 = vmatprep.subr.bf16.mxu1 %v18943_v14  ;;  %377 = vmatprep.subr.bf16.mxu0 %v18943_v14 }
 0x117   :  { %540 = vmatpush1.bf16.msra.mxu1 %v18945_v15  ;;  %378 = vmatpush1.bf16.msra.mxu0 %v18945_v15 }
 0x118   :  { %541 = vmatprep.subr.bf16.mxu1 %v18946_v16  ;;  %379 = vmatprep.subr.bf16.mxu0 %v18946_v16 }
 0x11b   :  { %542 = vmatpush1.bf16.msra.mxu1 %v18948_v17  ;;  %380 = vmatpush1.bf16.msra.mxu0 %v18948_v17 }
 0x11c   :  { %910 = vmatprep.subr.bf16.mxu0 %v18959_v18  ;;  %983 = vmatprep.subr.bf16.mxu1 %v18962_v19  ;;  %v19029_v18 = vld [vmem:[#allocation5] ss:$16 sps:$4 sm:$0xff]   ;;  %v19032_v19 = vld [vmem:[#allocation5 + $0x8] ss:$16 sps:$4 sm:$0xff]  }
 0x11e   :  { %560 = vmatmul.mubr.bf16.vlgmr.msra.gmra.mrb[0].mxu1 %v18949_v20  ;;  %398 = vmatmul.mubr.bf16.vlgmr.msra.gmra.mrb[0].mxu0 %v18953_v21 }
 0x11f   :  { %569 = vmatprep.mubr.bf16.mxu1 %v25587_v1  ;;  %407 = vmatprep.mubr.bf16.mxu0 %v25587_v1 }
 0x120   :  { %911 = vmatpush1.bf16.msra.mxu0 %v18957_v22  ;;  %984 = vmatpush1.bf16.msra.mxu1 %v18960_v23  ;;  %v19037_v23 = vld [vmem:[#allocation5 + $0x24] ss:$16 sps:$4 sm:$0xff]  }
 0x121   :  { %912 = vmatprep.subr.bf16.mxu0 %v18965_v24  ;;  %985 = vmatprep.subr.bf16.mxu1 %v18968_v25  ;;  %v19040_v24 = vld [vmem:[#allocation5 + $0x2c] ss:$16 sps:$4 sm:$0xff]  }
 0x124   :  { %913 = vmatpush1.bf16.msra.mxu0 %v18963_v26  ;;  %986 = vmatpush1.bf16.msra.mxu1 %v18966_v27 }
 0x125   :  { %914 = vmatprep.subr.bf16.mxu0 %v18971_v28  ;;  %987 = vmatprep.subr.bf16.mxu1 %v18974_v29  ;;  %v19035_v29 = vld [vmem:[#allocation5 + $0x20] ss:$16 sps:$4 sm:$0xff]  }
 0x126   :  { %570 = vmatmul.mubr.bf16.gmra.mrb[4].mxu1 %v18950_v30  ;;  %408 = vmatmul.mubr.bf16.gmra.mrb[4].mxu0 %v18954_v31  ;;  %v19038_v30 = vld [vmem:[#allocation5 + $0x28] ss:$16 sps:$4 sm:$0xff]   ;;  %v19043_v31 = vld [vmem:[#allocation5 + $0x44] ss:$16 sps:$4 sm:$0xff]  }
 0x127   :  { %579 = vmatprep.mubr.bf16.mxu1 %v25587_v1  ;;  %417 = vmatprep.mubr.bf16.mxu0 %v25587_v1 }
 0x128   :  { %915 = vmatpush1.bf16.msra.mxu0 %v18969_v32  ;;  %988 = vmatpush1.bf16.msra.mxu1 %v18972_v33  ;;  %v19046_v32 = vld [vmem:[#allocation5 + $0x4c] ss:$16 sps:$4 sm:$0xff]  }
 0x129   :  { %916 = vmatprep.subr.bf16.mxu0 %v18977_v34  ;;  %989 = vmatprep.subr.bf16.mxu1 %v18980_v35 }
 0x12c   :  { %917 = vmatpush1.bf16.msra.mxu0 %v18975_v36  ;;  %990 = vmatpush1.bf16.msra.mxu1 %v18978_v37  ;;  %v19041_v37 = vld [vmem:[#allocation5 + $0x40] ss:$16 sps:$4 sm:$0xff]  }
 0x12d   :  { %918 = vmatprep.subr.bf16.mxu0 %v18983_v40  ;;  %991 = vmatprep.subr.bf16.mxu1 %v18986_v41  ;;  %v19049_v41 = vld [vmem:[#allocation5 + $0x64] ss:$16 sps:$4 sm:$0xff]  }
 0x12e   :  { %580 = vmatmul.mubr.bf16.gmra.mrb[8].mxu1 %v18951_v38  ;;  %418 = vmatmul.mubr.bf16.gmra.mrb[8].mxu0 %v18955_v39  ;;  %v19044_v38 = vld [vmem:[#allocation5 + $0x48] ss:$16 sps:$4 sm:$0xff]  }
 0x12f   :  { %589 = vmatprep.mubr.bf16.mxu1 %v25587_v1  ;;  %427 = vmatprep.mubr.bf16.mxu0 %v25587_v1 }
 0x130   :  { %919 = vmatpush1.bf16.msra.mxu0 %v18981_v42  ;;  %992 = vmatpush1.bf16.msra.mxu1 %v18984_v43  ;;  %v19052_v42 = vld [vmem:[#allocation5 + $0x6c] ss:$16 sps:$4 sm:$0xff]  }
 0x131   :  { %920 = vmatprep.subr.bf16.mxu0 %v18989_v44  ;;  %993 = vmatprep.subr.bf16.mxu1 %v18992_v45 }
 0x134   :  { %921 = vmatpush1.bf16.msra.mxu0 %v18987_v46  ;;  %994 = vmatpush1.bf16.msra.mxu1 %v18990_v47 }
 0x135   :  { %922 = vmatprep.subr.bf16.mxu0 %v18995_v48  ;;  %995 = vmatprep.subr.bf16.mxu1 %v18998_v49  ;;  %v19047_v49 = vld [vmem:[#allocation5 + $0x60] ss:$16 sps:$4 sm:$0xff]  }
 0x136   :  { %590 = vmatmul.mubr.bf16.gmra.mrb[12].mxu1 %v18952_v50  ;;  %428 = vmatmul.mubr.bf16.gmra.mrb[12].mxu0 %v18956_v51  ;;  %v19050_v50 = vld [vmem:[#allocation5 + $0x68] ss:$16 sps:$4 sm:$0xff]   ;;  %v19055_v51 = vld [vmem:[#allocation5 + $0x84] ss:$16 sps:$4 sm:$0xff]  }
 0x138   :  { %923 = vmatpush1.bf16.msra.mxu0 %v18993_v52  ;;  %996 = vmatpush1.bf16.msra.mxu1 %v18996_v53  ;;  %v19058_v52 = vld [vmem:[#allocation5 + $0x8c] ss:$16 sps:$4 sm:$0xff]  }
 0x139   :  { %924 = vmatprep.subr.bf16.mxu0 %v19001_v54  ;;  %997 = vmatprep.subr.bf16.mxu1 %v19004_v55 }
 0x13c   :  { %925 = vmatpush1.bf16.msra.mxu0 %v18999_v56  ;;  %998 = vmatpush1.bf16.msra.mxu1 %v19002_v57  ;;  %v19053_v57 = vld [vmem:[#allocation5 + $0x80] ss:$16 sps:$4 sm:$0xff]  }
 0x13d   :  { %926 = vmatprep.subr.bf16.mxu0 %v19007_v58  ;;  %999 = vmatprep.subr.bf16.mxu1 %v19010_v59  ;;  %v19056_v58 = vld [vmem:[#allocation5 + $0x88] ss:$16 sps:$4 sm:$0xff]  }
 0x140   :  { %927 = vmatpush1.bf16.msra.mxu0 %v19005_v60  ;;  %1000 = vmatpush1.bf16.msra.mxu1 %v19008_v61  ;;  %v19061_v61 = vld [vmem:[#allocation5 + $0xa4] ss:$16 sps:$4 sm:$0xff]  }
 0x141   :  { %928 = vmatprep.subr.bf16.mxu0 %v19013_v62  ;;  %1001 = vmatprep.subr.bf16.mxu1 %v19016_v63  ;;  %v19064_v62 = vld [vmem:[#allocation5 + $0xac] ss:$16 sps:$4 sm:$0xff]  }
 0x144   :  { %929 = vmatpush1.bf16.msra.mxu0 %v19011_v0  ;;  %1002 = vmatpush1.bf16.msra.mxu1 %v19014_v2 }
 0x145   :  { %930 = vmatprep.subr.bf16.mxu0 %v19019_v3  ;;  %1003 = vmatprep.subr.bf16.mxu1 %v19022_v4 }
 0x148   :  { %931 = vmatpush1.bf16.msra.mxu0 %v19017_v5  ;;  %1004 = vmatpush1.bf16.msra.mxu1 %v19020_v6  ;;  %v19059_v6 = vld [vmem:[#allocation5 + $0xa0] ss:$16 sps:$4 sm:$0xff]  }
 0x149   :  { %932 = vmatprep.subr.bf16.mxu0 %v19025_v7  ;;  %1005 = vmatprep.subr.bf16.mxu1 %v19028_v8  ;;  %v19062_v7 = vld [vmem:[#allocation5 + $0xa8] ss:$16 sps:$4 sm:$0xff]   ;;  %v19067_v8 = vld [vmem:[#allocation5 + $0xc4] ss:$16 sps:$4 sm:$0xff]  }
 0x14c   :  { %933 = vmatpush1.bf16.msra.mxu0 %v19023_v9  ;;  %1006 = vmatpush1.bf16.msra.mxu1 %v19026_v10  ;;  %v19070_v9 = vld [vmem:[#allocation5 + $0xcc] ss:$16 sps:$4 sm:$0xff]  }
 0x14d   :  { %1308 = vmatprep.subr.bf16.mxu0 %v19031_v11  ;;  %1381 = vmatprep.subr.bf16.mxu1 %v19034_v12 }
 0x1f1   :  { %v561_v13 = vpop.f32.mrb[0].mxu1  ;;  %v399_v14 = vpop.f32.mrb[0].mxu0 }
 0x1f2   :  { %v563_v15 = vpop.f32.mrb[1].mxu1  ;;  %v401_v16 = vpop.f32.mrb[1].mxu0 }
 0x1f3   :  { %v565_v17 = vpop.f32.mrb[2].mxu1  ;;  %v403_v20 = vpop.f32.mrb[2].mxu0 }
 0x1f4   :  { %v600_v21 = vpack.c.bf16 %v565_v17, %v561_v13  ;;  %v567_v22 = vpop.f32.mrb[3].mxu1  ;;  %v21601_v25 = vpack.c.bf16 %v403_v20, %v399_v14  ;;  %v405_v26 = vpop.f32.mrb[3].mxu0  ;;  %v19065_v14 = vld [vmem:[#allocation5 + $0xc0] ss:$16 sps:$4 sm:$0xff]  }
 0x1f5   :  { %v601_v27 = vpack.c.bf16 %v567_v22, %v563_v15  ;;  %v21603_v28 = vpack.c.bf16 %v405_v26, %v401_v16  ;;  %v19068_v15 = vld [vmem:[#allocation5 + $0xc8] ss:$16 sps:$4 sm:$0xff]  }
 0x1f7   :  { %15817 = vmatprep.mubr.msk.bf16.mxu0 %vm897_vm0, %v601_v27  ;;  %15821 = vmatprep.mubr.msk.bf16.mxu1 %vm897_vm0, %v601_v27  ;;  %v19071_v27 = vld [vmem:[#allocation5 + $0xe0] ss:$16 sps:$4 sm:$0xff]  }
 0x1f8   :  { %943 = vmatmul.mubr.bf16.vlgmr.msra.gmra.mrb[16].mxu0 %v600_v21  ;;  %1016 = vmatmul.mubr.bf16.vlgmr.msra.gmra.mrb[16].mxu1 %v600_v21 }
 0x1f9   :  { %1309 = vmatpush1.bf16.msra.mxu0 %v19029_v18  ;;  %1382 = vmatpush1.bf16.msra.mxu1 %v19032_v19  ;;  %v571_v33 = vpop.f32.mrb[4].mxu1  ;;  %v409_v34 = vpop.f32.mrb[4].mxu0  ;;  %v19073_v18 = vld [vmem:[#allocation5 + $0xe4] ss:$16 sps:$4 sm:$0xff]   ;;  %v19076_v19 = vld [vmem:[#allocation5 + $0xec] ss:$16 sps:$4 sm:$0xff]  }
 0x1fa   :  { %1310 = vmatprep.subr.bf16.mxu0 %v19037_v23  ;;  %1383 = vmatprep.subr.bf16.mxu1 %v19040_v24  ;;  %v573_v35 = vpop.f32.mrb[5].mxu1  ;;  %v411_v36 = vpop.f32.mrb[5].mxu0 }
 0x1fb   :  { %v575_v39 = vpop.f32.mrb[6].mxu1  ;;  %v413_v40 = vpop.f32.mrb[6].mxu0 }
 0x1fc   :  { %v602_v43 = vpack.c.bf16 %v575_v39, %v571_v33  ;;  %v577_v44 = vpop.f32.mrb[7].mxu1  ;;  %v21607_v45 = vpack.c.bf16 %v413_v40, %v409_v34  ;;  %v415_v46 = vpop.f32.mrb[7].mxu0  ;;  %v19080_v33 = vld [vmem:[#allocation5 + $0x108] ss:$16 sps:$4 sm:$0xff]   ;;  %v19085_v34 = vld [vmem:[#allocation5 + $0x124] ss:$16 sps:$4 sm:$0xff]  }
 0x1fd   :  { %1311 = vmatpush1.bf16.msra.mxu0 %v19035_v29  ;;  %1384 = vmatpush1.bf16.msra.mxu1 %v19038_v30  ;;  %v603_v47 = vpack.c.bf16 %v577_v44, %v573_v35  ;;  %v21609_v48 = vpack.c.bf16 %v415_v46, %v411_v36  ;;  %v19074_v29 = vld [vmem:[#allocation5 + $0xe8] ss:$16 sps:$4 sm:$0xff]   ;;  %v19079_v30 = vld [vmem:[#allocation5 + $0x104] ss:$16 sps:$4 sm:$0xff]   ;;  %v19088_v35 = vld [vmem:[#allocation5 + $0x12c] ss:$16 sps:$4 sm:$0xff]  }
 0x1fe   :  { %1312 = vmatprep.subr.bf16.mxu0 %v19043_v31  ;;  %1385 = vmatprep.subr.bf16.mxu1 %v19046_v32  ;;  %v19082_v31 = vld [vmem:[#allocation5 + $0x10c] ss:$16 sps:$4 sm:$0xff]   ;;  %v19077_v32 = vld [vmem:[#allocation5 + $0x100] ss:$16 sps:$4 sm:$0xff]   ;;  %v19098_v44 = vld [vmem:[#allocation5 + $0x168] ss:$16 sps:$4 sm:$0xff]  }
 0x1ff   :  { %15818 = vmatprep.mubr.msk.bf16.mxu0 %vm897_vm0, %v603_v47  ;;  %15822 = vmatprep.mubr.msk.bf16.mxu1 %vm897_vm0, %v603_v47  ;;  %v19083_v36 = vld [vmem:[#allocation5 + $0x120] ss:$16 sps:$4 sm:$0xff]   ;;  %v19094_v39 = vld [vmem:[#allocation5 + $0x14c] ss:$16 sps:$4 sm:$0xff]   ;;  %v19108_v47 = vld [vmem:[#allocation5 + $0x308] ss:$16 sps:$4 sm:$0xff]  }
 0x200   :  { %953 = vmatmul.mubr.bf16.gmra.mrb[20].mxu0 %v602_v43  ;;  %1026 = vmatmul.mubr.bf16.gmra.mrb[20].mxu1 %v602_v43  ;;  %v19089_v40 = vld [vmem:[#allocation5 + $0x140] ss:$16 sps:$4 sm:$0xff]   ;;  %v19100_v43 = vld [vmem:[#allocation5 + $0x16c] ss:$16 sps:$4 sm:$0xff]  }
 0x201   :  { %1313 = vmatpush1.bf16.msra.mxu0 %v19041_v37  ;;  %1386 = vmatpush1.bf16.msra.mxu1 %v19044_v38  ;;  %v581_v53 = vpop.f32.mrb[8].mxu1  ;;  %v419_v54 = vpop.f32.mrb[8].mxu0  ;;  %v19086_v37 = vld [vmem:[#allocation5 + $0x128] ss:$16 sps:$4 sm:$0xff]   ;;  %v19091_v38 = vld [vmem:[#allocation5 + $0x144] ss:$16 sps:$4 sm:$0xff]  }
 0x202   :  { %1314 = vmatprep.subr.bf16.mxu0 %v19049_v41  ;;  %1387 = vmatprep.subr.bf16.mxu1 %v19052_v42  ;;  %v583_v55 = vpop.f32.mrb[9].mxu1  ;;  %v421_v56 = vpop.f32.mrb[9].mxu0  ;;  %v19092_v41 = vld [vmem:[#allocation5 + $0x148] ss:$16 sps:$4 sm:$0xff]   ;;  %v19097_v42 = vld [vmem:[#allocation5 + $0x164] ss:$16 sps:$4 sm:$0xff]  }
 0x203   :  { %v585_v59 = vpop.f32.mrb[10].mxu1  ;;  %v423_v60 = vpop.f32.mrb[10].mxu0  ;;  %v19110_v46 = vld [vmem:[#allocation5 + $0x30c] ss:$16 sps:$4 sm:$0xff]  }
 0x204   :  { %v604_v63 = vpack.c.bf16 %v585_v59, %v581_v53  ;;  %v587_v0 = vpop.f32.mrb[11].mxu1  ;;  %v21613_v2 = vpack.c.bf16 %v423_v60, %v419_v54  ;;  %v425_v3 = vpop.f32.mrb[11].mxu0  ;;  %v20928_v53 = vld [vmem:[%s25682_s1 + $0x14] ss:$8 sps:$4 sm:$0xff]   ;;  %v20934_v60 = vld [vmem:[%s25682_s1 + $0x44] ss:$8 sps:$4 sm:$0xff]  }
 0x205   :  { %1315 = vmatpush1.bf16.msra.mxu0 %v19047_v49  ;;  %1388 = vmatpush1.bf16.msra.mxu1 %v19050_v50  ;;  %v605_v4 = vpack.c.bf16 %v587_v0, %v583_v55  ;;  %v21615_v5 = vpack.c.bf16 %v425_v3, %v421_v56  ;;  %v20926_v49 = vld [vmem:[%s25682_s1 + $0x4] ss:$8 sps:$4 sm:$0xff]   ;;  %v20936_v0 = vld [vmem:[%s25682_s1 + $0x54] ss:$8 sps:$4 sm:$0xff]   ;;  %v20937_v3 = vld [vmem:[%s25682_s1 + $0x50] ss:$8 sps:$4 sm:$0xff]  }
 0x206   :  { %1316 = vmatprep.subr.bf16.mxu0 %v19055_v51  ;;  %1389 = vmatprep.subr.bf16.mxu1 %v19058_v52  ;;  %v19116_v50 = vld [vmem:[#allocation5 + $0x32c] ss:$16 sps:$4 sm:$0xff]   ;;  %v19114_v52 = vld [vmem:[#allocation5 + $0x328] ss:$16 sps:$4 sm:$0xff]  }
 0x207   :  { %15819 = vmatprep.mubr.msk.bf16.mxu0 %vm897_vm0, %v605_v4  ;;  %15823 = vmatprep.mubr.msk.bf16.mxu1 %vm897_vm0, %v605_v4  ;;  %v20927_v51 = vld [vmem:[%s25682_s1] ss:$8 sps:$4 sm:$0xff]   ;;  %v20930_v55 = vld [vmem:[%s25682_s1 + $0x24] ss:$8 sps:$4 sm:$0xff]  }
 0x208   :  { %963 = vmatmul.mubr.bf16.gmra.mrb[24].mxu0 %v604_v63  ;;  %1036 = vmatmul.mubr.bf16.gmra.mrb[24].mxu1 %v604_v63  ;;  %v19122_v54 = vld [vmem:[#allocation5 + $0x34c] ss:$16 sps:$4 sm:$0xff]   ;;  %v19120_v56 = vld [vmem:[#allocation5 + $0x348] ss:$16 sps:$4 sm:$0xff]  }
 0x209   :  { %1317 = vmatpush1.bf16.msra.mxu0 %v19053_v57  ;;  %1390 = vmatpush1.bf16.msra.mxu1 %v19056_v58  ;;  %v591_v10 = vpop.f32.mrb[12].mxu1  ;;  %v429_v11 = vpop.f32.mrb[12].mxu0  ;;  %v20931_v57 = vld [vmem:[%s25682_s1 + $0x20] ss:$8 sps:$4 sm:$0xff]   ;;  %v20932_v58 = vld [vmem:[%s25682_s1 + $0x34] ss:$8 sps:$4 sm:$0xff]  }
 0x20a   :  { %1318 = vmatprep.subr.bf16.mxu0 %v19061_v61  ;;  %1391 = vmatprep.subr.bf16.mxu1 %v19064_v62  ;;  %v593_v12 = vpop.f32.mrb[13].mxu1  ;;  %v431_v13 = vpop.f32.mrb[13].mxu0  ;;  %v19126_v59 = vld [vmem:[#allocation5 + $0x368] ss:$16 sps:$4 sm:$0xff]   ;;  %v19134_v61 = vld [vmem:[#allocation5 + $0x38c] ss:$16 sps:$4 sm:$0xff]  }
 0x20b   :  { %v595_v16 = vpop.f32.mrb[14].mxu1  ;;  %v433_v17 = vpop.f32.mrb[14].mxu0  ;;  %v20935_v62 = vld [vmem:[%s25682_s1 + $0x40] ss:$8 sps:$4 sm:$0xff]  }
 0x20c   :  { %v606_v20 = vpack.c.bf16 %v595_v16, %v591_v10  ;;  %v597_v21 = vpop.f32.mrb[15].mxu1  ;;  %v21619_v22 = vpack.c.bf16 %v433_v17, %v429_v11  ;;  %v435_v23 = vpop.f32.mrb[15].mxu0  ;;  %v19132_v63 = vld [vmem:[#allocation5 + $0x388] ss:$16 sps:$4 sm:$0xff]   ;;  %v19101_v11 = vld [vmem:[#allocation3 + $0x40] sm:$0xff]  }
 0x20d   :  { %1319 = vmatpush1.bf16.msra.mxu0 %v19059_v6  ;;  %1392 = vmatpush1.bf16.msra.mxu1 %v19062_v7  ;;  %v607_v24 = vpack.c.bf16 %v597_v21, %v593_v12  ;;  %v21621_v26 = vpack.c.bf16 %v435_v23, %v431_v13  ;;  %v19138_v4 = vld [vmem:[#allocation5 + $0x3a8] ss:$16 sps:$4 sm:$0xff]   ;;  %v19146_v6 = vld [vmem:[#allocation5 + $0x3cc] ss:$16 sps:$4 sm:$0xff]   ;;  %v19107_v7 = vld [vmem:[#allocation5 + $0x304] ss:$16 sps:$4 sm:$0xff]  }
 0x20e   :  { %1320 = vmatprep.subr.bf16.mxu0 %v19067_v8  ;;  %1393 = vmatprep.subr.bf16.mxu1 %v19070_v9  ;;  %v20939_v8 = vld [vmem:[%s25682_s1 + $0x60] ss:$8 sps:$4 sm:$0xff]   ;;  %v20940_v10 = vld [vmem:[%s25682_s1 + $0x74] ss:$8 sps:$4 sm:$0xff]  }
 0x20f   :  { %15820 = vmatprep.mubr.msk.bf16.mxu0 %vm897_vm0, %v607_v24  ;;  %15824 = vmatprep.mubr.msk.bf16.mxu1 %vm897_vm0, %v607_v24  ;;  %v19144_v9 = vld [vmem:[#allocation5 + $0x3c8] ss:$16 sps:$4 sm:$0xff]   ;;  %v19152_v12 = vld [vmem:[#allocation5 + $0x3ec] ss:$16 sps:$4 sm:$0xff]   ;;  %v19105_v13 = vld [vmem:[#allocation5 + $0x300] ss:$16 sps:$4 sm:$0xff]  }
 0x210   :  { %973 = vmatmul.mubr.bf16.gmra.mrb[28].mxu0 %v606_v20  ;;  %1046 = vmatmul.mubr.bf16.gmra.mrb[28].mxu1 %v606_v20  ;;  %v19150_v16 = vld [vmem:[#allocation5 + $0x3e8] ss:$16 sps:$4 sm:$0xff]   ;;  %v19158_v17 = vld [vmem:[#allocation5 + $0x40c] ss:$16 sps:$4 sm:$0xff]   ;;  %v19117_v23 = vld [vmem:[#allocation5 + $0x340] ss:$16 sps:$4 sm:$0xff]  }
 0x211   :  { %1321 = vmatpush1.bf16.msra.mxu0 %v19065_v14  ;;  %1394 = vmatpush1.bf16.msra.mxu1 %v19068_v15  ;;  %v19113_v14 = vld [vmem:[#allocation5 + $0x324] ss:$16 sps:$4 sm:$0xff]   ;;  %v19156_v20 = vld [vmem:[#allocation5 + $0x408] ss:$16 sps:$4 sm:$0xff]  }
 0x212   :  { %1322 = vmatprep.subr.bf16.mxu0 %v19073_v18  ;;  %1395 = vmatprep.subr.bf16.mxu1 %v19076_v19  ;;  %v20941_v15 = vld [vmem:[%s25682_s1 + $0x70] ss:$8 sps:$4 sm:$0xff]  }
 0x213   :  { %15873 = vmatprep.mubr.msk.bf16.mxu0 %vm897_vm0, %v21603_v28  ;;  %15877 = vmatprep.mubr.msk.bf16.mxu1 %vm897_vm0, %v21603_v28  ;;  %v19095_v28 = vld [vmem:[#allocation5 + $0x160] ss:$16 sps:$4 sm:$0xff]   ;;  %v19119_v19 = vld [vmem:[#allocation5 + $0x344] ss:$16 sps:$4 sm:$0xff]   ;;  %v19102_v21 = vld [vmem:[#allocation3 + $0x48] sm:$0xff]  }
 0x214   :  { %v19111_v18 = vld [vmem:[#allocation5 + $0x320] ss:$16 sps:$4 sm:$0xff]   ;;  %v19125_v24 = vld [vmem:[#allocation5 + $0x364] ss:$16 sps:$4 sm:$0xff]  }
 0x215   :  { %1323 = vmatpush1.bf16.msra.mxu0 %v19071_v27  ;;  %1396 = vmatpush1.bf16.msra.mxu1 %v19074_v29  ;;  %v19170_v27 = vld [vmem:[#allocation5 + $0x44c] ss:$16 sps:$4 sm:$0xff]   ;;  %v19123_v29 = vld [vmem:[#allocation5 + $0x360] ss:$16 sps:$4 sm:$0xff]  }
 0x216   :  { %1324 = vmatprep.subr.bf16.mxu0 %v19079_v30  ;;  %1397 = vmatprep.subr.bf16.mxu1 %v19082_v31  ;;  %v19131_v30 = vld [vmem:[#allocation5 + $0x384] ss:$16 sps:$4 sm:$0xff]   ;;  %v19168_v31 = vld [vmem:[#allocation5 + $0x448] ss:$16 sps:$4 sm:$0xff]  }
 0x219   :  { %1325 = vmatpush1.bf16.msra.mxu0 %v19077_v32  ;;  %1398 = vmatpush1.bf16.msra.mxu1 %v19080_v33  ;;  %v19103_v32 = vld [vmem:[#allocation3 + $0x50] sm:$0xff]  }
 0x21a   :  { %1326 = vmatprep.subr.bf16.mxu0 %v19085_v34  ;;  %1399 = vmatprep.subr.bf16.mxu1 %v19088_v35  ;;  %v19129_v33 = vld [vmem:[#allocation5 + $0x380] ss:$16 sps:$4 sm:$0xff]   ;;  %v19137_v34 = vld [vmem:[#allocation5 + $0x3a4] ss:$16 sps:$4 sm:$0xff]  }
 0x21b   :  { %v19135_v35 = vld [vmem:[#allocation5 + $0x3a0] ss:$16 sps:$4 sm:$0xff]  }
 0x21d   :  { %1327 = vmatpush1.bf16.msra.mxu0 %v19083_v36  ;;  %1400 = vmatpush1.bf16.msra.mxu1 %v19086_v37  ;;  %v19143_v36 = vld [vmem:[#allocation5 + $0x3c4] ss:$16 sps:$4 sm:$0xff]   ;;  %v19104_v37 = vld [vmem:[#allocation3 + $0x58] sm:$0xff]  }
 0x21e   :  { %1328 = vmatprep.subr.bf16.mxu0 %v19091_v38  ;;  %1401 = vmatprep.subr.bf16.mxu1 %v19094_v39  ;;  %v19141_v38 = vld [vmem:[#allocation5 + $0x3c0] ss:$16 sps:$4 sm:$0xff]   ;;  %v19149_v39 = vld [vmem:[#allocation5 + $0x3e4] ss:$16 sps:$4 sm:$0xff]  }
 0x221   :  { %1329 = vmatpush1.bf16.msra.mxu0 %v19089_v40  ;;  %1402 = vmatpush1.bf16.msra.mxu1 %v19092_v41  ;;  %v19147_v40 = vld [vmem:[#allocation5 + $0x3e0] ss:$16 sps:$4 sm:$0xff]   ;;  %v19155_v41 = vld [vmem:[#allocation5 + $0x404] ss:$16 sps:$4 sm:$0xff]  }
 0x222   :  { %1330 = vmatprep.subr.bf16.mxu0 %v19097_v42  ;;  %1403 = vmatprep.subr.bf16.mxu1 %v19100_v43  ;;  %v19153_v42 = vld [vmem:[#allocation5 + $0x400] ss:$16 sps:$4 sm:$0xff]   ;;  %v19161_v43 = vld [vmem:[#allocation5 + $0x424] ss:$16 sps:$4 sm:$0xff]  }
 0x225   :  { %1331 = vmatpush1.bf16.msra.mxu0 %v19095_v28  ;;  %1404 = vmatpush1.bf16.msra.mxu1 %v19098_v44  ;;  %v19159_v28 = vld [vmem:[#allocation5 + $0x420] ss:$16 sps:$4 sm:$0xff]   ;;  %v19167_v44 = vld [vmem:[#allocation5 + $0x444] ss:$16 sps:$4 sm:$0xff]  }
 0x226   :  { %1487 = vmatprep.subr.bf16.mxu0 %v20926_v49  ;;  %1942 = vmatprep.subr.bf16.mxu1 %v19110_v46  ;;  %v19165_v46 = vld [vmem:[#allocation5 + $0x440] ss:$16 sps:$4 sm:$0xff]   ;;  %v19176_v49 = vld [vmem:[#allocation5 + $0x46c] ss:$16 sps:$4 sm:$0xff]  }
 0x228   :  { %1341 = vmatmul.mubr.bf16.vlgmr.msra.gmra.mrb[16].mxu0 %v21601_v25  ;;  %1414 = vmatmul.mubr.bf16.vlgmr.msra.gmra.mrb[16].mxu1 %v21601_v25  ;;  %v20929_v25 = vld [vmem:[%s25682_s1 + $0x10] ss:$8 sps:$4 sm:$0xff]  }
 0x229   :  { %1488 = vmatpush1.bf16.msra.mxu0 %v20927_v51  ;;  %15874 = vmatprep.mubr.msk.bf16.mxu0 %vm897_vm0, %v21609_v48  ;;  %v19174_v51 = vld [vmem:[#allocation5 + $0x468] ss:$16 sps:$4 sm:$0xff]  }
 0x22a   :  { %15878 = vmatprep.mubr.msk.bf16.mxu1 %vm897_vm0, %v21609_v48  ;;  %1489 = vmatprep.subr.bf16.mxu0 %v20928_v53  ;;  %v19128_v48 = vld [vmem:[#allocation5 + $0x36c] ss:$16 sps:$4 sm:$0xff]  }
 0x22b   :  { %1943 = vmatpush1.bf16.msra.mxu1 %v19108_v47  ;;  %v19173_v47 = vld [vmem:[#allocation5 + $0x464] ss:$16 sps:$4 sm:$0xff]  }
 0x22c   :  { %1944 = vmatprep.subr.bf16.mxu1 %v19116_v50  ;;  %v19171_v50 = vld [vmem:[#allocation5 + $0x460] ss:$16 sps:$4 sm:$0xff]  }
 0x22d   :  { %1490 = vmatpush1.bf16.msra.mxu0 %v20929_v25 }
 0x22e   :  { %1491 = vmatprep.subr.bf16.mxu0 %v20930_v55 }
 0x22f   :  { %1945 = vmatpush1.bf16.msra.mxu1 %v19114_v52 }
 0x230   :  { %1351 = vmatmul.mubr.bf16.gmra.mrb[20].mxu0 %v21607_v45  ;;  %1424 = vmatmul.mubr.bf16.gmra.mrb[20].mxu1 %v21607_v45  ;;  %v20933_v45 = vld [vmem:[%s25682_s1 + $0x30] ss:$8 sps:$4 sm:$0xff]  }
 0x231   :  { %1492 = vmatpush1.bf16.msra.mxu0 %v20931_v57  ;;  %15875 = vmatprep.mubr.msk.bf16.mxu0 %vm897_vm0, %v21615_v5 }
 0x232   :  { %15879 = vmatprep.mubr.msk.bf16.mxu1 %vm897_vm0, %v21615_v5  ;;  %1493 = vmatprep.subr.bf16.mxu0 %v20932_v58  ;;  %v20938_v5 = vld [vmem:[%s25682_s1 + $0x64] ss:$8 sps:$4 sm:$0xff]   ;;  %s25821_s1 = sld [smem:[#allocation66_spill]] }
 0x233   :  { %1946 = vmatprep.subr.bf16.mxu1 %v19122_v54 }
 0x234   :  { %1947 = vmatpush1.bf16.msra.mxu1 %v19120_v56 }
 0x235   :  { %1494 = vmatpush1.bf16.msra.mxu0 %v20933_v45  ;;  %1948 = vmatprep.subr.bf16.mxu1 %v19128_v48 }
 0x236   :  { %1495 = vmatprep.subr.bf16.mxu0 %v20934_v60 }
 0x238   :  { %1361 = vmatmul.mubr.bf16.gmra.mrb[24].mxu0 %v21613_v2  ;;  %1434 = vmatmul.mubr.bf16.gmra.mrb[24].mxu1 %v21613_v2  ;;  %v19140_v2 = vld [vmem:[#allocation5 + $0x3ac] ss:$16 sps:$4 sm:$0xff]  }
 0x239   :  { %1496 = vmatpush1.bf16.msra.mxu0 %v20935_v62  ;;  %15876 = vmatprep.mubr.msk.bf16.mxu0 %vm897_vm0, %v21621_v26 }
 0x23a   :  { %15880 = vmatprep.mubr.msk.bf16.mxu1 %vm897_vm0, %v21621_v26  ;;  %1497 = vmatprep.subr.bf16.mxu0 %v20936_v0  ;;  %v19162_v26 = vld [vmem:[#allocation5 + $0x428] ss:$16 sps:$4 sm:$0xff]  }
 0x23b   :  { %1949 = vmatpush1.bf16.msra.mxu1 %v19126_v59 }
 0x23c   :  { %1950 = vmatprep.subr.bf16.mxu1 %v19134_v61 }
 0x23d   :  { %1498 = vmatpush1.bf16.msra.mxu0 %v20937_v3 }
 0x23e   :  { %1499 = vmatprep.subr.bf16.mxu0 %v20938_v5 }
 0x23f   :  { %1951 = vmatpush1.bf16.msra.mxu1 %v19132_v63 }
 0x240   :  { %1371 = vmatmul.mubr.bf16.gmra.mrb[28].mxu0 %v21619_v22  ;;  %1444 = vmatmul.mubr.bf16.gmra.mrb[28].mxu1 %v21619_v22  ;;  %v19164_v22 = vld [vmem:[#allocation5 + $0x42c] ss:$16 sps:$4 sm:$0xff]  }
 0x241   :  { %1500 = vmatpush1.bf16.msra.mxu0 %v20939_v8  ;;  %1519 = vmatprep.mubr.bf16.mxu0 %v25587_v1 }
 0x242   :  { %1501 = vmatprep.subr.bf16.mxu0 %v20940_v10  ;;  %1952 = vmatprep.subr.bf16.mxu1 %v19140_v2  ;;  %v2265_v10 = vld [vmem:[%s25683_s8 + $0x80] sm:$0xff] }
 0x243   :  { %1953 = vmatpush1.bf16.msra.mxu1 %v19138_v4 }
 0x244   :  { %1954 = vmatprep.subr.bf16.mxu1 %v19146_v6 }
 0x245   :  { %1502 = vmatpush1.bf16.msra.mxu0 %v20941_v15  ;;  %v2249_v15 = vld [vmem:[%s25683_s8] sm:$0xff] }
 0x246   :  { %1869 = vmatprep.subr.bf16.mxu0 %v19107_v7 }
 0x247   :  { %1955 = vmatpush1.bf16.msra.mxu1 %v19144_v9 }
 0x248   :  { %1520 = vmatmul.mubr.bf16.vlgmr.msra.gmra.mrb[32].mxu0 %v19101_v11  ;;  %1956 = vmatprep.subr.bf16.mxu1 %v19152_v12  ;;  %v2266_v11 = vld [vmem:[%s25683_s8 + $0x88] sm:$0xff]  ;;  %v2297_v12 = vld [vmem:[%s25683_s8 + $0x180] sm:$0xff] }
 0x249   :  { %1529 = vmatprep.mubr.bf16.mxu0 %v25587_v1  ;;  %1870 = vmatpush1.bf16.msra.mxu0 %v19105_v13  ;;  %v21718_v13 = vpack.c.bf16 %v2266_v11, %v2265_v10  ;;  %v2308_v11 = vld [vmem:[%s25683_s8 + $0x1d8] sm:$0xff] }
 0x24a   :  { %1871 = vmatprep.subr.bf16.mxu0 %v19113_v14  ;;  %v2298_v14 = vld [vmem:[%s25683_s8 + $0x188] sm:$0xff] }
 0x24b   :  { %1957 = vmatpush1.bf16.msra.mxu1 %v19150_v16  ;;  %v2250_v16 = vld [vmem:[%s25683_s8 + $0x8] sm:$0xff] }
 0x24c   :  { %1958 = vmatprep.subr.bf16.mxu1 %v19158_v17  ;;  %v21729_v17 = vpack.c.bf16 %v2298_v14, %v2297_v12  ;;  %v2259_v12 = vld [vmem:[%s25683_s8 + $0x50] sm:$0xff]  ;;  %v2260_v14 = vld [vmem:[%s25683_s8 + $0x58] sm:$0xff] }
 0x24d   :  { %1872 = vmatpush1.bf16.msra.mxu0 %v19111_v18  ;;  %v21731_v18 = vpack.c.bf16 %v2250_v16, %v2249_v15  ;;  %v21911_v16 = vpack.c.bf16 %v2260_v14, %v2259_v12 }
 0x24e   :  { %1873 = vmatprep.subr.bf16.mxu0 %v19119_v19  ;;  %v2281_v19 = vld [vmem:[%s25683_s8 + $0x100] sm:$0xff] }
 0x24f   :  { %1959 = vmatpush1.bf16.msra.mxu1 %v19156_v20  ;;  %v2282_v20 = vld [vmem:[%s25683_s8 + $0x108] sm:$0xff] }
 0x250   :  { %1530 = vmatmul.mubr.bf16.gmra.mrb[36].mxu0 %v19102_v21  ;;  %1960 = vmatprep.subr.bf16.mxu1 %v19164_v22  ;;  %v21740_v21 = vpack.c.bf16 %v2282_v20, %v2281_v19  ;;  %v2267_v22 = vld [vmem:[%s25683_s8 + $0x90] sm:$0xff]  ;;  %v2292_v20 = vld [vmem:[%s25683_s8 + $0x158] sm:$0xff] }
 0x251   :  { %1539 = vmatprep.mubr.bf16.mxu0 %v25587_v1  ;;  %1874 = vmatpush1.bf16.msra.mxu0 %v19117_v23  ;;  %v2268_v23 = vld [vmem:[%s25683_s8 + $0x98] sm:$0xff]  ;;  %v2291_v19 = vld [vmem:[%s25683_s8 + $0x150] sm:$0xff] }
 0x252   :  { %1875 = vmatprep.subr.bf16.mxu0 %v19125_v24  ;;  %v2299_v24 = vld [vmem:[%s25683_s8 + $0x190] sm:$0xff] }
 0x253   :  { %1961 = vmatpush1.bf16.msra.mxu1 %v19162_v26  ;;  %v21754_v26 = vpack.c.bf16 %v2268_v23, %v2267_v22  ;;  %v21920_v22 = vpack.c.bf16 %v2292_v20, %v2291_v19  ;;  %v2277_v23 = vld [vmem:[%s25683_s8 + $0xe0] sm:$0xff] }
 0x254   :  { %1962 = vmatprep.subr.bf16.mxu1 %v19170_v27  ;;  %v2300_v27 = vld [vmem:[%s25683_s8 + $0x198] sm:$0xff] }
 0x255   :  { %1876 = vmatpush1.bf16.msra.mxu0 %v19123_v29  ;;  %v2251_v29 = vld [vmem:[%s25683_s8 + $0x10] sm:$0xff] }
 0x256   :  { %1877 = vmatprep.subr.bf16.mxu0 %v19131_v30  ;;  %v2252_v30 = vld [vmem:[%s25683_s8 + $0x18] sm:$0xff] }
 0x257   :  { %1963 = vmatpush1.bf16.msra.mxu1 %v19168_v31  ;;  %v21765_v31 = vpack.c.bf16 %v2300_v27, %v2299_v24  ;;  %v2278_v24 = vld [vmem:[%s25683_s8 + $0xe8] sm:$0xff]  ;;  %v2309_v27 = vld [vmem:[%s25683_s8 + $0x1e0] sm:$0xff] }
 0x258   :  { %1540 = vmatmul.mubr.bf16.gmra.mrb[40].mxu0 %v19103_v32  ;;  %1964 = vmatprep.subr.bf16.mxu1 %v19176_v49  ;;  %v21767_v32 = vpack.c.bf16 %v2252_v30, %v2251_v29  ;;  %v2271_v49 = vld [vmem:[%s25683_s8 + $0xb0] sm:$0xff]  ;;  %v21934_v29 = vpack.c.bf16 %v2278_v24, %v2277_v23  ;;  %v2310_v30 = vld [vmem:[%s25683_s8 + $0x1e8] sm:$0xff] }
 0x259   :  { %1549 = vmatprep.mubr.bf16.mxu0 %v25587_v1  ;;  %1878 = vmatpush1.bf16.msra.mxu0 %v19129_v33  ;;  %v2283_v33 = vld [vmem:[%s25683_s8 + $0x110] sm:$0xff] }
 0x25a   :  { %1879 = vmatprep.subr.bf16.mxu0 %v19137_v34  ;;  %v2284_v34 = vld [vmem:[%s25683_s8 + $0x118] sm:$0xff] }
 0x25b   :  { %1965 = vmatpush1.bf16.msra.mxu1 %v19174_v51  ;;  %v2303_v51 = vld [vmem:[%s25683_s8 + $0x1b0] sm:$0xff] }
 0x25c   :  { %17968 = vmatprep.subr.bf16.mxu1 %v21718_v13 }
 0x25d   :  { %1880 = vmatpush1.bf16.msra.mxu0 %v19135_v35  ;;  %v21776_v35 = vpack.c.bf16 %v2284_v34, %v2283_v33  ;;  %v2261_v33 = vld [vmem:[%s25683_s8 + $0x60] sm:$0xff]  ;;  %v2262_v34 = vld [vmem:[%s25683_s8 + $0x68] sm:$0xff] }
 0x25e   :  { %1881 = vmatprep.subr.bf16.mxu0 %v19143_v36  ;;  %v2269_v36 = vld [vmem:[%s25683_s8 + $0xa0] sm:$0xff] }
 0x260   :  { %1550 = vmatmul.mubr.bf16.gmra.mrb[44].mxu0 %v19104_v37  ;;  %v2270_v37 = vld [vmem:[%s25683_s8 + $0xa8] sm:$0xff] }
 0x261   :  { %1882 = vmatpush1.bf16.msra.mxu0 %v19141_v38  ;;  %v2301_v38 = vld [vmem:[%s25683_s8 + $0x1a0] sm:$0xff] }
 0x262   :  { %1883 = vmatprep.subr.bf16.mxu0 %v19149_v39  ;;  %v21790_v39 = vpack.c.bf16 %v2270_v37, %v2269_v36  ;;  %v21945_v36 = vpack.c.bf16 %v2310_v30, %v2309_v27  ;;  %v21947_v37 = vpack.c.bf16 %v2262_v34, %v2261_v33 }
 0x265   :  { %1884 = vmatpush1.bf16.msra.mxu0 %v19147_v40  ;;  %v2302_v40 = vld [vmem:[%s25683_s8 + $0x1a8] sm:$0xff] }
 0x266   :  { %1885 = vmatprep.subr.bf16.mxu0 %v19155_v41  ;;  %v2253_v41 = vld [vmem:[%s25683_s8 + $0x20] sm:$0xff] }
 0x269   :  { %1886 = vmatpush1.bf16.msra.mxu0 %v19153_v42  ;;  %v2254_v42 = vld [vmem:[%s25683_s8 + $0x28] sm:$0xff] }
 0x26a   :  { %1887 = vmatprep.subr.bf16.mxu0 %v19161_v43  ;;  %v21801_v43 = vpack.c.bf16 %v2302_v40, %v2301_v38  ;;  %v2293_v38 = vld [vmem:[%s25683_s8 + $0x160] sm:$0xff]  ;;  %v2294_v40 = vld [vmem:[%s25683_s8 + $0x168] sm:$0xff] }
 0x26d   :  { %1888 = vmatpush1.bf16.msra.mxu0 %v19159_v28  ;;  %v21803_v28 = vpack.c.bf16 %v2254_v42, %v2253_v41  ;;  %v2279_v41 = vld [vmem:[%s25683_s8 + $0xf0] sm:$0xff]  ;;  %v21959_v42 = vpack.c.bf16 %v2294_v40, %v2293_v38 }
 0x26e   :  { %1889 = vmatprep.subr.bf16.mxu0 %v19167_v44  ;;  %v2285_v44 = vld [vmem:[%s25683_s8 + $0x120] sm:$0xff] }
 0x271   :  { %1890 = vmatpush1.bf16.msra.mxu0 %v19165_v46  ;;  %v2286_v46 = vld [vmem:[%s25683_s8 + $0x128] sm:$0xff] }
 0x272   :  { %1891 = vmatprep.subr.bf16.mxu0 %v19173_v47  ;;  %v21812_v47 = vpack.c.bf16 %v2286_v46, %v2285_v44  ;;  %v2280_v44 = vld [vmem:[%s25683_s8 + $0xf8] sm:$0xff]  ;;  %v2311_v46 = vld [vmem:[%s25683_s8 + $0x1f0] sm:$0xff] }
 0x275   :  { %1892 = vmatpush1.bf16.msra.mxu0 %v19171_v50  ;;  %v2272_v50 = vld [vmem:[%s25683_s8 + $0xb8] sm:$0xff] }
 0x276   :  { %18000 = vmatprep.subr.bf16.mxu0 %v21729_v17 }
 0x31b   :  { %v1521_v52 = vpop.f32.mrb[32].mxu0 }
 0x31c   :  { %v1523_v53 = vpop.f32.mrb[33].mxu0 }
 0x31d   :  { %v1525_v25 = vpop.f32.mrb[34].mxu0 }
 0x31e   :  { %v1560_v54 = vpack.c.bf16 %v1525_v25, %v1521_v52  ;;  %v1527_v55 = vpop.f32.mrb[35].mxu0  ;;  %v21826_v52 = vpack.c.bf16 %v2272_v50, %v2271_v49  ;;  %v2255_v25 = vld [vmem:[%s25683_s8 + $0x30] sm:$0xff]  ;;  %v2312_v49 = vld [vmem:[%s25683_s8 + $0x1f8] sm:$0xff]  ;;  %v21972_v50 = vpack.c.bf16 %v2280_v44, %v2279_v41 }
 0x31f   :  { %v1561_v56 = vpack.c.bf16 %v1527_v55, %v1523_v53  ;;  %v2304_v53 = vld [vmem:[%s25683_s8 + $0x1b8] sm:$0xff] }
 0x320   :  { %v21837_v55 = vpack.c.bf16 %v2304_v53, %v2303_v51  ;;  %v21974_v51 = vpack.c.bf16 %v2312_v49, %v2311_v46  ;;  %v2263_v53 = vld [vmem:[%s25683_s8 + $0x70] sm:$0xff] }
 0x321   :  { %15933 = vmatprep.mubr.msk.bf16.mxu0 %vm897_vm0, %v1561_v56  ;;  %15937 = vmatprep.mubr.msk.bf16.mxu1 %vm897_vm0, %v1561_v56 }
 0x322   :  { %1902 = vmatmul.mubr.bf16.vlgmr.msra.gmra.mrb[16].mxu0 %v1560_v54  ;;  %1975 = vmatmul.mubr.bf16.vlgmr.msra.gmra.mrb[16].mxu1 %v1560_v54  ;;  %v2256_v54 = vld [vmem:[%s25683_s8 + $0x38] sm:$0xff] }
 0x323   :  { %v1531_v48 = vpop.f32.mrb[36].mxu0  ;;  %17970 = vmatpush3.bf16.msra.mxu1 %v21731_v18  ;;  %18002 = vmatpush3.bf16.msra.mxu0 %v21740_v21  ;;  %v21839_v56 = vpack.c.bf16 %v2256_v54, %v2255_v25  ;;  %v2264_v25 = vld [vmem:[%s25683_s8 + $0x78] sm:$0xff]  ;;  %v2295_v54 = vld [vmem:[%s25683_s8 + $0x170] sm:$0xff] }
 0x324   :  { %v1533_v57 = vpop.f32.mrb[37].mxu0  ;;  %17972 = vmatprep.subr.bf16.mxu1 %v21754_v26  ;;  %18004 = vmatprep.subr.bf16.mxu0 %v21765_v31 }
 0x325   :  { %v1535_v58 = vpop.f32.mrb[38].mxu0 }
 0x326   :  { %v1562_v45 = vpack.c.bf16 %v1535_v58, %v1531_v48  ;;  %v1537_v59 = vpop.f32.mrb[39].mxu0  ;;  %v2287_v48 = vld [vmem:[%s25683_s8 + $0x130] sm:$0xff] }
 0x327   :  { %v1563_v60 = vpack.c.bf16 %v1537_v59, %v1533_v57  ;;  %17974 = vmatpush3.bf16.msra.mxu1 %v21767_v32  ;;  %18006 = vmatpush3.bf16.msra.mxu0 %v21776_v35  ;;  %v2288_v57 = vld [vmem:[%s25683_s8 + $0x138] sm:$0xff]  ;;  %v2274_v59 = vld [vmem:[%s25683_s8 + $0xc8] sm:$0xff] }
 0x328   :  { %17976 = vmatprep.subr.bf16.mxu1 %v21790_v39  ;;  %18008 = vmatprep.subr.bf16.mxu0 %v21801_v43  ;;  %v21848_v58 = vpack.c.bf16 %v2288_v57, %v2287_v48  ;;  %v21986_v48 = vpack.c.bf16 %v2264_v25, %v2263_v53  ;;  %v2296_v57 = vld [vmem:[%s25683_s8 + $0x178] sm:$0xff] }
 0x329   :  { %15934 = vmatprep.mubr.msk.bf16.mxu0 %vm897_vm0, %v1563_v60  ;;  %15938 = vmatprep.mubr.msk.bf16.mxu1 %vm897_vm0, %v1563_v60  ;;  %v2305_v60 = vld [vmem:[%s25683_s8 + $0x1c0] sm:$0xff] }
 0x32a   :  { %1912 = vmatmul.mubr.bf16.gmra.mrb[20].mxu0 %v1562_v45  ;;  %1985 = vmatmul.mubr.bf16.gmra.mrb[20].mxu1 %v1562_v45  ;;  %v2273_v45 = vld [vmem:[%s25683_s8 + $0xc0] sm:$0xff]  ;;  %25684 = vst [vmem:[#allocation29_spill] sm:$0xff] %v21986_v48 }
 0x32b   :  { %v1541_v61 = vpop.f32.mrb[40].mxu0  ;;  %17978 = vmatpush3.bf16.msra.mxu1 %v21803_v28  ;;  %18010 = vmatpush3.bf16.msra.mxu0 %v21812_v47 }
 0x32c   :  { %v1543_v62 = vpop.f32.mrb[41].mxu0  ;;  %17980 = vmatprep.subr.bf16.mxu1 %v21826_v52  ;;  %18012 = vmatprep.subr.bf16.mxu0 %v21837_v55 }
 0x32d   :  { %v1545_v63 = vpop.f32.mrb[42].mxu0 }
 0x32e   :  { %v1564_v0 = vpack.c.bf16 %v1545_v63, %v1541_v61  ;;  %v1547_v2 = vpop.f32.mrb[43].mxu0  ;;  %v21862_v61 = vpack.c.bf16 %v2274_v59, %v2273_v45  ;;  %v2257_v63 = vld [vmem:[%s25683_s8 + $0x40] sm:$0xff]  ;;  %v21993_v45 = vpack.c.bf16 %v2296_v57, %v2295_v54  ;;  %v2049_v59 = vlaneseq }
 0x32f   :  { %v1565_v3 = vpack.c.bf16 %v1547_v2, %v1543_v62  ;;  %17982 = vmatpush3.bf16.msra.mxu1 %v21839_v56  ;;  %18014 = vmatpush3.bf16.msra.mxu0 %v21848_v58  ;;  %v2306_v62 = vld [vmem:[%s25683_s8 + $0x1c8] sm:$0xff] }
 0x330   :  { %v21873_v2 = vpack.c.bf16 %v2306_v62, %v2305_v60  ;;  %17984 = vmatprep.subr.bf16.mxu1 %v21862_v61  ;;  %v2050_v60 = vshrl.u32 %v2049_v59, 7 }
 0x331   :  { %15935 = vmatprep.mubr.msk.bf16.mxu0 %vm897_vm0, %v1565_v3  ;;  %15939 = vmatprep.mubr.msk.bf16.mxu1 %vm897_vm0, %v1565_v3 }
 0x332   :  { %1922 = vmatmul.mubr.bf16.gmra.mrb[24].mxu0 %v1564_v0  ;;  %1995 = vmatmul.mubr.bf16.gmra.mrb[24].mxu1 %v1564_v0  ;;  %v2258_v0 = vld [vmem:[%s25683_s8 + $0x48] sm:$0xff]  ;;  %v21998_v62 = vsub.s32 0, %v2050_v60 }
 0x333   :  { %v1551_v4 = vpop.f32.mrb[44].mxu0  ;;  %v21875_v3 = vpack.c.bf16 %v2258_v0, %v2257_v63  ;;  %18016 = vmatprep.subr.bf16.mxu0 %v21873_v2  ;;  %v22000_v63 = vsub.s32 2, %v2050_v60  ;;  %v2047_v0 = vld [vmem:[#allocation8] ss:$4 sm:$0xf] }
 0x334   :  { %v1553_v5 = vpop.f32.mrb[45].mxu0  ;;  %25685 = vst [vmem:[#allocation30_spill] sm:$0xff] %v21998_v62 }
 0x335   :  { %v1555_v6 = vpop.f32.mrb[46].mxu0  ;;  %17986 = vmatpush3.bf16.msra.mxu1 %v21875_v3  ;;  %25686 = vst [vmem:[#allocation31_spill] sm:$0xff] %v22000_v63 }
 0x336   :  { %v1566_v7 = vpack.c.bf16 %v1555_v6, %v1551_v4  ;;  %v1557_v8 = vpop.f32.mrb[47].mxu0  ;;  %v2289_v4 = vld [vmem:[%s25683_s8 + $0x140] sm:$0xff] }
 0x337   :  { %v1567_v9 = vpack.c.bf16 %v1557_v8, %v1553_v5  ;;  %v2290_v5 = vld [vmem:[%s25683_s8 + $0x148] sm:$0xff]  ;;  %v2276_v8 = vld [vmem:[%s25683_s8 + $0xd8] sm:$0xff] }
 0x338   :  { %v21884_v6 = vpack.c.bf16 %v2290_v5, %v2289_v4  ;;  %v22002_v4 = vsub.s32 1, %v2050_v60  ;;  %v22004_v5 = vsub.s32 3, %v2050_v60 }
 0x339   :  { %15936 = vmatprep.mubr.msk.bf16.mxu0 %vm897_vm0, %v1567_v9  ;;  %15940 = vmatprep.mubr.msk.bf16.mxu1 %vm897_vm0, %v1567_v9  ;;  %v2307_v9 = vld [vmem:[%s25683_s8 + $0x1d0] sm:$0xff] }
 0x33a   :  { %1932 = vmatmul.mubr.bf16.gmra.mrb[28].mxu0 %v1566_v7  ;;  %2005 = vmatmul.mubr.bf16.gmra.mrb[28].mxu1 %v1566_v7  ;;  %v2275_v7 = vld [vmem:[%s25683_s8 + $0xd0] sm:$0xff]  ;;  %v21909_v15 = vpack.c.bf16 %v2308_v11, %v2307_v9  ;;  %25687 = vst [vmem:[#allocation32_spill] sm:$0xff] %v22002_v4  ;;  %25688 = vst [vmem:[#allocation33_spill] sm:$0xff] %v22004_v5  ;;  %v22013_v9 = vrot.slane %v2047_v0, %v22002_v4 }
 0x33b   :  { %18018 = vmatpush3.bf16.msra.mxu0 %v21884_v6  ;;  %v21898_v10 = vpack.c.bf16 %v2276_v8, %v2275_v7  ;;  %v22007_v7 = vrot.slane %v2047_v0, %v21998_v62  ;;  %v22010_v8 = vrot.slane %v2047_v0, %v22000_v63 }
 0x33c   :  { %18020 = vmatprep.subr.bf16.mxu0 %v21909_v15 }
 0x33d   :  { %17988 = vmatprep.subr.bf16.mxu1 %v21898_v10 }
 0x33e   :  { %17990 = vmatpush3.bf16.msra.mxu1 %v21911_v16 }
 0x33f   :  { %18022 = vmatpush3.bf16.msra.mxu0 %v21920_v22  ;;  %17992 = vmatprep.subr.bf16.mxu1 %v21934_v29 }
 0x340   :  { %18024 = vmatprep.subr.bf16.mxu0 %v21945_v36 }
 0x342   :  { %17994 = vmatpush3.bf16.msra.mxu1 %v21947_v37 }
 0x343   :  { %18026 = vmatpush3.bf16.msra.mxu0 %v21959_v42  ;;  %17996 = vmatprep.subr.bf16.mxu1 %v21972_v50 }
 0x344   :  { %18028 = vmatprep.subr.bf16.mxu0 %v21974_v51 }
 0x346   :  { %17998 = vmatpush3.bf16.msra.mxu1 %v21986_v48 }
 0x347   :  { %18030 = vmatpush3.bf16.msra.mxu0 %v21993_v45 }
 0x348   :  { %18072 = vmatprep.subr.bf16.mxu0 %v21729_v17  ;;  %v22016_v17 = vrot.slane %v2047_v0, %v22004_v5 }
 0x3f5   :  { %v1903_v11 = vpop.f32.mrb[16].mxu0  ;;  %v1976_v12 = vpop.f32.mrb[16].mxu1 }
 0x3f6   :  { %v2069_v14 = vadd.f32 %v22007_v7, %v1903_v11  ;;  %v2071_v19 = vadd.f32 %v22010_v8, %v1976_v12  ;;  %v1905_v20 = vpop.f32.mrb[17].mxu0  ;;  %v1978_v23 = vpop.f32.mrb[17].mxu1 }
 0x3f7   :  { %v2070_v24 = vadd.f32 %v22013_v9, %v1905_v20  ;;  %v2072_v27 = vadd.f32 %v22016_v17, %v1978_v23  ;;  %v1907_v30 = vpop.f32.mrb[18].mxu0  ;;  %v1980_v33 = vpop.f32.mrb[18].mxu1 }
 0x3f8   :  { %vm2101_vm1 = vcmp.gt.f32.partialorder %v2069_v14, 0.0  ;;  %v2133_v34 = vmul.f32 0.2, %v2069_v14  ;;  %vm2103_vm2 = vcmp.gt.f32.partialorder %v2071_v19, 0.0  ;;  %v2135_v38 = vmul.f32 0.2, %v2071_v19 }
 0x3f9   :  { %vm2102_vm3 = vcmp.gt.f32.partialorder %v2070_v24, 0.0  ;;  %v2134_v40 = vmul.f32 0.2, %v2070_v24  ;;  %vm2104_vm4 = vcmp.gt.f32.partialorder %v2072_v27, 0.0  ;;  %v2136_v41 = vmul.f32 0.2, %v2072_v27 }
 0x3fa   :  { %v2073_v44 = vadd.f32 %v22007_v7, %v1907_v30  ;;  %v2075_v46 = vadd.f32 %v22010_v8, %v1980_v33  ;;  %v1909_v49 = vpop.f32.mrb[19].mxu0  ;;  %v1982_v53 = vpop.f32.mrb[19].mxu1  ;;  %v22024_v25 = vsel %vm2101_vm1, %v2069_v14, %v2133_v34  ;;  %v22026_v54 = vsel %vm2103_vm2, %v2071_v19, %v2135_v38 }
 0x3fb   :  { %25689 = vst [vmem:[#allocation34_spill] sm:$0xff] %v22024_v25  ;;  %25690 = vst [vmem:[#allocation35_spill] sm:$0xff] %v22026_v54  ;;  %v2074_v57 = vadd.f32 %v22013_v9, %v1909_v49  ;;  %v2076_v59 = vadd.f32 %v22016_v17, %v1982_v53  ;;  %v22031_v20 = vsel %vm2102_vm3, %v2070_v24, %v2134_v40 }
 0x3fc   :  { %vm2105_vm5 = vcmp.gt.f32.partialorder %v2073_v44, 0.0  ;;  %v2137_v60 = vmul.f32 0.2, %v2073_v44  ;;  %vm2107_vm6 = vcmp.gt.f32.partialorder %v2075_v46, 0.0  ;;  %v2139_v0 = vmul.f32 0.2, %v2075_v46 }
 0x3fd   :  { %vm2106_vm7 = vcmp.gt.f32.partialorder %v2074_v57, 0.0  ;;  %v2138_v11 = vmul.f32 0.2, %v2074_v57  ;;  %vm2108_vm8 = vcmp.gt.f32.partialorder %v2076_v59, 0.0  ;;  %v2140_v12 = vmul.f32 0.2, %v2076_v59 }
 0x3fe   :  { %25691 = vst [vmem:[#allocation36_spill] sm:$0xff] %v22031_v20  ;;  %v22034_v14 = vsel %vm2104_vm4, %v2072_v27, %v2136_v41  ;;  %v22036_v19 = vsel %vm2105_vm5, %v2073_v44, %v2137_v60  ;;  %v22038_v23 = vsel %vm2107_vm6, %v2075_v46, %v2139_v0  ;;  %v1913_v30 = vpop.f32.mrb[20].mxu0  ;;  %v1986_v33 = vpop.f32.mrb[20].mxu1 }
 0x3ff   :  { %25692 = vst [vmem:[#allocation37_spill] sm:$0xff] %v22034_v14  ;;  %25693 = vst [vmem:[#allocation38_spill] sm:$0xff] %v22036_v19  ;;  %v2197_v34 = vadd.f32 %v22036_v19, %v22024_v25  ;;  %v2223_v38 = vadd.f32 %v22038_v23, %v22026_v54  ;;  %v22044_v49 = vsel %vm2106_vm7, %v2074_v57, %v2138_v11  ;;  %v1915_v24 = vpop.f32.mrb[21].mxu0  ;;  %v1988_v40 = vpop.f32.mrb[21].mxu1 }
 0x400   :  { %25694 = vst [vmem:[#allocation39_spill] sm:$0xff] %v22038_v23  ;;  %25695 = vst [vmem:[#allocation40_spill] sm:$0xff] %v22044_v49  ;;  %v22046_v53 = vsel %vm2108_vm8, %v2076_v59, %v2140_v12  ;;  %v2210_v27 = vadd.f32 %v22044_v49, %v22031_v20  ;;  %v2077_v44 = vadd.f32 %v22007_v7, %v1913_v30  ;;  %v1917_v60 = vpop.f32.mrb[22].mxu0  ;;  %v1990_v0 = vpop.f32.mrb[22].mxu1 }
 0x401   :  { %25696 = vst [vmem:[#allocation41_spill] sm:$0xff] %v22046_v53  ;;  %v2236_v41 = vadd.f32 %v22046_v53, %v22034_v14  ;;  %v2079_v46 = vadd.f32 %v22010_v8, %v1986_v33  ;;  %v2078_v1 = vadd.f32 %v22013_v9, %v1915_v24  ;;  %v2080_v57 = vadd.f32 %v22016_v17, %v1988_v40  ;;  %v1919_v12 = vpop.f32.mrb[23].mxu0  ;;  %v1992_v63 = vpop.f32.mrb[23].mxu1 }
 0x402   :  { %v2081_v59 = vadd.f32 %v22007_v7, %v1917_v60  ;;  %v2083_v11 = vadd.f32 %v22010_v8, %v1990_v0  ;;  %vm2109_vm9 = vcmp.gt.f32.partialorder %v2077_v44, 0.0  ;;  %v2141_v5 = vmul.f32 0.2, %v2077_v44 }
 0x403   :  { %vm2111_vm10 = vcmp.gt.f32.partialorder %v2079_v46, 0.0  ;;  %v2143_v4 = vmul.f32 0.2, %v2079_v46  ;;  %vm2110_vm11 = vcmp.gt.f32.partialorder %v2078_v1, 0.0  ;;  %v2142_v30 = vmul.f32 0.2, %v2078_v1 }
 0x404   :  { %vm2112_vm12 = vcmp.gt.f32.partialorder %v2080_v57, 0.0  ;;  %v2144_v33 = vmul.f32 0.2, %v2080_v57  ;;  %v22058_v23 = vsel %vm2109_vm9, %v2077_v44, %v2141_v5  ;;  %vm2113_vm13 = vcmp.gt.f32.partialorder %v2081_v59, 0.0 }
 0x405   :  { %25697 = vst [vmem:[#allocation42_spill] sm:$0xff] %v22058_v23  ;;  %v22060_v54 = vsel %vm2111_vm10, %v2079_v46, %v2143_v4  ;;  %v2145_v24 = vmul.f32 0.2, %v2081_v59  ;;  %v2198_v40 = vadd.f32 %v2197_v34, %v22058_v23  ;;  %v22063_v60 = vsel %vm2110_vm11, %v2078_v1, %v2142_v30  ;;  %v1923_v53 = vpop.f32.mrb[24].mxu0  ;;  %v1996_v14 = vpop.f32.mrb[24].mxu1 }
 0x406   :  { %25698 = vst [vmem:[#allocation43_spill] sm:$0xff] %v22060_v54  ;;  %25699 = vst [vmem:[#allocation44_spill] sm:$0xff] %v22063_v60  ;;  %v22065_v0 = vsel %vm2112_vm12, %v2080_v57, %v2144_v33  ;;  %v2224_v19 = vadd.f32 %v2223_v38, %v22060_v54  ;;  %v2211_v25 = vadd.f32 %v2210_v27, %v22063_v60  ;;  %vm2115_vm14 = vcmp.gt.f32.partialorder %v2083_v11, 0.0  ;;  %v1925_v5 = vpop.f32.mrb[25].mxu0  ;;  %v1998_v4 = vpop.f32.mrb[25].mxu1 }
 0x407   :  { %25700 = vst [vmem:[#allocation45_spill] sm:$0xff] %v22065_v0  ;;  %v2237_v49 = vadd.f32 %v2236_v41, %v22065_v0  ;;  %v22070_v44 = vsel %vm2113_vm13, %v2081_v59, %v2145_v24  ;;  %v2147_v46 = vmul.f32 0.2, %v2083_v11  ;;  %v2082_v34 = vadd.f32 %v22013_v9, %v1919_v12  ;;  %v1927_v57 = vpop.f32.mrb[26].mxu0  ;;  %v2000_v30 = vpop.f32.mrb[26].mxu1 }
 0x408   :  { %25701 = vst [vmem:[#allocation46_spill] sm:$0xff] %v22070_v44  ;;  %v2084_v1 = vadd.f32 %v22016_v17, %v1992_v63  ;;  %v2085_v33 = vadd.f32 %v22007_v7, %v1923_v53  ;;  %v2087_v38 = vadd.f32 %v22010_v8, %v1996_v14  ;;  %v2086_v27 = vadd.f32 %v22013_v9, %v1925_v5  ;;  %v1929_v54 = vpop.f32.mrb[27].mxu0  ;;  %v2002_v0 = vpop.f32.mrb[27].mxu1 }
 0x409   :  { %v2088_v41 = vadd.f32 %v22016_v17, %v1998_v4  ;;  %v22078_v23 = vsel %vm2115_vm14, %v2083_v11, %v2147_v46  ;;  %vm2114_vm15 = vcmp.gt.f32.partialorder %v2082_v34, 0.0  ;;  %v2146_v59 = vmul.f32 0.2, %v2082_v34 }
 0x40a   :  { %25702 = vst [vmem:[#allocation47_spill] sm:$0xff] %v22078_v23  ;;  %vm2116_vm1 = vcmp.gt.f32.partialorder %v2084_v1, 0.0  ;;  %v2199_v12 = vadd.f32 %v2198_v40, %v22070_v44  ;;  %v2148_v63 = vmul.f32 0.2, %v2084_v1  ;;  %vm2117_vm2 = vcmp.gt.f32.partialorder %v2085_v33, 0.0 }
 0x40b   :  { %v2149_v24 = vmul.f32 0.2, %v2085_v33  ;;  %v22081_v60 = vsel %vm2114_vm15, %v2082_v34, %v2146_v59  ;;  %vm2119_vm3 = vcmp.gt.f32.partialorder %v2087_v38, 0.0  ;;  %v2151_v14 = vmul.f32 0.2, %v2087_v38 }
 0x40c   :  { %25703 = vst [vmem:[#allocation48_spill] sm:$0xff] %v22081_v60  ;;  %vm2118_vm4 = vcmp.gt.f32.partialorder %v2086_v27, 0.0  ;;  %v2225_v53 = vadd.f32 %v2224_v19, %v22078_v23  ;;  %v22084_v5 = vsel %vm2116_vm1, %v2084_v1, %v2148_v63  ;;  %v2150_v11 = vmul.f32 0.2, %v2086_v27 }
 0x40d   :  { %25704 = vst [vmem:[#allocation49_spill] sm:$0xff] %v22084_v5  ;;  %v22086_v4 = vsel %vm2117_vm2, %v2085_v33, %v2149_v24  ;;  %v2212_v46 = vadd.f32 %v2211_v25, %v22081_v60  ;;  %v2238_v20 = vadd.f32 %v2237_v49, %v22084_v5  ;;  %v22090_v40 = vsel %vm2119_vm3, %v2087_v38, %v2151_v14  ;;  %v1933_v44 = vpop.f32.mrb[28].mxu0  ;;  %v2006_v34 = vpop.f32.mrb[28].mxu1 }
 0x40e   :  { %25705 = vst [vmem:[#allocation50_spill] sm:$0xff] %v22086_v4  ;;  %25706 = vst [vmem:[#allocation51_spill] sm:$0xff] %v22090_v40  ;;  %vm2120_vm5 = vcmp.gt.f32.partialorder %v2088_v41, 0.0  ;;  %v2200_v59 = vadd.f32 %v2199_v12, %v22086_v4  ;;  %v22093_v62 = vsel %vm2118_vm4, %v2086_v27, %v2150_v11  ;;  %v2152_v48 = vmul.f32 0.2, %v2088_v41  ;;  %v1935_v1 = vpop.f32.mrb[29].mxu0 }
 0x40f   :  { %25707 = vst [vmem:[#allocation52_spill] sm:$0xff] %v22093_v62  ;;  %v2089_v19 = vadd.f32 %v22007_v7, %v1927_v57  ;;  %v2008_v33 = vpop.f32.mrb[29].mxu1  ;;  %v2226_v63 = vadd.f32 %v2225_v53, %v22090_v40  ;;  %v2091_v25 = vadd.f32 %v22010_v8, %v2000_v30  ;;  %v2090_v49 = vadd.f32 %v22013_v9, %v1929_v54  ;;  %v1937_v24 = vpop.f32.mrb[30].mxu0 }
 0x410   :  { %v2092_v38 = vadd.f32 %v22016_v17, %v2002_v0  ;;  %v2010_v14 = vpop.f32.mrb[30].mxu1  ;;  %v22100_v23 = vsel %vm2120_vm5, %v2088_v41, %v2152_v48  ;;  %v2093_v12 = vadd.f32 %v22007_v7, %v1933_v44  ;;  %v1939_v11 = vpop.f32.mrb[31].mxu0  ;;  %v2213_v5 = vadd.f32 %v2212_v46, %v22093_v62 }
 0x411   :  { %vm2121_vm6 = vcmp.gt.f32.partialorder %v2089_v19, 0.0  ;;  %v2153_v27 = vmul.f32 0.2, %v2089_v19  ;;  %v2012_v57 = vpop.f32.mrb[31].mxu1  ;;  %vm2123_vm7 = vcmp.gt.f32.partialorder %v2091_v25, 0.0  ;;  %vm2122_vm8 = vcmp.gt.f32.partialorder %v2090_v49, 0.0 }
 0x412   :  { %v2155_v53 = vmul.f32 0.2, %v2091_v25  ;;  %v2154_v54 = vmul.f32 0.2, %v2090_v49  ;;  %vm2124_vm9 = vcmp.gt.f32.partialorder %v2092_v38, 0.0  ;;  %v2239_v40 = vadd.f32 %v2238_v20, %v22100_v23 }
 0x413   :  { %v22104_v30 = vsel %vm2121_vm6, %v2089_v19, %v2153_v27  ;;  %v2156_v0 = vmul.f32 0.2, %v2092_v38  ;;  %vm2125_vm10 = vcmp.gt.f32.partialorder %v2093_v12, 0.0  ;;  %v2157_v41 = vmul.f32 0.2, %v2093_v12 }
 0x414   :  { %v22107_v48 = vsel %vm2123_vm7, %v2091_v25, %v2155_v53  ;;  %v2201_v44 = vadd.f32 %v2200_v59, %v22104_v30  ;;  %v22111_v60 = vsel %vm2122_vm8, %v2090_v49, %v2154_v54  ;;  %v2095_v46 = vadd.f32 %v22010_v8, %v2006_v34 }
 0x415   :  { %25708 = vst [vmem:[#allocation53_spill] sm:$0xff] %v22107_v48  ;;  %v2227_v4 = vadd.f32 %v2226_v63, %v22107_v48  ;;  %v2214_v19 = vadd.f32 %v2213_v5, %v22111_v60  ;;  %v22115_v27 = vsel %vm2124_vm9, %v2092_v38, %v2156_v0  ;;  %v22117_v62 = vsel %vm2125_vm10, %v2093_v12, %v2157_v41 }
 0x416   :  { %v2094_v20 = vadd.f32 %v22013_v9, %v1935_v1  ;;  %v2202_v25 = vadd.f32 %v2201_v44, %v22117_v62  ;;  %vm2127_vm11 = vcmp.gt.f32.partialorder %v2095_v46, 0.0  ;;  %v2159_v53 = vmul.f32 0.2, %v2095_v46 }
 0x417   :  { %v2096_v59 = vadd.f32 %v22016_v17, %v2008_v33  ;;  %v2097_v49 = vadd.f32 %v22007_v7, %v1937_v24  ;;  %v2099_v34 = vadd.f32 %v22010_v8, %v2010_v14  ;;  %v2098_v38 = vadd.f32 %v22013_v9, %v1939_v11 }
 0x418   :  { %vm2126_vm12 = vcmp.gt.f32.partialorder %v2094_v20, 0.0  ;;  %v2158_v63 = vmul.f32 0.2, %v2094_v20  ;;  %v22124_v54 = vsel %vm2127_vm11, %v2095_v46, %v2159_v53  ;;  %v2240_v8 = vadd.f32 %v2239_v40, %v22115_v27 }
 0x419   :  { %25709 = vst [vmem:[#allocation54_spill] sm:$0xff] %v22124_v54  ;;  %vm2128_vm13 = vcmp.gt.f32.partialorder %v2096_v59, 0.0  ;;  %v2160_v5 = vmul.f32 0.2, %v2096_v59  ;;  %v2228_v1 = vadd.f32 %v2227_v4, %v22124_v54  ;;  %vm2129_vm14 = vcmp.gt.f32.partialorder %v2097_v49, 0.0 }
 0x41a   :  { %v22128_v12 = vsel %vm2126_vm12, %v2094_v20, %v2158_v63  ;;  %v2161_v0 = vmul.f32 0.2, %v2097_v49  ;;  %vm2131_vm15 = vcmp.gt.f32.partialorder %v2099_v34, 0.0  ;;  %v2163_v7 = vmul.f32 0.2, %v2099_v34 }
 0x41b   :  { %v2215_v33 = vadd.f32 %v2214_v19, %v22128_v12  ;;  %v22131_v41 = vsel %vm2128_vm13, %v2096_v59, %v2160_v5  ;;  %vm2130_vm1 = vcmp.gt.f32.partialorder %v2098_v38, 0.0  ;;  %v2162_v14 = vmul.f32 0.2, %v2098_v38 }
 0x41c   :  { %25710 = vst [vmem:[#allocation55_spill] sm:$0xff] %v22131_v41  ;;  %v22134_v24 = vsel %vm2129_vm14, %v2097_v49, %v2161_v0  ;;  %v22137_v11 = vsel %vm2131_vm15, %v2099_v34, %v2163_v7  ;;  %v2100_v4 = vadd.f32 %v22016_v17, %v2012_v57  ;;  %v2241_v44 = vadd.f32 %v2240_v8, %v22131_v41 }
 0x41d   :  { %v2203_v9 = vadd.f32 %v2202_v25, %v22134_v24  ;;  %25711 = vst [vmem:[#allocation56_spill] sm:$0xff] %v22137_v11  ;;  %v2229_v46 = vadd.f32 %v2228_v1, %v22137_v11  ;;  %v22142_v19 = vsel %vm2130_vm1, %v2098_v38, %v2162_v14  ;;  %vm2462_vm3 = vcmask 130048  }
 0x41e   :  { %v2216_v53 = vadd.f32 %v2215_v33, %v22142_v19  ;;  %vm2132_vm2 = vcmp.gt.f32.partialorder %v2100_v4, 0.0  ;;  %v2164_v40 = vmul.f32 0.2, %v2100_v4 }
 0x41f   :  { %v2204_v20 = vrot.slane %v2203_v9, 4  ;;  %v2230_v59 = vrot.slane %v2229_v46, 4 }
 0x420   :  { %v2217_v49 = vrot.slane %v2216_v53, 4  ;;  %v22145_v5 = vsel %vm2132_vm2, %v2100_v4, %v2164_v40 }
 0x421   :  { %v2205_v63 = vadd.f32 %v2204_v20, %v2203_v9  ;;  %v2231_v25 = vadd.f32 %v2230_v59, %v2229_v46  ;;  %v2242_v34 = vadd.f32 %v2241_v44, %v22145_v5 }
 0x422   :  { %v2218_v57 = vadd.f32 %v2217_v49, %v2216_v53  ;;  %v25718_v49 = vld [vmem:[#allocation48_spill] sm:$0xff] }
 0x423   :  { %v2206_v17 = vrot.slane %v2205_v63, 2  ;;  %v2232_v0 = vrot.slane %v2231_v25, 2  ;;  %v2243_v7 = vrot.slane %v2242_v34, 4 }
 0x424   :  { %v2219_v38 = vrot.slane %v2218_v57, 2 }
 0x425   :  { %v2207_v1 = vadd.f32 %v2206_v17, %v2205_v63  ;;  %v2244_v8 = vadd.f32 %v2243_v7, %v2242_v34  ;;  %v2233_v14 = vadd.f32 %v2232_v0, %v2231_v25  ;;  %v25720_v7 = vld [vmem:[#allocation52_spill] sm:$0xff] }
 0x426   :  { %v2220_v11 = vadd.f32 %v2219_v38, %v2218_v57  ;;  %v25719_v57 = vld [vmem:[#allocation38_spill] sm:$0xff] }
 0x427   :  { %v2208_v33 = vrot.slane %v2207_v1, 1  ;;  %v2245_v54 = vrot.slane %v2244_v8, 2  ;;  %v2234_v9 = vrot.slane %v2233_v14, 1  ;;  %v25721_v38 = vld [vmem:[#allocation42_spill] sm:$0xff] }
 0x428   :  { %v2221_v48 = vrot.slane %v2220_v11, 1 }
 0x429   :  { %v2246_v41 = vadd.f32 %v2245_v54, %v2244_v8  ;;  %v2209_v40 = vadd.f32 %v2208_v33, %v2207_v1  ;;  %v2235_v44 = vadd.f32 %v2234_v9, %v2233_v14  ;;  %v2456_v54 = vld [vmem:[#allocation7 + $0x10] sm:$0xff] }
 0x42a   :  { %v2222_v20 = vadd.f32 %v2221_v48, %v2220_v11 }
 0x42b   :  { %v2247_v4 = vrot.slane %v2246_v41, 1 }
 0x42c   :  { %2377 = vmatprep.mubr.f32.mxu1 %v2222_v20 }
 0x42d   :  { %v2248_v46 = vadd.f32 %v2247_v4, %v2246_v41  ;;  %2378 = vmatmul.mubr.f32.vlgmr.msra.gmra.mrb[32].mxu1 %v2209_v40  ;;  %v2460_v41 = vld [vmem:[#allocation7 + $0x30] sm:$0xff] }
 0x42e   :  { %v22170_v53 = vpack.c.bf16 %v2460_v41, %v2456_v54 }
 0x42f   :  { %2447 = vmatprep.mubr.f32.mxu0 %v2248_v46 }
 0x430   :  { %2448 = vmatmul.mubr.f32.vlgmr.msra.gmra.mrb[48].mxu0 %v2235_v44 }
 0x431   :  { %18074 = vmatpush3.bf16.msra.mxu0 %v21740_v21  ;;  %v2455_v21 = vld [vmem:[#allocation7 + $0x8] sm:$0xff] }
 0x432   :  { %18076 = vmatprep.subr.bf16.mxu0 %v21765_v31  ;;  %v2459_v31 = vld [vmem:[#allocation7 + $0x28] sm:$0xff] }
 0x435   :  { %18078 = vmatpush3.bf16.msra.mxu0 %v21776_v35  ;;  %v18031_v35 = vpack.c.bf16 %v2459_v31, %v2455_v21  ;;  %v25722_v31 = vld [vmem:[#allocation46_spill] sm:$0xff] }
 0x436   :  { %18080 = vmatprep.subr.bf16.mxu0 %v21801_v43  ;;  %v2454_v43 = vld [vmem:[#allocation7] sm:$0xff] }
 0x437   :  { %18032 = vmatprep.subr.bf16.mxu1 %v18031_v35 }
 0x439   :  { %18082 = vmatpush3.bf16.msra.mxu0 %v21812_v47  ;;  %v2458_v47 = vld [vmem:[#allocation7 + $0x20] sm:$0xff] }
 0x43a   :  { %18084 = vmatprep.subr.bf16.mxu0 %v21837_v55  ;;  %v22163_v55 = vpack.c.bf16 %v2458_v47, %v2454_v43 }
 0x43c   :  { %18034 = vmatpush1.bf16.msra.mxu1 %v22163_v55 }
 0x43d   :  { %18086 = vmatpush3.bf16.msra.mxu0 %v21848_v58  ;;  %v2457_v58 = vld [vmem:[#allocation7 + $0x18] sm:$0xff] }
 0x43e   :  { %18088 = vmatprep.subr.bf16.mxu0 %v21873_v2  ;;  %v2461_v2 = vld [vmem:[#allocation7 + $0x38] sm:$0xff] }
 0x441   :  { %18090 = vmatpush3.bf16.msra.mxu0 %v21884_v6  ;;  %v22166_v6 = vpack.c.bf16 %v2461_v2, %v2457_v58 }
 0x442   :  { %18092 = vmatprep.subr.bf16.mxu0 %v21909_v15  ;;  %v25621_v15 = vmov 0.0  }
 0x443   :  { %2530 = vmatprep.mubr.f32.mxu1 %v25621_v15  ;;  %18036 = vmatprep.subr.bf16.mxu1 %v22166_v6 }
 0x445   :  { %18094 = vmatpush3.bf16.msra.mxu0 %v21920_v22 }
 0x446   :  { %18096 = vmatprep.subr.bf16.mxu0 %v21945_v36 }
 0x449   :  { %18098 = vmatpush3.bf16.msra.mxu0 %v21959_v42 }
 0x44a   :  { %18100 = vmatprep.subr.bf16.mxu0 %v21974_v51 }
 0x44d   :  { %18102 = vmatpush3.bf16.msra.mxu0 %v21993_v45 }
 0x500   :  { %v17439_v22 = vpop.f32.mrb[32].mxu1 }
 0x501   :  { %v17440_v36 = vpop.f32.mrb[33].mxu1 }
 0x502   :  { %v17441_v42 = vadd.f32 %v17440_v36, %v17439_v22  ;;  %v25724_v36 = vld [vmem:[#allocation37_spill] sm:$0xff] }
 0x503   :  { %v17474_v51 = vpop.f32.mrb[48].mxu0 }
 0x504   :  { %v17475_v45 = vpop.f32.mrb[49].mxu0 }
 0x505   :  { %v17476_v48 = vadd.f32 %v17475_v45, %v17474_v51  ;;  %v25725_v51 = vld [vmem:[#allocation41_spill] sm:$0xff] }
 0x507   :  { %v2450_v11 = vadd.f32 %v17476_v48, %v17441_v42 }
 0x509   :  { %v2453_v59 = vmul.f32 0.00048828125, %v2450_v11  ;;  %v25726_v11 = vld [vmem:[#allocation45_spill] sm:$0xff] }
 0x50b   :  { %15941 = vmatmul.mubr.msk.f32.vlgmr.msra.gmra.mrb[34].mxu1 %vm2462_vm3, %v2453_v59 }
 0x50c   :  { %18038 = vmatpush1.bf16.msra.mxu1 %v22170_v53  ;;  %2601 = vmatprep.mubr.f32.mxu1 %v25621_v15 }
 0x50d   :  { %18040 = vmatprep.subr.bf16.mxu1 %v21718_v13  ;;  %v25712_v13 = vld [vmem:[#allocation29_spill] sm:$0xff] }
 0x50f   :  { %15942 = vmatmul.mubr.msk.f32.vlgmr.msra.gmra.mrb[36].mxu1 %vm2462_vm3, %v2453_v59 }
 0x510   :  { %18042 = vmatpush3.bf16.msra.mxu1 %v21731_v18 }
 0x511   :  { %18044 = vmatprep.subr.bf16.mxu1 %v21754_v26  ;;  %v25713_v26 = vld [vmem:[#allocation30_spill] sm:$0xff] }
 0x514   :  { %18046 = vmatpush3.bf16.msra.mxu1 %v21767_v32 }
 0x515   :  { %18048 = vmatprep.subr.bf16.mxu1 %v21790_v39 }
 0x518   :  { %18050 = vmatpush3.bf16.msra.mxu1 %v21803_v28 }
 0x519   :  { %18052 = vmatprep.subr.bf16.mxu1 %v21826_v52 }
 0x51c   :  { %18054 = vmatpush3.bf16.msra.mxu1 %v21839_v56  ;;  %v25714_v56 = vld [vmem:[#allocation36_spill] sm:$0xff] }
 0x51d   :  { %18056 = vmatprep.subr.bf16.mxu1 %v21862_v61 }
 0x520   :  { %18058 = vmatpush3.bf16.msra.mxu1 %v21875_v3  ;;  %v25715_v3 = vld [vmem:[#allocation40_spill] sm:$0xff] }
 0x521   :  { %18060 = vmatprep.subr.bf16.mxu1 %v21898_v10 }
 0x524   :  { %18062 = vmatpush3.bf16.msra.mxu1 %v21911_v16  ;;  %v25716_v16 = vld [vmem:[#allocation44_spill] sm:$0xff] }
 0x525   :  { %18064 = vmatprep.subr.bf16.mxu1 %v21934_v29 }
 0x528   :  { %18066 = vmatpush3.bf16.msra.mxu1 %v21947_v37 }
 0x529   :  { %18068 = vmatprep.subr.bf16.mxu1 %v21972_v50  ;;  %v25717_v50 = vld [vmem:[#allocation34_spill] sm:$0xff] }
 0x52c   :  { %18070 = vmatpush3.bf16.msra.mxu1 %v25712_v13 }
 0x52d   :  { %18104 = vmatprep.subr.bf16.mxu1 %v18031_v35 }
 0x5de   :  { %v2532_v18 = vpop.f32.mrb[34].mxu1 }
 0x5df   :  { %v2611_v32 = vrot.slane %v2532_v18, %v25713_v26  ;;  %v2534_v39 = vpop.f32.mrb[35].mxu1 }
 0x5e0   :  { %v2615_v28 = vrot.slane %v2534_v39, %v25713_v26 }
 0x5e1   :  { %v22204_v63 = vsub.f32 %v25717_v50, %v2611_v32  ;;  %v22214_v0 = vsub.f32 %v25719_v57, %v2611_v32  ;;  %v22220_v8 = vsub.f32 %v25721_v38, %v2611_v32  ;;  %v22239_v35 = vsub.f32 %v25722_v31, %v2611_v32 }
 0x5e2   :  { %v2603_v52 = vpop.f32.mrb[36].mxu1  ;;  %v22195_v61 = vsub.f32 %v25714_v56, %v2615_v28  ;;  %v22198_v10 = vsub.f32 %v25715_v3, %v2615_v28  ;;  %v22201_v29 = vsub.f32 %v25716_v16, %v2615_v28  ;;  %v22207_v25 = vsub.f32 %v25718_v49, %v2615_v28  ;;  %v25727_v56 = vld [vmem:[#allocation49_spill] sm:$0xff] }
 0x5e3   :  { %v2605_v37 = vpop.f32.mrb[37].mxu1  ;;  %v22217_v1 = vsub.f32 %v25720_v7, %v2615_v28  ;;  %v22226_v20 = vsub.f32 %v22111_v60, %v2615_v28  ;;  %v22229_v4 = vsub.f32 %v22128_v12, %v2615_v28  ;;  %v22232_v40 = vsub.f32 %v22142_v19, %v2615_v28  ;;  %v25723_v19 = vld [vmem:[#allocation50_spill] sm:$0xff]  ;;  %v25728_v7 = vld [vmem:[#allocation35_spill] sm:$0xff] }
 0x5e4   :  { %v2657_v34 = vmul.f32 %v22195_v61, %v22195_v61  ;;  %v2661_v17 = vmul.f32 %v22198_v10, %v22198_v10  ;;  %v2623_v14 = vrot.slane %v2605_v37, %v25713_v26  ;;  %v2665_v33 = vmul.f32 %v22201_v29, %v22201_v29 }
 0x5e5   :  { %v2656_v46 = vmul.f32 %v22204_v63, %v22204_v63  ;;  %v2669_v44 = vmul.f32 %v22207_v25, %v22207_v25  ;;  %v2660_v60 = vmul.f32 %v22214_v0, %v22214_v0  ;;  %v22244_v43 = vrot.slane %v2603_v52, %v25713_v26 }
 0x5e6   :  { %v2701_v9 = vadd.f32 %v2661_v17, %v2657_v34  ;;  %v2673_v12 = vmul.f32 %v22217_v1, %v22217_v1  ;;  %v22249_v47 = vsub.f32 %v25723_v19, %v2611_v32  ;;  %v2664_v58 = vmul.f32 %v22220_v8, %v22220_v8  ;;  %v25730_v19 = vld [vmem:[#allocation55_spill] sm:$0xff] }
 0x5e7   :  { %v2688_v22 = vadd.f32 %v2660_v60, %v2656_v46  ;;  %v22254_v42 = vsub.f32 %v25724_v36, %v2623_v14  ;;  %v22257_v45 = vsub.f32 %v25725_v51, %v2623_v14  ;;  %v2677_v48 = vmul.f32 %v22226_v20, %v22226_v20 }
 0x5e8   :  { %v2702_v21 = vadd.f32 %v2701_v9, %v2665_v33  ;;  %v2681_v54 = vmul.f32 %v22229_v4, %v22229_v4  ;;  %v2685_v41 = vmul.f32 %v22232_v40, %v22232_v40  ;;  %v22266_v59 = vsub.f32 %v25726_v11, %v2623_v14  ;;  %v25729_v9 = vld [vmem:[#allocation39_spill] sm:$0xff] }
 0x5e9   :  { %v22269_v18 = vsub.f32 %v22104_v30, %v2611_v32  ;;  %v2668_v39 = vmul.f32 %v22239_v35, %v22239_v35  ;;  %v2689_v28 = vadd.f32 %v2688_v22, %v2664_v58  ;;  %v22274_v52 = vsub.f32 %v22117_v62, %v2611_v32 }
 0x5ea   :  { %v2703_v2 = vadd.f32 %v2702_v21, %v2669_v44  ;;  %v22277_v3 = vsub.f32 %v25727_v56, %v2623_v14  ;;  %v2659_v16 = vmul.f32 %v22254_v42, %v22254_v42  ;;  %v2663_v37 = vmul.f32 %v22257_v45, %v22257_v45 }
 0x5eb   :  { %v22284_v30 = vsub.f32 %v22134_v24, %v2611_v32  ;;  %v2672_v49 = vmul.f32 %v22249_v47, %v22249_v47  ;;  %v2690_v34 = vadd.f32 %v2689_v28, %v2668_v39  ;;  %v22289_v62 = vsub.f32 %v22100_v23, %v2623_v14 }
 0x5ec   :  { %v2704_v13 = vadd.f32 %v2703_v2, %v2673_v12  ;;  %v2667_v17 = vmul.f32 %v22266_v59, %v22266_v59  ;;  %v2727_v57 = vadd.f32 %v2663_v37, %v2659_v16  ;;  %v22295_v38 = vsub.f32 %v25728_v7, %v22244_v43  ;;  %v25731_v2 = vld [vmem:[#allocation43_spill] sm:$0xff] }
 0x5ed   :  { %v2676_v24 = vmul.f32 %v22269_v18, %v22269_v18  ;;  %v2691_v32 = vadd.f32 %v2690_v34, %v2672_v49  ;;  %v22301_v46 = vsub.f32 %v25729_v9, %v22244_v43  ;;  %v2680_v23 = vmul.f32 %v22274_v52, %v22274_v52  ;;  %v25733_v37 = vld [vmem:[#allocation51_spill] sm:$0xff] }
 0x5ee   :  { %v2705_v50 = vadd.f32 %v2704_v13, %v2677_v48  ;;  %v22306_v44 = vsub.f32 %v22115_v27, %v2623_v14  ;;  %v2671_v21 = vmul.f32 %v22277_v3, %v22277_v3  ;;  %v2728_v31 = vadd.f32 %v2727_v57, %v2667_v17  ;;  %v25732_v13 = vld [vmem:[#allocation47_spill] sm:$0xff] }
 0x5ef   :  { %v2692_v12 = vadd.f32 %v2691_v32, %v2676_v24  ;;  %v22311_v58 = vsub.f32 %v25730_v19, %v2623_v14  ;;  %v22315_v22 = vsub.f32 %v25731_v2, %v22244_v43  ;;  %v2675_v36 = vmul.f32 %v22289_v62, %v22289_v62 }
 0x5f0   :  { %v2706_v33 = vadd.f32 %v2705_v50, %v2681_v54  ;;  %v2729_v51 = vadd.f32 %v2728_v31, %v2671_v21  ;;  %v2658_v27 = vmul.f32 %v22295_v38, %v22295_v38  ;;  %v2662_v48 = vmul.f32 %v22301_v46, %v22301_v46 }
 0x5f1   :  { %v2693_v11 = vadd.f32 %v2692_v12, %v2680_v23  ;;  %v22327_v39 = vsub.f32 %v25732_v13, %v22244_v43  ;;  %v22330_v28 = vsub.f32 %v22145_v5, %v2623_v14  ;;  %v2679_v56 = vmul.f32 %v22306_v44, %v22306_v44  ;;  %v25734_v5 = vld [vmem:[#allocation53_spill] sm:$0xff] }
 0x5f2   :  { %v2707_v60 = vadd.f32 %v2706_v33, %v2685_v41  ;;  %v2684_v41 = vmul.f32 %v22284_v30, %v22284_v30  ;;  %v2730_v16 = vadd.f32 %v2729_v51, %v2675_v36  ;;  %v22336_v50 = vsub.f32 %v25733_v37, %v22244_v43 }
 0x5f3   :  { %v2666_v17 = vmul.f32 %v22315_v22, %v22315_v22  ;;  %v2714_v57 = vadd.f32 %v2662_v48, %v2658_v27  ;;  %v2683_v7 = vmul.f32 %v22311_v58, %v22311_v58  ;;  %v22344_v14 = vsub.f32 %v25734_v5, %v22244_v43  ;;  %v25736_v48 = vld [vmem:[#allocation56_spill] sm:$0xff] }
 0x5f4   :  { %v2708_v54 = vrot.slane %v2707_v60, 4  ;;  %v2694_v34 = vadd.f32 %v2693_v11, %v2684_v41  ;;  %v2731_v33 = vadd.f32 %v2730_v16, %v2679_v56  ;;  %v2670_v9 = vmul.f32 %v22327_v39, %v22327_v39 }
 0x5f5   :  { %v2715_v23 = vadd.f32 %v2714_v57, %v2666_v17  ;;  %v2687_v21 = vmul.f32 %v22330_v28, %v22330_v28  ;;  %v2674_v36 = vmul.f32 %v22336_v50, %v22336_v50  ;;  %v2678_v13 = vmul.f32 %v22344_v14, %v22344_v14 }
 0x5f6   :  { %v2709_v49 = vadd.f32 %v2708_v54, %v2707_v60  ;;  %v2695_v32 = vrot.slane %v2694_v34, 4  ;;  %v2732_v31 = vadd.f32 %v2731_v33, %v2683_v7  ;;  %v25735_v60 = vld [vmem:[#allocation54_spill] sm:$0xff]  ;;  %v22358_v54 = vsub.f32 %v25736_v48, %v22244_v43 }
 0x5f7   :  { %v22352_v12 = vsub.f32 %v25735_v60, %v22244_v43  ;;  %v2716_v51 = vadd.f32 %v2715_v23, %v2670_v9 }
 0x5f8   :  { %v2710_v24 = vrot.slane %v2709_v49, 2  ;;  %v2696_v2 = vadd.f32 %v2695_v32, %v2694_v34  ;;  %v2733_v27 = vadd.f32 %v2732_v31, %v2687_v21  ;;  %v2686_v43 = vmul.f32 %v22358_v54, %v22358_v54 }
 0x5f9   :  { %v2717_v56 = vadd.f32 %v2716_v51, %v2674_v36 }
 0x5fa   :  { %v2711_v19 = vadd.f32 %v2710_v24, %v2709_v49  ;;  %v2697_v11 = vrot.slane %v2696_v2, 2  ;;  %v2734_v16 = vrot.slane %v2733_v27, 4  ;;  %v2682_v49 = vmul.f32 %v22352_v12, %v22352_v12 }
 0x5fb   :  { %v2718_v34 = vadd.f32 %v2717_v56, %v2678_v13 }
 0x5fc   :  { %v2712_v41 = vrot.slane %v2711_v19, 1  ;;  %v2698_v17 = vadd.f32 %v2697_v11, %v2696_v2  ;;  %v2735_v57 = vadd.f32 %v2734_v16, %v2733_v27  ;;  %v25737_v27 = vmov 0  }
 0x5fd   :  { %v2719_v33 = vadd.f32 %v2718_v34, %v2682_v49  ;;  %v3078_v34 = vld [vmem:[#allocation8 + $0x1] ss:$4 sm:$0xf] }
 0x5fe   :  { %v2713_v37 = vadd.f32 %v2712_v41, %v2711_v19  ;;  %v2699_v7 = vrot.slane %v2698_v17, 1  ;;  %v2736_v5 = vrot.slane %v2735_v57, 2 }
 0x5ff   :  { %v2720_v32 = vadd.f32 %v2719_v33, %v2686_v43  ;;  %v25738_v43 = vld [vmem:[#allocation32_spill] sm:$0xff] }
 0x600   :  { %2804 = vmatprep.mubr.f32.mxu1 %v2713_v37  ;;  %v2700_v24 = vadd.f32 %v2699_v7, %v2698_v17  ;;  %v2737_v9 = vadd.f32 %v2736_v5, %v2735_v57  ;;  %v3133_v57 = vld [vmem:[#allocation8 + $0x2] ss:$4 sm:$0xf]  ;;  %v22376_v33 = vrot.slane %v3078_v34, %v25738_v43  ;;  %v22379_v5 = vrot.slane %v3078_v34, %v25713_v26 }
 0x601   :  { %v2721_v23 = vrot.slane %v2720_v32, 4 }
 0x602   :  { %2805 = vmatmul.mubr.f32.vlgmr.msra.gmra.mrb[38].mxu1 %v2700_v24  ;;  %v2738_v21 = vrot.slane %v2737_v9, 1 }
 0x603   :  { %18106 = vmatpush1.bf16.msra.mxu1 %v22163_v55  ;;  %2951 = vmatprep.mubr.f32.mxu1 %v25621_v15  ;;  %v2722_v31 = vadd.f32 %v2721_v23, %v2720_v32  ;;  %v25739_v23 = vld [vmem:[#allocation33_spill] sm:$0xff] }
 0x604   :  { %18108 = vmatprep.subr.bf16.mxu1 %v22166_v6  ;;  %v2739_v60 = vadd.f32 %v2738_v21, %v2737_v9  ;;  %v22388_v9 = vrot.slane %v3133_v57, %v25713_v26  ;;  %v22391_v21 = vrot.slane %v3078_v34, %v25739_v23 }
 0x605   :  { %v2723_v19 = vrot.slane %v2722_v31, 2 }
 0x606   :  { %2874 = vmatprep.mubr.f32.mxu0 %v2739_v60  ;;  %v22397_v60 = vrot.slane %v3133_v57, %v25739_v23 }
 0x607   :  { %v2724_v2 = vadd.f32 %v2723_v19, %v2722_v31  ;;  %v25740_v19 = vld [vmem:[#allocation31_spill] sm:$0xff] }
 0x609   :  { %v2725_v36 = vrot.slane %v2724_v2, 1 }
 0x60b   :  { %v2726_v51 = vadd.f32 %v2725_v36, %v2724_v2  ;;  %v22400_v2 = vrot.slane %v3078_v34, %v25740_v19  ;;  %v22403_v36 = vrot.slane %v3133_v57, %v25740_v19 }
 0x60d   :  { %2875 = vmatmul.mubr.f32.vlgmr.msra.gmra.mrb[50].mxu0 %v2726_v51 }
 0x60e   :  { %3308 = vmatprep.mubr.bf16.mxu0 %v25737_v27 }
 0x6d5   :  { %v17509_v48 = vpop.f32.mrb[38].mxu1 }
 0x6d6   :  { %v17510_v41 = vpop.f32.mrb[39].mxu1 }
 0x6d7   :  { %v17511_v11 = vadd.f32 %v17510_v41, %v17509_v48 }
 0x6e0   :  { %v17544_v13 = vpop.f32.mrb[50].mxu0 }
 0x6e1   :  { %v17545_v56 = vpop.f32.mrb[51].mxu0 }
 0x6e2   :  { %v17546_v55 = vadd.f32 %v17545_v56, %v17544_v13 }
 0x6e4   :  { %v2877_v16 = vadd.f32 %v17546_v55, %v17511_v11 }
 0x6e6   :  { %v2880_v37 = vmul.f32 0.00048828125, %v2877_v16 }
 0x6e8   :  { %v2881_v17 = vmax.f32 %v2880_v37, 0.0 }
 0x6ea   :  { %v2882_v49 = vadd.f32 1e-05, %v2881_v17 }
 0x6ec   :  { %20914 = vrsqrt.f32 %v2882_v49 }
 0x6f6   :  { %v20915_v6 = vpop.eup %20914 }
 0x6f7   :  { %15943 = vmatmul.mubr.msk.f32.vlgmr.msra.gmra.mrb[40].mxu1 %vm2462_vm3, %v20915_v6 }
 0x6f8   :  { %18110 = vmatpush1.bf16.msra.mxu1 %v22170_v53  ;;  %3022 = vmatprep.mubr.f32.mxu1 %v25621_v15  ;;  %v22385_v53 = vrot.slane %v3133_v57, %v25738_v43 }
 0x6fb   :  { %15944 = vmatmul.mubr.msk.f32.vlgmr.msra.gmra.mrb[42].mxu1 %vm2462_vm3, %v20915_v6 }
 0x6fc   :  { %3255 = vmatprep.mubr.bf16.mxu1 %v25737_v27 }
 0x7ca   :  { %v2953_v7 = vpop.f32.mrb[40].mxu1 }
 0x7cb   :  { %v22382_v24 = vrot.slane %v2953_v7, %v25713_v26  ;;  %v2955_v32 = vpop.f32.mrb[41].mxu1 }
 0x7cc   :  { %v22394_v31 = vrot.slane %v2955_v32, %v25713_v26 }
 0x7cd   :  { %v3045_v51 = vmul.f32 %v22382_v24, %v22204_v63  ;;  %v3049_v48 = vmul.f32 %v22382_v24, %v22214_v0  ;;  %v3053_v41 = vmul.f32 %v22382_v24, %v22220_v8  ;;  %v3057_v11 = vmul.f32 %v22382_v24, %v22239_v35 }
 0x7ce   :  { %v3024_v13 = vpop.f32.mrb[42].mxu1  ;;  %v3046_v56 = vmul.f32 %v22394_v31, %v22195_v61  ;;  %v3050_v55 = vmul.f32 %v22394_v31, %v22198_v10  ;;  %v3054_v16 = vmul.f32 %v22394_v31, %v22201_v29  ;;  %v3058_v63 = vmul.f32 %v22394_v31, %v22207_v25 }
 0x7cf   :  { %v22422_v0 = vrot.slane %v3024_v13, %v25713_v26  ;;  %v3026_v8 = vpop.f32.mrb[43].mxu1  ;;  %v3100_v37 = vmul.f32 %v22379_v5, %v3045_v51  ;;  %v3104_v35 = vmul.f32 %v22379_v5, %v3049_v48  ;;  %v3108_v17 = vmul.f32 %v22379_v5, %v3053_v41 }
 0x7d0   :  { %v22428_v61 = vrot.slane %v3026_v8, %v25713_v26  ;;  %v3101_v10 = vmul.f32 %v22376_v33, %v3046_v56  ;;  %v3105_v29 = vmul.f32 %v22376_v33, %v3050_v55  ;;  %v3109_v49 = vmul.f32 %v22376_v33, %v3054_v16 }
 0x7d1   :  { %v3155_v25 = vadd.f32 %v22388_v9, %v3100_v37  ;;  %v3159_v6 = vadd.f32 %v22388_v9, %v3104_v35  ;;  %v3113_v34 = vmul.f32 %v22376_v33, %v3058_v63  ;;  %v3112_v57 = vmul.f32 %v22379_v5, %v3057_v11 }
 0x7d2   :  { %v3156_v7 = vadd.f32 %v22385_v53, %v3101_v10  ;;  %v3160_v32 = vadd.f32 %v22385_v53, %v3105_v29  ;;  %v3164_v51 = vadd.f32 %v22385_v53, %v3109_v49  ;;  %v3048_v48 = vmul.f32 %v22428_v61, %v22254_v42 }
 0x7d3   :  { %v22442_v41 = vpack.c.bf16 %v3159_v6, %v3155_v25  ;;  %v3168_v13 = vadd.f32 %v22385_v53, %v3113_v34  ;;  %v3052_v56 = vmul.f32 %v22428_v61, %v22257_v45  ;;  %v3163_v55 = vadd.f32 %v22388_v9, %v3108_v17 }
 0x7d4   :  { %v22448_v16 = vpack.c.bf16 %v3160_v32, %v3156_v7  ;;  %v3103_v11 = vmul.f32 %v22391_v21, %v3048_v48  ;;  %v3167_v63 = vadd.f32 %v22388_v9, %v3112_v57  ;;  %v3047_v8 = vmul.f32 %v22422_v0, %v22295_v38 }
 0x7d5   :  { %v22454_v37 = vpack.c.bf16 %v3168_v13, %v3164_v51  ;;  %v3107_v42 = vmul.f32 %v22391_v21, %v3052_v56  ;;  %v3051_v35 = vmul.f32 %v22422_v0, %v22301_v46  ;;  %v3062_v45 = vmul.f32 %v22394_v31, %v22217_v1 }
 0x7d6   :  { %3223 = vmatprep.subr.bf16.mxu1 %v22448_v16  ;;  %v3158_v17 = vadd.f32 %v22397_v60, %v3103_v11  ;;  %v22463_v10 = vpack.c.bf16 %v3167_v63, %v3163_v55  ;;  %v3102_v29 = vmul.f32 %v22400_v2, %v3047_v8  ;;  %v3066_v38 = vmul.f32 %v22394_v31, %v22226_v20 }
 0x7d7   :  { %3224 = vmatpush1.bf16.msra.mxu1 %v22442_v41  ;;  %v3162_v49 = vadd.f32 %v22397_v60, %v3107_v42  ;;  %v3106_v46 = vmul.f32 %v22400_v2, %v3051_v35  ;;  %v3117_v25 = vmul.f32 %v22376_v33, %v3062_v45  ;;  %v3056_v1 = vmul.f32 %v22428_v61, %v22266_v59 }
 0x7d8   :  { %3225 = vmatprep.subr.bf16.mxu1 %v22454_v37  ;;  %v3157_v6 = vadd.f32 %v22403_v36, %v3102_v29  ;;  %v3121_v34 = vmul.f32 %v22376_v33, %v3066_v38  ;;  %v3060_v20 = vmul.f32 %v22428_v61, %v22277_v3  ;;  %v3061_v57 = vmul.f32 %v22382_v24, %v22249_v47 }
 0x7d9   :  { %v22481_v7 = vpack.c.bf16 %v3162_v49, %v3158_v17  ;;  %v3161_v32 = vadd.f32 %v22403_v36, %v3106_v46  ;;  %v3172_v51 = vadd.f32 %v22385_v53, %v3117_v25  ;;  %v3111_v59 = vmul.f32 %v22391_v21, %v3056_v1 }
 0x7da   :  { %v3176_v48 = vadd.f32 %v22385_v53, %v3121_v34  ;;  %v3115_v13 = vmul.f32 %v22391_v21, %v3060_v20  ;;  %v3065_v56 = vmul.f32 %v22382_v24, %v22269_v18  ;;  %v3116_v3 = vmul.f32 %v22379_v5, %v3061_v57 }
 0x7db   :  { %3276 = vmatprep.subr.bf16.mxu0 %v22481_v7  ;;  %3226 = vmatpush1.bf16.msra.mxu1 %v22463_v10  ;;  %v22493_v47 = vpack.c.bf16 %v3161_v32, %v3157_v6  ;;  %v3166_v55 = vadd.f32 %v22397_v60, %v3111_v59  ;;  %v3055_v11 = vmul.f32 %v22422_v0, %v22315_v22 }
 0x7dc   :  { %v22498_v63 = vpack.c.bf16 %v3176_v48, %v3172_v51  ;;  %v3170_v8 = vadd.f32 %v22397_v60, %v3115_v13  ;;  %v3120_v42 = vmul.f32 %v22379_v5, %v3065_v56  ;;  %v3171_v18 = vadd.f32 %v22388_v9, %v3116_v3 }
 0x7dd   :  { %3277 = vmatpush1.bf16.msra.mxu0 %v22493_v47  ;;  %v3059_v35 = vmul.f32 %v22422_v0, %v22327_v39  ;;  %v3110_v45 = vmul.f32 %v22400_v2, %v3055_v11  ;;  %v3070_v17 = vmul.f32 %v22394_v31, %v22229_v4  ;;  %v3074_v22 = vmul.f32 %v22394_v31, %v22232_v40 }
 0x7de   :  { %3227 = vmatprep.subr.bf16.mxu1 %v22498_v63  ;;  %v22512_v29 = vpack.c.bf16 %v3170_v8, %v3166_v55  ;;  %v3175_v38 = vadd.f32 %v22388_v9, %v3120_v42  ;;  %v3064_v49 = vmul.f32 %v22428_v61, %v22289_v62  ;;  %v3068_v39 = vmul.f32 %v22428_v61, %v22306_v44 }
 0x7df   :  { %v3114_v46 = vmul.f32 %v22400_v2, %v3059_v35  ;;  %v3165_v25 = vadd.f32 %v22403_v36, %v3110_v45  ;;  %v3125_v4 = vmul.f32 %v22376_v33, %v3070_v17  ;;  %v3129_v40 = vmul.f32 %v22376_v33, %v3074_v22  ;;  %v19179_v22 = vld [vmem:[%s25741_s26 + $0x10] sm:$0xff]  }
 0x7e0   :  { %3278 = vmatprep.subr.bf16.mxu0 %v22512_v29  ;;  %v22524_v31 = vpack.c.bf16 %v3175_v38, %v3171_v18  ;;  %v3119_v1 = vmul.f32 %v22391_v21, %v3064_v49  ;;  %v3123_v6 = vmul.f32 %v22391_v21, %v3068_v39  ;;  %v3069_v62 = vmul.f32 %v22382_v24, %v22274_v52  ;;  %v19181_v38 = vld [vmem:[%s25742_s24 + $0x400] ss:$16 sps:$4 sm:$0xff]   ;;  %v19189_v49 = vld [vmem:[%s25742_s24 + $0x424] ss:$16 sps:$4 sm:$0xff]   ;;  %v19186_v39 = vld [vmem:[%s25742_s24 + $0x40c] ss:$16 sps:$4 sm:$0xff]  }
 0x7e1   :  { %v3169_v44 = vadd.f32 %v22403_v36, %v3114_v46  ;;  %v3180_v34 = vadd.f32 %v22385_v53, %v3125_v4  ;;  %v3184_v20 = vadd.f32 %v22385_v53, %v3129_v40  ;;  %v3073_v33 = vmul.f32 %v22382_v24, %v22284_v30  ;;  %v19187_v46 = vld [vmem:[%s25742_s24 + $0x420] ss:$16 sps:$4 sm:$0xff]   ;;  %v19184_v4 = vld [vmem:[%s25742_s24 + $0x408] ss:$16 sps:$4 sm:$0xff]  }
 0x7e2   :  { %3228 = vmatpush1.bf16.msra.mxu1 %v22524_v31  ;;  %v3174_v57 = vadd.f32 %v22397_v60, %v3119_v1  ;;  %v3178_v32 = vadd.f32 %v22397_v60, %v3123_v6  ;;  %v3124_v51 = vmul.f32 %v22379_v5, %v3069_v62  ;;  %v3063_v52 = vmul.f32 %v22422_v0, %v22336_v50  ;;  %v19180_v40 = vld [vmem:[%s25741_s26 + $0x18] sm:$0xff]   ;;  %v19193_v6 = vld [vmem:[%s25742_s24 + $0x440] ss:$16 sps:$4 sm:$0xff]   ;;  %v19201_v62 = vld [vmem:[%s25742_s24 + $0x464] ss:$16 sps:$4 sm:$0xff]  }
 0x7e3   :  { %v22541_v59 = vpack.c.bf16 %v3169_v44, %v3165_v25  ;;  %v22543_v48 = vpack.c.bf16 %v3184_v20, %v3180_v34  ;;  %v3128_v53 = vmul.f32 %v22379_v5, %v3073_v33  ;;  %v3067_v30 = vmul.f32 %v22422_v0, %v22344_v14  ;;  %v19195_v25 = vld [vmem:[%s25742_s24 + $0x444] ss:$16 sps:$4 sm:$0xff]   ;;  %v19192_v1 = vld [vmem:[%s25742_s24 + $0x42c] ss:$16 sps:$4 sm:$0xff]   ;;  %v19190_v44 = vld [vmem:[%s25742_s24 + $0x428] ss:$16 sps:$4 sm:$0xff]  }
 0x7e4   :  { %v22548_v24 = vpack.c.bf16 %v3178_v32, %v3174_v57  ;;  %v3179_v13 = vadd.f32 %v22388_v9, %v3124_v51  ;;  %v3118_v56 = vmul.f32 %v22400_v2, %v3063_v52  ;;  %v3072_v3 = vmul.f32 %v22428_v61, %v22311_v58  ;;  %v19198_v34 = vld [vmem:[%s25742_s24 + $0x44c] ss:$16 sps:$4 sm:$0xff]   ;;  %v19199_v20 = vld [vmem:[%s25742_s24 + $0x460] ss:$16 sps:$4 sm:$0xff]   ;;  %v19207_v33 = vld [vmem:[%s25742_s24 + $0x484] ss:$16 sps:$4 sm:$0xff]  }
 0x7e5   :  { %3279 = vmatpush1.bf16.msra.mxu0 %v22541_v59  ;;  %3229 = vmatprep.subr.bf16.mxu1 %v22543_v48  ;;  %v3183_v50 = vadd.f32 %v22388_v9, %v3128_v53  ;;  %v3122_v5 = vmul.f32 %v22400_v2, %v3067_v30  ;;  %v3076_v14 = vmul.f32 %v22428_v61, %v22330_v28  ;;  %v19177_v61 = vld [vmem:[%s25741_s26] sm:$0xff]   ;;  %v19196_v57 = vld [vmem:[%s25742_s24 + $0x448] ss:$16 sps:$4 sm:$0xff]   ;;  %v19204_v32 = vld [vmem:[%s25742_s24 + $0x46c] ss:$16 sps:$4 sm:$0xff]  }
 0x7e6   :  { %3280 = vmatprep.subr.bf16.mxu0 %v22548_v24  ;;  %v3173_v55 = vadd.f32 %v22403_v36, %v3118_v56  ;;  %v3127_v11 = vmul.f32 %v22391_v21, %v3072_v3  ;;  %v3071_v58 = vmul.f32 %v22422_v0, %v22352_v12  ;;  %v3075_v8 = vmul.f32 %v22422_v0, %v22358_v54  ;;  %v19205_v51 = vld [vmem:[%s25742_s24 + $0x480] ss:$16 sps:$4 sm:$0xff]   ;;  %v19213_v52 = vld [vmem:[%s25742_s24 + $0x4a4] ss:$16 sps:$4 sm:$0xff]   ;;  %v19202_v53 = vld [vmem:[%s25742_s24 + $0x468] ss:$16 sps:$4 sm:$0xff]  }
 0x7e7   :  { %v22567_v42 = vpack.c.bf16 %v3183_v50, %v3179_v13  ;;  %v3177_v9 = vadd.f32 %v22403_v36, %v3122_v5  ;;  %v3131_v18 = vmul.f32 %v22391_v21, %v3076_v14  ;;  %v19210_v30 = vld [vmem:[%s25742_s24 + $0x48c] ss:$16 sps:$4 sm:$0xff]   ;;  %v19211_v13 = vld [vmem:[%s25742_s24 + $0x4a0] ss:$16 sps:$4 sm:$0xff]   ;;  %v19219_v56 = vld [vmem:[%s25742_s24 + $0x4c4] ss:$16 sps:$4 sm:$0xff]  }
 0x7e8   :  { %v3182_v28 = vadd.f32 %v22397_v60, %v3127_v11  ;;  %v3126_v35 = vmul.f32 %v22400_v2, %v3071_v58  ;;  %v3130_v45 = vmul.f32 %v22400_v2, %v3075_v8  ;;  %v19208_v3 = vld [vmem:[%s25742_s24 + $0x488] ss:$16 sps:$4 sm:$0xff]   ;;  %v19216_v50 = vld [vmem:[%s25742_s24 + $0x4ac] ss:$16 sps:$4 sm:$0xff]   ;;  %v19217_v5 = vld [vmem:[%s25742_s24 + $0x4c0] ss:$16 sps:$4 sm:$0xff]  }
 0x7e9   :  { %3230 = vmatpush1.bf16.msra.mxu1 %v22567_v42  ;;  %v22578_v12 = vpack.c.bf16 %v3177_v9, %v3173_v55  ;;  %v3186_v54 = vadd.f32 %v22397_v60, %v3131_v18  ;;  %v19178_v60 = vld [vmem:[%s25741_s26 + $0x8] sm:$0xff]   ;;  %v19225_v14 = vld [vmem:[%s25742_s24 + $0x4e4] ss:$16 sps:$4 sm:$0xff]   ;;  %v19223_v58 = vld [vmem:[%s25742_s24 + $0x4e0] ss:$16 sps:$4 sm:$0xff]  }
 0x7ea   :  { %3486 = vmatprep.subr.bf16.mxu1 %v22448_v16  ;;  %v3181_v21 = vadd.f32 %v22403_v36, %v3126_v35  ;;  %v3185_v0 = vadd.f32 %v22403_v36, %v3130_v45  ;;  %v19183_v36 = vld [vmem:[%s25742_s24 + $0x404] ss:$16 sps:$4 sm:$0xff]   ;;  %v19214_v55 = vld [vmem:[%s25742_s24 + $0x4a8] ss:$16 sps:$4 sm:$0xff]   ;;  %v19222_v11 = vld [vmem:[%s25742_s24 + $0x4cc] ss:$16 sps:$4 sm:$0xff]  }
 0x7eb   :  { %3281 = vmatpush1.bf16.msra.mxu0 %v22578_v12  ;;  %v22585_v17 = vpack.c.bf16 %v3186_v54, %v3182_v28  ;;  %v19231_v8 = vld [vmem:[%s25742_s24 + $0x504] ss:$16 sps:$4 sm:$0xff]   ;;  %v19220_v9 = vld [vmem:[%s25742_s24 + $0x4c8] ss:$16 sps:$4 sm:$0xff]   ;;  %v19228_v18 = vld [vmem:[%s25742_s24 + $0x4ec] ss:$16 sps:$4 sm:$0xff]  }
 0x7ec   :  { %15947 = vmatmul.mubr.msk.bf16.vlgmr.msra.gmra.mrb[44].mxu1 %vm897_vm0, %v19177_v61  ;;  %v22589_v2 = vpack.c.bf16 %v3185_v0, %v3181_v21  ;;  %v19229_v28 = vld [vmem:[%s25742_s24 + $0x500] ss:$16 sps:$4 sm:$0xff]   ;;  %v19226_v35 = vld [vmem:[%s25742_s24 + $0x4e8] ss:$16 sps:$4 sm:$0xff]   ;;  %v19234_v45 = vld [vmem:[%s25742_s24 + $0x50c] ss:$16 sps:$4 sm:$0xff]  }
 0x7ed   :  { %3282 = vmatprep.subr.bf16.mxu0 %v22585_v17  ;;  %3487 = vmatpush1.bf16.msra.mxu1 %v22442_v41  ;;  %v19235_v54 = vld [vmem:[%s25742_s24 + $0x520] ss:$16 sps:$4 sm:$0xff]   ;;  %v19243_v21 = vld [vmem:[%s25742_s24 + $0x544] ss:$16 sps:$4 sm:$0xff]   ;;  %v19232_v0 = vld [vmem:[%s25742_s24 + $0x508] ss:$16 sps:$4 sm:$0xff]  }
 0x7ee   :  { %3488 = vmatprep.subr.bf16.mxu1 %v22454_v37  ;;  %3265 = vmatprep.mubr.bf16.mxu1 %v25737_v27 }
 0x7ef   :  { %3283 = vmatpush1.bf16.msra.mxu0 %v22589_v2 }
 0x7f0   :  { %3539 = vmatprep.subr.bf16.mxu0 %v22481_v7 }
 0x7f1   :  { %3489 = vmatpush1.bf16.msra.mxu1 %v22463_v10 }
 0x7f2   :  { %15949 = vmatmul.mubr.msk.bf16.vlgmr.msra.gmra.mrb[52].mxu0 %vm897_vm0, %v19177_v61  ;;  %3490 = vmatprep.subr.bf16.mxu1 %v22498_v63  ;;  %v19237_v61 = vld [vmem:[%s25742_s24 + $0x524] ss:$16 sps:$4 sm:$0xff]  }
 0x7f3   :  { %3540 = vmatpush1.bf16.msra.mxu0 %v22493_v47  ;;  %3318 = vmatprep.mubr.bf16.mxu0 %v25737_v27 }
 0x7f4   :  { %3541 = vmatprep.subr.bf16.mxu0 %v22512_v29  ;;  %15948 = vmatmul.mubr.msk.bf16.gmra.mrb[48].mxu1 %vm897_vm0, %v19178_v60 }
 0x7f5   :  { %3491 = vmatpush1.bf16.msra.mxu1 %v22524_v31  ;;  %3518 = vmatprep.mubr.bf16.mxu1 %v25737_v27 }
 0x7f6   :  { %3492 = vmatprep.subr.bf16.mxu1 %v22543_v48 }
 0x7f7   :  { %3542 = vmatpush1.bf16.msra.mxu0 %v22541_v59 }
 0x7f8   :  { %3543 = vmatprep.subr.bf16.mxu0 %v22548_v24 }
 0x7f9   :  { %3493 = vmatpush1.bf16.msra.mxu1 %v22567_v42 }
 0x7fa   :  { %15950 = vmatmul.mubr.msk.bf16.gmra.mrb[56].mxu0 %vm897_vm0, %v19178_v60  ;;  %4369 = vmatprep.subr.bf16.mxu1 %v19183_v36  ;;  %v19240_v60 = vld [vmem:[%s25742_s24 + $0x52c] ss:$16 sps:$4 sm:$0xff]   ;;  %v19241_v36 = vld [vmem:[%s25742_s24 + $0x540] ss:$16 sps:$4 sm:$0xff]  }
 0x7fb   :  { %3544 = vmatpush1.bf16.msra.mxu0 %v22578_v12  ;;  %3571 = vmatprep.mubr.bf16.mxu0 %v25737_v27 }
 0x7fc   :  { %3545 = vmatprep.subr.bf16.mxu0 %v22585_v17  ;;  %15957 = vmatmul.mubr.msk.bf16.vlgmr.msra.gmra.mrb[52].mxu1 %vm897_vm0, %v19179_v22 }
 0x7fd   :  { %3528 = vmatprep.mubr.bf16.mxu1 %v25737_v27  ;;  %4370 = vmatpush1.bf16.msra.mxu1 %v19181_v38  ;;  %v19246_v38 = vld [vmem:[%s25742_s24 + $0x54c] ss:$16 sps:$4 sm:$0xff]  }
 0x7fe   :  { %4371 = vmatprep.subr.bf16.mxu1 %v19189_v49  ;;  %v19244_v49 = vld [vmem:[%s25742_s24 + $0x548] ss:$16 sps:$4 sm:$0xff]  }
 0x7ff   :  { %3546 = vmatpush1.bf16.msra.mxu0 %v22589_v2 }
 0x800   :  { %4475 = vmatprep.subr.bf16.mxu0 %v19186_v39  ;;  %v19247_v39 = vld [vmem:[%s25742_s24 + $0x560] ss:$16 sps:$4 sm:$0xff]  }
 0x801   :  { %4372 = vmatpush1.bf16.msra.mxu1 %v19187_v46  ;;  %v19249_v46 = vld [vmem:[%s25742_s24 + $0x564] ss:$16 sps:$4 sm:$0xff]  }
 0x802   :  { %15959 = vmatmul.mubr.msk.bf16.vlgmr.msra.gmra.mrb[60].mxu0 %vm897_vm0, %v19179_v22  ;;  %4373 = vmatprep.subr.bf16.mxu1 %v19195_v25  ;;  %v19238_v22 = vld [vmem:[%s25742_s24 + $0x528] ss:$16 sps:$4 sm:$0xff]  }
 0x803   :  { %3581 = vmatprep.mubr.bf16.mxu0 %v25737_v27  ;;  %4476 = vmatpush1.bf16.msra.mxu0 %v19184_v4  ;;  %v19250_v25 = vld [vmem:[%s25742_s24 + $0x568] ss:$16 sps:$4 sm:$0xff]   ;;  %v19252_v4 = vld [vmem:[%s25742_s24 + $0x56c] ss:$16 sps:$4 sm:$0xff]  }
 0x804   :  { %15958 = vmatmul.mubr.msk.bf16.gmra.mrb[56].mxu1 %vm897_vm0, %v19180_v40  ;;  %4477 = vmatprep.subr.bf16.mxu0 %v19192_v1  ;;  %v19258_v1 = vld [vmem:[%s25742_s24 + $0x58c] ss:$16 sps:$4 sm:$0xff]  }
 0x805   :  { %4374 = vmatpush1.bf16.msra.mxu1 %v19193_v6  ;;  %v19253_v6 = vld [vmem:[%s25742_s24 + $0x580] ss:$16 sps:$4 sm:$0xff]  }
 0x806   :  { %4375 = vmatprep.subr.bf16.mxu1 %v19201_v62  ;;  %v19256_v62 = vld [vmem:[%s25742_s24 + $0x588] ss:$16 sps:$4 sm:$0xff]  }
 0x807   :  { %4478 = vmatpush1.bf16.msra.mxu0 %v19190_v44  ;;  %v19259_v44 = vld [vmem:[%s25742_s24 + $0x5a0] ss:$16 sps:$4 sm:$0xff]  }
 0x808   :  { %4479 = vmatprep.subr.bf16.mxu0 %v19198_v34  ;;  %v19261_v34 = vld [vmem:[%s25742_s24 + $0x5a4] ss:$16 sps:$4 sm:$0xff]  }
 0x809   :  { %4376 = vmatpush1.bf16.msra.mxu1 %v19199_v20  ;;  %v19262_v20 = vld [vmem:[%s25742_s24 + $0x5a8] ss:$16 sps:$4 sm:$0xff]  }
 0x80a   :  { %15960 = vmatmul.mubr.msk.bf16.gmra.mrb[64].mxu0 %vm897_vm0, %v19180_v40  ;;  %4377 = vmatprep.subr.bf16.mxu1 %v19207_v33  ;;  %v19255_v40 = vld [vmem:[%s25742_s24 + $0x584] ss:$16 sps:$4 sm:$0xff]   ;;  %v19264_v33 = vld [vmem:[%s25742_s24 + $0x5ac] ss:$16 sps:$4 sm:$0xff]  }
 0x80b   :  { %4480 = vmatpush1.bf16.msra.mxu0 %v19196_v57  ;;  %v19267_v57 = vld [vmem:[%s25742_s24 + $0x5c4] ss:$16 sps:$4 sm:$0xff]  }
 0x80c   :  { %4481 = vmatprep.subr.bf16.mxu0 %v19204_v32  ;;  %v19270_v32 = vld [vmem:[%s25742_s24 + $0x5cc] ss:$16 sps:$4 sm:$0xff]  }
 0x80d   :  { %4378 = vmatpush1.bf16.msra.mxu1 %v19205_v51  ;;  %v19265_v51 = vld [vmem:[%s25742_s24 + $0x5c0] ss:$16 sps:$4 sm:$0xff]  }
 0x80e   :  { %4379 = vmatprep.subr.bf16.mxu1 %v19213_v52  ;;  %v19268_v52 = vld [vmem:[%s25742_s24 + $0x5c8] ss:$16 sps:$4 sm:$0xff]  }
 0x80f   :  { %4482 = vmatpush1.bf16.msra.mxu0 %v19202_v53  ;;  %v19271_v53 = vld [vmem:[%s25742_s24 + $0x5e0] ss:$16 sps:$4 sm:$0xff]  }
 0x810   :  { %4483 = vmatprep.subr.bf16.mxu0 %v19210_v30  ;;  %v19273_v30 = vld [vmem:[%s25742_s24 + $0x5e4] ss:$16 sps:$4 sm:$0xff]  }
 0x811   :  { %4380 = vmatpush1.bf16.msra.mxu1 %v19211_v13  ;;  %v19274_v13 = vld [vmem:[%s25742_s24 + $0x5e8] ss:$16 sps:$4 sm:$0xff]  }
 0x812   :  { %4381 = vmatprep.subr.bf16.mxu1 %v19219_v56  ;;  %v19276_v56 = vld [vmem:[%s25742_s24 + $0x5ec] ss:$16 sps:$4 sm:$0xff]  }
 0x813   :  { %4484 = vmatpush1.bf16.msra.mxu0 %v19208_v3  ;;  %v19279_v3 = vld [vmem:[%s25742_s24 + $0x604] ss:$16 sps:$4 sm:$0xff]  }
 0x814   :  { %4485 = vmatprep.subr.bf16.mxu0 %v19216_v50  ;;  %v19282_v50 = vld [vmem:[%s25742_s24 + $0x60c] ss:$16 sps:$4 sm:$0xff]  }
 0x815   :  { %4382 = vmatpush1.bf16.msra.mxu1 %v19217_v5 }
 0x816   :  { %4383 = vmatprep.subr.bf16.mxu1 %v19225_v14 }
 0x817   :  { %4486 = vmatpush1.bf16.msra.mxu0 %v19214_v55 }
 0x818   :  { %4487 = vmatprep.subr.bf16.mxu0 %v19222_v11 }
 0x819   :  { %4384 = vmatpush1.bf16.msra.mxu1 %v19223_v58 }
 0x81a   :  { %4385 = vmatprep.subr.bf16.mxu1 %v19231_v8 }
 0x81b   :  { %4488 = vmatpush1.bf16.msra.mxu0 %v19220_v9 }
 0x81c   :  { %4489 = vmatprep.subr.bf16.mxu0 %v19228_v18 }
 0x81d   :  { %4386 = vmatpush1.bf16.msra.mxu1 %v19229_v28 }
 0x81e   :  { %4387 = vmatprep.subr.bf16.mxu1 %v19237_v61 }
 0x81f   :  { %4490 = vmatpush1.bf16.msra.mxu0 %v19226_v35 }
 0x820   :  { %4491 = vmatprep.subr.bf16.mxu0 %v19234_v45 }
 0x821   :  { %4388 = vmatpush1.bf16.msra.mxu1 %v19235_v54 }
 0x822   :  { %4389 = vmatprep.subr.bf16.mxu1 %v19243_v21 }
 0x823   :  { %4492 = vmatpush1.bf16.msra.mxu0 %v19232_v0 }
 0x824   :  { %4493 = vmatprep.subr.bf16.mxu0 %v19240_v60 }
 0x825   :  { %4390 = vmatpush1.bf16.msra.mxu1 %v19241_v36 }
 0x826   :  { %4391 = vmatprep.subr.bf16.mxu1 %v19249_v46 }
 0x827   :  { %4494 = vmatpush1.bf16.msra.mxu0 %v19238_v22 }
 0x828   :  { %4495 = vmatprep.subr.bf16.mxu0 %v19246_v38 }
 0x829   :  { %4392 = vmatpush1.bf16.msra.mxu1 %v19247_v39 }
 0x82a   :  { %4393 = vmatprep.subr.bf16.mxu1 %v19255_v40 }
 0x82b   :  { %4496 = vmatpush1.bf16.msra.mxu0 %v19244_v49 }
 0x82c   :  { %4497 = vmatprep.subr.bf16.mxu0 %v19252_v4 }
 0x82d   :  { %4394 = vmatpush1.bf16.msra.mxu1 %v19253_v6 }
 0x82e   :  { %4395 = vmatprep.subr.bf16.mxu1 %v19261_v34 }
 0x82f   :  { %4498 = vmatpush1.bf16.msra.mxu0 %v19250_v25 }
 0x830   :  { %4499 = vmatprep.subr.bf16.mxu0 %v19258_v1 }
 0x831   :  { %4396 = vmatpush1.bf16.msra.mxu1 %v19259_v44 }
 0x832   :  { %4397 = vmatprep.subr.bf16.mxu1 %v19267_v57  ;;  %v19285_v57 = vld [vmem:[%s25742_s24 + $0x624] ss:$16 sps:$4 sm:$0xff]  }
 0x833   :  { %4500 = vmatpush1.bf16.msra.mxu0 %v19256_v62 }
 0x834   :  { %4501 = vmatprep.subr.bf16.mxu0 %v19264_v33  ;;  %v19280_v33 = vld [vmem:[%s25742_s24 + $0x608] ss:$16 sps:$4 sm:$0xff]  }
 0x835   :  { %4398 = vmatpush1.bf16.msra.mxu1 %v19265_v51 }
 0x836   :  { %4399 = vmatprep.subr.bf16.mxu1 %v19273_v30  ;;  %v19286_v30 = vld [vmem:[%s25742_s24 + $0x628] ss:$16 sps:$4 sm:$0xff]  }
 0x837   :  { %4502 = vmatpush1.bf16.msra.mxu0 %v19262_v20  ;;  %v19277_v20 = vld [vmem:[%s25742_s24 + $0x600] ss:$16 sps:$4 sm:$0xff]  }
 0x838   :  { %4503 = vmatprep.subr.bf16.mxu0 %v19270_v32  ;;  %v19288_v32 = vld [vmem:[%s25742_s24 + $0x62c] ss:$16 sps:$4 sm:$0xff]  }
 0x839   :  { %4400 = vmatpush1.bf16.msra.mxu1 %v19271_v53  ;;  %v19283_v53 = vld [vmem:[%s25742_s24 + $0x620] ss:$16 sps:$4 sm:$0xff]  }
 0x83a   :  { %4422 = vmatprep.subr.bf16.mxu1 %v19279_v3  ;;  %v19291_v3 = vld [vmem:[%s25742_s24 + $0x644] ss:$16 sps:$4 sm:$0xff]  }
 0x83b   :  { %4504 = vmatpush1.bf16.msra.mxu0 %v19268_v52 }
 0x83c   :  { %4505 = vmatprep.subr.bf16.mxu0 %v19276_v56 }
 0x83f   :  { %4506 = vmatpush1.bf16.msra.mxu0 %v19274_v13 }
 0x840   :  { %4528 = vmatprep.subr.bf16.mxu0 %v19282_v50  ;;  %v19294_v50 = vld [vmem:[%s25742_s24 + $0x64c] ss:$16 sps:$4 sm:$0xff]  }
 0x8bf   :  { %v3257_v5 = vpop.f32.mrb[44].mxu1 }
 0x8c0   :  { %v3259_v14 = vpop.f32.mrb[45].mxu1 }
 0x8c1   :  { %v3261_v55 = vpop.f32.mrb[46].mxu1 }
 0x8c2   :  { %v22827_v11 = vpack.c.bf16 %v3261_v55, %v3257_v5  ;;  %v3263_v58 = vpop.f32.mrb[47].mxu1 }
 0x8c3   :  { %v22829_v8 = vpack.c.bf16 %v3263_v58, %v3259_v14 }
 0x8c5   :  { %v3310_v9 = vpop.f32.mrb[52].mxu0 }
 0x8c6   :  { %v3312_v18 = vpop.f32.mrb[53].mxu0 }
 0x8c7   :  { %v3267_v28 = vpop.f32.mrb[48].mxu1  ;;  %v3314_v61 = vpop.f32.mrb[54].mxu0 }
 0x8c8   :  { %v3269_v35 = vpop.f32.mrb[49].mxu1  ;;  %v22831_v45 = vpack.c.bf16 %v3314_v61, %v3310_v9  ;;  %v3316_v54 = vpop.f32.mrb[55].mxu0  ;;  %v19289_v61 = vld [vmem:[%s25742_s24 + $0x640] ss:$16 sps:$4 sm:$0xff]  }
 0x8c9   :  { %v3271_v21 = vpop.f32.mrb[50].mxu1  ;;  %v22833_v0 = vpack.c.bf16 %v3316_v54, %v3312_v18 }
 0x8ca   :  { %v22835_v60 = vpack.c.bf16 %v3271_v21, %v3267_v28  ;;  %v3273_v36 = vpop.f32.mrb[51].mxu1  ;;  %v19297_v21 = vld [vmem:[%s25742_s24 + $0x664] ss:$16 sps:$4 sm:$0xff]  }
 0x8cb   :  { %v22837_v22 = vpack.c.bf16 %v3273_v36, %v3269_v35  ;;  %v19292_v35 = vld [vmem:[%s25742_s24 + $0x648] ss:$16 sps:$4 sm:$0xff]   ;;  %v19300_v36 = vld [vmem:[%s25742_s24 + $0x66c] ss:$16 sps:$4 sm:$0xff]  }
 0x8cd   :  { %v3320_v38 = vpop.f32.mrb[56].mxu0 }
 0x8ce   :  { %v3322_v49 = vpop.f32.mrb[57].mxu0 }
 0x8cf   :  { %v3520_v39 = vpop.f32.mrb[52].mxu1  ;;  %v3324_v46 = vpop.f32.mrb[58].mxu0 }
 0x8d0   :  { %v3522_v25 = vpop.f32.mrb[53].mxu1  ;;  %v22839_v4 = vpack.c.bf16 %v3324_v46, %v3320_v38  ;;  %v3326_v40 = vpop.f32.mrb[59].mxu0  ;;  %v19298_v46 = vld [vmem:[%s25742_s24 + $0x668] ss:$16 sps:$4 sm:$0xff]  }
 0x8d1   :  { %v3524_v1 = vpop.f32.mrb[54].mxu1  ;;  %v22841_v6 = vpack.c.bf16 %v3326_v40, %v3322_v49  ;;  %v19303_v40 = vld [vmem:[%s25742_s24 + $0x684] ss:$16 sps:$4 sm:$0xff]  }
 0x8d2   :  { %v3592_v62 = vpack.c.bf16 %v3524_v1, %v3520_v39  ;;  %v3526_v44 = vpop.f32.mrb[55].mxu1  ;;  %v19295_v39 = vld [vmem:[%s25742_s24 + $0x660] ss:$16 sps:$4 sm:$0xff]   ;;  %v19306_v1 = vld [vmem:[%s25742_s24 + $0x68c] ss:$16 sps:$4 sm:$0xff]  }
 0x8d3   :  { %v3593_v34 = vpack.c.bf16 %v3526_v44, %v3522_v25 }
 0x8d5   :  { %4401 = vmatprep.mubr.bf16.mxu1 %v3593_v34  ;;  %4507 = vmatprep.mubr.bf16.mxu0 %v3593_v34  ;;  %v3573_v51 = vpop.f32.mrb[60].mxu0 }
 0x8d6   :  { %4402 = vmatmul.mubr.bf16.vlgmr.msra.gmra.mrb[60].mxu1 %v3592_v62  ;;  %4508 = vmatmul.mubr.bf16.vlgmr.msra.gmra.mrb[68].mxu0 %v3592_v62  ;;  %v3575_v52 = vpop.f32.mrb[61].mxu0 }
 0x8d7   :  { %4423 = vmatpush1.bf16.msra.mxu1 %v19277_v20  ;;  %4529 = vmatpush1.bf16.msra.mxu0 %v19280_v33  ;;  %v3530_v13 = vpop.f32.mrb[56].mxu1  ;;  %v3577_v56 = vpop.f32.mrb[62].mxu0  ;;  %v19301_v20 = vld [vmem:[%s25742_s24 + $0x680] ss:$16 sps:$4 sm:$0xff]   ;;  %v19304_v33 = vld [vmem:[%s25742_s24 + $0x688] ss:$16 sps:$4 sm:$0xff]  }
 0x8d8   :  { %4424 = vmatprep.subr.bf16.mxu1 %v19285_v57  ;;  %4530 = vmatprep.subr.bf16.mxu0 %v19288_v32  ;;  %v3532_v5 = vpop.f32.mrb[57].mxu1  ;;  %v22867_v14 = vpack.c.bf16 %v3577_v56, %v3573_v51  ;;  %v3579_v55 = vpop.f32.mrb[63].mxu0  ;;  %v19309_v57 = vld [vmem:[%s25742_s24 + $0x6a4] ss:$16 sps:$4 sm:$0xff]   ;;  %v19312_v32 = vld [vmem:[%s25742_s24 + $0x6ac] ss:$16 sps:$4 sm:$0xff]  }
 0x8d9   :  { %v3534_v58 = vpop.f32.mrb[58].mxu1  ;;  %v3595_v9 = vpack.c.bf16 %v3579_v55, %v3575_v52  ;;  %v19307_v51 = vld [vmem:[%s25742_s24 + $0x6a0] ss:$16 sps:$4 sm:$0xff]   ;;  %v19310_v52 = vld [vmem:[%s25742_s24 + $0x6a8] ss:$16 sps:$4 sm:$0xff]  }
 0x8da   :  { %v3596_v18 = vpack.c.bf16 %v3534_v58, %v3530_v13  ;;  %v3536_v28 = vpop.f32.mrb[59].mxu1  ;;  %v19313_v13 = vld [vmem:[%s25742_s24 + $0x6c0] ss:$16 sps:$4 sm:$0xff]   ;;  %v19316_v56 = vld [vmem:[%s25742_s24 + $0x6c8] ss:$16 sps:$4 sm:$0xff]  }
 0x8db   :  { %4425 = vmatpush1.bf16.msra.mxu1 %v19283_v53  ;;  %4531 = vmatpush1.bf16.msra.mxu0 %v19286_v30  ;;  %v3597_v54 = vpack.c.bf16 %v3536_v28, %v3532_v5  ;;  %v19315_v53 = vld [vmem:[%s25742_s24 + $0x6c4] ss:$16 sps:$4 sm:$0xff]   ;;  %v19318_v30 = vld [vmem:[%s25742_s24 + $0x6cc] ss:$16 sps:$4 sm:$0xff]   ;;  %v19319_v5 = vld [vmem:[%s25742_s24 + $0x6e0] ss:$16 sps:$4 sm:$0xff]  }
 0x8dc   :  { %4426 = vmatprep.subr.bf16.mxu1 %v19291_v3  ;;  %4532 = vmatprep.subr.bf16.mxu0 %v19294_v50  ;;  %v19321_v3 = vld [vmem:[%s25742_s24 + $0x6e4] ss:$16 sps:$4 sm:$0xff]   ;;  %v19324_v50 = vld [vmem:[%s25742_s24 + $0x6ec] ss:$16 sps:$4 sm:$0xff]   ;;  %v19322_v55 = vld [vmem:[%s25742_s24 + $0x6e8] ss:$16 sps:$4 sm:$0xff]  }
 0x8dd   :  { %4411 = vmatprep.mubr.bf16.mxu1 %v3597_v54  ;;  %4517 = vmatprep.mubr.bf16.mxu0 %v3597_v54  ;;  %v3583_v38 = vpop.f32.mrb[64].mxu0  ;;  %v19327_v58 = vld [vmem:[%s25742_s24 + $0x704] ss:$16 sps:$4 sm:$0xff]   ;;  %v19328_v28 = vld [vmem:[%s25742_s24 + $0x708] ss:$16 sps:$4 sm:$0xff]  }
 0x8de   :  { %4412 = vmatmul.mubr.bf16.gmra.mrb[64].mxu1 %v3596_v18  ;;  %4518 = vmatmul.mubr.bf16.gmra.mrb[72].mxu0 %v3596_v18  ;;  %v3585_v49 = vpop.f32.mrb[65].mxu0  ;;  %v19325_v18 = vld [vmem:[%s25742_s24 + $0x700] ss:$16 sps:$4 sm:$0xff]  }
 0x8df   :  { %4427 = vmatpush1.bf16.msra.mxu1 %v19289_v61  ;;  %4533 = vmatpush1.bf16.msra.mxu0 %v19292_v35  ;;  %v3587_v25 = vpop.f32.mrb[66].mxu0  ;;  %v19333_v61 = vld [vmem:[%s25742_s24 + $0x724] ss:$16 sps:$4 sm:$0xff]   ;;  %v19336_v35 = vld [vmem:[%s25742_s24 + $0x72c] ss:$16 sps:$4 sm:$0xff]  }
 0x8e0   :  { %4428 = vmatprep.subr.bf16.mxu1 %v19297_v21  ;;  %4534 = vmatprep.subr.bf16.mxu0 %v19300_v36  ;;  %v22893_v62 = vpack.c.bf16 %v3587_v25, %v3583_v38  ;;  %v3589_v44 = vpop.f32.mrb[67].mxu0  ;;  %v19331_v54 = vld [vmem:[%s25742_s24 + $0x720] ss:$16 sps:$4 sm:$0xff]   ;;  %v19334_v21 = vld [vmem:[%s25742_s24 + $0x728] ss:$16 sps:$4 sm:$0xff]  }
 0x8e1   :  { %4454 = vmatprep.mubr.bf16.mxu1 %v3595_v9  ;;  %4560 = vmatprep.mubr.bf16.mxu0 %v3595_v9  ;;  %v22895_v34 = vpack.c.bf16 %v3589_v44, %v3585_v49  ;;  %v19330_v9 = vld [vmem:[%s25742_s24 + $0x70c] ss:$16 sps:$4 sm:$0xff]   ;;  %v19339_v36 = vld [vmem:[%s25742_s24 + $0x744] ss:$16 sps:$4 sm:$0xff]   ;;  %v19337_v49 = vld [vmem:[%s25742_s24 + $0x740] ss:$16 sps:$4 sm:$0xff]  }
 0x8e2   :  { %v19342_v38 = vld [vmem:[%s25742_s24 + $0x74c] ss:$16 sps:$4 sm:$0xff]   ;;  %v19351_v44 = vld [vmem:[%s25742_s24 + $0x784] ss:$16 sps:$4 sm:$0xff]  }
 0x8e3   :  { %4429 = vmatpush1.bf16.msra.mxu1 %v19295_v39  ;;  %4535 = vmatpush1.bf16.msra.mxu0 %v19298_v46  ;;  %v19340_v39 = vld [vmem:[%s25742_s24 + $0x748] ss:$16 sps:$4 sm:$0xff]   ;;  %v19345_v46 = vld [vmem:[%s25742_s24 + $0x764] ss:$16 sps:$4 sm:$0xff]   ;;  %v19348_v25 = vld [vmem:[%s25742_s24 + $0x76c] ss:$16 sps:$4 sm:$0xff]  }
 0x8e4   :  { %4430 = vmatprep.subr.bf16.mxu1 %v19303_v40  ;;  %4536 = vmatprep.subr.bf16.mxu0 %v19306_v1  ;;  %v19343_v40 = vld [vmem:[%s25742_s24 + $0x760] ss:$16 sps:$4 sm:$0xff]   ;;  %v19346_v1 = vld [vmem:[%s25742_s24 + $0x768] ss:$16 sps:$4 sm:$0xff]  }
 0x8e7   :  { %4431 = vmatpush1.bf16.msra.mxu1 %v19301_v20  ;;  %4537 = vmatpush1.bf16.msra.mxu0 %v19304_v33  ;;  %v19354_v20 = vld [vmem:[%s25742_s24 + $0x78c] ss:$16 sps:$4 sm:$0xff]   ;;  %v19349_v33 = vld [vmem:[%s25742_s24 + $0x780] ss:$16 sps:$4 sm:$0xff]  }
 0x8e8   :  { %4432 = vmatprep.subr.bf16.mxu1 %v19309_v57  ;;  %4538 = vmatprep.subr.bf16.mxu0 %v19312_v32  ;;  %v19352_v57 = vld [vmem:[%s25742_s24 + $0x788] ss:$16 sps:$4 sm:$0xff]   ;;  %v19357_v32 = vld [vmem:[%s25742_s24 + $0x7a4] ss:$16 sps:$4 sm:$0xff]  }
 0x8eb   :  { %4433 = vmatpush1.bf16.msra.mxu1 %v19307_v51  ;;  %4539 = vmatpush1.bf16.msra.mxu0 %v19310_v52  ;;  %v19360_v51 = vld [vmem:[%s25742_s24 + $0x7ac] ss:$16 sps:$4 sm:$0xff]   ;;  %v19355_v52 = vld [vmem:[%s25742_s24 + $0x7a0] ss:$16 sps:$4 sm:$0xff]  }
 0x8ec   :  { %4434 = vmatprep.subr.bf16.mxu1 %v19315_v53  ;;  %4540 = vmatprep.subr.bf16.mxu0 %v19318_v30  ;;  %v19358_v53 = vld [vmem:[%s25742_s24 + $0x7a8] ss:$16 sps:$4 sm:$0xff]   ;;  %v19363_v30 = vld [vmem:[%s25742_s24 + $0x7c4] ss:$16 sps:$4 sm:$0xff]  }
 0x8ef   :  { %4435 = vmatpush1.bf16.msra.mxu1 %v19313_v13  ;;  %4541 = vmatpush1.bf16.msra.mxu0 %v19316_v56  ;;  %v19366_v13 = vld [vmem:[%s25742_s24 + $0x7cc] ss:$16 sps:$4 sm:$0xff]   ;;  %v19361_v56 = vld [vmem:[%s25742_s24 + $0x7c0] ss:$16 sps:$4 sm:$0xff]  }
 0x8f0   :  { %4436 = vmatprep.subr.bf16.mxu1 %v19321_v3  ;;  %4542 = vmatprep.subr.bf16.mxu0 %v19324_v50  ;;  %v19364_v3 = vld [vmem:[%s25742_s24 + $0x7c8] ss:$16 sps:$4 sm:$0xff]   ;;  %v19369_v50 = vld [vmem:[%s25742_s24 + $0x7e4] ss:$16 sps:$4 sm:$0xff]  }
 0x8f3   :  { %4437 = vmatpush1.bf16.msra.mxu1 %v19319_v5  ;;  %4543 = vmatpush1.bf16.msra.mxu0 %v19322_v55  ;;  %v19372_v5 = vld [vmem:[%s25742_s24 + $0x7ec] ss:$16 sps:$4 sm:$0xff]   ;;  %v19367_v55 = vld [vmem:[%s25742_s24 + $0x7e0] ss:$16 sps:$4 sm:$0xff]  }
 0x8f4   :  { %4438 = vmatprep.subr.bf16.mxu1 %v19327_v58  ;;  %4544 = vmatprep.subr.bf16.mxu0 %v19330_v9  ;;  %v19370_v58 = vld [vmem:[%s25742_s24 + $0x7e8] ss:$16 sps:$4 sm:$0xff]   ;;  %v19375_v9 = vld [vmem:[%s25742_s24 + $0x4] ss:$16 sps:$4 sm:$0xff]  }
 0x8f7   :  { %4439 = vmatpush1.bf16.msra.mxu1 %v19325_v18  ;;  %4545 = vmatpush1.bf16.msra.mxu0 %v19328_v28  ;;  %v19378_v18 = vld [vmem:[%s25742_s24 + $0xc] ss:$16 sps:$4 sm:$0xff]   ;;  %v19373_v28 = vld [vmem:[%s25742_s24] ss:$16 sps:$4 sm:$0xff]  }
 0x8f8   :  { %4440 = vmatprep.subr.bf16.mxu1 %v19333_v61  ;;  %4546 = vmatprep.subr.bf16.mxu0 %v19336_v35  ;;  %v19376_v61 = vld [vmem:[%s25742_s24 + $0x8] ss:$16 sps:$4 sm:$0xff]   ;;  %v19381_v35 = vld [vmem:[%s25742_s24 + $0x24] ss:$16 sps:$4 sm:$0xff]  }
 0x8fb   :  { %4441 = vmatpush1.bf16.msra.mxu1 %v19331_v54  ;;  %4547 = vmatpush1.bf16.msra.mxu0 %v19334_v21  ;;  %v19384_v54 = vld [vmem:[%s25742_s24 + $0x2c] ss:$16 sps:$4 sm:$0xff]   ;;  %v19379_v21 = vld [vmem:[%s25742_s24 + $0x20] ss:$16 sps:$4 sm:$0xff]  }
 0x8fc   :  { %4442 = vmatprep.subr.bf16.mxu1 %v19339_v36  ;;  %4548 = vmatprep.subr.bf16.mxu0 %v19342_v38  ;;  %v19382_v36 = vld [vmem:[%s25742_s24 + $0x28] ss:$16 sps:$4 sm:$0xff]   ;;  %v19387_v38 = vld [vmem:[%s25742_s24 + $0x44] ss:$16 sps:$4 sm:$0xff]  }
 0x8ff   :  { %4443 = vmatpush1.bf16.msra.mxu1 %v19337_v49  ;;  %4549 = vmatpush1.bf16.msra.mxu0 %v19340_v39  ;;  %v19385_v49 = vld [vmem:[%s25742_s24 + $0x40] ss:$16 sps:$4 sm:$0xff]   ;;  %v19388_v39 = vld [vmem:[%s25742_s24 + $0x48] ss:$16 sps:$4 sm:$0xff]  }
 0x900   :  { %4444 = vmatprep.subr.bf16.mxu1 %v19345_v46  ;;  %4550 = vmatprep.subr.bf16.mxu0 %v19348_v25  ;;  %v19393_v46 = vld [vmem:[%s25742_s24 + $0x64] ss:$16 sps:$4 sm:$0xff]   ;;  %v19391_v25 = vld [vmem:[%s25742_s24 + $0x60] ss:$16 sps:$4 sm:$0xff]  }
 0x903   :  { %4445 = vmatpush1.bf16.msra.mxu1 %v19343_v40  ;;  %4551 = vmatpush1.bf16.msra.mxu0 %v19346_v1  ;;  %v19394_v40 = vld [vmem:[%s25742_s24 + $0x68] ss:$16 sps:$4 sm:$0xff]   ;;  %v19399_v1 = vld [vmem:[%s25742_s24 + $0x84] ss:$16 sps:$4 sm:$0xff]  }
 0x904   :  { %4446 = vmatprep.subr.bf16.mxu1 %v19351_v44  ;;  %4552 = vmatprep.subr.bf16.mxu0 %v19354_v20  ;;  %v19397_v44 = vld [vmem:[%s25742_s24 + $0x80] ss:$16 sps:$4 sm:$0xff]   ;;  %v19405_v20 = vld [vmem:[%s25742_s24 + $0xa4] ss:$16 sps:$4 sm:$0xff]  }
 0x907   :  { %4447 = vmatpush1.bf16.msra.mxu1 %v19349_v33  ;;  %4553 = vmatpush1.bf16.msra.mxu0 %v19352_v57  ;;  %v19408_v33 = vld [vmem:[%s25742_s24 + $0xac] ss:$16 sps:$4 sm:$0xff]   ;;  %v19403_v57 = vld [vmem:[%s25742_s24 + $0xa0] ss:$16 sps:$4 sm:$0xff]  }
 0x908   :  { %4448 = vmatprep.subr.bf16.mxu1 %v19357_v32  ;;  %4554 = vmatprep.subr.bf16.mxu0 %v19360_v51  ;;  %v19406_v32 = vld [vmem:[%s25742_s24 + $0xa8] ss:$16 sps:$4 sm:$0xff]   ;;  %v19411_v51 = vld [vmem:[%s25742_s24 + $0xc4] ss:$16 sps:$4 sm:$0xff]  }
 0x90b   :  { %4449 = vmatpush1.bf16.msra.mxu1 %v19355_v52  ;;  %4555 = vmatpush1.bf16.msra.mxu0 %v19358_v53  ;;  %v19414_v52 = vld [vmem:[%s25742_s24 + $0xcc] ss:$16 sps:$4 sm:$0xff]   ;;  %v19409_v53 = vld [vmem:[%s25742_s24 + $0xc0] ss:$16 sps:$4 sm:$0xff]  }
 0x90c   :  { %4450 = vmatprep.subr.bf16.mxu1 %v19363_v30  ;;  %4556 = vmatprep.subr.bf16.mxu0 %v19366_v13  ;;  %v19412_v30 = vld [vmem:[%s25742_s24 + $0xc8] ss:$16 sps:$4 sm:$0xff]   ;;  %v19417_v13 = vld [vmem:[%s25742_s24 + $0xe4] ss:$16 sps:$4 sm:$0xff]  }
 0x90f   :  { %4451 = vmatpush1.bf16.msra.mxu1 %v19361_v56  ;;  %4557 = vmatpush1.bf16.msra.mxu0 %v19364_v3  ;;  %v19420_v56 = vld [vmem:[%s25742_s24 + $0xec] ss:$16 sps:$4 sm:$0xff]   ;;  %v19415_v3 = vld [vmem:[%s25742_s24 + $0xe0] ss:$16 sps:$4 sm:$0xff]  }
 0x910   :  { %4452 = vmatprep.subr.bf16.mxu1 %v19369_v50  ;;  %4558 = vmatprep.subr.bf16.mxu0 %v19372_v5  ;;  %v19418_v50 = vld [vmem:[%s25742_s24 + $0xe8] ss:$16 sps:$4 sm:$0xff]   ;;  %v19423_v5 = vld [vmem:[%s25742_s24 + $0x104] ss:$16 sps:$4 sm:$0xff]  }
 0x913   :  { %4453 = vmatpush1.bf16.msra.mxu1 %v19367_v55  ;;  %4559 = vmatpush1.bf16.msra.mxu0 %v19370_v58  ;;  %v19426_v55 = vld [vmem:[%s25742_s24 + $0x10c] ss:$16 sps:$4 sm:$0xff]   ;;  %v19421_v58 = vld [vmem:[%s25742_s24 + $0x100] ss:$16 sps:$4 sm:$0xff]  }
 0x914   :  { %5221 = vmatprep.subr.bf16.mxu1 %v19375_v9  ;;  %5327 = vmatprep.subr.bf16.mxu0 %v19378_v18  ;;  %v19424_v9 = vld [vmem:[%s25742_s24 + $0x108] ss:$16 sps:$4 sm:$0xff]   ;;  %v19429_v18 = vld [vmem:[%s25742_s24 + $0x124] ss:$16 sps:$4 sm:$0xff]  }
 0x916   :  { %4455 = vmatmul.mubr.bf16.vlgmr.msra.gmra.mrb[60].mxu1 %v22867_v14  ;;  %4561 = vmatmul.mubr.bf16.vlgmr.msra.gmra.mrb[68].mxu0 %v22867_v14  ;;  %v19390_v14 = vld [vmem:[%s25742_s24 + $0x4c] ss:$16 sps:$4 sm:$0xff]  }
 0x917   :  { %5222 = vmatpush1.bf16.msra.mxu1 %v19373_v28  ;;  %5328 = vmatpush1.bf16.msra.mxu0 %v19376_v61  ;;  %v19432_v28 = vld [vmem:[%s25742_s24 + $0x12c] ss:$16 sps:$4 sm:$0xff]   ;;  %v19427_v61 = vld [vmem:[%s25742_s24 + $0x120] ss:$16 sps:$4 sm:$0xff]  }
 0x918   :  { %5223 = vmatprep.subr.bf16.mxu1 %v19381_v35  ;;  %5329 = vmatprep.subr.bf16.mxu0 %v19384_v54  ;;  %v19430_v35 = vld [vmem:[%s25742_s24 + $0x128] ss:$16 sps:$4 sm:$0xff]   ;;  %v19435_v54 = vld [vmem:[%s25742_s24 + $0x144] ss:$16 sps:$4 sm:$0xff]  }
 0x919   :  { %4464 = vmatprep.mubr.bf16.mxu1 %v22895_v34  ;;  %4570 = vmatprep.mubr.bf16.mxu0 %v22895_v34  ;;  %v19396_v34 = vld [vmem:[%s25742_s24 + $0x6c] ss:$16 sps:$4 sm:$0xff]  }
 0x91b   :  { %5224 = vmatpush1.bf16.msra.mxu1 %v19379_v21  ;;  %5330 = vmatpush1.bf16.msra.mxu0 %v19382_v36  ;;  %v19438_v21 = vld [vmem:[%s25742_s24 + $0x14c] ss:$16 sps:$4 sm:$0xff]   ;;  %v19433_v36 = vld [vmem:[%s25742_s24 + $0x140] ss:$16 sps:$4 sm:$0xff]  }
 0x91c   :  { %5225 = vmatprep.subr.bf16.mxu1 %v19387_v38  ;;  %5331 = vmatprep.subr.bf16.mxu0 %v19390_v14  ;;  %v19436_v38 = vld [vmem:[%s25742_s24 + $0x148] ss:$16 sps:$4 sm:$0xff]   ;;  %v19441_v14 = vld [vmem:[%s25742_s24 + $0x164] ss:$16 sps:$4 sm:$0xff]  }
 0x91e   :  { %4465 = vmatmul.mubr.bf16.gmra.mrb[64].mxu1 %v22893_v62  ;;  %4571 = vmatmul.mubr.bf16.gmra.mrb[72].mxu0 %v22893_v62  ;;  %v19402_v62 = vld [vmem:[%s25742_s24 + $0x8c] ss:$16 sps:$4 sm:$0xff]  }
 0x91f   :  { %5226 = vmatpush1.bf16.msra.mxu1 %v19385_v49  ;;  %5253 = vmatprep.mubr.bf16.mxu1 %v22829_v8  ;;  %v19444_v49 = vld [vmem:[%s25742_s24 + $0x16c] ss:$16 sps:$4 sm:$0xff]  }
 0x920   :  { %5332 = vmatpush1.bf16.msra.mxu0 %v19388_v39  ;;  %5359 = vmatprep.mubr.bf16.mxu0 %v22829_v8  ;;  %v19400_v8 = vld [vmem:[%s25742_s24 + $0x88] ss:$16 sps:$4 sm:$0xff]   ;;  %v19439_v39 = vld [vmem:[%s25742_s24 + $0x160] ss:$16 sps:$4 sm:$0xff]  }
 0x921   :  { %5227 = vmatprep.subr.bf16.mxu1 %v19393_v46  ;;  %5333 = vmatprep.subr.bf16.mxu0 %v19396_v34  ;;  %v19442_v46 = vld [vmem:[%s25742_s24 + $0x168] ss:$16 sps:$4 sm:$0xff]   ;;  %v19447_v34 = vld [vmem:[%s25742_s24 + $0x184] ss:$16 sps:$4 sm:$0xff]  }
 0x923   :  { %5228 = vmatpush1.bf16.msra.mxu1 %v19391_v25  ;;  %v19450_v25 = vld [vmem:[%s25742_s24 + $0x18c] ss:$16 sps:$4 sm:$0xff]  }
 0x924   :  { %5334 = vmatpush1.bf16.msra.mxu0 %v19394_v40  ;;  %5229 = vmatprep.subr.bf16.mxu1 %v19399_v1  ;;  %v19445_v40 = vld [vmem:[%s25742_s24 + $0x180] ss:$16 sps:$4 sm:$0xff]   ;;  %v19448_v1 = vld [vmem:[%s25742_s24 + $0x188] ss:$16 sps:$4 sm:$0xff]  }
 0x925   :  { %5335 = vmatprep.subr.bf16.mxu0 %v19402_v62  ;;  %v19453_v62 = vld [vmem:[%s25742_s24 + $0x1a4] ss:$16 sps:$4 sm:$0xff]  }
 0x927   :  { %5230 = vmatpush1.bf16.msra.mxu1 %v19397_v44  ;;  %v19456_v44 = vld [vmem:[%s25742_s24 + $0x1ac] ss:$16 sps:$4 sm:$0xff]  }
 0x928   :  { %5336 = vmatpush1.bf16.msra.mxu0 %v19400_v8  ;;  %5231 = vmatprep.subr.bf16.mxu1 %v19405_v20  ;;  %v19451_v8 = vld [vmem:[%s25742_s24 + $0x1a0] ss:$16 sps:$4 sm:$0xff]   ;;  %v19454_v20 = vld [vmem:[%s25742_s24 + $0x1a8] ss:$16 sps:$4 sm:$0xff]  }
 0x929   :  { %5337 = vmatprep.subr.bf16.mxu0 %v19408_v33  ;;  %v19459_v33 = vld [vmem:[%s25742_s24 + $0x1c4] ss:$16 sps:$4 sm:$0xff]  }
 0x92b   :  { %5232 = vmatpush1.bf16.msra.mxu1 %v19403_v57  ;;  %v19462_v57 = vld [vmem:[%s25742_s24 + $0x1cc] ss:$16 sps:$4 sm:$0xff]  }
 0x92c   :  { %5338 = vmatpush1.bf16.msra.mxu0 %v19406_v32  ;;  %5233 = vmatprep.subr.bf16.mxu1 %v19411_v51  ;;  %v19457_v32 = vld [vmem:[%s25742_s24 + $0x1c0] ss:$16 sps:$4 sm:$0xff]   ;;  %v19460_v51 = vld [vmem:[%s25742_s24 + $0x1c8] ss:$16 sps:$4 sm:$0xff]  }
 0x92d   :  { %5339 = vmatprep.subr.bf16.mxu0 %v19414_v52  ;;  %v19465_v52 = vld [vmem:[%s25742_s24 + $0x1e4] ss:$16 sps:$4 sm:$0xff]  }
 0x92f   :  { %5234 = vmatpush1.bf16.msra.mxu1 %v19409_v53  ;;  %v19468_v53 = vld [vmem:[%s25742_s24 + $0x1ec] ss:$16 sps:$4 sm:$0xff]  }
 0x930   :  { %5340 = vmatpush1.bf16.msra.mxu0 %v19412_v30  ;;  %5235 = vmatprep.subr.bf16.mxu1 %v19417_v13  ;;  %v19463_v30 = vld [vmem:[%s25742_s24 + $0x1e0] ss:$16 sps:$4 sm:$0xff]   ;;  %v19466_v13 = vld [vmem:[%s25742_s24 + $0x1e8] ss:$16 sps:$4 sm:$0xff]  }
 0x931   :  { %5341 = vmatprep.subr.bf16.mxu0 %v19420_v56  ;;  %v19471_v56 = vld [vmem:[%s25742_s24 + $0x204] ss:$16 sps:$4 sm:$0xff]  }
 0x933   :  { %5236 = vmatpush1.bf16.msra.mxu1 %v19415_v3  ;;  %v19474_v3 = vld [vmem:[%s25742_s24 + $0x20c] ss:$16 sps:$4 sm:$0xff]  }
 0x934   :  { %5342 = vmatpush1.bf16.msra.mxu0 %v19418_v50  ;;  %5237 = vmatprep.subr.bf16.mxu1 %v19423_v5  ;;  %v19469_v50 = vld [vmem:[%s25742_s24 + $0x200] ss:$16 sps:$4 sm:$0xff]   ;;  %v19472_v5 = vld [vmem:[%s25742_s24 + $0x208] ss:$16 sps:$4 sm:$0xff]  }
 0x935   :  { %5343 = vmatprep.subr.bf16.mxu0 %v19426_v55  ;;  %v19477_v55 = vld [vmem:[%s25742_s24 + $0x224] ss:$16 sps:$4 sm:$0xff]  }
 0x937   :  { %5238 = vmatpush1.bf16.msra.mxu1 %v19421_v58  ;;  %v19480_v58 = vld [vmem:[%s25742_s24 + $0x22c] ss:$16 sps:$4 sm:$0xff]  }
 0x938   :  { %5344 = vmatpush1.bf16.msra.mxu0 %v19424_v9  ;;  %5239 = vmatprep.subr.bf16.mxu1 %v19429_v18  ;;  %v19475_v9 = vld [vmem:[%s25742_s24 + $0x220] ss:$16 sps:$4 sm:$0xff]   ;;  %v19478_v18 = vld [vmem:[%s25742_s24 + $0x228] ss:$16 sps:$4 sm:$0xff]  }
 0x939   :  { %5345 = vmatprep.subr.bf16.mxu0 %v19432_v28  ;;  %v19483_v28 = vld [vmem:[%s25742_s24 + $0x244] ss:$16 sps:$4 sm:$0xff]  }
 0x93b   :  { %5240 = vmatpush1.bf16.msra.mxu1 %v19427_v61  ;;  %v19484_v61 = vld [vmem:[%s25742_s24 + $0x248] ss:$16 sps:$4 sm:$0xff]  }
 0x93c   :  { %5346 = vmatpush1.bf16.msra.mxu0 %v19430_v35  ;;  %5241 = vmatprep.subr.bf16.mxu1 %v19435_v54  ;;  %v19489_v35 = vld [vmem:[%s25742_s24 + $0x264] ss:$16 sps:$4 sm:$0xff]   ;;  %v19492_v54 = vld [vmem:[%s25742_s24 + $0x26c] ss:$16 sps:$4 sm:$0xff]  }
 0x93d   :  { %5347 = vmatprep.subr.bf16.mxu0 %v19438_v21  ;;  %v19487_v21 = vld [vmem:[%s25742_s24 + $0x260] ss:$16 sps:$4 sm:$0xff]  }
 0x93f   :  { %5242 = vmatpush1.bf16.msra.mxu1 %v19433_v36  ;;  %v19490_v36 = vld [vmem:[%s25742_s24 + $0x268] ss:$16 sps:$4 sm:$0xff]  }
 0x940   :  { %5348 = vmatpush1.bf16.msra.mxu0 %v19436_v38  ;;  %5243 = vmatprep.subr.bf16.mxu1 %v19441_v14  ;;  %v19495_v38 = vld [vmem:[%s25742_s24 + $0x284] ss:$16 sps:$4 sm:$0xff]   ;;  %v19496_v14 = vld [vmem:[%s25742_s24 + $0x288] ss:$16 sps:$4 sm:$0xff]  }
 0x941   :  { %5349 = vmatprep.subr.bf16.mxu0 %v19444_v49  ;;  %v19501_v49 = vld [vmem:[%s25742_s24 + $0x2a4] ss:$16 sps:$4 sm:$0xff]  }
 0x943   :  { %5244 = vmatpush1.bf16.msra.mxu1 %v19439_v39  ;;  %v19504_v39 = vld [vmem:[%s25742_s24 + $0x2ac] ss:$16 sps:$4 sm:$0xff]  }
 0x944   :  { %5350 = vmatpush1.bf16.msra.mxu0 %v19442_v46  ;;  %5245 = vmatprep.subr.bf16.mxu1 %v19447_v34  ;;  %v19499_v46 = vld [vmem:[%s25742_s24 + $0x2a0] ss:$16 sps:$4 sm:$0xff]   ;;  %v19502_v34 = vld [vmem:[%s25742_s24 + $0x2a8] ss:$16 sps:$4 sm:$0xff]  }
 0x945   :  { %5351 = vmatprep.subr.bf16.mxu0 %v19450_v25  ;;  %v19507_v25 = vld [vmem:[%s25742_s24 + $0x2c4] ss:$16 sps:$4 sm:$0xff]  }
 0x947   :  { %5246 = vmatpush1.bf16.msra.mxu1 %v19445_v40  ;;  %v19510_v40 = vld [vmem:[%s25742_s24 + $0x2cc] ss:$16 sps:$4 sm:$0xff]  }
 0x948   :  { %5352 = vmatpush1.bf16.msra.mxu0 %v19448_v1  ;;  %5247 = vmatprep.subr.bf16.mxu1 %v19453_v62  ;;  %v19505_v1 = vld [vmem:[%s25742_s24 + $0x2c0] ss:$16 sps:$4 sm:$0xff]   ;;  %v19508_v62 = vld [vmem:[%s25742_s24 + $0x2c8] ss:$16 sps:$4 sm:$0xff]  }
 0x949   :  { %5353 = vmatprep.subr.bf16.mxu0 %v19456_v44  ;;  %v19513_v44 = vld [vmem:[%s25742_s24 + $0x2e4] ss:$16 sps:$4 sm:$0xff]  }
 0x94b   :  { %5248 = vmatpush1.bf16.msra.mxu1 %v19451_v8  ;;  %v19516_v8 = vld [vmem:[%s25742_s24 + $0x2ec] ss:$16 sps:$4 sm:$0xff]  }
 0x94c   :  { %5354 = vmatpush1.bf16.msra.mxu0 %v19454_v20  ;;  %5249 = vmatprep.subr.bf16.mxu1 %v19459_v33  ;;  %v19511_v20 = vld [vmem:[%s25742_s24 + $0x2e0] ss:$16 sps:$4 sm:$0xff]   ;;  %v19514_v33 = vld [vmem:[%s25742_s24 + $0x2e8] ss:$16 sps:$4 sm:$0xff]  }
 0x94d   :  { %5355 = vmatprep.subr.bf16.mxu0 %v19462_v57  ;;  %v19519_v57 = vld [vmem:[%s25742_s24 + $0x304] ss:$16 sps:$4 sm:$0xff]  }
 0x94f   :  { %5250 = vmatpush1.bf16.msra.mxu1 %v19457_v32  ;;  %v19522_v32 = vld [vmem:[%s25742_s24 + $0x30c] ss:$16 sps:$4 sm:$0xff]  }
 0x950   :  { %5356 = vmatpush1.bf16.msra.mxu0 %v19460_v51  ;;  %5251 = vmatprep.subr.bf16.mxu1 %v19465_v52  ;;  %v19517_v51 = vld [vmem:[%s25742_s24 + $0x300] ss:$16 sps:$4 sm:$0xff]   ;;  %v19520_v52 = vld [vmem:[%s25742_s24 + $0x308] ss:$16 sps:$4 sm:$0xff]  }
 0x951   :  { %5357 = vmatprep.subr.bf16.mxu0 %v19468_v53  ;;  %v19525_v53 = vld [vmem:[%s25742_s24 + $0x324] ss:$16 sps:$4 sm:$0xff]  }
 0x953   :  { %5252 = vmatpush1.bf16.msra.mxu1 %v19463_v30  ;;  %v19528_v30 = vld [vmem:[%s25742_s24 + $0x32c] ss:$16 sps:$4 sm:$0xff]  }
 0x954   :  { %5358 = vmatpush1.bf16.msra.mxu0 %v19466_v13  ;;  %5274 = vmatprep.subr.bf16.mxu1 %v19471_v56  ;;  %v19523_v13 = vld [vmem:[%s25742_s24 + $0x320] ss:$16 sps:$4 sm:$0xff]   ;;  %v19526_v56 = vld [vmem:[%s25742_s24 + $0x328] ss:$16 sps:$4 sm:$0xff]  }
 0x955   :  { %5380 = vmatprep.subr.bf16.mxu0 %v19474_v3  ;;  %v19531_v3 = vld [vmem:[%s25742_s24 + $0x344] ss:$16 sps:$4 sm:$0xff]  }
 0x956   :  { %5254 = vmatmul.mubr.bf16.vlgmr.msra.gmra.mrb[60].mxu1 %v22827_v11 }
 0x957   :  { %5360 = vmatmul.mubr.bf16.vlgmr.msra.gmra.mrb[68].mxu0 %v22827_v11  ;;  %5263 = vmatprep.mubr.bf16.mxu1 %v22837_v22  ;;  %v19486_v11 = vld [vmem:[%s25742_s24 + $0x24c] ss:$16 sps:$4 sm:$0xff]  }
 0x958   :  { %5275 = vmatpush1.bf16.msra.mxu1 %v19469_v50  ;;  %5369 = vmatprep.mubr.bf16.mxu0 %v22837_v22  ;;  %v19481_v22 = vld [vmem:[%s25742_s24 + $0x240] ss:$16 sps:$4 sm:$0xff]   ;;  %v19534_v50 = vld [vmem:[%s25742_s24 + $0x34c] ss:$16 sps:$4 sm:$0xff]  }
 0x959   :  { %5381 = vmatpush1.bf16.msra.mxu0 %v19472_v5  ;;  %5276 = vmatprep.subr.bf16.mxu1 %v19477_v55  ;;  %v19529_v5 = vld [vmem:[%s25742_s24 + $0x340] ss:$16 sps:$4 sm:$0xff]   ;;  %v19532_v55 = vld [vmem:[%s25742_s24 + $0x348] ss:$16 sps:$4 sm:$0xff]  }
 0x95a   :  { %5382 = vmatprep.subr.bf16.mxu0 %v19480_v58  ;;  %v19537_v58 = vld [vmem:[%s25742_s24 + $0x364] ss:$16 sps:$4 sm:$0xff]  }
 0x95c   :  { %5277 = vmatpush1.bf16.msra.mxu1 %v19475_v9  ;;  %v19540_v9 = vld [vmem:[%s25742_s24 + $0x36c] ss:$16 sps:$4 sm:$0xff]  }
 0x95d   :  { %5383 = vmatpush1.bf16.msra.mxu0 %v19478_v18  ;;  %5278 = vmatprep.subr.bf16.mxu1 %v19483_v28  ;;  %v19535_v18 = vld [vmem:[%s25742_s24 + $0x360] ss:$16 sps:$4 sm:$0xff]   ;;  %v19538_v28 = vld [vmem:[%s25742_s24 + $0x368] ss:$16 sps:$4 sm:$0xff]  }
 0x95e   :  { %5264 = vmatmul.mubr.bf16.gmra.mrb[64].mxu1 %v22835_v60  ;;  %5384 = vmatprep.subr.bf16.mxu0 %v19486_v11  ;;  %v19543_v11 = vld [vmem:[%s25742_s24 + $0x384] ss:$16 sps:$4 sm:$0xff]  }
 0x95f   :  { %5370 = vmatmul.mubr.bf16.gmra.mrb[72].mxu0 %v22835_v60  ;;  %5306 = vmatprep.mubr.bf16.mxu1 %v22833_v0  ;;  %v19498_v60 = vld [vmem:[%s25742_s24 + $0x28c] ss:$16 sps:$4 sm:$0xff]  }
 0x960   :  { %5279 = vmatpush1.bf16.msra.mxu1 %v19481_v22  ;;  %5412 = vmatprep.mubr.bf16.mxu0 %v22833_v0  ;;  %v19493_v0 = vld [vmem:[%s25742_s24 + $0x280] ss:$16 sps:$4 sm:$0xff]   ;;  %v19546_v22 = vld [vmem:[%s25742_s24 + $0x38c] ss:$16 sps:$4 sm:$0xff]  }
 0x961   :  { %5385 = vmatpush1.bf16.msra.mxu0 %v19484_v61  ;;  %5280 = vmatprep.subr.bf16.mxu1 %v19489_v35  ;;  %v19541_v61 = vld [vmem:[%s25742_s24 + $0x380] ss:$16 sps:$4 sm:$0xff]   ;;  %v19544_v35 = vld [vmem:[%s25742_s24 + $0x388] ss:$16 sps:$4 sm:$0xff]  }
 0x962   :  { %5386 = vmatprep.subr.bf16.mxu0 %v19492_v54  ;;  %v19549_v54 = vld [vmem:[%s25742_s24 + $0x3a4] ss:$16 sps:$4 sm:$0xff]  }
 0x964   :  { %5281 = vmatpush1.bf16.msra.mxu1 %v19487_v21  ;;  %v19552_v21 = vld [vmem:[%s25742_s24 + $0x3ac] ss:$16 sps:$4 sm:$0xff]  }
 0x965   :  { %5387 = vmatpush1.bf16.msra.mxu0 %v19490_v36  ;;  %5282 = vmatprep.subr.bf16.mxu1 %v19495_v38  ;;  %v19547_v36 = vld [vmem:[%s25742_s24 + $0x3a0] ss:$16 sps:$4 sm:$0xff]   ;;  %v19550_v38 = vld [vmem:[%s25742_s24 + $0x3a8] ss:$16 sps:$4 sm:$0xff]  }
 0x966   :  { %5388 = vmatprep.subr.bf16.mxu0 %v19498_v60  ;;  %v19555_v60 = vld [vmem:[%s25742_s24 + $0x3c4] ss:$16 sps:$4 sm:$0xff]  }
 0x968   :  { %5283 = vmatpush1.bf16.msra.mxu1 %v19493_v0  ;;  %v19558_v0 = vld [vmem:[%s25742_s24 + $0x3cc] ss:$16 sps:$4 sm:$0xff]  }
 0x969   :  { %5389 = vmatpush1.bf16.msra.mxu0 %v19496_v14  ;;  %5284 = vmatprep.subr.bf16.mxu1 %v19501_v49  ;;  %v19553_v14 = vld [vmem:[%s25742_s24 + $0x3c0] ss:$16 sps:$4 sm:$0xff]   ;;  %v19556_v49 = vld [vmem:[%s25742_s24 + $0x3c8] ss:$16 sps:$4 sm:$0xff]  }
 0x96a   :  { %5390 = vmatprep.subr.bf16.mxu0 %v19504_v39  ;;  %v19561_v39 = vld [vmem:[%s25742_s24 + $0x3e4] ss:$16 sps:$4 sm:$0xff]  }
 0x96c   :  { %5285 = vmatpush1.bf16.msra.mxu1 %v19499_v46  ;;  %v19564_v46 = vld [vmem:[%s25742_s24 + $0x3ec] ss:$16 sps:$4 sm:$0xff]  }
 0x96d   :  { %5391 = vmatpush1.bf16.msra.mxu0 %v19502_v34  ;;  %5286 = vmatprep.subr.bf16.mxu1 %v19507_v25  ;;  %v19559_v34 = vld [vmem:[%s25742_s24 + $0x3e0] ss:$16 sps:$4 sm:$0xff]   ;;  %v19562_v25 = vld [vmem:[%s25742_s24 + $0x3e8] ss:$16 sps:$4 sm:$0xff]  }
 0x96e   :  { %5392 = vmatprep.subr.bf16.mxu0 %v19510_v40  ;;  %v19596_v40 = vld [vmem:[%s25742_s24 + $0x88c] ss:$16 sps:$4 sm:$0xff]  }
 0x970   :  { %5287 = vmatpush1.bf16.msra.mxu1 %v19505_v1  ;;  %v19591_v1 = vld [vmem:[%s25742_s24 + $0x880] ss:$16 sps:$4 sm:$0xff]  }
 0x971   :  { %5393 = vmatpush1.bf16.msra.mxu0 %v19508_v62  ;;  %5288 = vmatprep.subr.bf16.mxu1 %v19513_v44  ;;  %v19594_v62 = vld [vmem:[%s25742_s24 + $0x888] ss:$16 sps:$4 sm:$0xff]   ;;  %v19599_v44 = vld [vmem:[%s25742_s24 + $0x8a4] ss:$16 sps:$4 sm:$0xff]  }
 0x972   :  { %5394 = vmatprep.subr.bf16.mxu0 %v19516_v8  ;;  %v19602_v8 = vld [vmem:[%s25742_s24 + $0x8ac] ss:$16 sps:$4 sm:$0xff]  }
 0x974   :  { %5289 = vmatpush1.bf16.msra.mxu1 %v19511_v20  ;;  %v19597_v20 = vld [vmem:[%s25742_s24 + $0x8a0] ss:$16 sps:$4 sm:$0xff]  }
 0x975   :  { %5395 = vmatpush1.bf16.msra.mxu0 %v19514_v33  ;;  %5290 = vmatprep.subr.bf16.mxu1 %v19519_v57  ;;  %v19600_v33 = vld [vmem:[%s25742_s24 + $0x8a8] ss:$16 sps:$4 sm:$0xff]   ;;  %v19605_v57 = vld [vmem:[%s25742_s24 + $0x8c4] ss:$16 sps:$4 sm:$0xff]  }
 0x976   :  { %5396 = vmatprep.subr.bf16.mxu0 %v19522_v32  ;;  %v19608_v32 = vld [vmem:[%s25742_s24 + $0x8cc] ss:$16 sps:$4 sm:$0xff]  }
 0x978   :  { %5291 = vmatpush1.bf16.msra.mxu1 %v19517_v51  ;;  %v19603_v51 = vld [vmem:[%s25742_s24 + $0x8c0] ss:$16 sps:$4 sm:$0xff]  }
 0x979   :  { %5397 = vmatpush1.bf16.msra.mxu0 %v19520_v52  ;;  %5292 = vmatprep.subr.bf16.mxu1 %v19525_v53  ;;  %v19606_v52 = vld [vmem:[%s25742_s24 + $0x8c8] ss:$16 sps:$4 sm:$0xff]   ;;  %v19611_v53 = vld [vmem:[%s25742_s24 + $0x8e4] ss:$16 sps:$4 sm:$0xff]  }
 0x97a   :  { %5398 = vmatprep.subr.bf16.mxu0 %v19528_v30  ;;  %v19614_v30 = vld [vmem:[%s25742_s24 + $0x8ec] ss:$16 sps:$4 sm:$0xff]  }
 0x97c   :  { %5293 = vmatpush1.bf16.msra.mxu1 %v19523_v13  ;;  %v19609_v13 = vld [vmem:[%s25742_s24 + $0x8e0] ss:$16 sps:$4 sm:$0xff]  }
 0x97d   :  { %5399 = vmatpush1.bf16.msra.mxu0 %v19526_v56  ;;  %5294 = vmatprep.subr.bf16.mxu1 %v19531_v3  ;;  %v19612_v56 = vld [vmem:[%s25742_s24 + $0x8e8] ss:$16 sps:$4 sm:$0xff]   ;;  %v19617_v3 = vld [vmem:[%s25742_s24 + $0x904] ss:$16 sps:$4 sm:$0xff]  }
 0x97e   :  { %5400 = vmatprep.subr.bf16.mxu0 %v19534_v50  ;;  %v19620_v50 = vld [vmem:[%s25742_s24 + $0x90c] ss:$16 sps:$4 sm:$0xff]  }
 0x980   :  { %5295 = vmatpush1.bf16.msra.mxu1 %v19529_v5  ;;  %v19615_v5 = vld [vmem:[%s25742_s24 + $0x900] ss:$16 sps:$4 sm:$0xff]  }
 0x981   :  { %5401 = vmatpush1.bf16.msra.mxu0 %v19532_v55  ;;  %5296 = vmatprep.subr.bf16.mxu1 %v19537_v58  ;;  %v19618_v55 = vld [vmem:[%s25742_s24 + $0x908] ss:$16 sps:$4 sm:$0xff]   ;;  %v19623_v58 = vld [vmem:[%s25742_s24 + $0x924] ss:$16 sps:$4 sm:$0xff]  }
 0x982   :  { %5402 = vmatprep.subr.bf16.mxu0 %v19540_v9  ;;  %v19626_v9 = vld [vmem:[%s25742_s24 + $0x92c] ss:$16 sps:$4 sm:$0xff]  }
 0x984   :  { %5297 = vmatpush1.bf16.msra.mxu1 %v19535_v18  ;;  %v19621_v18 = vld [vmem:[%s25742_s24 + $0x920] ss:$16 sps:$4 sm:$0xff]  }
 0x985   :  { %5403 = vmatpush1.bf16.msra.mxu0 %v19538_v28  ;;  %5298 = vmatprep.subr.bf16.mxu1 %v19543_v11  ;;  %v19624_v28 = vld [vmem:[%s25742_s24 + $0x928] ss:$16 sps:$4 sm:$0xff]   ;;  %v19629_v11 = vld [vmem:[%s25742_s24 + $0x944] ss:$16 sps:$4 sm:$0xff]  }
 0x986   :  { %5404 = vmatprep.subr.bf16.mxu0 %v19546_v22  ;;  %v19632_v22 = vld [vmem:[%s25742_s24 + $0x94c] ss:$16 sps:$4 sm:$0xff]  }
 0x988   :  { %5299 = vmatpush1.bf16.msra.mxu1 %v19541_v61  ;;  %v19627_v61 = vld [vmem:[%s25742_s24 + $0x940] ss:$16 sps:$4 sm:$0xff]  }
 0x989   :  { %5405 = vmatpush1.bf16.msra.mxu0 %v19544_v35  ;;  %5300 = vmatprep.subr.bf16.mxu1 %v19549_v54  ;;  %v19630_v35 = vld [vmem:[%s25742_s24 + $0x948] ss:$16 sps:$4 sm:$0xff]   ;;  %v19635_v54 = vld [vmem:[%s25742_s24 + $0x964] ss:$16 sps:$4 sm:$0xff]  }
 0x98a   :  { %5406 = vmatprep.subr.bf16.mxu0 %v19552_v21  ;;  %v19638_v21 = vld [vmem:[%s25742_s24 + $0x96c] ss:$16 sps:$4 sm:$0xff]  }
 0x98c   :  { %5301 = vmatpush1.bf16.msra.mxu1 %v19547_v36  ;;  %v19633_v36 = vld [vmem:[%s25742_s24 + $0x960] ss:$16 sps:$4 sm:$0xff]  }
 0x98d   :  { %5407 = vmatpush1.bf16.msra.mxu0 %v19550_v38  ;;  %5302 = vmatprep.subr.bf16.mxu1 %v19555_v60  ;;  %v19636_v38 = vld [vmem:[%s25742_s24 + $0x968] ss:$16 sps:$4 sm:$0xff]   ;;  %v19641_v60 = vld [vmem:[%s25742_s24 + $0x984] ss:$16 sps:$4 sm:$0xff]  }
 0x98e   :  { %5408 = vmatprep.subr.bf16.mxu0 %v19558_v0  ;;  %v19644_v0 = vld [vmem:[%s25742_s24 + $0x98c] ss:$16 sps:$4 sm:$0xff]  }
 0x990   :  { %5303 = vmatpush1.bf16.msra.mxu1 %v19553_v14  ;;  %v19639_v14 = vld [vmem:[%s25742_s24 + $0x980] ss:$16 sps:$4 sm:$0xff]  }
 0x991   :  { %5409 = vmatpush1.bf16.msra.mxu0 %v19556_v49  ;;  %5304 = vmatprep.subr.bf16.mxu1 %v19561_v39  ;;  %v19642_v49 = vld [vmem:[%s25742_s24 + $0x988] ss:$16 sps:$4 sm:$0xff]   ;;  %v19647_v39 = vld [vmem:[%s25742_s24 + $0x9a4] ss:$16 sps:$4 sm:$0xff]  }
 0x992   :  { %5410 = vmatprep.subr.bf16.mxu0 %v19564_v46  ;;  %v19650_v46 = vld [vmem:[%s25742_s24 + $0x9ac] ss:$16 sps:$4 sm:$0xff]  }
 0x994   :  { %5305 = vmatpush1.bf16.msra.mxu1 %v19559_v34  ;;  %v19645_v34 = vld [vmem:[%s25742_s24 + $0x9a0] ss:$16 sps:$4 sm:$0xff]  }
 0x995   :  { %5411 = vmatpush1.bf16.msra.mxu0 %v19562_v25  ;;  %5454 = vmatprep.subr.bf16.mxu1 %v22448_v16  ;;  %v19572_v16 = vld [vmem:[%s25742_s24 + $0x80c] ss:$16 sps:$4 sm:$0xff]   ;;  %v19648_v25 = vld [vmem:[%s25742_s24 + $0x9a8] ss:$16 sps:$4 sm:$0xff]  }
 0x996   :  { %5507 = vmatprep.subr.bf16.mxu0 %v22481_v7  ;;  %v19570_v7 = vld [vmem:[%s25742_s24 + $0x808] ss:$16 sps:$4 sm:$0xff]  }
 0x997   :  { %5307 = vmatmul.mubr.bf16.vlgmr.msra.gmra.mrb[60].mxu1 %v22831_v45 }
 0x998   :  { %5413 = vmatmul.mubr.bf16.vlgmr.msra.gmra.mrb[68].mxu0 %v22831_v45  ;;  %5316 = vmatprep.mubr.bf16.mxu1 %v22841_v6  ;;  %v19585_v45 = vld [vmem:[%s25742_s24 + $0x860] ss:$16 sps:$4 sm:$0xff]  }
 0x999   :  { %5422 = vmatprep.mubr.bf16.mxu0 %v22841_v6  ;;  %5455 = vmatpush1.bf16.msra.mxu1 %v22442_v41  ;;  %v19569_v41 = vld [vmem:[%s25742_s24 + $0x804] ss:$16 sps:$4 sm:$0xff]  }
 0x99a   :  { %5508 = vmatpush1.bf16.msra.mxu0 %v22493_v47  ;;  %5456 = vmatprep.subr.bf16.mxu1 %v22454_v37  ;;  %v19565_v37 = vld [vmem:[%s25741_s26 + $0x20] sm:$0xff]  }
 0x99b   :  { %5509 = vmatprep.subr.bf16.mxu0 %v22512_v29  ;;  %v19575_v47 = vld [vmem:[%s25742_s24 + $0x824] ss:$16 sps:$4 sm:$0xff]   ;;  %v19573_v29 = vld [vmem:[%s25742_s24 + $0x820] ss:$16 sps:$4 sm:$0xff]  }
 0x99c   :  { %v19593_v6 = vld [vmem:[%s25742_s24 + $0x884] ss:$16 sps:$4 sm:$0xff]  }
 0x99d   :  { %5457 = vmatpush1.bf16.msra.mxu1 %v22463_v10  ;;  %v19567_v10 = vld [vmem:[%s25742_s24 + $0x800] ss:$16 sps:$4 sm:$0xff]  }
 0x99e   :  { %5510 = vmatpush1.bf16.msra.mxu0 %v22541_v59  ;;  %5458 = vmatprep.subr.bf16.mxu1 %v22498_v63  ;;  %v19578_v63 = vld [vmem:[%s25742_s24 + $0x82c] ss:$16 sps:$4 sm:$0xff]   ;;  %v19581_v59 = vld [vmem:[%s25742_s24 + $0x844] ss:$16 sps:$4 sm:$0xff]  }
 0x99f   :  { %5511 = vmatprep.subr.bf16.mxu0 %v22548_v24  ;;  %5317 = vmatmul.mubr.bf16.gmra.mrb[64].mxu1 %v22839_v4  ;;  %v19584_v24 = vld [vmem:[%s25742_s24 + $0x84c] ss:$16 sps:$4 sm:$0xff]  }
 0x9a0   :  { %5423 = vmatmul.mubr.bf16.gmra.mrb[72].mxu0 %v22839_v4  ;;  %5486 = vmatprep.mubr.bf16.mxu1 %v25737_v27  ;;  %v19588_v4 = vld [vmem:[%s25742_s24 + $0x868] ss:$16 sps:$4 sm:$0xff]  }
 0x9a1   :  { %5459 = vmatpush1.bf16.msra.mxu1 %v22524_v31  ;;  %5539 = vmatprep.mubr.bf16.mxu0 %v25737_v27  ;;  %v19576_v31 = vld [vmem:[%s25742_s24 + $0x828] ss:$16 sps:$4 sm:$0xff]  }
 0x9a2   :  { %5512 = vmatpush1.bf16.msra.mxu0 %v22578_v12  ;;  %5460 = vmatprep.subr.bf16.mxu1 %v22543_v48  ;;  %v19566_v48 = vld [vmem:[%s25741_s26 + $0x28] sm:$0xff]  }
 0x9a3   :  { %5513 = vmatprep.subr.bf16.mxu0 %v22585_v17  ;;  %v19582_v12 = vld [vmem:[%s25742_s24 + $0x848] ss:$16 sps:$4 sm:$0xff]   ;;  %v19587_v17 = vld [vmem:[%s25742_s24 + $0x864] ss:$16 sps:$4 sm:$0xff]  }
 0x9a5   :  { %5461 = vmatpush1.bf16.msra.mxu1 %v22567_v42  ;;  %v19579_v42 = vld [vmem:[%s25742_s24 + $0x840] ss:$16 sps:$4 sm:$0xff]  }
 0x9a6   :  { %5514 = vmatpush1.bf16.msra.mxu0 %v22589_v2  ;;  %6337 = vmatprep.subr.bf16.mxu1 %v19569_v41  ;;  %v19590_v2 = vld [vmem:[%s25742_s24 + $0x86c] ss:$16 sps:$4 sm:$0xff]   ;;  %v19653_v41 = vld [vmem:[%s25742_s24 + $0x9c4] ss:$16 sps:$4 sm:$0xff]  }
 0x9a7   :  { %6443 = vmatprep.subr.bf16.mxu0 %v19572_v16  ;;  %v19656_v16 = vld [vmem:[%s25742_s24 + $0x9cc] ss:$16 sps:$4 sm:$0xff]  }
 0x9a8   :  { %16351 = vmatmul.mubr.msk.bf16.vlgmr.msra.gmra.mrb[68].mxu1 %vm897_vm0, %v19565_v37 }
 0x9a9   :  { %5496 = vmatprep.mubr.bf16.mxu1 %v25737_v27  ;;  %16353 = vmatmul.mubr.msk.bf16.vlgmr.msra.gmra.mrb[76].mxu0 %vm897_vm0, %v19565_v37  ;;  %v19651_v37 = vld [vmem:[%s25742_s24 + $0x9c0] ss:$16 sps:$4 sm:$0xff]  }
 0x9aa   :  { %5549 = vmatprep.mubr.bf16.mxu0 %v25737_v27  ;;  %6338 = vmatpush1.bf16.msra.mxu1 %v19567_v10  ;;  %v19654_v10 = vld [vmem:[%s25742_s24 + $0x9c8] ss:$16 sps:$4 sm:$0xff]  }
 0x9ab   :  { %6444 = vmatpush1.bf16.msra.mxu0 %v19570_v7  ;;  %6339 = vmatprep.subr.bf16.mxu1 %v19575_v47  ;;  %v19657_v7 = vld [vmem:[%s25742_s24 + $0x9e0] ss:$16 sps:$4 sm:$0xff]   ;;  %v19659_v47 = vld [vmem:[%s25742_s24 + $0x9e4] ss:$16 sps:$4 sm:$0xff]  }
 0x9ac   :  { %6445 = vmatprep.subr.bf16.mxu0 %v19578_v63  ;;  %v19660_v63 = vld [vmem:[%s25742_s24 + $0x9e8] ss:$16 sps:$4 sm:$0xff]  }
 0x9ae   :  { %6340 = vmatpush1.bf16.msra.mxu1 %v19573_v29  ;;  %v19662_v29 = vld [vmem:[%s25742_s24 + $0x9ec] ss:$16 sps:$4 sm:$0xff]  }
 0x9af   :  { %6446 = vmatpush1.bf16.msra.mxu0 %v19576_v31  ;;  %6341 = vmatprep.subr.bf16.mxu1 %v19581_v59  ;;  %v19665_v31 = vld [vmem:[%s25742_s24 + $0xa04] ss:$16 sps:$4 sm:$0xff]   ;;  %v19668_v59 = vld [vmem:[%s25742_s24 + $0xa0c] ss:$16 sps:$4 sm:$0xff]  }
 0x9b0   :  { %16352 = vmatmul.mubr.msk.bf16.gmra.mrb[72].mxu1 %vm897_vm0, %v19566_v48  ;;  %6447 = vmatprep.subr.bf16.mxu0 %v19584_v24 }
 0x9b1   :  { %16354 = vmatmul.mubr.msk.bf16.gmra.mrb[80].mxu0 %vm897_vm0, %v19566_v48 }
 0x9b2   :  { %6342 = vmatpush1.bf16.msra.mxu1 %v19579_v42 }
 0x9b3   :  { %6448 = vmatpush1.bf16.msra.mxu0 %v19582_v12  ;;  %6343 = vmatprep.subr.bf16.mxu1 %v19587_v17 }
 0x9b4   :  { %6449 = vmatprep.subr.bf16.mxu0 %v19590_v2 }
 0x9b6   :  { %6344 = vmatpush1.bf16.msra.mxu1 %v19585_v45 }
 0x9b7   :  { %6450 = vmatpush1.bf16.msra.mxu0 %v19588_v4  ;;  %6345 = vmatprep.subr.bf16.mxu1 %v19593_v6 }
 0x9b8   :  { %6451 = vmatprep.subr.bf16.mxu0 %v19596_v40  ;;  %v19663_v40 = vld [vmem:[%s25742_s24 + $0xa00] ss:$16 sps:$4 sm:$0xff]  }
 0x9ba   :  { %6346 = vmatpush1.bf16.msra.mxu1 %v19591_v1  ;;  %v19666_v1 = vld [vmem:[%s25742_s24 + $0xa08] ss:$16 sps:$4 sm:$0xff]  }
 0x9bb   :  { %6452 = vmatpush1.bf16.msra.mxu0 %v19594_v62  ;;  %6347 = vmatprep.subr.bf16.mxu1 %v19599_v44 }
 0x9bc   :  { %6453 = vmatprep.subr.bf16.mxu0 %v19602_v8  ;;  %v19671_v8 = vld [vmem:[%s25742_s24 + $0xa24] ss:$16 sps:$4 sm:$0xff]  }
 0x9be   :  { %6348 = vmatpush1.bf16.msra.mxu1 %v19597_v20  ;;  %v19674_v20 = vld [vmem:[%s25742_s24 + $0xa2c] ss:$16 sps:$4 sm:$0xff]  }
 0x9bf   :  { %6454 = vmatpush1.bf16.msra.mxu0 %v19600_v33  ;;  %6349 = vmatprep.subr.bf16.mxu1 %v19605_v57  ;;  %v19669_v57 = vld [vmem:[%s25742_s24 + $0xa20] ss:$16 sps:$4 sm:$0xff]  }
 0x9c0   :  { %6455 = vmatprep.subr.bf16.mxu0 %v19608_v32  ;;  %v19672_v32 = vld [vmem:[%s25742_s24 + $0xa28] ss:$16 sps:$4 sm:$0xff]  }
 0x9c2   :  { %6350 = vmatpush1.bf16.msra.mxu1 %v19603_v51 }
 0x9c3   :  { %6456 = vmatpush1.bf16.msra.mxu0 %v19606_v52  ;;  %6351 = vmatprep.subr.bf16.mxu1 %v19611_v53  ;;  %v19677_v52 = vld [vmem:[%s25742_s24 + $0xa44] ss:$16 sps:$4 sm:$0xff]   ;;  %v19680_v53 = vld [vmem:[%s25742_s24 + $0xa4c] ss:$16 sps:$4 sm:$0xff]  }
 0x9c4   :  { %6457 = vmatprep.subr.bf16.mxu0 %v19614_v30 }
 0x9c6   :  { %6352 = vmatpush1.bf16.msra.mxu1 %v19609_v13 }
 0x9c7   :  { %6458 = vmatpush1.bf16.msra.mxu0 %v19612_v56  ;;  %6353 = vmatprep.subr.bf16.mxu1 %v19617_v3 }
 0x9c8   :  { %6459 = vmatprep.subr.bf16.mxu0 %v19620_v50 }
 0x9ca   :  { %6354 = vmatpush1.bf16.msra.mxu1 %v19615_v5 }
 0x9cb   :  { %6460 = vmatpush1.bf16.msra.mxu0 %v19618_v55  ;;  %6355 = vmatprep.subr.bf16.mxu1 %v19623_v58  ;;  %v19675_v58 = vld [vmem:[%s25742_s24 + $0xa40] ss:$16 sps:$4 sm:$0xff]  }
 0x9cc   :  { %6461 = vmatprep.subr.bf16.mxu0 %v19626_v9  ;;  %v19678_v9 = vld [vmem:[%s25742_s24 + $0xa48] ss:$16 sps:$4 sm:$0xff]  }
 0x9ce   :  { %6356 = vmatpush1.bf16.msra.mxu1 %v19621_v18 }
 0x9cf   :  { %6462 = vmatpush1.bf16.msra.mxu0 %v19624_v28  ;;  %6357 = vmatprep.subr.bf16.mxu1 %v19629_v11 }
 0x9d0   :  { %6463 = vmatprep.subr.bf16.mxu0 %v19632_v22  ;;  %v19683_v22 = vld [vmem:[%s25742_s24 + $0xa64] ss:$16 sps:$4 sm:$0xff]  }
 0x9d2   :  { %6358 = vmatpush1.bf16.msra.mxu1 %v19627_v61  ;;  %v19686_v61 = vld [vmem:[%s25742_s24 + $0xa6c] ss:$16 sps:$4 sm:$0xff]  }
 0x9d3   :  { %6464 = vmatpush1.bf16.msra.mxu0 %v19630_v35  ;;  %6359 = vmatprep.subr.bf16.mxu1 %v19635_v54  ;;  %v19681_v54 = vld [vmem:[%s25742_s24 + $0xa60] ss:$16 sps:$4 sm:$0xff]  }
 0x9d4   :  { %6465 = vmatprep.subr.bf16.mxu0 %v19638_v21  ;;  %v19684_v21 = vld [vmem:[%s25742_s24 + $0xa68] ss:$16 sps:$4 sm:$0xff]  }
 0x9d6   :  { %6360 = vmatpush1.bf16.msra.mxu1 %v19633_v36  ;;  %v19689_v36 = vld [vmem:[%s25742_s24 + $0xa84] ss:$16 sps:$4 sm:$0xff]  }
 0x9d7   :  { %6466 = vmatpush1.bf16.msra.mxu0 %v19636_v38  ;;  %6361 = vmatprep.subr.bf16.mxu1 %v19641_v60  ;;  %v19692_v38 = vld [vmem:[%s25742_s24 + $0xa8c] ss:$16 sps:$4 sm:$0xff]   ;;  %v19687_v60 = vld [vmem:[%s25742_s24 + $0xa80] ss:$16 sps:$4 sm:$0xff]  }
 0x9d8   :  { %6467 = vmatprep.subr.bf16.mxu0 %v19644_v0  ;;  %v19690_v0 = vld [vmem:[%s25742_s24 + $0xa88] ss:$16 sps:$4 sm:$0xff]  }
 0x9da   :  { %6362 = vmatpush1.bf16.msra.mxu1 %v19639_v14  ;;  %v19695_v14 = vld [vmem:[%s25742_s24 + $0xaa4] ss:$16 sps:$4 sm:$0xff]  }
 0x9db   :  { %6468 = vmatpush1.bf16.msra.mxu0 %v19642_v49  ;;  %6363 = vmatprep.subr.bf16.mxu1 %v19647_v39  ;;  %v19698_v49 = vld [vmem:[%s25742_s24 + $0xaac] ss:$16 sps:$4 sm:$0xff]   ;;  %v19693_v39 = vld [vmem:[%s25742_s24 + $0xaa0] ss:$16 sps:$4 sm:$0xff]  }
 0x9dc   :  { %6469 = vmatprep.subr.bf16.mxu0 %v19650_v46  ;;  %v19696_v46 = vld [vmem:[%s25742_s24 + $0xaa8] ss:$16 sps:$4 sm:$0xff]  }
 0x9de   :  { %6364 = vmatpush1.bf16.msra.mxu1 %v19645_v34  ;;  %v19701_v34 = vld [vmem:[%s25742_s24 + $0xac4] ss:$16 sps:$4 sm:$0xff]  }
 0x9df   :  { %6470 = vmatpush1.bf16.msra.mxu0 %v19648_v25  ;;  %6365 = vmatprep.subr.bf16.mxu1 %v19653_v41  ;;  %v19704_v25 = vld [vmem:[%s25742_s24 + $0xacc] ss:$16 sps:$4 sm:$0xff]   ;;  %v19699_v41 = vld [vmem:[%s25742_s24 + $0xac0] ss:$16 sps:$4 sm:$0xff]  }
 0x9e0   :  { %6471 = vmatprep.subr.bf16.mxu0 %v19656_v16  ;;  %v19702_v16 = vld [vmem:[%s25742_s24 + $0xac8] ss:$16 sps:$4 sm:$0xff]  }
 0x9e2   :  { %6366 = vmatpush1.bf16.msra.mxu1 %v19651_v37  ;;  %v19707_v37 = vld [vmem:[%s25742_s24 + $0xae4] ss:$16 sps:$4 sm:$0xff]  }
 0x9e3   :  { %6472 = vmatpush1.bf16.msra.mxu0 %v19654_v10  ;;  %6367 = vmatprep.subr.bf16.mxu1 %v19659_v47  ;;  %v19710_v10 = vld [vmem:[%s25742_s24 + $0xaec] ss:$16 sps:$4 sm:$0xff]   ;;  %v19708_v47 = vld [vmem:[%s25742_s24 + $0xae8] ss:$16 sps:$4 sm:$0xff]  }
 0x9e4   :  { %6473 = vmatprep.subr.bf16.mxu0 %v19662_v29  ;;  %v19716_v29 = vld [vmem:[%s25742_s24 + $0xb0c] ss:$16 sps:$4 sm:$0xff]  }
 0x9e6   :  { %6368 = vmatpush1.bf16.msra.mxu1 %v19657_v7  ;;  %v19705_v7 = vld [vmem:[%s25742_s24 + $0xae0] ss:$16 sps:$4 sm:$0xff]  }
 0x9e7   :  { %6474 = vmatpush1.bf16.msra.mxu0 %v19660_v63  ;;  %6390 = vmatprep.subr.bf16.mxu1 %v19665_v31  ;;  %v19713_v63 = vld [vmem:[%s25742_s24 + $0xb04] ss:$16 sps:$4 sm:$0xff]   ;;  %v19711_v31 = vld [vmem:[%s25742_s24 + $0xb00] ss:$16 sps:$4 sm:$0xff]  }
 0x9e8   :  { %6496 = vmatprep.subr.bf16.mxu0 %v19668_v59  ;;  %v19714_v59 = vld [vmem:[%s25742_s24 + $0xb08] ss:$16 sps:$4 sm:$0xff]  }
 0xa7b   :  { %v5488_v48 = vpop.f32.mrb[68].mxu1 }
 0xa7c   :  { %v5490_v24 = vpop.f32.mrb[69].mxu1  ;;  %v5541_v42 = vpop.f32.mrb[76].mxu0 }
 0xa7d   :  { %v5492_v12 = vpop.f32.mrb[70].mxu1  ;;  %v5543_v17 = vpop.f32.mrb[77].mxu0 }
 0xa7e   :  { %v5560_v2 = vpack.c.bf16 %v5492_v12, %v5488_v48  ;;  %v5494_v45 = vpop.f32.mrb[71].mxu1  ;;  %v5545_v4 = vpop.f32.mrb[78].mxu0  ;;  %v19719_v48 = vld [vmem:[%s25742_s24 + $0xb24] ss:$16 sps:$4 sm:$0xff]   ;;  %v19720_v12 = vld [vmem:[%s25742_s24 + $0xb28] ss:$16 sps:$4 sm:$0xff]  }
 0xa7f   :  { %v5561_v6 = vpack.c.bf16 %v5494_v45, %v5490_v24  ;;  %v23675_v62 = vpack.c.bf16 %v5545_v4, %v5541_v42  ;;  %v5547_v44 = vpop.f32.mrb[79].mxu0  ;;  %v19722_v24 = vld [vmem:[%s25742_s24 + $0xb2c] ss:$16 sps:$4 sm:$0xff]   ;;  %v19717_v42 = vld [vmem:[%s25742_s24 + $0xb20] ss:$16 sps:$4 sm:$0xff]  }
 0xa80   :  { %v5563_v33 = vpack.c.bf16 %v5547_v44, %v5543_v17  ;;  %v19725_v17 = vld [vmem:[%s25742_s24 + $0xb44] ss:$16 sps:$4 sm:$0xff]   ;;  %v19723_v45 = vld [vmem:[%s25742_s24 + $0xb40] ss:$16 sps:$4 sm:$0xff]   ;;  %v19726_v4 = vld [vmem:[%s25742_s24 + $0xb48] ss:$16 sps:$4 sm:$0xff]  }
 0xa81   :  { %6369 = vmatprep.mubr.bf16.mxu1 %v5561_v6  ;;  %6475 = vmatprep.mubr.bf16.mxu0 %v5561_v6  ;;  %v19731_v6 = vld [vmem:[%s25742_s24 + $0xb64] ss:$16 sps:$4 sm:$0xff]   ;;  %v19732_v44 = vld [vmem:[%s25742_s24 + $0xb68] ss:$16 sps:$4 sm:$0xff]  }
 0xa82   :  { %6370 = vmatmul.mubr.bf16.vlgmr.msra.gmra.mrb[60].mxu1 %v5560_v2  ;;  %6476 = vmatmul.mubr.bf16.vlgmr.msra.gmra.mrb[68].mxu0 %v5560_v2  ;;  %v19728_v2 = vld [vmem:[%s25742_s24 + $0xb4c] ss:$16 sps:$4 sm:$0xff]  }
 0xa83   :  { %6391 = vmatpush1.bf16.msra.mxu1 %v19663_v40  ;;  %6497 = vmatpush1.bf16.msra.mxu0 %v19666_v1  ;;  %v5498_v51 = vpop.f32.mrb[72].mxu1  ;;  %v19734_v40 = vld [vmem:[%s25742_s24 + $0xb6c] ss:$16 sps:$4 sm:$0xff]   ;;  %v19729_v1 = vld [vmem:[%s25742_s24 + $0xb60] ss:$16 sps:$4 sm:$0xff]  }
 0xa84   :  { %6392 = vmatprep.subr.bf16.mxu1 %v19671_v8  ;;  %6498 = vmatprep.subr.bf16.mxu0 %v19674_v20  ;;  %v5500_v30 = vpop.f32.mrb[73].mxu1  ;;  %v5551_v13 = vpop.f32.mrb[80].mxu0  ;;  %v19737_v8 = vld [vmem:[%s25742_s24 + $0xb84] ss:$16 sps:$4 sm:$0xff]   ;;  %v19740_v20 = vld [vmem:[%s25742_s24 + $0xb8c] ss:$16 sps:$4 sm:$0xff]  }
 0xa85   :  { %v5502_v56 = vpop.f32.mrb[74].mxu1  ;;  %v5553_v3 = vpop.f32.mrb[81].mxu0 }
 0xa86   :  { %v5564_v50 = vpack.c.bf16 %v5502_v56, %v5498_v51  ;;  %v5504_v5 = vpop.f32.mrb[75].mxu1  ;;  %v5555_v55 = vpop.f32.mrb[82].mxu0  ;;  %v19746_v51 = vld [vmem:[%s25742_s24 + $0xbac] ss:$16 sps:$4 sm:$0xff]   ;;  %v19747_v56 = vld [vmem:[%s25742_s24 + $0xbc0] ss:$16 sps:$4 sm:$0xff]  }
 0xa87   :  { %6393 = vmatpush1.bf16.msra.mxu1 %v19669_v57  ;;  %6499 = vmatpush1.bf16.msra.mxu0 %v19672_v32  ;;  %v5565_v18 = vpack.c.bf16 %v5504_v5, %v5500_v30  ;;  %v23701_v28 = vpack.c.bf16 %v5555_v55, %v5551_v13  ;;  %v5557_v11 = vpop.f32.mrb[83].mxu0  ;;  %v19738_v57 = vld [vmem:[%s25742_s24 + $0xb88] ss:$16 sps:$4 sm:$0xff]   ;;  %v19743_v32 = vld [vmem:[%s25742_s24 + $0xba4] ss:$16 sps:$4 sm:$0xff]  }
 0xa88   :  { %6394 = vmatprep.subr.bf16.mxu1 %v19677_v52  ;;  %6500 = vmatprep.subr.bf16.mxu0 %v19680_v53  ;;  %v23709_v35 = vpack.c.bf16 %v5557_v11, %v5553_v3  ;;  %v19741_v52 = vld [vmem:[%s25742_s24 + $0xba0] ss:$16 sps:$4 sm:$0xff]   ;;  %v19744_v53 = vld [vmem:[%s25742_s24 + $0xba8] ss:$16 sps:$4 sm:$0xff]   ;;  %v19749_v30 = vld [vmem:[%s25742_s24 + $0xbc4] ss:$16 sps:$4 sm:$0xff]  }
 0xa89   :  { %6379 = vmatprep.mubr.bf16.mxu1 %v5565_v18  ;;  %6485 = vmatprep.mubr.bf16.mxu0 %v5565_v18  ;;  %v19752_v13 = vld [vmem:[%s25742_s24 + $0xbcc] ss:$16 sps:$4 sm:$0xff]   ;;  %v19750_v3 = vld [vmem:[%s25742_s24 + $0xbc8] ss:$16 sps:$4 sm:$0xff]   ;;  %v19753_v55 = vld [vmem:[%s25742_s24 + $0xbe0] ss:$16 sps:$4 sm:$0xff]  }
 0xa8a   :  { %6380 = vmatmul.mubr.bf16.gmra.mrb[64].mxu1 %v5564_v50  ;;  %6486 = vmatmul.mubr.bf16.gmra.mrb[72].mxu0 %v5564_v50  ;;  %v19755_v50 = vld [vmem:[%s25742_s24 + $0xbe4] ss:$16 sps:$4 sm:$0xff]   ;;  %v19758_v5 = vld [vmem:[%s25742_s24 + $0xbec] ss:$16 sps:$4 sm:$0xff]  }
 0xa8b   :  { %6395 = vmatpush1.bf16.msra.mxu1 %v19675_v58  ;;  %6501 = vmatpush1.bf16.msra.mxu0 %v19678_v9  ;;  %v19756_v58 = vld [vmem:[%s25742_s24 + $0xbe8] ss:$16 sps:$4 sm:$0xff]   ;;  %v6703_v9 = vld [vmem:[%s25743_s27 + $0x80] sm:$0xff] }
 0xa8c   :  { %6396 = vmatprep.subr.bf16.mxu1 %v19683_v22  ;;  %6502 = vmatprep.subr.bf16.mxu0 %v19686_v61  ;;  %v6704_v18 = vld [vmem:[%s25743_s27 + $0x88] sm:$0xff] }
 0xa8d   :  { %6422 = vmatprep.mubr.bf16.mxu1 %v5563_v33  ;;  %6528 = vmatprep.mubr.bf16.mxu0 %v5563_v33  ;;  %v19735_v33 = vld [vmem:[%s25742_s24 + $0xb80] ss:$16 sps:$4 sm:$0xff]   ;;  %v23876_v11 = vpack.c.bf16 %v6704_v18, %v6703_v9  ;;  %v6736_v22 = vld [vmem:[%s25743_s27 + $0x188] sm:$0xff] }
 0xa8e   :  { %v6688_v61 = vld [vmem:[%s25743_s27 + $0x8] sm:$0xff] }
 0xa8f   :  { %6397 = vmatpush1.bf16.msra.mxu1 %v19681_v54  ;;  %6503 = vmatpush1.bf16.msra.mxu0 %v19684_v21  ;;  %v6719_v21 = vld [vmem:[%s25743_s27 + $0x100] sm:$0xff]  ;;  %v6728_v9 = vld [vmem:[%s25743_s27 + $0x148] sm:$0xff] }
 0xa90   :  { %6398 = vmatprep.subr.bf16.mxu1 %v19689_v36  ;;  %6504 = vmatprep.subr.bf16.mxu0 %v19692_v38  ;;  %v6720_v36 = vld [vmem:[%s25743_s27 + $0x108] sm:$0xff] }
 0xa91   :  { %v23898_v38 = vpack.c.bf16 %v6720_v36, %v6719_v21  ;;  %v6746_v21 = vld [vmem:[%s25743_s27 + $0x1d8] sm:$0xff]  ;;  %v6697_v36 = vld [vmem:[%s25743_s27 + $0x50] sm:$0xff] }
 0xa93   :  { %6399 = vmatpush1.bf16.msra.mxu1 %v19687_v60  ;;  %6505 = vmatpush1.bf16.msra.mxu0 %v19690_v0  ;;  %v6705_v60 = vld [vmem:[%s25743_s27 + $0x90] sm:$0xff]  ;;  %v6706_v0 = vld [vmem:[%s25743_s27 + $0x98] sm:$0xff] }
 0xa94   :  { %6400 = vmatprep.subr.bf16.mxu1 %v19695_v14  ;;  %6506 = vmatprep.subr.bf16.mxu0 %v19698_v49  ;;  %v6737_v14 = vld [vmem:[%s25743_s27 + $0x190] sm:$0xff]  ;;  %v23912_v49 = vpack.c.bf16 %v6706_v0, %v6705_v60  ;;  %v6698_v60 = vld [vmem:[%s25743_s27 + $0x58] sm:$0xff] }
 0xa97   :  { %6401 = vmatpush1.bf16.msra.mxu1 %v19693_v39  ;;  %6507 = vmatpush1.bf16.msra.mxu0 %v19696_v46  ;;  %v6738_v39 = vld [vmem:[%s25743_s27 + $0x198] sm:$0xff]  ;;  %v6689_v46 = vld [vmem:[%s25743_s27 + $0x10] sm:$0xff] }
 0xa98   :  { %6402 = vmatprep.subr.bf16.mxu1 %v19701_v34  ;;  %6508 = vmatprep.subr.bf16.mxu0 %v19704_v25  ;;  %v6690_v34 = vld [vmem:[%s25743_s27 + $0x18] sm:$0xff]  ;;  %v23923_v25 = vpack.c.bf16 %v6738_v39, %v6737_v14  ;;  %v24069_v14 = vpack.c.bf16 %v6698_v60, %v6697_v36  ;;  %v6729_v39 = vld [vmem:[%s25743_s27 + $0x150] sm:$0xff] }
 0xa9b   :  { %6403 = vmatpush1.bf16.msra.mxu1 %v19699_v41  ;;  %6509 = vmatpush1.bf16.msra.mxu0 %v19702_v16  ;;  %v23925_v41 = vpack.c.bf16 %v6690_v34, %v6689_v46  ;;  %v6721_v16 = vld [vmem:[%s25743_s27 + $0x110] sm:$0xff]  ;;  %v6730_v46 = vld [vmem:[%s25743_s27 + $0x158] sm:$0xff] }
 0xa9c   :  { %6404 = vmatprep.subr.bf16.mxu1 %v19707_v37  ;;  %6510 = vmatprep.subr.bf16.mxu0 %v19710_v10  ;;  %v6722_v37 = vld [vmem:[%s25743_s27 + $0x118] sm:$0xff]  ;;  %v24078_v34 = vpack.c.bf16 %v6730_v46, %v6729_v39 }
 0xa9d   :  { %v23934_v10 = vpack.c.bf16 %v6722_v37, %v6721_v16  ;;  %v6715_v16 = vld [vmem:[%s25743_s27 + $0xe0] sm:$0xff]  ;;  %v6716_v37 = vld [vmem:[%s25743_s27 + $0xe8] sm:$0xff] }
 0xa9f   :  { %6405 = vmatpush1.bf16.msra.mxu1 %v19705_v7  ;;  %6511 = vmatpush1.bf16.msra.mxu0 %v19708_v47  ;;  %v6707_v7 = vld [vmem:[%s25743_s27 + $0xa0] sm:$0xff]  ;;  %v6708_v47 = vld [vmem:[%s25743_s27 + $0xa8] sm:$0xff] }
 0xaa0   :  { %6406 = vmatprep.subr.bf16.mxu1 %v19713_v63  ;;  %6512 = vmatprep.subr.bf16.mxu0 %v19716_v29  ;;  %v6739_v63 = vld [vmem:[%s25743_s27 + $0x1a0] sm:$0xff]  ;;  %v23948_v29 = vpack.c.bf16 %v6708_v47, %v6707_v7  ;;  %v24091_v47 = vpack.c.bf16 %v6716_v37, %v6715_v16 }
 0xaa1   :  { %v6747_v7 = vld [vmem:[%s25743_s27 + $0x1e0] sm:$0xff] }
 0xaa3   :  { %6407 = vmatpush1.bf16.msra.mxu1 %v19711_v31  ;;  %6513 = vmatpush1.bf16.msra.mxu0 %v19714_v59  ;;  %v6740_v31 = vld [vmem:[%s25743_s27 + $0x1a8] sm:$0xff]  ;;  %v6691_v59 = vld [vmem:[%s25743_s27 + $0x20] sm:$0xff] }
 0xaa4   :  { %6408 = vmatprep.subr.bf16.mxu1 %v19719_v48  ;;  %6514 = vmatprep.subr.bf16.mxu0 %v19722_v24  ;;  %v6692_v48 = vld [vmem:[%s25743_s27 + $0x28] sm:$0xff]  ;;  %v23959_v24 = vpack.c.bf16 %v6740_v31, %v6739_v63  ;;  %v6699_v31 = vld [vmem:[%s25743_s27 + $0x60] sm:$0xff] }
 0xaa5   :  { %v6748_v63 = vld [vmem:[%s25743_s27 + $0x1e8] sm:$0xff] }
 0xaa7   :  { %6409 = vmatpush1.bf16.msra.mxu1 %v19717_v42  ;;  %6515 = vmatpush1.bf16.msra.mxu0 %v19720_v12  ;;  %v23961_v42 = vpack.c.bf16 %v6692_v48, %v6691_v59  ;;  %v6723_v12 = vld [vmem:[%s25743_s27 + $0x120] sm:$0xff]  ;;  %v6700_v59 = vld [vmem:[%s25743_s27 + $0x68] sm:$0xff]  ;;  %v24103_v48 = vpack.c.bf16 %v6748_v63, %v6747_v7 }
 0xaa8   :  { %6410 = vmatprep.subr.bf16.mxu1 %v19725_v17  ;;  %6516 = vmatprep.subr.bf16.mxu0 %v19728_v2  ;;  %v6724_v17 = vld [vmem:[%s25743_s27 + $0x128] sm:$0xff] }
 0xaa9   :  { %v23970_v2 = vpack.c.bf16 %v6724_v17, %v6723_v12  ;;  %v24105_v12 = vpack.c.bf16 %v6700_v59, %v6699_v31  ;;  %v6731_v17 = vld [vmem:[%s25743_s27 + $0x160] sm:$0xff] }
 0xaab   :  { %6411 = vmatpush1.bf16.msra.mxu1 %v19723_v45  ;;  %6517 = vmatpush1.bf16.msra.mxu0 %v19726_v4  ;;  %v6709_v45 = vld [vmem:[%s25743_s27 + $0xb0] sm:$0xff]  ;;  %v6710_v4 = vld [vmem:[%s25743_s27 + $0xb8] sm:$0xff] }
 0xaac   :  { %6412 = vmatprep.subr.bf16.mxu1 %v19731_v6  ;;  %6518 = vmatprep.subr.bf16.mxu0 %v19734_v40  ;;  %v6741_v6 = vld [vmem:[%s25743_s27 + $0x1b0] sm:$0xff]  ;;  %v23984_v40 = vpack.c.bf16 %v6710_v4, %v6709_v45  ;;  %v6732_v45 = vld [vmem:[%s25743_s27 + $0x168] sm:$0xff] }
 0xaad   :  { %v6717_v4 = vld [vmem:[%s25743_s27 + $0xf0] sm:$0xff] }
 0xaaf   :  { %6413 = vmatpush1.bf16.msra.mxu1 %v19729_v1  ;;  %6519 = vmatpush1.bf16.msra.mxu0 %v19732_v44  ;;  %v6742_v1 = vld [vmem:[%s25743_s27 + $0x1b8] sm:$0xff]  ;;  %v6693_v44 = vld [vmem:[%s25743_s27 + $0x30] sm:$0xff] }
 0xab0   :  { %6414 = vmatprep.subr.bf16.mxu1 %v19737_v8  ;;  %6520 = vmatprep.subr.bf16.mxu0 %v19740_v20  ;;  %v6694_v8 = vld [vmem:[%s25743_s27 + $0x38] sm:$0xff]  ;;  %v23995_v20 = vpack.c.bf16 %v6742_v1, %v6741_v6  ;;  %v24117_v6 = vpack.c.bf16 %v6732_v45, %v6731_v17 }
 0xab1   :  { %v6718_v1 = vld [vmem:[%s25743_s27 + $0xf8] sm:$0xff] }
 0xab3   :  { %6415 = vmatpush1.bf16.msra.mxu1 %v19735_v33  ;;  %6521 = vmatpush1.bf16.msra.mxu0 %v19738_v57  ;;  %v23997_v33 = vpack.c.bf16 %v6694_v8, %v6693_v44  ;;  %v6725_v57 = vld [vmem:[%s25743_s27 + $0x130] sm:$0xff]  ;;  %v6750_v8 = vld [vmem:[%s25743_s27 + $0x1f8] sm:$0xff] }
 0xab4   :  { %6416 = vmatprep.subr.bf16.mxu1 %v19743_v32  ;;  %6522 = vmatprep.subr.bf16.mxu0 %v19746_v51  ;;  %v6726_v32 = vld [vmem:[%s25743_s27 + $0x138] sm:$0xff]  ;;  %v6749_v44 = vld [vmem:[%s25743_s27 + $0x1f0] sm:$0xff] }
 0xab5   :  { %v24006_v51 = vpack.c.bf16 %v6726_v32, %v6725_v57  ;;  %v24129_v57 = vpack.c.bf16 %v6718_v1, %v6717_v4  ;;  %v24131_v32 = vpack.c.bf16 %v6750_v8, %v6749_v44 }
 0xab7   :  { %6417 = vmatpush1.bf16.msra.mxu1 %v19741_v52  ;;  %6523 = vmatpush1.bf16.msra.mxu0 %v19744_v53  ;;  %v6711_v52 = vld [vmem:[%s25743_s27 + $0xc0] sm:$0xff]  ;;  %v6712_v53 = vld [vmem:[%s25743_s27 + $0xc8] sm:$0xff] }
 0xab8   :  { %6418 = vmatprep.subr.bf16.mxu1 %v19749_v30  ;;  %6524 = vmatprep.subr.bf16.mxu0 %v19752_v13  ;;  %v6743_v30 = vld [vmem:[%s25743_s27 + $0x1c0] sm:$0xff]  ;;  %v24020_v13 = vpack.c.bf16 %v6712_v53, %v6711_v52  ;;  %v6701_v52 = vld [vmem:[%s25743_s27 + $0x70] sm:$0xff]  ;;  %v6702_v53 = vld [vmem:[%s25743_s27 + $0x78] sm:$0xff] }
 0xabb   :  { %6419 = vmatpush1.bf16.msra.mxu1 %v19747_v56  ;;  %6525 = vmatpush1.bf16.msra.mxu0 %v19750_v3  ;;  %v6744_v56 = vld [vmem:[%s25743_s27 + $0x1c8] sm:$0xff]  ;;  %v6695_v3 = vld [vmem:[%s25743_s27 + $0x40] sm:$0xff] }
 0xabc   :  { %6420 = vmatprep.subr.bf16.mxu1 %v19755_v50  ;;  %6526 = vmatprep.subr.bf16.mxu0 %v19758_v5  ;;  %v6696_v50 = vld [vmem:[%s25743_s27 + $0x48] sm:$0xff]  ;;  %v24031_v5 = vpack.c.bf16 %v6744_v56, %v6743_v30  ;;  %v6733_v30 = vld [vmem:[%s25743_s27 + $0x170] sm:$0xff]  ;;  %v24143_v56 = vpack.c.bf16 %v6702_v53, %v6701_v52 }
 0xabf   :  { %6421 = vmatpush1.bf16.msra.mxu1 %v19753_v55  ;;  %6527 = vmatpush1.bf16.msra.mxu0 %v19756_v58  ;;  %v24033_v55 = vpack.c.bf16 %v6696_v50, %v6695_v3  ;;  %v6727_v58 = vld [vmem:[%s25743_s27 + $0x140] sm:$0xff]  ;;  %v6734_v3 = vld [vmem:[%s25743_s27 + $0x178] sm:$0xff] }
 0xac0   :  { %18112 = vmatprep.subr.bf16.mxu1 %v23876_v11  ;;  %v24042_v18 = vpack.c.bf16 %v6728_v9, %v6727_v58  ;;  %v24150_v50 = vpack.c.bf16 %v6734_v3, %v6733_v30  ;;  %v6893_v58 = vld [vmem:[%s25561_s9 + $0x8] sm:$0xff] }
 0xac1   :  { %v6897_v9 = vld [vmem:[%s25561_s9 + $0x28] sm:$0xff] }
 0xac2   :  { %6423 = vmatmul.mubr.bf16.vlgmr.msra.gmra.mrb[60].mxu1 %v23675_v62  ;;  %6529 = vmatmul.mubr.bf16.vlgmr.msra.gmra.mrb[68].mxu0 %v23675_v62  ;;  %v6735_v62 = vld [vmem:[%s25743_s27 + $0x180] sm:$0xff] }
 0xac3   :  { %6432 = vmatprep.mubr.bf16.mxu1 %v23709_v35  ;;  %6538 = vmatprep.mubr.bf16.mxu0 %v23709_v35  ;;  %v23887_v35 = vpack.c.bf16 %v6736_v22, %v6735_v62  ;;  %v6713_v62 = vld [vmem:[%s25743_s27 + $0xd0] sm:$0xff]  ;;  %v6714_v22 = vld [vmem:[%s25743_s27 + $0xd8] sm:$0xff] }
 0xac5   :  { %18144 = vmatprep.subr.bf16.mxu0 %v23887_v35 }
 0xac6   :  { %18146 = vmatpush3.bf16.msra.mxu0 %v23898_v38 }
 0xac7   :  { %18148 = vmatprep.subr.bf16.mxu0 %v23923_v25 }
 0xaca   :  { %6433 = vmatmul.mubr.bf16.gmra.mrb[64].mxu1 %v23701_v28  ;;  %6539 = vmatmul.mubr.bf16.gmra.mrb[72].mxu0 %v23701_v28  ;;  %v6687_v28 = vld [vmem:[%s25743_s27] sm:$0xff] }
 0xacb   :  { %v23889_v54 = vpack.c.bf16 %v6688_v61, %v6687_v28  ;;  %18150 = vmatpush3.bf16.msra.mxu0 %v23934_v10  ;;  %v6745_v28 = vld [vmem:[%s25743_s27 + $0x1d0] sm:$0xff]  ;;  %v24056_v61 = vpack.c.bf16 %v6714_v22, %v6713_v62  ;;  %v24160_v62 = vpack.c.bf16 %v6897_v9, %v6893_v58 }
 0xacc   :  { %18152 = vmatprep.subr.bf16.mxu0 %v23959_v24  ;;  %v24067_v0 = vpack.c.bf16 %v6746_v21, %v6745_v28  ;;  %v6565_v22 = vld [vmem:[#allocation10] ss:$4 sm:$0xf] }
 0xacd   :  { %18114 = vmatpush3.bf16.msra.mxu1 %v23889_v54  ;;  %v6570_v28 = vrot.slane %v6565_v22, %v25713_v26  ;;  %v6578_v21 = vrot.slane %v6565_v22, %v25740_v19  ;;  %v24168_v36 = vrot.slane %v6565_v22, %v25738_v43  ;;  %v24171_v60 = vrot.slane %v6565_v22, %v25739_v23 }
 0xace   :  { %18116 = vmatprep.subr.bf16.mxu1 %v23912_v49 }
 0xacf   :  { %18154 = vmatpush3.bf16.msra.mxu0 %v23970_v2 }
 0xad0   :  { %18156 = vmatprep.subr.bf16.mxu0 %v23995_v20 }
 0xad1   :  { %18118 = vmatpush3.bf16.msra.mxu1 %v23925_v41 }
 0xad2   :  { %18120 = vmatprep.subr.bf16.mxu1 %v23948_v29 }
 0xad3   :  { %18158 = vmatpush3.bf16.msra.mxu0 %v24006_v51 }
 0xad4   :  { %18160 = vmatprep.subr.bf16.mxu0 %v24031_v5 }
 0xad5   :  { %18122 = vmatpush3.bf16.msra.mxu1 %v23961_v42 }
 0xad6   :  { %18124 = vmatprep.subr.bf16.mxu1 %v23984_v40 }
 0xad7   :  { %18162 = vmatpush3.bf16.msra.mxu0 %v24042_v18 }
 0xad8   :  { %18164 = vmatprep.subr.bf16.mxu0 %v24067_v0 }
 0xad9   :  { %18126 = vmatpush3.bf16.msra.mxu1 %v23997_v33 }
 0xada   :  { %18128 = vmatprep.subr.bf16.mxu1 %v24020_v13 }
 0xadb   :  { %18166 = vmatpush3.bf16.msra.mxu0 %v24078_v34 }
 0xadc   :  { %18168 = vmatprep.subr.bf16.mxu0 %v24103_v48 }
 0xadd   :  { %18130 = vmatpush3.bf16.msra.mxu1 %v24033_v55 }
 0xade   :  { %18132 = vmatprep.subr.bf16.mxu1 %v24056_v61 }
 0xadf   :  { %18170 = vmatpush3.bf16.msra.mxu0 %v24117_v6 }
 0xae0   :  { %18172 = vmatprep.subr.bf16.mxu0 %v24131_v32 }
 0xae1   :  { %18134 = vmatpush3.bf16.msra.mxu1 %v24069_v14 }
 0xae2   :  { %18136 = vmatprep.subr.bf16.mxu1 %v24091_v47 }
 0xae3   :  { %18174 = vmatpush3.bf16.msra.mxu0 %v24150_v50 }
 0xae4   :  { %18192 = vmatprep.subr.bf16.mxu0 %v23876_v11 }
 0xae5   :  { %18138 = vmatpush3.bf16.msra.mxu1 %v24105_v12 }
 0xae6   :  { %18140 = vmatprep.subr.bf16.mxu1 %v24129_v57 }
 0xae9   :  { %18142 = vmatpush3.bf16.msra.mxu1 %v24143_v56 }
 0xaea   :  { %18176 = vmatprep.subr.bf16.mxu1 %v24160_v62 }
 0xb95   :  { %v6424_v39 = vpop.f32.mrb[60].mxu1  ;;  %v6530_v46 = vpop.f32.mrb[68].mxu0 }
 0xb96   :  { %v6587_v16 = vadd.f32 %v6570_v28, %v6424_v39  ;;  %v6589_v37 = vadd.f32 %v6578_v21, %v6530_v46  ;;  %v6426_v7 = vpop.f32.mrb[61].mxu1  ;;  %v6532_v63 = vpop.f32.mrb[69].mxu0 }
 0xb97   :  { %v6588_v31 = vadd.f32 %v24168_v36, %v6426_v7  ;;  %v6590_v11 = vadd.f32 %v24171_v60, %v6532_v63  ;;  %v6428_v59 = vpop.f32.mrb[62].mxu1  ;;  %v6534_v17 = vpop.f32.mrb[70].mxu0 }
 0xb98   :  { %vm6603_vm4 = vcmp.gt.f32.partialorder %v6587_v16, 0.0  ;;  %v6619_v45 = vmul.f32 0.2, %v6587_v16  ;;  %vm6605_vm5 = vcmp.gt.f32.partialorder %v6589_v37, 0.0  ;;  %v6621_v4 = vmul.f32 0.2, %v6589_v37 }
 0xb99   :  { %vm6604_vm6 = vcmp.gt.f32.partialorder %v6588_v31, 0.0  ;;  %v6620_v1 = vmul.f32 0.2, %v6588_v31  ;;  %v6591_v44 = vadd.f32 %v6570_v28, %v6428_v59  ;;  %v6593_v8 = vadd.f32 %v6578_v21, %v6534_v17  ;;  %v6430_v52 = vpop.f32.mrb[63].mxu1  ;;  %v6536_v53 = vpop.f32.mrb[71].mxu0 }
 0xb9a   :  { %vm6606_vm7 = vcmp.gt.f32.partialorder %v6590_v11, 0.0  ;;  %v6622_v30 = vmul.f32 0.2, %v6590_v11  ;;  %v6592_v3 = vadd.f32 %v24168_v36, %v6430_v52  ;;  %v6594_v58 = vadd.f32 %v24171_v60, %v6536_v53 }
 0xb9b   :  { %vm6607_vm8 = vcmp.gt.f32.partialorder %v6591_v44, 0.0  ;;  %v6623_v9 = vmul.f32 0.2, %v6591_v44  ;;  %vm6609_vm9 = vcmp.gt.f32.partialorder %v6593_v8, 0.0  ;;  %v6625_v22 = vmul.f32 0.2, %v6593_v8 }
 0xb9c   :  { %vm6608_vm10 = vcmp.gt.f32.partialorder %v6592_v3, 0.0  ;;  %v6624_v39 = vmul.f32 0.2, %v6592_v3  ;;  %vm6610_vm11 = vcmp.gt.f32.partialorder %v6594_v58, 0.0  ;;  %v6626_v46 = vmul.f32 0.2, %v6594_v58 }
 0xb9d   :  { %v24178_v7 = vsel %vm6603_vm4, %v6587_v16, %v6619_v45  ;;  %v24181_v63 = vsel %vm6605_vm5, %v6589_v37, %v6621_v4  ;;  %v24183_v59 = vsel %vm6607_vm8, %v6591_v44, %v6623_v9  ;;  %v24185_v17 = vsel %vm6609_vm9, %v6593_v8, %v6625_v22  ;;  %v6434_v52 = vpop.f32.mrb[64].mxu1  ;;  %v6540_v53 = vpop.f32.mrb[72].mxu0 }
 0xb9e   :  { %25744 = vst [vmem:[#allocation29_spill] sm:$0xff] %v24181_v63  ;;  %25745 = vst [vmem:[#allocation30_spill] sm:$0xff] %v24183_v59  ;;  %v24188_v15 = vsel %vm6604_vm6, %v6588_v31, %v6620_v1  ;;  %v24191_v23 = vsel %vm6606_vm7, %v6590_v11, %v6622_v30  ;;  %v6651_v43 = vadd.f32 %v24183_v59, %v24178_v7  ;;  %v6436_v37 = vpop.f32.mrb[65].mxu1  ;;  %v6542_v45 = vpop.f32.mrb[73].mxu0  ;;  %vm6908_vm6 = vcmask 261120  }
 0xb9f   :  { %25746 = vst [vmem:[#allocation36_spill] sm:$0xff] %v24185_v17  ;;  %25747 = vst [vmem:[#allocation40_spill] sm:$0xff] %v24191_v23  ;;  %v6669_v16 = vadd.f32 %v24185_v17, %v24181_v63  ;;  %v24198_v4 = vsel %vm6608_vm10, %v6592_v3, %v6624_v39  ;;  %v24200_v44 = vsel %vm6610_vm11, %v6594_v58, %v6626_v46  ;;  %v6438_v31 = vpop.f32.mrb[66].mxu1  ;;  %v6544_v1 = vpop.f32.mrb[74].mxu0 }
 0xba0   :  { %25748 = vst [vmem:[#allocation44_spill] sm:$0xff] %v24200_v44  ;;  %v6595_v8 = vadd.f32 %v6570_v28, %v6434_v52  ;;  %v6597_v9 = vadd.f32 %v6578_v21, %v6540_v53  ;;  %v6596_v11 = vadd.f32 %v24168_v36, %v6436_v37  ;;  %v6598_v30 = vadd.f32 %v24171_v60, %v6542_v45  ;;  %v6440_v27 = vpop.f32.mrb[67].mxu1  ;;  %v6546_v59 = vpop.f32.mrb[75].mxu0 }
 0xba1   :  { %v6599_v22 = vadd.f32 %v6570_v28, %v6438_v31  ;;  %v6601_v19 = vadd.f32 %v6578_v21, %v6544_v1  ;;  %v6660_v28 = vadd.f32 %v24198_v4, %v24188_v15  ;;  %v6678_v45 = vadd.f32 %v24200_v44, %v24191_v23 }
 0xba2   :  { %vm6611_vm12 = vcmp.gt.f32.partialorder %v6595_v8, 0.0  ;;  %v6627_v17 = vmul.f32 0.2, %v6595_v8  ;;  %vm6613_vm13 = vcmp.gt.f32.partialorder %v6597_v9, 0.0  ;;  %v6629_v63 = vmul.f32 0.2, %v6597_v9 }
 0xba3   :  { %vm6612_vm14 = vcmp.gt.f32.partialorder %v6596_v11, 0.0  ;;  %v6628_v3 = vmul.f32 0.2, %v6596_v11  ;;  %vm6614_vm15 = vcmp.gt.f32.partialorder %v6598_v30, 0.0  ;;  %v6630_v58 = vmul.f32 0.2, %v6598_v30 }
 0xba4   :  { %v24204_v39 = vsel %vm6611_vm12, %v6595_v8, %v6627_v17  ;;  %v24206_v46 = vsel %vm6613_vm13, %v6597_v9, %v6629_v63  ;;  %vm6615_vm1 = vcmp.gt.f32.partialorder %v6599_v22, 0.0  ;;  %v6631_v52 = vmul.f32 0.2, %v6599_v22 }
 0xba5   :  { %25749 = vst [vmem:[#allocation34_spill] sm:$0xff] %v24206_v46  ;;  %v6652_v21 = vadd.f32 %v6651_v43, %v24204_v39  ;;  %v24211_v53 = vsel %vm6612_vm14, %v6596_v11, %v6628_v3  ;;  %v24213_v37 = vsel %vm6614_vm15, %v6598_v30, %v6630_v58  ;;  %v6670_v31 = vadd.f32 %v6669_v16, %v24206_v46 }
 0xba6   :  { %25750 = vst [vmem:[#allocation48_spill] sm:$0xff] %v24211_v53  ;;  %25751 = vst [vmem:[#allocation38_spill] sm:$0xff] %v24213_v37  ;;  %v24218_v17 = vsel %vm6615_vm1, %v6599_v22, %v6631_v52  ;;  %vm6617_vm2 = vcmp.gt.f32.partialorder %v6601_v19, 0.0  ;;  %v6633_v8 = vmul.f32 0.2, %v6601_v19  ;;  %v6600_v9 = vadd.f32 %v24168_v36, %v6440_v27 }
 0xba7   :  { %25752 = vst [vmem:[#allocation52_spill] sm:$0xff] %v24218_v17  ;;  %v6653_v63 = vadd.f32 %v6652_v21, %v24218_v17  ;;  %v6602_v1 = vadd.f32 %v24171_v60, %v6546_v59  ;;  %v6661_v43 = vadd.f32 %v6660_v28, %v24211_v53  ;;  %v6679_v11 = vadd.f32 %v6678_v45, %v24213_v37 }
 0xba8   :  { %v24225_v3 = vsel %vm6617_vm2, %v6601_v19, %v6633_v8  ;;  %vm6616_vm4 = vcmp.gt.f32.partialorder %v6600_v9, 0.0  ;;  %v6632_v58 = vmul.f32 0.2, %v6600_v9  ;;  %vm15536_vm2 = vcmask 64512  }
 0xba9   :  { %v6654_v30 = vrot.slane %v6653_v63, 4  ;;  %25753 = vst [vmem:[#allocation42_spill] sm:$0xff] %v24225_v3  ;;  %v6671_v16 = vadd.f32 %v6670_v31, %v24225_v3  ;;  %vm6618_vm5 = vcmp.gt.f32.partialorder %v6602_v1, 0.0  ;;  %v6634_v22 = vmul.f32 0.2, %v6602_v1 }
 0xbaa   :  { %v24228_v21 = vsel %vm6616_vm4, %v6600_v9, %v6632_v58  ;;  %vm15708_vm4 = vcmask 1041408  }
 0xbab   :  { %v6655_v52 = vadd.f32 %v6654_v30, %v6653_v63  ;;  %25754 = vst [vmem:[#allocation46_spill] sm:$0xff] %v24228_v21  ;;  %v6672_v44 = vrot.slane %v6671_v16, 4  ;;  %v6662_v27 = vadd.f32 %v6661_v43, %v24228_v21  ;;  %v24231_v36 = vsel %vm6618_vm5, %v6602_v1, %v6634_v22 }
 0xbac   :  { %v6680_v59 = vadd.f32 %v6679_v11, %v24231_v36  ;;  %v25755_v11 = vmov 0.0   ;;  %vm15732_vm5 = vcmask 1024  }
 0xbad   :  { %v6656_v60 = vrot.slane %v6655_v52, 2  ;;  %v6673_v28 = vadd.f32 %v6672_v44, %v6671_v16  ;;  %v6663_v19 = vrot.slane %v6662_v27, 4 }
 0xbae   :  { %v6681_v45 = vrot.slane %v6680_v59, 4 }
 0xbaf   :  { %v6674_v8 = vrot.slane %v6673_v28, 2  ;;  %v6664_v37 = vadd.f32 %v6663_v19, %v6662_v27  ;;  %v6657_v23 = vadd.f32 %v6656_v60, %v6655_v52  ;;  %v6902_v60 = vld [vmem:[%s25561_s9 + $0x50] sm:$0xff] }
 0xbb0   :  { %v6682_v31 = vadd.f32 %v6681_v45, %v6680_v59  ;;  %v6906_v59 = vld [vmem:[%s25561_s9 + $0x70] sm:$0xff] }
 0xbb1   :  { %v6675_v3 = vadd.f32 %v6674_v8, %v6673_v28  ;;  %v6665_v46 = vrot.slane %v6664_v37, 2  ;;  %v6658_v30 = vrot.slane %v6657_v23, 1  ;;  %v24308_v28 = vpack.c.bf16 %v6906_v59, %v6902_v60 }
 0xbb2   :  { %v6683_v63 = vrot.slane %v6682_v31, 2 }
 0xbb3   :  { %v6666_v9 = vadd.f32 %v6665_v46, %v6664_v37  ;;  %v6676_v17 = vrot.slane %v6675_v3, 1  ;;  %v6659_v53 = vadd.f32 %v6658_v30, %v6657_v23  ;;  %v6892_v23 = vld [vmem:[%s25561_s9] sm:$0xff]  ;;  %v6898_v37 = vld [vmem:[%s25561_s9 + $0x30] sm:$0xff] }
 0xbb4   :  { %v6684_v58 = vadd.f32 %v6683_v63, %v6682_v31 }
 0xbb5   :  { %v6667_v43 = vrot.slane %v6666_v9, 1  ;;  %v6677_v44 = vadd.f32 %v6676_v17, %v6675_v3  ;;  %v6903_v17 = vld [vmem:[%s25561_s9 + $0x58] sm:$0xff] }
 0xbb6   :  { %v6685_v1 = vrot.slane %v6684_v58, 1  ;;  %v6907_v3 = vld [vmem:[%s25561_s9 + $0x78] sm:$0xff] }
 0xbb7   :  { %v6668_v22 = vadd.f32 %v6667_v43, %v6666_v9  ;;  %v24298_v27 = vpack.c.bf16 %v6907_v3, %v6903_v17  ;;  %v25759_v9 = vld [vmem:[#allocation46_spill] sm:$0xff] }
 0xbb8   :  { %v6686_v21 = vadd.f32 %v6685_v1, %v6684_v58 }
 0xbb9   :  { %6815 = vmatprep.mubr.f32.mxu1 %v6668_v22 }
 0xbba   :  { %6885 = vmatprep.mubr.f32.mxu0 %v6686_v21  ;;  %6816 = vmatmul.mubr.f32.vlgmr.msra.gmra.mrb[76].mxu1 %v6659_v53  ;;  %v6894_v53 = vld [vmem:[%s25561_s9 + $0x10] sm:$0xff] }
 0xbbb   :  { %6886 = vmatmul.mubr.f32.vlgmr.msra.gmra.mrb[84].mxu0 %v6677_v44  ;;  %6976 = vmatprep.mubr.f32.mxu1 %v25755_v11  ;;  %v24296_v52 = vpack.c.bf16 %v6898_v37, %v6894_v53 }
 0xbbc   :  { %18194 = vmatpush3.bf16.msra.mxu0 %v23889_v54  ;;  %v6896_v54 = vld [vmem:[%s25561_s9 + $0x20] sm:$0xff] }
 0xbbd   :  { %18196 = vmatprep.subr.bf16.mxu0 %v23912_v49  ;;  %v24257_v49 = vpack.c.bf16 %v6896_v54, %v6892_v23  ;;  %v25760_v23 = vld [vmem:[#allocation29_spill] sm:$0xff] }
 0xbbf   :  { %18178 = vmatpush1.bf16.msra.mxu1 %v24257_v49 }
 0xbc0   :  { %18198 = vmatpush3.bf16.msra.mxu0 %v23925_v41  ;;  %v6901_v41 = vld [vmem:[%s25561_s9 + $0x48] sm:$0xff] }
 0xbc1   :  { %18200 = vmatprep.subr.bf16.mxu0 %v23948_v29  ;;  %v6905_v29 = vld [vmem:[%s25561_s9 + $0x68] sm:$0xff] }
 0xbc4   :  { %18202 = vmatpush3.bf16.msra.mxu0 %v23961_v42  ;;  %v24266_v42 = vpack.c.bf16 %v6905_v29, %v6901_v41  ;;  %v25761_v41 = vld [vmem:[#allocation36_spill] sm:$0xff] }
 0xbc5   :  { %18204 = vmatprep.subr.bf16.mxu0 %v23984_v40  ;;  %v6900_v40 = vld [vmem:[%s25561_s9 + $0x40] sm:$0xff] }
 0xbc6   :  { %18180 = vmatprep.subr.bf16.mxu1 %v24266_v42 }
 0xbc8   :  { %18206 = vmatpush3.bf16.msra.mxu0 %v23997_v33  ;;  %v6904_v33 = vld [vmem:[%s25561_s9 + $0x60] sm:$0xff] }
 0xbc9   :  { %18208 = vmatprep.subr.bf16.mxu0 %v24020_v13  ;;  %v24274_v13 = vpack.c.bf16 %v6904_v33, %v6900_v40  ;;  %v25762_v40 = vld [vmem:[#allocation34_spill] sm:$0xff] }
 0xbcb   :  { %18182 = vmatpush1.bf16.msra.mxu1 %v24274_v13 }
 0xbcc   :  { %18210 = vmatpush3.bf16.msra.mxu0 %v24033_v55  ;;  %v6895_v55 = vld [vmem:[%s25561_s9 + $0x18] sm:$0xff] }
 0xbcd   :  { %18212 = vmatprep.subr.bf16.mxu0 %v24056_v61  ;;  %v6899_v61 = vld [vmem:[%s25561_s9 + $0x38] sm:$0xff] }
 0xbd0   :  { %18214 = vmatpush3.bf16.msra.mxu0 %v24069_v14  ;;  %v18183_v14 = vpack.c.bf16 %v6899_v61, %v6895_v55  ;;  %v25763_v55 = vld [vmem:[#allocation40_spill] sm:$0xff] }
 0xbd1   :  { %18216 = vmatprep.subr.bf16.mxu0 %v24091_v47 }
 0xbd2   :  { %18184 = vmatprep.subr.bf16.mxu1 %v18183_v14 }
 0xbd4   :  { %18218 = vmatpush3.bf16.msra.mxu0 %v24105_v12 }
 0xbd5   :  { %18220 = vmatprep.subr.bf16.mxu0 %v24129_v57 }
 0xbd8   :  { %18222 = vmatpush3.bf16.msra.mxu0 %v24143_v56 }
 0xbd9   :  { %18256 = vmatprep.subr.bf16.mxu0 %v24160_v62 }
 0xc8d   :  { %v17579_v47 = vpop.f32.mrb[76].mxu1 }
 0xc8e   :  { %v17614_v12 = vpop.f32.mrb[84].mxu0  ;;  %v17580_v57 = vpop.f32.mrb[77].mxu1 }
 0xc8f   :  { %v17581_v56 = vadd.f32 %v17580_v57, %v17579_v47  ;;  %v17615_v62 = vpop.f32.mrb[85].mxu0 }
 0xc90   :  { %v17616_v46 = vadd.f32 %v17615_v62, %v17614_v12  ;;  %v25765_v12 = vld [vmem:[#allocation38_spill] sm:$0xff] }
 0xc91   :  { %v25766_v62 = vld [vmem:[#allocation42_spill] sm:$0xff] }
 0xc92   :  { %v6888_v16 = vadd.f32 %v17616_v46, %v17581_v56 }
 0xc94   :  { %v6891_v21 = vmul.f32 0.001953125, %v6888_v16 }
 0xc96   :  { %16611 = vmatmul.mubr.msk.f32.vlgmr.msra.gmra.mrb[78].mxu1 %vm6908_vm6, %v6891_v21 }
 0xc97   :  { %18186 = vmatpush1.bf16.msra.mxu1 %v24296_v52  ;;  %7047 = vmatprep.mubr.f32.mxu1 %v25755_v11 }
 0xc98   :  { %18188 = vmatprep.subr.bf16.mxu1 %v24298_v27 }
 0xc9b   :  { %18190 = vmatpush1.bf16.msra.mxu1 %v24308_v28 }
 0xc9c   :  { %18224 = vmatprep.subr.bf16.mxu1 %v23887_v35 }
 0xc9e   :  { %16612 = vmatmul.mubr.msk.f32.vlgmr.msra.gmra.mrb[80].mxu1 %vm6908_vm6, %v6891_v21 }
 0xc9f   :  { %18226 = vmatpush3.bf16.msra.mxu1 %v23898_v38 }
 0xca0   :  { %18228 = vmatprep.subr.bf16.mxu1 %v23923_v25 }
 0xca3   :  { %18230 = vmatpush3.bf16.msra.mxu1 %v23934_v10 }
 0xca4   :  { %18232 = vmatprep.subr.bf16.mxu1 %v23959_v24 }
 0xca7   :  { %18234 = vmatpush3.bf16.msra.mxu1 %v23970_v2  ;;  %v25756_v2 = vld [vmem:[#allocation30_spill] sm:$0xff] }
 0xca8   :  { %18236 = vmatprep.subr.bf16.mxu1 %v23995_v20 }
 0xcab   :  { %18238 = vmatpush3.bf16.msra.mxu1 %v24006_v51 }
 0xcac   :  { %18240 = vmatprep.subr.bf16.mxu1 %v24031_v5 }
 0xcaf   :  { %18242 = vmatpush3.bf16.msra.mxu1 %v24042_v18 }
 0xcb0   :  { %18244 = vmatprep.subr.bf16.mxu1 %v24067_v0  ;;  %v25757_v0 = vld [vmem:[#allocation48_spill] sm:$0xff] }
 0xcb3   :  { %18246 = vmatpush3.bf16.msra.mxu1 %v24078_v34 }
 0xcb4   :  { %18248 = vmatprep.subr.bf16.mxu1 %v24103_v48  ;;  %v25758_v48 = vld [vmem:[#allocation52_spill] sm:$0xff] }
 0xcb7   :  { %18250 = vmatpush3.bf16.msra.mxu1 %v24117_v6 }
 0xcb8   :  { %18252 = vmatprep.subr.bf16.mxu1 %v24131_v32 }
 0xcbb   :  { %18254 = vmatpush3.bf16.msra.mxu1 %v24150_v50 }
 0xcbc   :  { %18264 = vmatprep.subr.bf16.mxu1 %v18183_v14  ;;  %v25764_v14 = vld [vmem:[#allocation44_spill] sm:$0xff] }
 0xd69   :  { %v6978_v35 = vpop.f32.mrb[78].mxu1 }
 0xd6a   :  { %v7057_v38 = vrot.slane %v6978_v35, %v25713_v26  ;;  %v6980_v25 = vpop.f32.mrb[79].mxu1 }
 0xd6b   :  { %v7061_v10 = vrot.slane %v6980_v25, %v25713_v26 }
 0xd6c   :  { %v24333_v24 = vsub.f32 %v24178_v7, %v7057_v38  ;;  %v24336_v20 = vsub.f32 %v25756_v2, %v7057_v38  ;;  %v24339_v51 = vsub.f32 %v24204_v39, %v7057_v38  ;;  %v24351_v6 = vsub.f32 %v25758_v48, %v7057_v38 }
 0xd6d   :  { %v24342_v5 = vsub.f32 %v24188_v15, %v7061_v10  ;;  %v24345_v18 = vsub.f32 %v24198_v4, %v7061_v10  ;;  %v24348_v34 = vsub.f32 %v25757_v0, %v7061_v10  ;;  %v24368_v30 = vsub.f32 %v25759_v9, %v7061_v10 }
 0xd6e   :  { %v7086_v32 = vmul.f32 %v24333_v24, %v24333_v24  ;;  %v7090_v50 = vmul.f32 %v24336_v20, %v24336_v20  ;;  %v7094_v4 = vmul.f32 %v24339_v51, %v24339_v51  ;;  %v7098_v31 = vmul.f32 %v24351_v6, %v24351_v6 }
 0xd6f   :  { %v7087_v7 = vmul.f32 %v24342_v5, %v24342_v5  ;;  %v7091_v15 = vmul.f32 %v24345_v18, %v24345_v18  ;;  %v7095_v19 = vmul.f32 %v24348_v34, %v24348_v34  ;;  %v7099_v56 = vmul.f32 %v24368_v30, %v24368_v30 }
 0xd70   :  { %v7102_v39 = vadd.f32 %v7090_v50, %v7086_v32 }
 0xd71   :  { %v7111_v45 = vadd.f32 %v7091_v15, %v7087_v7  ;;  %v7049_v8 = vpop.f32.mrb[80].mxu1 }
 0xd72   :  { %v7103_v63 = vadd.f32 %v7102_v39, %v7094_v4  ;;  %v7065_v58 = vrot.slane %v7049_v8, %v25713_v26  ;;  %v7051_v43 = vpop.f32.mrb[81].mxu1 }
 0xd73   :  { %v7069_v1 = vrot.slane %v7051_v43, %v25713_v26  ;;  %v7112_v22 = vadd.f32 %v7111_v45, %v7095_v19 }
 0xd74   :  { %v7104_v44 = vadd.f32 %v7103_v63, %v7098_v31  ;;  %v24373_v54 = vsub.f32 %v25760_v23, %v7065_v58  ;;  %v24376_v29 = vsub.f32 %v25761_v41, %v7065_v58  ;;  %v24379_v33 = vsub.f32 %v25762_v40, %v7065_v58 }
 0xd75   :  { %v24382_v61 = vsub.f32 %v25763_v55, %v7069_v1  ;;  %v24385_v47 = vsub.f32 %v25764_v14, %v7069_v1  ;;  %v24388_v57 = vsub.f32 %v25765_v12, %v7069_v1  ;;  %v24393_v46 = vsub.f32 %v25766_v62, %v7065_v58 }
 0xd76   :  { %v7088_v53 = vmul.f32 %v24373_v54, %v24373_v54  ;;  %v7092_v37 = vmul.f32 %v24376_v29, %v24376_v29  ;;  %v24400_v17 = vsub.f32 %v24231_v36, %v7069_v1  ;;  %v7096_v21 = vmul.f32 %v24379_v33, %v24379_v33 }
 0xd77   :  { %v7089_v3 = vmul.f32 %v24382_v61, %v24382_v61  ;;  %v7093_v16 = vmul.f32 %v24385_v47, %v24385_v47  ;;  %v7113_v59 = vadd.f32 %v7112_v22, %v7099_v56  ;;  %v7105_v35 = vrot.slane %v7104_v44, 4 }
 0xd78   :  { %v7120_v60 = vadd.f32 %v7092_v37, %v7088_v53  ;;  %v7097_v38 = vmul.f32 %v24388_v57, %v24388_v57  ;;  %v7100_v36 = vmul.f32 %v24393_v46, %v24393_v46  ;;  %v7101_v48 = vmul.f32 %v24400_v17, %v24400_v17 }
 0xd79   :  { %v7129_v25 = vadd.f32 %v7093_v16, %v7089_v3  ;;  %v7114_v2 = vrot.slane %v7113_v59, 4  ;;  %v7106_v0 = vadd.f32 %v7105_v35, %v7104_v44 }
 0xd7a   :  { %v7121_v10 = vadd.f32 %v7120_v60, %v7096_v21 }
 0xd7b   :  { %v7130_v32 = vadd.f32 %v7129_v25, %v7097_v38  ;;  %v7115_v7 = vadd.f32 %v7114_v2, %v7113_v59  ;;  %v7107_v15 = vrot.slane %v7106_v0, 2  ;;  %v25769_v2 = vld [vmem:[#allocation32_spill] sm:$0xff] }
 0xd7c   :  { %v7122_v50 = vadd.f32 %v7121_v10, %v7100_v36  ;;  %v25768_v36 = vld [vmem:[#allocation31_spill] sm:$0xff] }
 0xd7d   :  { %v7131_v4 = vadd.f32 %v7130_v32, %v7101_v48  ;;  %v7116_v39 = vrot.slane %v7115_v7, 2  ;;  %v7108_v19 = vadd.f32 %v7107_v15, %v7106_v0  ;;  %v25770_v48 = vld [vmem:[#allocation33_spill] sm:$0xff] }
 0xd7e   :  { %v7123_v45 = vrot.slane %v7122_v50, 4 }
 0xd7f   :  { %v7132_v8 = vrot.slane %v7131_v4, 4  ;;  %v7117_v31 = vadd.f32 %v7116_v39, %v7115_v7  ;;  %v7109_v9 = vrot.slane %v7108_v19, 1 }
 0xd80   :  { %v7124_v63 = vadd.f32 %v7123_v45, %v7122_v50 }
 0xd81   :  { %v7133_v58 = vadd.f32 %v7132_v8, %v7131_v4  ;;  %v7118_v43 = vrot.slane %v7117_v31, 1  ;;  %v7110_v41 = vadd.f32 %v7109_v9, %v7108_v19 }
 0xd82   :  { %v7125_v1 = vrot.slane %v7124_v63, 2 }
 0xd83   :  { %v7134_v22 = vrot.slane %v7133_v58, 2  ;;  %v7119_v44 = vadd.f32 %v7118_v43, %v7117_v31 }
 0xd84   :  { %v7126_v23 = vadd.f32 %v7125_v1, %v7124_v63 }
 0xd85   :  { %v7135_v40 = vadd.f32 %v7134_v22, %v7133_v58  ;;  %7202 = vmatprep.mubr.f32.mxu0 %v7119_v44 }
 0xd86   :  { %v7127_v55 = vrot.slane %v7126_v23, 1  ;;  %7203 = vmatmul.mubr.f32.vlgmr.msra.gmra.mrb[86].mxu0 %v7110_v41 }
 0xd87   :  { %v7136_v14 = vrot.slane %v7135_v40, 1  ;;  %18258 = vmatpush1.bf16.msra.mxu0 %v24257_v49  ;;  %7349 = vmatprep.mubr.f32.mxu0 %v25755_v11 }
 0xd88   :  { %18260 = vmatprep.subr.bf16.mxu0 %v24266_v42  ;;  %v7128_v56 = vadd.f32 %v7127_v55, %v7126_v23 }
 0xd89   :  { %v7137_v12 = vadd.f32 %v7136_v14, %v7135_v40 }
 0xd8b   :  { %7272 = vmatprep.mubr.f32.mxu1 %v7137_v12  ;;  %18262 = vmatpush1.bf16.msra.mxu0 %v24274_v13 }
 0xd8c   :  { %7273 = vmatmul.mubr.f32.vlgmr.msra.gmra.mrb[82].mxu1 %v7128_v56 }
 0xd8d   :  { %18266 = vmatpush1.bf16.msra.mxu1 %v24296_v52  ;;  %7420 = vmatprep.mubr.f32.mxu1 %v25755_v11  ;;  %v25767_v52 = vmov 0  }
 0xd8e   :  { %18268 = vmatprep.subr.bf16.mxu1 %v24298_v27  ;;  %v7460_v27 = vld [vmem:[#allocation10 + $0x1] ss:$4 sm:$0xf] }
 0xd8f   :  { %v7465_v38 = vrot.slane %v7460_v27, %v25713_v26  ;;  %v7473_v10 = vrot.slane %v7460_v27, %v25768_v36  ;;  %v7469_v0 = vrot.slane %v7460_v27, %v25769_v2  ;;  %v7477_v32 = vrot.slane %v7460_v27, %v25770_v48 }
 0xd91   :  { %18270 = vmatpush1.bf16.msra.mxu1 %v24308_v28  ;;  %v7499_v28 = vld [vmem:[#allocation10 + $0x2] ss:$4 sm:$0xf] }
 0xd92   :  { %v7508_v39 = vrot.slane %v7499_v28, %v25769_v2  ;;  %v7504_v19 = vrot.slane %v7499_v28, %v25713_v26  ;;  %v7516_v31 = vrot.slane %v7499_v28, %v25770_v48  ;;  %v7512_v63 = vrot.slane %v7499_v28, %v25768_v36 }
 0xe59   :  { %v17649_v62 = vpop.f32.mrb[86].mxu0 }
 0xe5a   :  { %v17650_v49 = vpop.f32.mrb[87].mxu0 }
 0xe5b   :  { %v17651_v53 = vadd.f32 %v17650_v49, %v17649_v62 }
 0xe5f   :  { %v17684_v37 = vpop.f32.mrb[82].mxu1 }
 0xe60   :  { %v17685_v3 = vpop.f32.mrb[83].mxu1 }
 0xe61   :  { %v17686_v16 = vadd.f32 %v17685_v3, %v17684_v37 }
 0xe63   :  { %v7275_v42 = vadd.f32 %v17686_v16, %v17651_v53 }
 0xe65   :  { %v7278_v21 = vmul.f32 0.001953125, %v7275_v42 }
 0xe67   :  { %v7279_v60 = vmax.f32 %v7278_v21, 0.0 }
 0xe69   :  { %v7280_v59 = vadd.f32 1e-05, %v7279_v60 }
 0xe6b   :  { %20916 = vrsqrt.f32 %v7280_v59 }
 0xe75   :  { %v20917_v13 = vpop.eup %20916 }
 0xe76   :  { %16613 = vmatmul.mubr.msk.f32.vlgmr.msra.gmra.mrb[88].mxu0 %vm6908_vm6, %v20917_v13  ;;  %16614 = vmatmul.mubr.msk.f32.vlgmr.msra.gmra.mrb[84].mxu1 %vm6908_vm6, %v20917_v13 }
 0xe77   :  { %7587 = vmatprep.mubr.bf16.mxu0 %v25767_v52  ;;  %7630 = vmatprep.mubr.bf16.mxu1 %v25767_v52 }
 0xf49   :  { %v7351_v35 = vpop.f32.mrb[88].mxu0  ;;  %v7422_v25 = vpop.f32.mrb[84].mxu1 }
 0xf4a   :  { %v7430_v50 = vrot.slane %v7351_v35, %v25713_v26  ;;  %v7438_v7 = vrot.slane %v7422_v25, %v25713_v26  ;;  %v7353_v15 = vpop.f32.mrb[89].mxu0  ;;  %v7424_v4 = vpop.f32.mrb[85].mxu1 }
 0xf4b   :  { %v7434_v45 = vrot.slane %v7353_v15, %v25713_v26  ;;  %v7442_v8 = vrot.slane %v7424_v4, %v25713_v26 }
 0xf4c   :  { %v7443_v9 = vmul.f32 %v7430_v50, %v24333_v24  ;;  %v7447_v58 = vmul.f32 %v7430_v50, %v24336_v20  ;;  %v7451_v43 = vmul.f32 %v7430_v50, %v24339_v51  ;;  %v7455_v1 = vmul.f32 %v7430_v50, %v24351_v6 }
 0xf4d   :  { %v7445_v22 = vmul.f32 %v7438_v7, %v24373_v54  ;;  %v7449_v44 = vmul.f32 %v7438_v7, %v24376_v29  ;;  %v7453_v23 = vmul.f32 %v7438_v7, %v24379_v33  ;;  %v7457_v41 = vmul.f32 %v7438_v7, %v24393_v46 }
 0xf4e   :  { %v7482_v40 = vmul.f32 %v7465_v38, %v7443_v9  ;;  %v7486_v55 = vmul.f32 %v7465_v38, %v7447_v58  ;;  %v7490_v14 = vmul.f32 %v7465_v38, %v7451_v43  ;;  %v7494_v12 = vmul.f32 %v7465_v38, %v7455_v1  ;;  %v19766_v9 = vld [vmem:[#allocation13 + $0x40c] ss:$16 sps:$4 sm:$0xff]   ;;  %v19760_v58 = vld [vmem:[#allocation11 + $0x8] sm:$0xff]   ;;  %v19764_v1 = vld [vmem:[#allocation13 + $0x408] ss:$16 sps:$4 sm:$0xff]  }
 0xf4f   :  { %v7484_v56 = vmul.f32 %v7473_v10, %v7445_v22  ;;  %v7488_v24 = vmul.f32 %v7473_v10, %v7449_v44  ;;  %v7492_v62 = vmul.f32 %v7473_v10, %v7453_v23  ;;  %v7496_v20 = vmul.f32 %v7473_v10, %v7457_v41  ;;  %v19761_v43 = vld [vmem:[#allocation13 + $0x400] ss:$16 sps:$4 sm:$0xff]   ;;  %v19769_v22 = vld [vmem:[#allocation13 + $0x424] ss:$16 sps:$4 sm:$0xff]   ;;  %v19772_v44 = vld [vmem:[#allocation13 + $0x42c] ss:$16 sps:$4 sm:$0xff]  }
 0xf50   :  { %v7444_v51 = vmul.f32 %v7434_v45, %v24342_v5  ;;  %v7448_v6 = vmul.f32 %v7434_v45, %v24345_v18  ;;  %v7452_v54 = vmul.f32 %v7434_v45, %v24348_v34  ;;  %v7456_v29 = vmul.f32 %v7434_v45, %v24368_v30  ;;  %v19767_v23 = vld [vmem:[#allocation13 + $0x420] ss:$16 sps:$4 sm:$0xff]   ;;  %v19770_v41 = vld [vmem:[#allocation13 + $0x428] ss:$16 sps:$4 sm:$0xff]  }
 0xf51   :  { %v7446_v33 = vmul.f32 %v7442_v8, %v24382_v61  ;;  %v7450_v46 = vmul.f32 %v7442_v8, %v24385_v47  ;;  %v7454_v49 = vmul.f32 %v7442_v8, %v24388_v57  ;;  %v7458_v53 = vmul.f32 %v7442_v8, %v24400_v17 }
 0xf52   :  { %v7483_v37 = vmul.f32 %v7469_v0, %v7444_v51  ;;  %v7487_v3 = vmul.f32 %v7469_v0, %v7448_v6  ;;  %v7521_v16 = vadd.f32 %v7504_v19, %v7482_v40  ;;  %v7525_v42 = vadd.f32 %v7504_v19, %v7486_v55  ;;  %v19775_v40 = vld [vmem:[#allocation13 + $0x444] ss:$16 sps:$4 sm:$0xff]   ;;  %v19778_v55 = vld [vmem:[#allocation13 + $0x44c] ss:$16 sps:$4 sm:$0xff]  }
 0xf53   :  { %v7485_v21 = vmul.f32 %v7477_v32, %v7446_v33  ;;  %v7489_v5 = vmul.f32 %v7477_v32, %v7450_v46  ;;  %v7523_v60 = vadd.f32 %v7512_v63, %v7484_v56  ;;  %v7527_v18 = vadd.f32 %v7512_v63, %v7488_v24  ;;  %v19781_v56 = vld [vmem:[#allocation13 + $0x464] ss:$16 sps:$4 sm:$0xff]   ;;  %v19784_v24 = vld [vmem:[#allocation13 + $0x46c] ss:$16 sps:$4 sm:$0xff]  }
 0xf54   :  { %v7522_v59 = vadd.f32 %v7508_v39, %v7483_v37  ;;  %v7526_v34 = vadd.f32 %v7508_v39, %v7487_v3  ;;  %v24454_v13 = vpack.c.bf16 %v7525_v42, %v7521_v16  ;;  %v7491_v30 = vmul.f32 %v7469_v0, %v7452_v54  ;;  %v19787_v51 = vld [vmem:[#allocation13 + $0x484] ss:$16 sps:$4 sm:$0xff]   ;;  %v19790_v6 = vld [vmem:[#allocation13 + $0x48c] ss:$16 sps:$4 sm:$0xff]   ;;  %v19785_v54 = vld [vmem:[#allocation13 + $0x480] ss:$16 sps:$4 sm:$0xff]  }
 0xf55   :  { %v7524_v61 = vadd.f32 %v7516_v31, %v7485_v21  ;;  %v7528_v27 = vadd.f32 %v7516_v31, %v7489_v5  ;;  %v24456_v47 = vpack.c.bf16 %v7527_v18, %v7523_v60  ;;  %v7495_v57 = vmul.f32 %v7469_v0, %v7456_v29  ;;  %v19788_v29 = vld [vmem:[#allocation13 + $0x488] ss:$16 sps:$4 sm:$0xff]   ;;  %v19793_v33 = vld [vmem:[#allocation13 + $0x4a4] ss:$16 sps:$4 sm:$0xff]   ;;  %v19796_v46 = vld [vmem:[#allocation13 + $0x4ac] ss:$16 sps:$4 sm:$0xff]  }
 0xf56   :  { %v24458_v28 = vpack.c.bf16 %v7526_v34, %v7522_v59  ;;  %v7530_v17 = vadd.f32 %v7508_v39, %v7491_v30  ;;  %v7493_v35 = vmul.f32 %v7477_v32, %v7454_v49  ;;  %v7497_v38 = vmul.f32 %v7477_v32, %v7458_v53  ;;  %v19791_v49 = vld [vmem:[#allocation13 + $0x4a0] ss:$16 sps:$4 sm:$0xff]   ;;  %v19794_v53 = vld [vmem:[#allocation13 + $0x4a8] ss:$16 sps:$4 sm:$0xff]   ;;  %v19799_v37 = vld [vmem:[#allocation13 + $0x4c4] ss:$16 sps:$4 sm:$0xff]  }
 0xf57   :  { %v24460_v25 = vpack.c.bf16 %v7528_v27, %v7524_v61  ;;  %v7534_v10 = vadd.f32 %v7508_v39, %v7495_v57  ;;  %v7529_v50 = vadd.f32 %v7504_v19, %v7490_v14  ;;  %v7533_v7 = vadd.f32 %v7504_v19, %v7494_v12  ;;  %v19773_v14 = vld [vmem:[#allocation13 + $0x440] ss:$16 sps:$4 sm:$0xff]   ;;  %v19776_v12 = vld [vmem:[#allocation13 + $0x448] ss:$16 sps:$4 sm:$0xff]   ;;  %v19802_v3 = vld [vmem:[#allocation13 + $0x4cc] ss:$16 sps:$4 sm:$0xff]  }
 0xf58   :  { %7555 = vmatprep.subr.bf16.mxu0 %v24458_v28  ;;  %v7532_v15 = vadd.f32 %v7516_v31, %v7493_v35  ;;  %v7536_v4 = vadd.f32 %v7516_v31, %v7497_v38  ;;  %v7531_v45 = vadd.f32 %v7512_v63, %v7492_v62  ;;  %v7535_v8 = vadd.f32 %v7512_v63, %v7496_v20  ;;  %v19759_v31 = vld [vmem:[#allocation11] sm:$0xff]   ;;  %v19763_v63 = vld [vmem:[#allocation13 + $0x404] ss:$16 sps:$4 sm:$0xff]   ;;  %v19779_v62 = vld [vmem:[#allocation13 + $0x460] ss:$16 sps:$4 sm:$0xff]  }
 0xf59   :  { %7598 = vmatprep.subr.bf16.mxu1 %v24460_v25  ;;  %7556 = vmatpush1.bf16.msra.mxu0 %v24454_v13  ;;  %v24465_v0 = vpack.c.bf16 %v7534_v10, %v7530_v17  ;;  %v24471_v39 = vpack.c.bf16 %v7533_v7, %v7529_v50  ;;  %v19782_v20 = vld [vmem:[#allocation13 + $0x468] ss:$16 sps:$4 sm:$0xff]   ;;  %v19797_v16 = vld [vmem:[#allocation13 + $0x4c0] ss:$16 sps:$4 sm:$0xff]   ;;  %v19805_v21 = vld [vmem:[#allocation13 + $0x4e4] ss:$16 sps:$4 sm:$0xff]  }
 0xf5a   :  { %7599 = vmatpush1.bf16.msra.mxu1 %v24456_v47  ;;  %v24468_v32 = vpack.c.bf16 %v7536_v4, %v7532_v15  ;;  %v24474_v19 = vpack.c.bf16 %v7535_v8, %v7531_v45  ;;  %v19800_v42 = vld [vmem:[#allocation13 + $0x4c8] ss:$16 sps:$4 sm:$0xff]   ;;  %v19808_v5 = vld [vmem:[#allocation13 + $0x4ec] ss:$16 sps:$4 sm:$0xff]   ;;  %v19803_v60 = vld [vmem:[#allocation13 + $0x4e0] ss:$16 sps:$4 sm:$0xff]  }
 0xf5b   :  { %7557 = vmatprep.subr.bf16.mxu0 %v24465_v0  ;;  %v19806_v18 = vld [vmem:[#allocation13 + $0x4e8] ss:$16 sps:$4 sm:$0xff]   ;;  %v19811_v59 = vld [vmem:[#allocation13 + $0x504] ss:$16 sps:$4 sm:$0xff]   ;;  %v19814_v34 = vld [vmem:[#allocation13 + $0x50c] ss:$16 sps:$4 sm:$0xff]  }
 0xf5c   :  { %7600 = vmatprep.subr.bf16.mxu1 %v24468_v32  ;;  %v19809_v30 = vld [vmem:[#allocation13 + $0x500] ss:$16 sps:$4 sm:$0xff]   ;;  %v19812_v61 = vld [vmem:[#allocation13 + $0x508] ss:$16 sps:$4 sm:$0xff]   ;;  %v19817_v27 = vld [vmem:[#allocation13 + $0x524] ss:$16 sps:$4 sm:$0xff]  }
 0xf5d   :  { %7558 = vmatpush1.bf16.msra.mxu0 %v24471_v39  ;;  %v19820_v57 = vld [vmem:[#allocation13 + $0x52c] ss:$16 sps:$4 sm:$0xff]   ;;  %v19815_v17 = vld [vmem:[#allocation13 + $0x520] ss:$16 sps:$4 sm:$0xff]   ;;  %v19818_v35 = vld [vmem:[#allocation13 + $0x528] ss:$16 sps:$4 sm:$0xff]  }
 0xf5e   :  { %7601 = vmatpush1.bf16.msra.mxu1 %v24474_v19  ;;  %7784 = vmatprep.subr.bf16.mxu0 %v24458_v28  ;;  %v19823_v38 = vld [vmem:[#allocation13 + $0x544] ss:$16 sps:$4 sm:$0xff]   ;;  %v19826_v10 = vld [vmem:[#allocation13 + $0x54c] ss:$16 sps:$4 sm:$0xff]   ;;  %v19821_v50 = vld [vmem:[#allocation13 + $0x540] ss:$16 sps:$4 sm:$0xff]  }
 0xf5f   :  { %7827 = vmatprep.subr.bf16.mxu1 %v24460_v25  ;;  %v19824_v7 = vld [vmem:[#allocation13 + $0x548] ss:$16 sps:$4 sm:$0xff]   ;;  %v19829_v15 = vld [vmem:[#allocation13 + $0x564] ss:$16 sps:$4 sm:$0xff]   ;;  %v19832_v4 = vld [vmem:[#allocation13 + $0x56c] ss:$16 sps:$4 sm:$0xff]  }
 0xf60   :  { %16616 = vmatmul.mubr.msk.bf16.vlgmr.msra.gmra.mrb[92].mxu0 %vm6908_vm6, %v19759_v31  ;;  %v19827_v45 = vld [vmem:[#allocation13 + $0x560] ss:$16 sps:$4 sm:$0xff]   ;;  %v19830_v8 = vld [vmem:[#allocation13 + $0x568] ss:$16 sps:$4 sm:$0xff]  }
 0xf61   :  { %16617 = vmatmul.mubr.msk.bf16.vlgmr.msra.gmra.mrb[88].mxu1 %vm6908_vm6, %v19759_v31  ;;  %7785 = vmatpush1.bf16.msra.mxu0 %v24454_v13  ;;  %v19835_v31 = vld [vmem:[#allocation13 + $0x584] ss:$16 sps:$4 sm:$0xff]  }
 0xf62   :  { %7828 = vmatpush1.bf16.msra.mxu1 %v24456_v47  ;;  %7786 = vmatprep.subr.bf16.mxu0 %v24465_v0 }
 0xf63   :  { %7829 = vmatprep.subr.bf16.mxu1 %v24468_v32  ;;  %7816 = vmatprep.mubr.bf16.mxu0 %v25767_v52 }
 0xf64   :  { %7859 = vmatprep.mubr.bf16.mxu1 %v25767_v52 }
 0xf65   :  { %7787 = vmatpush1.bf16.msra.mxu0 %v24471_v39 }
 0xf66   :  { %7830 = vmatpush1.bf16.msra.mxu1 %v24474_v19  ;;  %8643 = vmatprep.subr.bf16.mxu0 %v19763_v63  ;;  %v19838_v63 = vld [vmem:[#allocation13 + $0x58c] ss:$16 sps:$4 sm:$0xff]  }
 0xf67   :  { %8729 = vmatprep.subr.bf16.mxu1 %v19766_v9  ;;  %v19833_v9 = vld [vmem:[#allocation13 + $0x580] ss:$16 sps:$4 sm:$0xff]  }
 0xf68   :  { %16619 = vmatmul.mubr.msk.bf16.vlgmr.msra.gmra.mrb[96].mxu0 %vm6908_vm6, %v19760_v58 }
 0xf69   :  { %16620 = vmatmul.mubr.msk.bf16.vlgmr.msra.gmra.mrb[92].mxu1 %vm6908_vm6, %v19760_v58  ;;  %8644 = vmatpush1.bf16.msra.mxu0 %v19761_v43  ;;  %v19836_v58 = vld [vmem:[#allocation13 + $0x588] ss:$16 sps:$4 sm:$0xff]   ;;  %v19839_v43 = vld [vmem:[#allocation13 + $0x5a0] ss:$16 sps:$4 sm:$0xff]  }
 0xf6a   :  { %8730 = vmatpush1.bf16.msra.mxu1 %v19764_v1  ;;  %8645 = vmatprep.subr.bf16.mxu0 %v19769_v22  ;;  %v19841_v1 = vld [vmem:[#allocation13 + $0x5a4] ss:$16 sps:$4 sm:$0xff]   ;;  %v19842_v22 = vld [vmem:[#allocation13 + $0x5a8] ss:$16 sps:$4 sm:$0xff]  }
 0xf6b   :  { %8731 = vmatprep.subr.bf16.mxu1 %v19772_v44  ;;  %v19844_v44 = vld [vmem:[#allocation13 + $0x5ac] ss:$16 sps:$4 sm:$0xff]  }
 0xf6d   :  { %8646 = vmatpush1.bf16.msra.mxu0 %v19767_v23  ;;  %v19847_v23 = vld [vmem:[#allocation13 + $0x5c4] ss:$16 sps:$4 sm:$0xff]  }
 0xf6e   :  { %8732 = vmatpush1.bf16.msra.mxu1 %v19770_v41  ;;  %8647 = vmatprep.subr.bf16.mxu0 %v19775_v40  ;;  %v19850_v41 = vld [vmem:[#allocation13 + $0x5cc] ss:$16 sps:$4 sm:$0xff]   ;;  %v19845_v40 = vld [vmem:[#allocation13 + $0x5c0] ss:$16 sps:$4 sm:$0xff]  }
 0xf6f   :  { %8733 = vmatprep.subr.bf16.mxu1 %v19778_v55  ;;  %v19848_v55 = vld [vmem:[#allocation13 + $0x5c8] ss:$16 sps:$4 sm:$0xff]  }
 0xf71   :  { %8648 = vmatpush1.bf16.msra.mxu0 %v19773_v14  ;;  %v19851_v14 = vld [vmem:[#allocation13 + $0x5e0] ss:$16 sps:$4 sm:$0xff]  }
 0xf72   :  { %8734 = vmatpush1.bf16.msra.mxu1 %v19776_v12  ;;  %8649 = vmatprep.subr.bf16.mxu0 %v19781_v56  ;;  %v19853_v12 = vld [vmem:[#allocation13 + $0x5e4] ss:$16 sps:$4 sm:$0xff]   ;;  %v19854_v56 = vld [vmem:[#allocation13 + $0x5e8] ss:$16 sps:$4 sm:$0xff]  }
 0xf73   :  { %8735 = vmatprep.subr.bf16.mxu1 %v19784_v24  ;;  %v19856_v24 = vld [vmem:[#allocation13 + $0x5ec] ss:$16 sps:$4 sm:$0xff]  }
 0xf75   :  { %8650 = vmatpush1.bf16.msra.mxu0 %v19779_v62  ;;  %v19859_v62 = vld [vmem:[#allocation13 + $0x604] ss:$16 sps:$4 sm:$0xff]  }
 0xf76   :  { %8736 = vmatpush1.bf16.msra.mxu1 %v19782_v20  ;;  %8651 = vmatprep.subr.bf16.mxu0 %v19787_v51  ;;  %v19862_v20 = vld [vmem:[#allocation13 + $0x60c] ss:$16 sps:$4 sm:$0xff]  }
 0xf77   :  { %8737 = vmatprep.subr.bf16.mxu1 %v19790_v6 }
 0xf79   :  { %8652 = vmatpush1.bf16.msra.mxu0 %v19785_v54 }
 0xf7a   :  { %8738 = vmatpush1.bf16.msra.mxu1 %v19788_v29  ;;  %8653 = vmatprep.subr.bf16.mxu0 %v19793_v33 }
 0xf7b   :  { %8739 = vmatprep.subr.bf16.mxu1 %v19796_v46 }
 0xf7d   :  { %8654 = vmatpush1.bf16.msra.mxu0 %v19791_v49 }
 0xf7e   :  { %8740 = vmatpush1.bf16.msra.mxu1 %v19794_v53  ;;  %8655 = vmatprep.subr.bf16.mxu0 %v19799_v37 }
 0xf7f   :  { %8741 = vmatprep.subr.bf16.mxu1 %v19802_v3 }
 0xf81   :  { %8656 = vmatpush1.bf16.msra.mxu0 %v19797_v16 }
 0xf82   :  { %8742 = vmatpush1.bf16.msra.mxu1 %v19800_v42  ;;  %8657 = vmatprep.subr.bf16.mxu0 %v19805_v21 }
 0xf83   :  { %8743 = vmatprep.subr.bf16.mxu1 %v19808_v5 }
 0xf85   :  { %8658 = vmatpush1.bf16.msra.mxu0 %v19803_v60 }
 0xf86   :  { %8744 = vmatpush1.bf16.msra.mxu1 %v19806_v18  ;;  %8659 = vmatprep.subr.bf16.mxu0 %v19811_v59 }
 0xf87   :  { %8745 = vmatprep.subr.bf16.mxu1 %v19814_v34 }
 0xf89   :  { %8660 = vmatpush1.bf16.msra.mxu0 %v19809_v30 }
 0xf8a   :  { %8746 = vmatpush1.bf16.msra.mxu1 %v19812_v61  ;;  %8661 = vmatprep.subr.bf16.mxu0 %v19817_v27 }
 0xf8b   :  { %8747 = vmatprep.subr.bf16.mxu1 %v19820_v57  ;;  %v19857_v57 = vld [vmem:[#allocation13 + $0x600] ss:$16 sps:$4 sm:$0xff]  }
 0xf8d   :  { %8662 = vmatpush1.bf16.msra.mxu0 %v19815_v17  ;;  %v19860_v17 = vld [vmem:[#allocation13 + $0x608] ss:$16 sps:$4 sm:$0xff]  }
 0xf8e   :  { %8748 = vmatpush1.bf16.msra.mxu1 %v19818_v35  ;;  %8663 = vmatprep.subr.bf16.mxu0 %v19823_v38 }
 0xf8f   :  { %8749 = vmatprep.subr.bf16.mxu1 %v19826_v10  ;;  %v19865_v10 = vld [vmem:[#allocation13 + $0x624] ss:$16 sps:$4 sm:$0xff]  }
 0xf91   :  { %8664 = vmatpush1.bf16.msra.mxu0 %v19821_v50  ;;  %v19868_v50 = vld [vmem:[#allocation13 + $0x62c] ss:$16 sps:$4 sm:$0xff]  }
 0xf92   :  { %8750 = vmatpush1.bf16.msra.mxu1 %v19824_v7  ;;  %8665 = vmatprep.subr.bf16.mxu0 %v19829_v15  ;;  %v19863_v15 = vld [vmem:[#allocation13 + $0x620] ss:$16 sps:$4 sm:$0xff]  }
 0xf93   :  { %8751 = vmatprep.subr.bf16.mxu1 %v19832_v4  ;;  %v19866_v4 = vld [vmem:[#allocation13 + $0x628] ss:$16 sps:$4 sm:$0xff]  }
 0xf95   :  { %8666 = vmatpush1.bf16.msra.mxu0 %v19827_v45  ;;  %v19871_v45 = vld [vmem:[#allocation13 + $0x644] ss:$16 sps:$4 sm:$0xff]  }
 0xf96   :  { %8752 = vmatpush1.bf16.msra.mxu1 %v19830_v8  ;;  %8667 = vmatprep.subr.bf16.mxu0 %v19835_v31  ;;  %v19874_v8 = vld [vmem:[#allocation13 + $0x64c] ss:$16 sps:$4 sm:$0xff]   ;;  %v19869_v31 = vld [vmem:[#allocation13 + $0x640] ss:$16 sps:$4 sm:$0xff]  }
 0xf97   :  { %8753 = vmatprep.subr.bf16.mxu1 %v19838_v63  ;;  %v19872_v63 = vld [vmem:[#allocation13 + $0x648] ss:$16 sps:$4 sm:$0xff]  }
 0xf99   :  { %8668 = vmatpush1.bf16.msra.mxu0 %v19833_v9  ;;  %v19877_v9 = vld [vmem:[#allocation13 + $0x664] ss:$16 sps:$4 sm:$0xff]  }
 0xf9a   :  { %8754 = vmatpush1.bf16.msra.mxu1 %v19836_v58  ;;  %8669 = vmatprep.subr.bf16.mxu0 %v19841_v1  ;;  %v19880_v58 = vld [vmem:[#allocation13 + $0x66c] ss:$16 sps:$4 sm:$0xff]   ;;  %v19878_v1 = vld [vmem:[#allocation13 + $0x668] ss:$16 sps:$4 sm:$0xff]  }
 0xf9b   :  { %8755 = vmatprep.subr.bf16.mxu1 %v19844_v44  ;;  %v19886_v44 = vld [vmem:[#allocation13 + $0x68c] ss:$16 sps:$4 sm:$0xff]  }
 0xf9d   :  { %8670 = vmatpush1.bf16.msra.mxu0 %v19839_v43  ;;  %v19875_v43 = vld [vmem:[#allocation13 + $0x660] ss:$16 sps:$4 sm:$0xff]  }
 0xf9e   :  { %8756 = vmatpush1.bf16.msra.mxu1 %v19842_v22  ;;  %8671 = vmatprep.subr.bf16.mxu0 %v19847_v23  ;;  %v19883_v22 = vld [vmem:[#allocation13 + $0x684] ss:$16 sps:$4 sm:$0xff]   ;;  %v19881_v23 = vld [vmem:[#allocation13 + $0x680] ss:$16 sps:$4 sm:$0xff]  }
 0xf9f   :  { %8757 = vmatprep.subr.bf16.mxu1 %v19850_v41  ;;  %v19884_v41 = vld [vmem:[#allocation13 + $0x688] ss:$16 sps:$4 sm:$0xff]  }
 0xfa1   :  { %8672 = vmatpush1.bf16.msra.mxu0 %v19845_v40  ;;  %v19889_v40 = vld [vmem:[#allocation13 + $0x6a4] ss:$16 sps:$4 sm:$0xff]  }
 0xfa2   :  { %8758 = vmatpush1.bf16.msra.mxu1 %v19848_v55  ;;  %8673 = vmatprep.subr.bf16.mxu0 %v19853_v12  ;;  %v19892_v55 = vld [vmem:[#allocation13 + $0x6ac] ss:$16 sps:$4 sm:$0xff]   ;;  %v19890_v12 = vld [vmem:[#allocation13 + $0x6a8] ss:$16 sps:$4 sm:$0xff]  }
 0xfa3   :  { %8759 = vmatprep.subr.bf16.mxu1 %v19856_v24  ;;  %v19898_v24 = vld [vmem:[#allocation13 + $0x6cc] ss:$16 sps:$4 sm:$0xff]  }
 0xfa5   :  { %8674 = vmatpush1.bf16.msra.mxu0 %v19851_v14  ;;  %v19887_v14 = vld [vmem:[#allocation13 + $0x6a0] ss:$16 sps:$4 sm:$0xff]  }
 0xfa6   :  { %8760 = vmatpush1.bf16.msra.mxu1 %v19854_v56  ;;  %8686 = vmatprep.subr.bf16.mxu0 %v19859_v62  ;;  %v19895_v56 = vld [vmem:[#allocation13 + $0x6c4] ss:$16 sps:$4 sm:$0xff]   ;;  %v19893_v62 = vld [vmem:[#allocation13 + $0x6c0] ss:$16 sps:$4 sm:$0xff]  }
 0xfa7   :  { %8772 = vmatprep.subr.bf16.mxu1 %v19862_v20  ;;  %v19896_v20 = vld [vmem:[#allocation13 + $0x6c8] ss:$16 sps:$4 sm:$0xff]  }
0x1033   :  { %v7589_v51 = vpop.f32.mrb[92].mxu0 }
0x1034   :  { %v7591_v6 = vpop.f32.mrb[93].mxu0  ;;  %v7632_v54 = vpop.f32.mrb[88].mxu1 }
0x1035   :  { %v7593_v29 = vpop.f32.mrb[94].mxu0  ;;  %v7634_v33 = vpop.f32.mrb[89].mxu1 }
0x1036   :  { %v24492_v46 = vpack.c.bf16 %v7593_v29, %v7589_v51  ;;  %v7595_v49 = vpop.f32.mrb[95].mxu0  ;;  %v7636_v53 = vpop.f32.mrb[90].mxu1  ;;  %v19901_v51 = vld [vmem:[#allocation13 + $0x6e4] ss:$16 sps:$4 sm:$0xff]   ;;  %v19902_v29 = vld [vmem:[#allocation13 + $0x6e8] ss:$16 sps:$4 sm:$0xff]  }
0x1037   :  { %v24494_v37 = vpack.c.bf16 %v7595_v49, %v7591_v6  ;;  %v24496_v3 = vpack.c.bf16 %v7636_v53, %v7632_v54  ;;  %v7638_v16 = vpop.f32.mrb[91].mxu1  ;;  %v19904_v6 = vld [vmem:[#allocation13 + $0x6ec] ss:$16 sps:$4 sm:$0xff]   ;;  %v19899_v54 = vld [vmem:[#allocation13 + $0x6e0] ss:$16 sps:$4 sm:$0xff]  }
0x1038   :  { %v24498_v42 = vpack.c.bf16 %v7638_v16, %v7634_v33  ;;  %v19907_v33 = vld [vmem:[#allocation13 + $0x704] ss:$16 sps:$4 sm:$0xff]   ;;  %v19910_v49 = vld [vmem:[#allocation13 + $0x70c] ss:$16 sps:$4 sm:$0xff]   ;;  %v19905_v53 = vld [vmem:[#allocation13 + $0x700] ss:$16 sps:$4 sm:$0xff]  }
0x1039   :  { %v19908_v16 = vld [vmem:[#allocation13 + $0x708] ss:$16 sps:$4 sm:$0xff]  }
0x103b   :  { %v7818_v21 = vpop.f32.mrb[96].mxu0 }
0x103c   :  { %v7820_v5 = vpop.f32.mrb[97].mxu0  ;;  %v7861_v60 = vpop.f32.mrb[92].mxu1 }
0x103d   :  { %v7822_v18 = vpop.f32.mrb[98].mxu0  ;;  %v7863_v59 = vpop.f32.mrb[93].mxu1 }
0x103e   :  { %v7870_v34 = vpack.c.bf16 %v7822_v18, %v7818_v21  ;;  %v7824_v30 = vpop.f32.mrb[99].mxu0  ;;  %v7865_v61 = vpop.f32.mrb[94].mxu1  ;;  %v19913_v21 = vld [vmem:[#allocation13 + $0x724] ss:$16 sps:$4 sm:$0xff]   ;;  %v19914_v18 = vld [vmem:[#allocation13 + $0x728] ss:$16 sps:$4 sm:$0xff]  }
0x103f   :  { %v7871_v27 = vpack.c.bf16 %v7824_v30, %v7820_v5  ;;  %v24500_v35 = vpack.c.bf16 %v7865_v61, %v7861_v60  ;;  %v7867_v38 = vpop.f32.mrb[95].mxu1  ;;  %v19916_v5 = vld [vmem:[#allocation13 + $0x72c] ss:$16 sps:$4 sm:$0xff]   ;;  %v19911_v60 = vld [vmem:[#allocation13 + $0x720] ss:$16 sps:$4 sm:$0xff]  }
0x1040   :  { %v7873_v7 = vpack.c.bf16 %v7867_v38, %v7863_v59  ;;  %v19919_v59 = vld [vmem:[#allocation13 + $0x744] ss:$16 sps:$4 sm:$0xff]   ;;  %v19917_v30 = vld [vmem:[#allocation13 + $0x740] ss:$16 sps:$4 sm:$0xff]   ;;  %v19920_v61 = vld [vmem:[#allocation13 + $0x748] ss:$16 sps:$4 sm:$0xff]  }
0x1041   :  { %8675 = vmatprep.mubr.bf16.mxu0 %v7871_v27  ;;  %8761 = vmatprep.mubr.bf16.mxu1 %v7871_v27  ;;  %v19925_v27 = vld [vmem:[#allocation13 + $0x764] ss:$16 sps:$4 sm:$0xff]   ;;  %v19926_v38 = vld [vmem:[#allocation13 + $0x768] ss:$16 sps:$4 sm:$0xff]  }
0x1042   :  { %8676 = vmatmul.mubr.bf16.vlgmr.msra.gmra.mrb[100].mxu0 %v7870_v34  ;;  %8762 = vmatmul.mubr.bf16.vlgmr.msra.gmra.mrb[96].mxu1 %v7870_v34  ;;  %v19922_v34 = vld [vmem:[#allocation13 + $0x74c] ss:$16 sps:$4 sm:$0xff]  }
0x1043   :  { %8687 = vmatpush1.bf16.msra.mxu0 %v19857_v57  ;;  %8773 = vmatpush1.bf16.msra.mxu1 %v19860_v17  ;;  %v19928_v57 = vld [vmem:[#allocation13 + $0x76c] ss:$16 sps:$4 sm:$0xff]   ;;  %v19923_v17 = vld [vmem:[#allocation13 + $0x760] ss:$16 sps:$4 sm:$0xff]  }
0x1044   :  { %8688 = vmatprep.subr.bf16.mxu0 %v19865_v10  ;;  %8774 = vmatprep.subr.bf16.mxu1 %v19868_v50  ;;  %v19931_v10 = vld [vmem:[#allocation13 + $0x784] ss:$16 sps:$4 sm:$0xff]   ;;  %v19934_v50 = vld [vmem:[#allocation13 + $0x78c] ss:$16 sps:$4 sm:$0xff]  }
0x1045   :  { %8718 = vmatprep.mubr.bf16.mxu0 %v7873_v7  ;;  %8804 = vmatprep.mubr.bf16.mxu1 %v7873_v7  ;;  %v19929_v7 = vld [vmem:[#allocation13 + $0x780] ss:$16 sps:$4 sm:$0xff]  }
0x1047   :  { %8689 = vmatpush1.bf16.msra.mxu0 %v19863_v15  ;;  %8775 = vmatpush1.bf16.msra.mxu1 %v19866_v4  ;;  %v19932_v15 = vld [vmem:[#allocation13 + $0x788] ss:$16 sps:$4 sm:$0xff]   ;;  %v19937_v4 = vld [vmem:[#allocation13 + $0x7a4] ss:$16 sps:$4 sm:$0xff]  }
0x1048   :  { %8690 = vmatprep.subr.bf16.mxu0 %v19871_v45  ;;  %8776 = vmatprep.subr.bf16.mxu1 %v19874_v8  ;;  %v19940_v45 = vld [vmem:[#allocation13 + $0x7ac] ss:$16 sps:$4 sm:$0xff]   ;;  %v19935_v8 = vld [vmem:[#allocation13 + $0x7a0] ss:$16 sps:$4 sm:$0xff]  }
0x104b   :  { %8691 = vmatpush1.bf16.msra.mxu0 %v19869_v31  ;;  %8777 = vmatpush1.bf16.msra.mxu1 %v19872_v63  ;;  %v19938_v31 = vld [vmem:[#allocation13 + $0x7a8] ss:$16 sps:$4 sm:$0xff]   ;;  %v19943_v63 = vld [vmem:[#allocation13 + $0x7c4] ss:$16 sps:$4 sm:$0xff]  }
0x104c   :  { %8692 = vmatprep.subr.bf16.mxu0 %v19877_v9  ;;  %8778 = vmatprep.subr.bf16.mxu1 %v19880_v58  ;;  %v19946_v9 = vld [vmem:[#allocation13 + $0x7cc] ss:$16 sps:$4 sm:$0xff]   ;;  %v19941_v58 = vld [vmem:[#allocation13 + $0x7c0] ss:$16 sps:$4 sm:$0xff]  }
0x104f   :  { %8693 = vmatpush1.bf16.msra.mxu0 %v19875_v43  ;;  %8779 = vmatpush1.bf16.msra.mxu1 %v19878_v1  ;;  %v19944_v43 = vld [vmem:[#allocation13 + $0x7c8] ss:$16 sps:$4 sm:$0xff]   ;;  %v19949_v1 = vld [vmem:[#allocation13 + $0x7e4] ss:$16 sps:$4 sm:$0xff]  }
0x1050   :  { %8694 = vmatprep.subr.bf16.mxu0 %v19883_v22  ;;  %8780 = vmatprep.subr.bf16.mxu1 %v19886_v44  ;;  %v19952_v22 = vld [vmem:[#allocation13 + $0x7ec] ss:$16 sps:$4 sm:$0xff]   ;;  %v19947_v44 = vld [vmem:[#allocation13 + $0x7e0] ss:$16 sps:$4 sm:$0xff]  }
0x1053   :  { %8695 = vmatpush1.bf16.msra.mxu0 %v19881_v23  ;;  %8781 = vmatpush1.bf16.msra.mxu1 %v19884_v41  ;;  %v19950_v23 = vld [vmem:[#allocation13 + $0x7e8] ss:$16 sps:$4 sm:$0xff]   ;;  %v19955_v41 = vld [vmem:[#allocation13 + $0x4] ss:$16 sps:$4 sm:$0xff]  }
0x1054   :  { %8696 = vmatprep.subr.bf16.mxu0 %v19889_v40  ;;  %8782 = vmatprep.subr.bf16.mxu1 %v19892_v55  ;;  %v19958_v40 = vld [vmem:[#allocation13 + $0xc] ss:$16 sps:$4 sm:$0xff]   ;;  %v19953_v55 = vld [vmem:[#allocation13] ss:$16 sps:$4 sm:$0xff]  }
0x1057   :  { %8697 = vmatpush1.bf16.msra.mxu0 %v19887_v14  ;;  %8783 = vmatpush1.bf16.msra.mxu1 %v19890_v12  ;;  %v19956_v14 = vld [vmem:[#allocation13 + $0x8] ss:$16 sps:$4 sm:$0xff]   ;;  %v19961_v12 = vld [vmem:[#allocation13 + $0x24] ss:$16 sps:$4 sm:$0xff]  }
0x1058   :  { %8698 = vmatprep.subr.bf16.mxu0 %v19895_v56  ;;  %8784 = vmatprep.subr.bf16.mxu1 %v19898_v24  ;;  %v19964_v56 = vld [vmem:[#allocation13 + $0x2c] ss:$16 sps:$4 sm:$0xff]   ;;  %v19959_v24 = vld [vmem:[#allocation13 + $0x20] ss:$16 sps:$4 sm:$0xff]  }
0x105b   :  { %8699 = vmatpush1.bf16.msra.mxu0 %v19893_v62  ;;  %8785 = vmatpush1.bf16.msra.mxu1 %v19896_v20  ;;  %v19962_v62 = vld [vmem:[#allocation13 + $0x28] ss:$16 sps:$4 sm:$0xff]   ;;  %v19967_v20 = vld [vmem:[#allocation13 + $0x44] ss:$16 sps:$4 sm:$0xff]  }
0x105c   :  { %8700 = vmatprep.subr.bf16.mxu0 %v19901_v51  ;;  %8786 = vmatprep.subr.bf16.mxu1 %v19904_v6  ;;  %v19970_v51 = vld [vmem:[#allocation13 + $0x4c] ss:$16 sps:$4 sm:$0xff]   ;;  %v19965_v6 = vld [vmem:[#allocation13 + $0x40] ss:$16 sps:$4 sm:$0xff]  }
0x105f   :  { %8701 = vmatpush1.bf16.msra.mxu0 %v19899_v54  ;;  %8787 = vmatpush1.bf16.msra.mxu1 %v19902_v29  ;;  %v19968_v54 = vld [vmem:[#allocation13 + $0x48] ss:$16 sps:$4 sm:$0xff]   ;;  %v19973_v29 = vld [vmem:[#allocation13 + $0x64] ss:$16 sps:$4 sm:$0xff]  }
0x1060   :  { %8702 = vmatprep.subr.bf16.mxu0 %v19907_v33  ;;  %8788 = vmatprep.subr.bf16.mxu1 %v19910_v49  ;;  %v19971_v33 = vld [vmem:[#allocation13 + $0x60] ss:$16 sps:$4 sm:$0xff]   ;;  %v19974_v49 = vld [vmem:[#allocation13 + $0x68] ss:$16 sps:$4 sm:$0xff]  }
0x1063   :  { %8703 = vmatpush1.bf16.msra.mxu0 %v19905_v53  ;;  %8789 = vmatpush1.bf16.msra.mxu1 %v19908_v16  ;;  %v19979_v53 = vld [vmem:[#allocation13 + $0x84] ss:$16 sps:$4 sm:$0xff]   ;;  %v19977_v16 = vld [vmem:[#allocation13 + $0x80] ss:$16 sps:$4 sm:$0xff]  }
0x1064   :  { %8704 = vmatprep.subr.bf16.mxu0 %v19913_v21  ;;  %8790 = vmatprep.subr.bf16.mxu1 %v19916_v5  ;;  %v19980_v21 = vld [vmem:[#allocation13 + $0x88] ss:$16 sps:$4 sm:$0xff]   ;;  %v19985_v5 = vld [vmem:[#allocation13 + $0xa4] ss:$16 sps:$4 sm:$0xff]  }
0x1067   :  { %8705 = vmatpush1.bf16.msra.mxu0 %v19911_v60  ;;  %8791 = vmatpush1.bf16.msra.mxu1 %v19914_v18  ;;  %v19988_v60 = vld [vmem:[#allocation13 + $0xac] ss:$16 sps:$4 sm:$0xff]   ;;  %v19983_v18 = vld [vmem:[#allocation13 + $0xa0] ss:$16 sps:$4 sm:$0xff]  }
0x1068   :  { %8706 = vmatprep.subr.bf16.mxu0 %v19919_v59  ;;  %8792 = vmatprep.subr.bf16.mxu1 %v19922_v34  ;;  %v19986_v59 = vld [vmem:[#allocation13 + $0xa8] ss:$16 sps:$4 sm:$0xff]   ;;  %v19991_v34 = vld [vmem:[#allocation13 + $0xc4] ss:$16 sps:$4 sm:$0xff]  }
0x106b   :  { %8707 = vmatpush1.bf16.msra.mxu0 %v19917_v30  ;;  %8793 = vmatpush1.bf16.msra.mxu1 %v19920_v61  ;;  %v19994_v30 = vld [vmem:[#allocation13 + $0xcc] ss:$16 sps:$4 sm:$0xff]   ;;  %v19989_v61 = vld [vmem:[#allocation13 + $0xc0] ss:$16 sps:$4 sm:$0xff]  }
0x106c   :  { %8708 = vmatprep.subr.bf16.mxu0 %v19925_v27  ;;  %8794 = vmatprep.subr.bf16.mxu1 %v19928_v57  ;;  %v19992_v27 = vld [vmem:[#allocation13 + $0xc8] ss:$16 sps:$4 sm:$0xff]   ;;  %v19997_v57 = vld [vmem:[#allocation13 + $0xe4] ss:$16 sps:$4 sm:$0xff]  }
0x106f   :  { %8709 = vmatpush1.bf16.msra.mxu0 %v19923_v17  ;;  %8795 = vmatpush1.bf16.msra.mxu1 %v19926_v38  ;;  %v20000_v17 = vld [vmem:[#allocation13 + $0xec] ss:$16 sps:$4 sm:$0xff]   ;;  %v19995_v38 = vld [vmem:[#allocation13 + $0xe0] ss:$16 sps:$4 sm:$0xff]  }
0x1070   :  { %8710 = vmatprep.subr.bf16.mxu0 %v19931_v10  ;;  %8796 = vmatprep.subr.bf16.mxu1 %v19934_v50  ;;  %v19998_v10 = vld [vmem:[#allocation13 + $0xe8] ss:$16 sps:$4 sm:$0xff]   ;;  %v20003_v50 = vld [vmem:[#allocation13 + $0x104] ss:$16 sps:$4 sm:$0xff]  }
0x1073   :  { %8711 = vmatpush1.bf16.msra.mxu0 %v19929_v7  ;;  %8797 = vmatpush1.bf16.msra.mxu1 %v19932_v15  ;;  %v20006_v7 = vld [vmem:[#allocation13 + $0x10c] ss:$16 sps:$4 sm:$0xff]   ;;  %v20001_v15 = vld [vmem:[#allocation13 + $0x100] ss:$16 sps:$4 sm:$0xff]  }
0x1074   :  { %8712 = vmatprep.subr.bf16.mxu0 %v19937_v4  ;;  %8798 = vmatprep.subr.bf16.mxu1 %v19940_v45  ;;  %v20004_v4 = vld [vmem:[#allocation13 + $0x108] ss:$16 sps:$4 sm:$0xff]   ;;  %v20009_v45 = vld [vmem:[#allocation13 + $0x124] ss:$16 sps:$4 sm:$0xff]  }
0x1077   :  { %8713 = vmatpush1.bf16.msra.mxu0 %v19935_v8  ;;  %8799 = vmatpush1.bf16.msra.mxu1 %v19938_v31  ;;  %v20012_v8 = vld [vmem:[#allocation13 + $0x12c] ss:$16 sps:$4 sm:$0xff]   ;;  %v20007_v31 = vld [vmem:[#allocation13 + $0x120] ss:$16 sps:$4 sm:$0xff]  }
0x1078   :  { %8714 = vmatprep.subr.bf16.mxu0 %v19943_v63  ;;  %8800 = vmatprep.subr.bf16.mxu1 %v19946_v9  ;;  %v20010_v63 = vld [vmem:[#allocation13 + $0x128] ss:$16 sps:$4 sm:$0xff]   ;;  %v20015_v9 = vld [vmem:[#allocation13 + $0x144] ss:$16 sps:$4 sm:$0xff]  }
0x107b   :  { %8715 = vmatpush1.bf16.msra.mxu0 %v19941_v58  ;;  %8801 = vmatpush1.bf16.msra.mxu1 %v19944_v43  ;;  %v20018_v58 = vld [vmem:[#allocation13 + $0x14c] ss:$16 sps:$4 sm:$0xff]   ;;  %v20013_v43 = vld [vmem:[#allocation13 + $0x140] ss:$16 sps:$4 sm:$0xff]  }
0x107c   :  { %8716 = vmatprep.subr.bf16.mxu0 %v19949_v1  ;;  %8802 = vmatprep.subr.bf16.mxu1 %v19952_v22  ;;  %v20016_v1 = vld [vmem:[#allocation13 + $0x148] ss:$16 sps:$4 sm:$0xff]   ;;  %v20021_v22 = vld [vmem:[#allocation13 + $0x164] ss:$16 sps:$4 sm:$0xff]  }
0x107f   :  { %8717 = vmatpush1.bf16.msra.mxu0 %v19947_v44  ;;  %8803 = vmatpush1.bf16.msra.mxu1 %v19950_v23  ;;  %v20024_v44 = vld [vmem:[#allocation13 + $0x16c] ss:$16 sps:$4 sm:$0xff]   ;;  %v20019_v23 = vld [vmem:[#allocation13 + $0x160] ss:$16 sps:$4 sm:$0xff]  }
0x1080   :  { %9455 = vmatprep.subr.bf16.mxu0 %v19955_v41  ;;  %9541 = vmatprep.subr.bf16.mxu1 %v19958_v40  ;;  %v20022_v41 = vld [vmem:[#allocation13 + $0x168] ss:$16 sps:$4 sm:$0xff]   ;;  %v20027_v40 = vld [vmem:[#allocation13 + $0x184] ss:$16 sps:$4 sm:$0xff]  }
0x1082   :  { %8719 = vmatmul.mubr.bf16.vlgmr.msra.gmra.mrb[100].mxu0 %v24500_v35  ;;  %8805 = vmatmul.mubr.bf16.vlgmr.msra.gmra.mrb[96].mxu1 %v24500_v35  ;;  %v19976_v35 = vld [vmem:[#allocation13 + $0x6c] ss:$16 sps:$4 sm:$0xff]  }
0x1083   :  { %9456 = vmatpush1.bf16.msra.mxu0 %v19953_v55  ;;  %9487 = vmatprep.mubr.bf16.mxu0 %v24494_v37  ;;  %v20030_v55 = vld [vmem:[#allocation13 + $0x18c] ss:$16 sps:$4 sm:$0xff]  }
0x1084   :  { %9542 = vmatpush1.bf16.msra.mxu1 %v19956_v14  ;;  %9573 = vmatprep.mubr.bf16.mxu1 %v24494_v37  ;;  %v19982_v37 = vld [vmem:[#allocation13 + $0x8c] ss:$16 sps:$4 sm:$0xff]   ;;  %v20025_v14 = vld [vmem:[#allocation13 + $0x180] ss:$16 sps:$4 sm:$0xff]  }
0x1085   :  { %9457 = vmatprep.subr.bf16.mxu0 %v19961_v12  ;;  %9543 = vmatprep.subr.bf16.mxu1 %v19964_v56  ;;  %v20028_v12 = vld [vmem:[#allocation13 + $0x188] ss:$16 sps:$4 sm:$0xff]   ;;  %v20033_v56 = vld [vmem:[#allocation13 + $0x1a4] ss:$16 sps:$4 sm:$0xff]  }
0x1087   :  { %9458 = vmatpush1.bf16.msra.mxu0 %v19959_v24  ;;  %v20036_v24 = vld [vmem:[#allocation13 + $0x1ac] ss:$16 sps:$4 sm:$0xff]  }
0x1088   :  { %9544 = vmatpush1.bf16.msra.mxu1 %v19962_v62  ;;  %9459 = vmatprep.subr.bf16.mxu0 %v19967_v20  ;;  %v20031_v62 = vld [vmem:[#allocation13 + $0x1a0] ss:$16 sps:$4 sm:$0xff]   ;;  %v20034_v20 = vld [vmem:[#allocation13 + $0x1a8] ss:$16 sps:$4 sm:$0xff]  }
0x1089   :  { %9545 = vmatprep.subr.bf16.mxu1 %v19970_v51  ;;  %v20039_v51 = vld [vmem:[#allocation13 + $0x1c4] ss:$16 sps:$4 sm:$0xff]  }
0x108b   :  { %9460 = vmatpush1.bf16.msra.mxu0 %v19965_v6  ;;  %v20042_v6 = vld [vmem:[#allocation13 + $0x1cc] ss:$16 sps:$4 sm:$0xff]  }
0x108c   :  { %9546 = vmatpush1.bf16.msra.mxu1 %v19968_v54  ;;  %9461 = vmatprep.subr.bf16.mxu0 %v19973_v29  ;;  %v20037_v54 = vld [vmem:[#allocation13 + $0x1c0] ss:$16 sps:$4 sm:$0xff]   ;;  %v20040_v29 = vld [vmem:[#allocation13 + $0x1c8] ss:$16 sps:$4 sm:$0xff]  }
0x108d   :  { %9547 = vmatprep.subr.bf16.mxu1 %v19976_v35  ;;  %v20045_v35 = vld [vmem:[#allocation13 + $0x1e4] ss:$16 sps:$4 sm:$0xff]  }
0x108f   :  { %9462 = vmatpush1.bf16.msra.mxu0 %v19971_v33  ;;  %v20048_v33 = vld [vmem:[#allocation13 + $0x1ec] ss:$16 sps:$4 sm:$0xff]  }
0x1090   :  { %9548 = vmatpush1.bf16.msra.mxu1 %v19974_v49  ;;  %9463 = vmatprep.subr.bf16.mxu0 %v19979_v53  ;;  %v20043_v49 = vld [vmem:[#allocation13 + $0x1e0] ss:$16 sps:$4 sm:$0xff]   ;;  %v20046_v53 = vld [vmem:[#allocation13 + $0x1e8] ss:$16 sps:$4 sm:$0xff]  }
0x1091   :  { %9549 = vmatprep.subr.bf16.mxu1 %v19982_v37  ;;  %v20051_v37 = vld [vmem:[#allocation13 + $0x204] ss:$16 sps:$4 sm:$0xff]  }
0x1093   :  { %9464 = vmatpush1.bf16.msra.mxu0 %v19977_v16  ;;  %v20054_v16 = vld [vmem:[#allocation13 + $0x20c] ss:$16 sps:$4 sm:$0xff]  }
0x1094   :  { %9550 = vmatpush1.bf16.msra.mxu1 %v19980_v21  ;;  %9465 = vmatprep.subr.bf16.mxu0 %v19985_v5  ;;  %v20049_v21 = vld [vmem:[#allocation13 + $0x200] ss:$16 sps:$4 sm:$0xff]   ;;  %v20052_v5 = vld [vmem:[#allocation13 + $0x208] ss:$16 sps:$4 sm:$0xff]  }
0x1095   :  { %9551 = vmatprep.subr.bf16.mxu1 %v19988_v60  ;;  %v20057_v60 = vld [vmem:[#allocation13 + $0x224] ss:$16 sps:$4 sm:$0xff]  }
0x1097   :  { %9466 = vmatpush1.bf16.msra.mxu0 %v19983_v18  ;;  %v20060_v18 = vld [vmem:[#allocation13 + $0x22c] ss:$16 sps:$4 sm:$0xff]  }
0x1098   :  { %9552 = vmatpush1.bf16.msra.mxu1 %v19986_v59  ;;  %9467 = vmatprep.subr.bf16.mxu0 %v19991_v34  ;;  %v20055_v59 = vld [vmem:[#allocation13 + $0x220] ss:$16 sps:$4 sm:$0xff]   ;;  %v20058_v34 = vld [vmem:[#allocation13 + $0x228] ss:$16 sps:$4 sm:$0xff]  }
0x1099   :  { %9553 = vmatprep.subr.bf16.mxu1 %v19994_v30  ;;  %v20063_v30 = vld [vmem:[#allocation13 + $0x244] ss:$16 sps:$4 sm:$0xff]  }
0x109b   :  { %9468 = vmatpush1.bf16.msra.mxu0 %v19989_v61  ;;  %v20066_v61 = vld [vmem:[#allocation13 + $0x24c] ss:$16 sps:$4 sm:$0xff]  }
0x109c   :  { %9554 = vmatpush1.bf16.msra.mxu1 %v19992_v27  ;;  %9469 = vmatprep.subr.bf16.mxu0 %v19997_v57  ;;  %v20061_v27 = vld [vmem:[#allocation13 + $0x240] ss:$16 sps:$4 sm:$0xff]   ;;  %v20064_v57 = vld [vmem:[#allocation13 + $0x248] ss:$16 sps:$4 sm:$0xff]  }
0x109d   :  { %9555 = vmatprep.subr.bf16.mxu1 %v20000_v17  ;;  %v20069_v17 = vld [vmem:[#allocation13 + $0x264] ss:$16 sps:$4 sm:$0xff]  }
0x109f   :  { %9470 = vmatpush1.bf16.msra.mxu0 %v19995_v38  ;;  %v20067_v38 = vld [vmem:[#allocation13 + $0x260] ss:$16 sps:$4 sm:$0xff]  }
0x10a0   :  { %9556 = vmatpush1.bf16.msra.mxu1 %v19998_v10  ;;  %9471 = vmatprep.subr.bf16.mxu0 %v20003_v50  ;;  %v20070_v10 = vld [vmem:[#allocation13 + $0x268] ss:$16 sps:$4 sm:$0xff]   ;;  %v20075_v50 = vld [vmem:[#allocation13 + $0x284] ss:$16 sps:$4 sm:$0xff]  }
0x10a1   :  { %9557 = vmatprep.subr.bf16.mxu1 %v20006_v7  ;;  %v20078_v7 = vld [vmem:[#allocation13 + $0x28c] ss:$16 sps:$4 sm:$0xff]  }
0x10a3   :  { %9472 = vmatpush1.bf16.msra.mxu0 %v20001_v15  ;;  %v20076_v15 = vld [vmem:[#allocation13 + $0x288] ss:$16 sps:$4 sm:$0xff]  }
0x10a4   :  { %9558 = vmatpush1.bf16.msra.mxu1 %v20004_v4  ;;  %9473 = vmatprep.subr.bf16.mxu0 %v20009_v45  ;;  %v20081_v4 = vld [vmem:[#allocation13 + $0x2a4] ss:$16 sps:$4 sm:$0xff]   ;;  %v20084_v45 = vld [vmem:[#allocation13 + $0x2ac] ss:$16 sps:$4 sm:$0xff]  }
0x10a5   :  { %9559 = vmatprep.subr.bf16.mxu1 %v20012_v8  ;;  %v20079_v8 = vld [vmem:[#allocation13 + $0x2a0] ss:$16 sps:$4 sm:$0xff]  }
0x10a7   :  { %9474 = vmatpush1.bf16.msra.mxu0 %v20007_v31  ;;  %v20082_v31 = vld [vmem:[#allocation13 + $0x2a8] ss:$16 sps:$4 sm:$0xff]  }
0x10a8   :  { %9560 = vmatpush1.bf16.msra.mxu1 %v20010_v63  ;;  %9475 = vmatprep.subr.bf16.mxu0 %v20015_v9  ;;  %v20087_v63 = vld [vmem:[#allocation13 + $0x2c4] ss:$16 sps:$4 sm:$0xff]   ;;  %v20090_v9 = vld [vmem:[#allocation13 + $0x2cc] ss:$16 sps:$4 sm:$0xff]  }
0x10a9   :  { %9561 = vmatprep.subr.bf16.mxu1 %v20018_v58  ;;  %v20085_v58 = vld [vmem:[#allocation13 + $0x2c0] ss:$16 sps:$4 sm:$0xff]  }
0x10ab   :  { %9476 = vmatpush1.bf16.msra.mxu0 %v20013_v43  ;;  %v20088_v43 = vld [vmem:[#allocation13 + $0x2c8] ss:$16 sps:$4 sm:$0xff]  }
0x10ac   :  { %9562 = vmatpush1.bf16.msra.mxu1 %v20016_v1  ;;  %9477 = vmatprep.subr.bf16.mxu0 %v20021_v22  ;;  %v20093_v1 = vld [vmem:[#allocation13 + $0x2e4] ss:$16 sps:$4 sm:$0xff]   ;;  %v20096_v22 = vld [vmem:[#allocation13 + $0x2ec] ss:$16 sps:$4 sm:$0xff]  }
0x10ad   :  { %9563 = vmatprep.subr.bf16.mxu1 %v20024_v44  ;;  %v20091_v44 = vld [vmem:[#allocation13 + $0x2e0] ss:$16 sps:$4 sm:$0xff]  }
0x10af   :  { %9478 = vmatpush1.bf16.msra.mxu0 %v20019_v23  ;;  %v20094_v23 = vld [vmem:[#allocation13 + $0x2e8] ss:$16 sps:$4 sm:$0xff]  }
0x10b0   :  { %9564 = vmatpush1.bf16.msra.mxu1 %v20022_v41  ;;  %9479 = vmatprep.subr.bf16.mxu0 %v20027_v40  ;;  %v20099_v41 = vld [vmem:[#allocation13 + $0x304] ss:$16 sps:$4 sm:$0xff]   ;;  %v20102_v40 = vld [vmem:[#allocation13 + $0x30c] ss:$16 sps:$4 sm:$0xff]  }
0x10b1   :  { %9565 = vmatprep.subr.bf16.mxu1 %v20030_v55  ;;  %v20097_v55 = vld [vmem:[#allocation13 + $0x300] ss:$16 sps:$4 sm:$0xff]  }
0x10b3   :  { %9480 = vmatpush1.bf16.msra.mxu0 %v20025_v14  ;;  %v20100_v14 = vld [vmem:[#allocation13 + $0x308] ss:$16 sps:$4 sm:$0xff]  }
0x10b4   :  { %9566 = vmatpush1.bf16.msra.mxu1 %v20028_v12  ;;  %9481 = vmatprep.subr.bf16.mxu0 %v20033_v56  ;;  %v20105_v12 = vld [vmem:[#allocation13 + $0x324] ss:$16 sps:$4 sm:$0xff]   ;;  %v20108_v56 = vld [vmem:[#allocation13 + $0x32c] ss:$16 sps:$4 sm:$0xff]  }
0x10b5   :  { %9567 = vmatprep.subr.bf16.mxu1 %v20036_v24  ;;  %v20103_v24 = vld [vmem:[#allocation13 + $0x320] ss:$16 sps:$4 sm:$0xff]  }
0x10b7   :  { %9482 = vmatpush1.bf16.msra.mxu0 %v20031_v62  ;;  %v20106_v62 = vld [vmem:[#allocation13 + $0x328] ss:$16 sps:$4 sm:$0xff]  }
0x10b8   :  { %9568 = vmatpush1.bf16.msra.mxu1 %v20034_v20  ;;  %9483 = vmatprep.subr.bf16.mxu0 %v20039_v51  ;;  %v20111_v20 = vld [vmem:[#allocation13 + $0x344] ss:$16 sps:$4 sm:$0xff]   ;;  %v20114_v51 = vld [vmem:[#allocation13 + $0x34c] ss:$16 sps:$4 sm:$0xff]  }
0x10b9   :  { %9569 = vmatprep.subr.bf16.mxu1 %v20042_v6  ;;  %v20109_v6 = vld [vmem:[#allocation13 + $0x340] ss:$16 sps:$4 sm:$0xff]  }
0x10bb   :  { %9484 = vmatpush1.bf16.msra.mxu0 %v20037_v54  ;;  %v20112_v54 = vld [vmem:[#allocation13 + $0x348] ss:$16 sps:$4 sm:$0xff]  }
0x10bc   :  { %9570 = vmatpush1.bf16.msra.mxu1 %v20040_v29  ;;  %9485 = vmatprep.subr.bf16.mxu0 %v20045_v35  ;;  %v20117_v29 = vld [vmem:[#allocation13 + $0x364] ss:$16 sps:$4 sm:$0xff]   ;;  %v20120_v35 = vld [vmem:[#allocation13 + $0x36c] ss:$16 sps:$4 sm:$0xff]  }
0x10bd   :  { %9571 = vmatprep.subr.bf16.mxu1 %v20048_v33  ;;  %v20115_v33 = vld [vmem:[#allocation13 + $0x360] ss:$16 sps:$4 sm:$0xff]  }
0x10bf   :  { %9486 = vmatpush1.bf16.msra.mxu0 %v20043_v49  ;;  %v20118_v49 = vld [vmem:[#allocation13 + $0x368] ss:$16 sps:$4 sm:$0xff]  }
0x10c0   :  { %9572 = vmatpush1.bf16.msra.mxu1 %v20046_v53  ;;  %9498 = vmatprep.subr.bf16.mxu0 %v20051_v37  ;;  %v20123_v53 = vld [vmem:[#allocation13 + $0x384] ss:$16 sps:$4 sm:$0xff]   ;;  %v20126_v37 = vld [vmem:[#allocation13 + $0x38c] ss:$16 sps:$4 sm:$0xff]  }
0x10c1   :  { %9584 = vmatprep.subr.bf16.mxu1 %v20054_v16  ;;  %v20121_v16 = vld [vmem:[#allocation13 + $0x380] ss:$16 sps:$4 sm:$0xff]  }
0x10c2   :  { %9488 = vmatmul.mubr.bf16.vlgmr.msra.gmra.mrb[100].mxu0 %v24492_v46 }
0x10c3   :  { %9574 = vmatmul.mubr.bf16.vlgmr.msra.gmra.mrb[96].mxu1 %v24492_v46  ;;  %9499 = vmatpush1.bf16.msra.mxu0 %v20049_v21  ;;  %v20072_v46 = vld [vmem:[#allocation13 + $0x26c] ss:$16 sps:$4 sm:$0xff]   ;;  %v20124_v21 = vld [vmem:[#allocation13 + $0x388] ss:$16 sps:$4 sm:$0xff]  }
0x10c4   :  { %9530 = vmatprep.mubr.bf16.mxu0 %v24498_v42  ;;  %9585 = vmatpush1.bf16.msra.mxu1 %v20052_v5  ;;  %v20129_v5 = vld [vmem:[#allocation13 + $0x3a4] ss:$16 sps:$4 sm:$0xff]  }
0x10c5   :  { %9616 = vmatprep.mubr.bf16.mxu1 %v24498_v42  ;;  %9500 = vmatprep.subr.bf16.mxu0 %v20057_v60  ;;  %v20073_v42 = vld [vmem:[#allocation13 + $0x280] ss:$16 sps:$4 sm:$0xff]   ;;  %v20132_v60 = vld [vmem:[#allocation13 + $0x3ac] ss:$16 sps:$4 sm:$0xff]  }
0x10c6   :  { %9586 = vmatprep.subr.bf16.mxu1 %v20060_v18  ;;  %v20127_v18 = vld [vmem:[#allocation13 + $0x3a0] ss:$16 sps:$4 sm:$0xff]  }
0x10c7   :  { %9501 = vmatpush1.bf16.msra.mxu0 %v20055_v59  ;;  %v20130_v59 = vld [vmem:[#allocation13 + $0x3a8] ss:$16 sps:$4 sm:$0xff]  }
0x10c8   :  { %9587 = vmatpush1.bf16.msra.mxu1 %v20058_v34  ;;  %9502 = vmatprep.subr.bf16.mxu0 %v20063_v30  ;;  %v20135_v34 = vld [vmem:[#allocation13 + $0x3c4] ss:$16 sps:$4 sm:$0xff]   ;;  %v20138_v30 = vld [vmem:[#allocation13 + $0x3cc] ss:$16 sps:$4 sm:$0xff]  }
0x10c9   :  { %9588 = vmatprep.subr.bf16.mxu1 %v20066_v61  ;;  %v20133_v61 = vld [vmem:[#allocation13 + $0x3c0] ss:$16 sps:$4 sm:$0xff]  }
0x10cb   :  { %9503 = vmatpush1.bf16.msra.mxu0 %v20061_v27  ;;  %v20136_v27 = vld [vmem:[#allocation13 + $0x3c8] ss:$16 sps:$4 sm:$0xff]  }
0x10cc   :  { %9589 = vmatpush1.bf16.msra.mxu1 %v20064_v57  ;;  %9504 = vmatprep.subr.bf16.mxu0 %v20069_v17  ;;  %v20141_v57 = vld [vmem:[#allocation13 + $0x3e4] ss:$16 sps:$4 sm:$0xff]   ;;  %v20144_v17 = vld [vmem:[#allocation13 + $0x3ec] ss:$16 sps:$4 sm:$0xff]  }
0x10cd   :  { %9590 = vmatprep.subr.bf16.mxu1 %v20072_v46  ;;  %v20139_v46 = vld [vmem:[#allocation13 + $0x3e0] ss:$16 sps:$4 sm:$0xff]  }
0x10cf   :  { %9505 = vmatpush1.bf16.msra.mxu0 %v20067_v38  ;;  %v20142_v38 = vld [vmem:[#allocation13 + $0x3e8] ss:$16 sps:$4 sm:$0xff]  }
0x10d0   :  { %9591 = vmatpush1.bf16.msra.mxu1 %v20070_v10  ;;  %9506 = vmatprep.subr.bf16.mxu0 %v20075_v50  ;;  %v20148_v10 = vld [vmem:[#allocation13 + $0x804] ss:$16 sps:$4 sm:$0xff]   ;;  %v20151_v50 = vld [vmem:[#allocation13 + $0x80c] ss:$16 sps:$4 sm:$0xff]  }
0x10d1   :  { %9592 = vmatprep.subr.bf16.mxu1 %v20078_v7  ;;  %v20145_v7 = vld [vmem:[#allocation11 + $0x10] sm:$0xff]  }
0x10d3   :  { %9507 = vmatpush1.bf16.msra.mxu0 %v20073_v42  ;;  %v20158_v42 = vld [vmem:[#allocation13 + $0x840] ss:$16 sps:$4 sm:$0xff]  }
0x10d4   :  { %9593 = vmatpush1.bf16.msra.mxu1 %v20076_v15  ;;  %9508 = vmatprep.subr.bf16.mxu0 %v20081_v4  ;;  %v20166_v15 = vld [vmem:[#allocation13 + $0x864] ss:$16 sps:$4 sm:$0xff]   ;;  %v20169_v4 = vld [vmem:[#allocation13 + $0x86c] ss:$16 sps:$4 sm:$0xff]  }
0x10d5   :  { %9594 = vmatprep.subr.bf16.mxu1 %v20084_v45  ;;  %v20164_v45 = vld [vmem:[#allocation13 + $0x860] ss:$16 sps:$4 sm:$0xff]  }
0x10d7   :  { %9509 = vmatpush1.bf16.msra.mxu0 %v20079_v8  ;;  %v20167_v8 = vld [vmem:[#allocation13 + $0x868] ss:$16 sps:$4 sm:$0xff]  }
0x10d8   :  { %9595 = vmatpush1.bf16.msra.mxu1 %v20082_v31  ;;  %9510 = vmatprep.subr.bf16.mxu0 %v20087_v63  ;;  %v20172_v31 = vld [vmem:[#allocation13 + $0x884] ss:$16 sps:$4 sm:$0xff]   ;;  %v20175_v63 = vld [vmem:[#allocation13 + $0x88c] ss:$16 sps:$4 sm:$0xff]  }
0x10d9   :  { %9596 = vmatprep.subr.bf16.mxu1 %v20090_v9  ;;  %v20170_v9 = vld [vmem:[#allocation13 + $0x880] ss:$16 sps:$4 sm:$0xff]  }
0x10db   :  { %9511 = vmatpush1.bf16.msra.mxu0 %v20085_v58  ;;  %v20173_v58 = vld [vmem:[#allocation13 + $0x888] ss:$16 sps:$4 sm:$0xff]  }
0x10dc   :  { %9597 = vmatpush1.bf16.msra.mxu1 %v20088_v43  ;;  %9512 = vmatprep.subr.bf16.mxu0 %v20093_v1  ;;  %v20178_v43 = vld [vmem:[#allocation13 + $0x8a4] ss:$16 sps:$4 sm:$0xff]   ;;  %v20181_v1 = vld [vmem:[#allocation13 + $0x8ac] ss:$16 sps:$4 sm:$0xff]  }
0x10dd   :  { %9598 = vmatprep.subr.bf16.mxu1 %v20096_v22  ;;  %v20176_v22 = vld [vmem:[#allocation13 + $0x8a0] ss:$16 sps:$4 sm:$0xff]  }
0x10df   :  { %9513 = vmatpush1.bf16.msra.mxu0 %v20091_v44  ;;  %v20179_v44 = vld [vmem:[#allocation13 + $0x8a8] ss:$16 sps:$4 sm:$0xff]  }
0x10e0   :  { %9599 = vmatpush1.bf16.msra.mxu1 %v20094_v23  ;;  %9514 = vmatprep.subr.bf16.mxu0 %v20099_v41  ;;  %v20184_v23 = vld [vmem:[#allocation13 + $0x8c4] ss:$16 sps:$4 sm:$0xff]   ;;  %v20187_v41 = vld [vmem:[#allocation13 + $0x8cc] ss:$16 sps:$4 sm:$0xff]  }
0x10e1   :  { %9600 = vmatprep.subr.bf16.mxu1 %v20102_v40  ;;  %v20182_v40 = vld [vmem:[#allocation13 + $0x8c0] ss:$16 sps:$4 sm:$0xff]  }
0x10e3   :  { %9515 = vmatpush1.bf16.msra.mxu0 %v20097_v55  ;;  %v20185_v55 = vld [vmem:[#allocation13 + $0x8c8] ss:$16 sps:$4 sm:$0xff]  }
0x10e4   :  { %9601 = vmatpush1.bf16.msra.mxu1 %v20100_v14  ;;  %9516 = vmatprep.subr.bf16.mxu0 %v20105_v12  ;;  %v20190_v14 = vld [vmem:[#allocation13 + $0x8e4] ss:$16 sps:$4 sm:$0xff]   ;;  %v20193_v12 = vld [vmem:[#allocation13 + $0x8ec] ss:$16 sps:$4 sm:$0xff]  }
0x10e5   :  { %9602 = vmatprep.subr.bf16.mxu1 %v20108_v56  ;;  %v20188_v56 = vld [vmem:[#allocation13 + $0x8e0] ss:$16 sps:$4 sm:$0xff]  }
0x10e7   :  { %9517 = vmatpush1.bf16.msra.mxu0 %v20103_v24  ;;  %v20191_v24 = vld [vmem:[#allocation13 + $0x8e8] ss:$16 sps:$4 sm:$0xff]  }
0x10e8   :  { %9603 = vmatpush1.bf16.msra.mxu1 %v20106_v62  ;;  %9518 = vmatprep.subr.bf16.mxu0 %v20111_v20  ;;  %v20196_v62 = vld [vmem:[#allocation13 + $0x904] ss:$16 sps:$4 sm:$0xff]   ;;  %v20199_v20 = vld [vmem:[#allocation13 + $0x90c] ss:$16 sps:$4 sm:$0xff]  }
0x10e9   :  { %9604 = vmatprep.subr.bf16.mxu1 %v20114_v51  ;;  %v20194_v51 = vld [vmem:[#allocation13 + $0x900] ss:$16 sps:$4 sm:$0xff]  }
0x10eb   :  { %9519 = vmatpush1.bf16.msra.mxu0 %v20109_v6  ;;  %v20197_v6 = vld [vmem:[#allocation13 + $0x908] ss:$16 sps:$4 sm:$0xff]  }
0x10ec   :  { %9605 = vmatpush1.bf16.msra.mxu1 %v20112_v54  ;;  %9520 = vmatprep.subr.bf16.mxu0 %v20117_v29  ;;  %v20202_v54 = vld [vmem:[#allocation13 + $0x924] ss:$16 sps:$4 sm:$0xff]   ;;  %v20205_v29 = vld [vmem:[#allocation13 + $0x92c] ss:$16 sps:$4 sm:$0xff]  }
0x10ed   :  { %9606 = vmatprep.subr.bf16.mxu1 %v20120_v35  ;;  %v20200_v35 = vld [vmem:[#allocation13 + $0x920] ss:$16 sps:$4 sm:$0xff]  }
0x10ef   :  { %9521 = vmatpush1.bf16.msra.mxu0 %v20115_v33  ;;  %v20203_v33 = vld [vmem:[#allocation13 + $0x928] ss:$16 sps:$4 sm:$0xff]  }
0x10f0   :  { %9607 = vmatpush1.bf16.msra.mxu1 %v20118_v49  ;;  %9522 = vmatprep.subr.bf16.mxu0 %v20123_v53  ;;  %v20208_v49 = vld [vmem:[#allocation13 + $0x944] ss:$16 sps:$4 sm:$0xff]   ;;  %v20211_v53 = vld [vmem:[#allocation13 + $0x94c] ss:$16 sps:$4 sm:$0xff]  }
0x10f1   :  { %9608 = vmatprep.subr.bf16.mxu1 %v20126_v37  ;;  %v20206_v37 = vld [vmem:[#allocation13 + $0x940] ss:$16 sps:$4 sm:$0xff]  }
0x10f3   :  { %9523 = vmatpush1.bf16.msra.mxu0 %v20121_v16  ;;  %v20209_v16 = vld [vmem:[#allocation13 + $0x948] ss:$16 sps:$4 sm:$0xff]  }
0x10f4   :  { %9609 = vmatpush1.bf16.msra.mxu1 %v20124_v21  ;;  %9524 = vmatprep.subr.bf16.mxu0 %v20129_v5  ;;  %v20214_v21 = vld [vmem:[#allocation13 + $0x964] ss:$16 sps:$4 sm:$0xff]   ;;  %v20217_v5 = vld [vmem:[#allocation13 + $0x96c] ss:$16 sps:$4 sm:$0xff]  }
0x10f5   :  { %9610 = vmatprep.subr.bf16.mxu1 %v20132_v60  ;;  %v20212_v60 = vld [vmem:[#allocation13 + $0x960] ss:$16 sps:$4 sm:$0xff]  }
0x10f7   :  { %9525 = vmatpush1.bf16.msra.mxu0 %v20127_v18  ;;  %v20215_v18 = vld [vmem:[#allocation13 + $0x968] ss:$16 sps:$4 sm:$0xff]  }
0x10f8   :  { %9611 = vmatpush1.bf16.msra.mxu1 %v20130_v59  ;;  %9526 = vmatprep.subr.bf16.mxu0 %v20135_v34  ;;  %v20220_v59 = vld [vmem:[#allocation13 + $0x984] ss:$16 sps:$4 sm:$0xff]   ;;  %v20223_v34 = vld [vmem:[#allocation13 + $0x98c] ss:$16 sps:$4 sm:$0xff]  }
0x10f9   :  { %9612 = vmatprep.subr.bf16.mxu1 %v20138_v30  ;;  %v20218_v30 = vld [vmem:[#allocation13 + $0x980] ss:$16 sps:$4 sm:$0xff]  }
0x10fb   :  { %9527 = vmatpush1.bf16.msra.mxu0 %v20133_v61  ;;  %v20221_v61 = vld [vmem:[#allocation13 + $0x988] ss:$16 sps:$4 sm:$0xff]  }
0x10fc   :  { %9613 = vmatpush1.bf16.msra.mxu1 %v20136_v27  ;;  %9528 = vmatprep.subr.bf16.mxu0 %v20141_v57  ;;  %v20226_v27 = vld [vmem:[#allocation13 + $0x9a4] ss:$16 sps:$4 sm:$0xff]   ;;  %v20229_v57 = vld [vmem:[#allocation13 + $0x9ac] ss:$16 sps:$4 sm:$0xff]  }
0x10fd   :  { %9614 = vmatprep.subr.bf16.mxu1 %v20144_v17  ;;  %v20224_v17 = vld [vmem:[#allocation13 + $0x9a0] ss:$16 sps:$4 sm:$0xff]  }
0x10ff   :  { %9529 = vmatpush1.bf16.msra.mxu0 %v20139_v46  ;;  %v20227_v46 = vld [vmem:[#allocation13 + $0x9a8] ss:$16 sps:$4 sm:$0xff]  }
0x1100   :  { %9615 = vmatpush1.bf16.msra.mxu1 %v20142_v38  ;;  %9638 = vmatprep.subr.bf16.mxu0 %v24458_v28  ;;  %v20146_v28 = vld [vmem:[#allocation13 + $0x800] ss:$16 sps:$4 sm:$0xff]   ;;  %v20232_v38 = vld [vmem:[#allocation13 + $0x9c4] ss:$16 sps:$4 sm:$0xff]  }
0x1101   :  { %9681 = vmatprep.subr.bf16.mxu1 %v24460_v25  ;;  %v20154_v25 = vld [vmem:[#allocation13 + $0x824] ss:$16 sps:$4 sm:$0xff]  }
0x1102   :  { %9531 = vmatmul.mubr.bf16.vlgmr.msra.gmra.mrb[100].mxu0 %v24496_v3 }
0x1103   :  { %9617 = vmatmul.mubr.bf16.vlgmr.msra.gmra.mrb[96].mxu1 %v24496_v3  ;;  %9639 = vmatpush1.bf16.msra.mxu0 %v24454_v13  ;;  %v20149_v13 = vld [vmem:[#allocation13 + $0x808] ss:$16 sps:$4 sm:$0xff]   ;;  %v20160_v3 = vld [vmem:[#allocation13 + $0x844] ss:$16 sps:$4 sm:$0xff]  }
0x1104   :  { %9682 = vmatpush1.bf16.msra.mxu1 %v24456_v47  ;;  %9640 = vmatprep.subr.bf16.mxu0 %v24465_v0  ;;  %v20157_v47 = vld [vmem:[#allocation13 + $0x82c] ss:$16 sps:$4 sm:$0xff]   ;;  %v20152_v0 = vld [vmem:[#allocation13 + $0x820] ss:$16 sps:$4 sm:$0xff]  }
0x1105   :  { %9683 = vmatprep.subr.bf16.mxu1 %v24468_v32  ;;  %9670 = vmatprep.mubr.bf16.mxu0 %v25767_v52  ;;  %v20155_v32 = vld [vmem:[#allocation13 + $0x828] ss:$16 sps:$4 sm:$0xff]  }
0x1106   :  { %9713 = vmatprep.mubr.bf16.mxu1 %v25767_v52 }
0x1107   :  { %9641 = vmatpush1.bf16.msra.mxu0 %v24471_v39  ;;  %v20163_v39 = vld [vmem:[#allocation13 + $0x84c] ss:$16 sps:$4 sm:$0xff]  }
0x1108   :  { %9684 = vmatpush1.bf16.msra.mxu1 %v24474_v19  ;;  %10497 = vmatprep.subr.bf16.mxu0 %v20148_v10  ;;  %v20161_v19 = vld [vmem:[#allocation13 + $0x848] ss:$16 sps:$4 sm:$0xff]   ;;  %v20235_v10 = vld [vmem:[#allocation13 + $0x9cc] ss:$16 sps:$4 sm:$0xff]  }
0x1109   :  { %10583 = vmatprep.subr.bf16.mxu1 %v20151_v50  ;;  %v20230_v50 = vld [vmem:[#allocation13 + $0x9c0] ss:$16 sps:$4 sm:$0xff]  }
0x110a   :  { %16878 = vmatmul.mubr.msk.bf16.vlgmr.msra.gmra.mrb[104].mxu0 %vm6908_vm6, %v20145_v7 }
0x110b   :  { %16879 = vmatmul.mubr.msk.bf16.vlgmr.msra.gmra.mrb[100].mxu1 %vm6908_vm6, %v20145_v7  ;;  %10498 = vmatpush1.bf16.msra.mxu0 %v20146_v28  ;;  %v20233_v7 = vld [vmem:[#allocation13 + $0x9c8] ss:$16 sps:$4 sm:$0xff]   ;;  %v20236_v28 = vld [vmem:[#allocation13 + $0x9e0] ss:$16 sps:$4 sm:$0xff]  }
0x110c   :  { %10584 = vmatpush1.bf16.msra.mxu1 %v20149_v13  ;;  %10499 = vmatprep.subr.bf16.mxu0 %v20154_v25  ;;  %v20238_v13 = vld [vmem:[#allocation13 + $0x9e4] ss:$16 sps:$4 sm:$0xff]   ;;  %v20239_v25 = vld [vmem:[#allocation13 + $0x9e8] ss:$16 sps:$4 sm:$0xff]  }
0x110d   :  { %10585 = vmatprep.subr.bf16.mxu1 %v20157_v47  ;;  %v20241_v47 = vld [vmem:[#allocation13 + $0x9ec] ss:$16 sps:$4 sm:$0xff]  }
0x110f   :  { %10500 = vmatpush1.bf16.msra.mxu0 %v20152_v0  ;;  %v20244_v0 = vld [vmem:[#allocation13 + $0xa04] ss:$16 sps:$4 sm:$0xff]  }
0x1110   :  { %10586 = vmatpush1.bf16.msra.mxu1 %v20155_v32  ;;  %10501 = vmatprep.subr.bf16.mxu0 %v20160_v3  ;;  %v20247_v32 = vld [vmem:[#allocation13 + $0xa0c] ss:$16 sps:$4 sm:$0xff]  }
0x1111   :  { %10587 = vmatprep.subr.bf16.mxu1 %v20163_v39 }
0x1113   :  { %10502 = vmatpush1.bf16.msra.mxu0 %v20158_v42 }
0x1114   :  { %10588 = vmatpush1.bf16.msra.mxu1 %v20161_v19  ;;  %10503 = vmatprep.subr.bf16.mxu0 %v20166_v15 }
0x1115   :  { %10589 = vmatprep.subr.bf16.mxu1 %v20169_v4 }
0x1117   :  { %10504 = vmatpush1.bf16.msra.mxu0 %v20164_v45 }
0x1118   :  { %10590 = vmatpush1.bf16.msra.mxu1 %v20167_v8  ;;  %10505 = vmatprep.subr.bf16.mxu0 %v20172_v31 }
0x1119   :  { %10591 = vmatprep.subr.bf16.mxu1 %v20175_v63  ;;  %v20242_v63 = vld [vmem:[#allocation13 + $0xa00] ss:$16 sps:$4 sm:$0xff]  }
0x111b   :  { %10506 = vmatpush1.bf16.msra.mxu0 %v20170_v9  ;;  %v20245_v9 = vld [vmem:[#allocation13 + $0xa08] ss:$16 sps:$4 sm:$0xff]  }
0x111c   :  { %10592 = vmatpush1.bf16.msra.mxu1 %v20173_v58  ;;  %10507 = vmatprep.subr.bf16.mxu0 %v20178_v43 }
0x111d   :  { %10593 = vmatprep.subr.bf16.mxu1 %v20181_v1  ;;  %v20250_v1 = vld [vmem:[#allocation13 + $0xa24] ss:$16 sps:$4 sm:$0xff]  }
0x111f   :  { %10508 = vmatpush1.bf16.msra.mxu0 %v20176_v22  ;;  %v20253_v22 = vld [vmem:[#allocation13 + $0xa2c] ss:$16 sps:$4 sm:$0xff]  }
0x1120   :  { %10594 = vmatpush1.bf16.msra.mxu1 %v20179_v44  ;;  %10509 = vmatprep.subr.bf16.mxu0 %v20184_v23  ;;  %v20248_v23 = vld [vmem:[#allocation13 + $0xa20] ss:$16 sps:$4 sm:$0xff]  }
0x1121   :  { %10595 = vmatprep.subr.bf16.mxu1 %v20187_v41  ;;  %v20251_v41 = vld [vmem:[#allocation13 + $0xa28] ss:$16 sps:$4 sm:$0xff]  }
0x1123   :  { %10510 = vmatpush1.bf16.msra.mxu0 %v20182_v40  ;;  %v20256_v40 = vld [vmem:[#allocation13 + $0xa44] ss:$16 sps:$4 sm:$0xff]  }
0x1124   :  { %10596 = vmatpush1.bf16.msra.mxu1 %v20185_v55  ;;  %10511 = vmatprep.subr.bf16.mxu0 %v20190_v14  ;;  %v20259_v55 = vld [vmem:[#allocation13 + $0xa4c] ss:$16 sps:$4 sm:$0xff]   ;;  %v20254_v14 = vld [vmem:[#allocation13 + $0xa40] ss:$16 sps:$4 sm:$0xff]  }
0x1125   :  { %10597 = vmatprep.subr.bf16.mxu1 %v20193_v12  ;;  %v20257_v12 = vld [vmem:[#allocation13 + $0xa48] ss:$16 sps:$4 sm:$0xff]  }
0x1127   :  { %10512 = vmatpush1.bf16.msra.mxu0 %v20188_v56  ;;  %v20262_v56 = vld [vmem:[#allocation13 + $0xa64] ss:$16 sps:$4 sm:$0xff]  }
0x1128   :  { %10598 = vmatpush1.bf16.msra.mxu1 %v20191_v24  ;;  %10513 = vmatprep.subr.bf16.mxu0 %v20196_v62  ;;  %v20265_v24 = vld [vmem:[#allocation13 + $0xa6c] ss:$16 sps:$4 sm:$0xff]   ;;  %v20260_v62 = vld [vmem:[#allocation13 + $0xa60] ss:$16 sps:$4 sm:$0xff]  }
0x1129   :  { %10599 = vmatprep.subr.bf16.mxu1 %v20199_v20  ;;  %v20263_v20 = vld [vmem:[#allocation13 + $0xa68] ss:$16 sps:$4 sm:$0xff]  }
0x112b   :  { %10514 = vmatpush1.bf16.msra.mxu0 %v20194_v51  ;;  %v20268_v51 = vld [vmem:[#allocation13 + $0xa84] ss:$16 sps:$4 sm:$0xff]  }
0x112c   :  { %10600 = vmatpush1.bf16.msra.mxu1 %v20197_v6  ;;  %10515 = vmatprep.subr.bf16.mxu0 %v20202_v54  ;;  %v20271_v6 = vld [vmem:[#allocation13 + $0xa8c] ss:$16 sps:$4 sm:$0xff]   ;;  %v20266_v54 = vld [vmem:[#allocation13 + $0xa80] ss:$16 sps:$4 sm:$0xff]  }
0x112d   :  { %10601 = vmatprep.subr.bf16.mxu1 %v20205_v29  ;;  %v20269_v29 = vld [vmem:[#allocation13 + $0xa88] ss:$16 sps:$4 sm:$0xff]  }
0x112f   :  { %10516 = vmatpush1.bf16.msra.mxu0 %v20200_v35  ;;  %v20274_v35 = vld [vmem:[#allocation13 + $0xaa4] ss:$16 sps:$4 sm:$0xff]  }
0x1130   :  { %10602 = vmatpush1.bf16.msra.mxu1 %v20203_v33  ;;  %10517 = vmatprep.subr.bf16.mxu0 %v20208_v49  ;;  %v20277_v33 = vld [vmem:[#allocation13 + $0xaac] ss:$16 sps:$4 sm:$0xff]   ;;  %v20272_v49 = vld [vmem:[#allocation13 + $0xaa0] ss:$16 sps:$4 sm:$0xff]  }
0x1131   :  { %10603 = vmatprep.subr.bf16.mxu1 %v20211_v53  ;;  %v20275_v53 = vld [vmem:[#allocation13 + $0xaa8] ss:$16 sps:$4 sm:$0xff]  }
0x1133   :  { %10518 = vmatpush1.bf16.msra.mxu0 %v20206_v37  ;;  %v20280_v37 = vld [vmem:[#allocation13 + $0xac4] ss:$16 sps:$4 sm:$0xff]  }
0x1134   :  { %10604 = vmatpush1.bf16.msra.mxu1 %v20209_v16  ;;  %10519 = vmatprep.subr.bf16.mxu0 %v20214_v21  ;;  %v20283_v16 = vld [vmem:[#allocation13 + $0xacc] ss:$16 sps:$4 sm:$0xff]   ;;  %v20278_v21 = vld [vmem:[#allocation13 + $0xac0] ss:$16 sps:$4 sm:$0xff]  }
0x1135   :  { %10605 = vmatprep.subr.bf16.mxu1 %v20217_v5  ;;  %v20281_v5 = vld [vmem:[#allocation13 + $0xac8] ss:$16 sps:$4 sm:$0xff]  }
0x1137   :  { %10520 = vmatpush1.bf16.msra.mxu0 %v20212_v60  ;;  %v20286_v60 = vld [vmem:[#allocation13 + $0xae4] ss:$16 sps:$4 sm:$0xff]  }
0x1138   :  { %10606 = vmatpush1.bf16.msra.mxu1 %v20215_v18  ;;  %10521 = vmatprep.subr.bf16.mxu0 %v20220_v59  ;;  %v20289_v18 = vld [vmem:[#allocation13 + $0xaec] ss:$16 sps:$4 sm:$0xff]   ;;  %v20284_v59 = vld [vmem:[#allocation13 + $0xae0] ss:$16 sps:$4 sm:$0xff]  }
0x1139   :  { %10607 = vmatprep.subr.bf16.mxu1 %v20223_v34  ;;  %v20287_v34 = vld [vmem:[#allocation13 + $0xae8] ss:$16 sps:$4 sm:$0xff]  }
0x113b   :  { %10522 = vmatpush1.bf16.msra.mxu0 %v20218_v30  ;;  %v20292_v30 = vld [vmem:[#allocation13 + $0xb04] ss:$16 sps:$4 sm:$0xff]  }
0x113c   :  { %10608 = vmatpush1.bf16.msra.mxu1 %v20221_v61  ;;  %10523 = vmatprep.subr.bf16.mxu0 %v20226_v27  ;;  %v20295_v61 = vld [vmem:[#allocation13 + $0xb0c] ss:$16 sps:$4 sm:$0xff]   ;;  %v20290_v27 = vld [vmem:[#allocation13 + $0xb00] ss:$16 sps:$4 sm:$0xff]  }
0x113d   :  { %10609 = vmatprep.subr.bf16.mxu1 %v20229_v57  ;;  %v20293_v57 = vld [vmem:[#allocation13 + $0xb08] ss:$16 sps:$4 sm:$0xff]  }
0x113f   :  { %10524 = vmatpush1.bf16.msra.mxu0 %v20224_v17  ;;  %v20298_v17 = vld [vmem:[#allocation13 + $0xb24] ss:$16 sps:$4 sm:$0xff]  }
0x1140   :  { %10610 = vmatpush1.bf16.msra.mxu1 %v20227_v46  ;;  %10525 = vmatprep.subr.bf16.mxu0 %v20232_v38  ;;  %v20301_v46 = vld [vmem:[#allocation13 + $0xb2c] ss:$16 sps:$4 sm:$0xff]   ;;  %v20296_v38 = vld [vmem:[#allocation13 + $0xb20] ss:$16 sps:$4 sm:$0xff]  }
0x1141   :  { %10611 = vmatprep.subr.bf16.mxu1 %v20235_v10  ;;  %v20299_v10 = vld [vmem:[#allocation13 + $0xb28] ss:$16 sps:$4 sm:$0xff]  }
0x1143   :  { %10526 = vmatpush1.bf16.msra.mxu0 %v20230_v50  ;;  %v20304_v50 = vld [vmem:[#allocation13 + $0xb44] ss:$16 sps:$4 sm:$0xff]  }
0x1144   :  { %10612 = vmatpush1.bf16.msra.mxu1 %v20233_v7  ;;  %10527 = vmatprep.subr.bf16.mxu0 %v20238_v13  ;;  %v20307_v7 = vld [vmem:[#allocation13 + $0xb4c] ss:$16 sps:$4 sm:$0xff]   ;;  %v20305_v13 = vld [vmem:[#allocation13 + $0xb48] ss:$16 sps:$4 sm:$0xff]  }
0x1145   :  { %10613 = vmatprep.subr.bf16.mxu1 %v20241_v47  ;;  %v20313_v47 = vld [vmem:[#allocation13 + $0xb6c] ss:$16 sps:$4 sm:$0xff]  }
0x1147   :  { %10528 = vmatpush1.bf16.msra.mxu0 %v20236_v28  ;;  %v20302_v28 = vld [vmem:[#allocation13 + $0xb40] ss:$16 sps:$4 sm:$0xff]  }
0x1148   :  { %10614 = vmatpush1.bf16.msra.mxu1 %v20239_v25  ;;  %10540 = vmatprep.subr.bf16.mxu0 %v20244_v0  ;;  %v20310_v25 = vld [vmem:[#allocation13 + $0xb64] ss:$16 sps:$4 sm:$0xff]   ;;  %v20308_v0 = vld [vmem:[#allocation13 + $0xb60] ss:$16 sps:$4 sm:$0xff]  }
0x1149   :  { %10626 = vmatprep.subr.bf16.mxu1 %v20247_v32  ;;  %v20311_v32 = vld [vmem:[#allocation13 + $0xb68] ss:$16 sps:$4 sm:$0xff]  }
0x11dd   :  { %v9672_v3 = vpop.f32.mrb[104].mxu0 }
0x11de   :  { %v9674_v39 = vpop.f32.mrb[105].mxu0  ;;  %v9715_v42 = vpop.f32.mrb[100].mxu1 }
0x11df   :  { %v9676_v19 = vpop.f32.mrb[106].mxu0  ;;  %v9717_v15 = vpop.f32.mrb[101].mxu1 }
0x11e0   :  { %v9724_v4 = vpack.c.bf16 %v9676_v19, %v9672_v3  ;;  %v9678_v45 = vpop.f32.mrb[107].mxu0  ;;  %v9719_v8 = vpop.f32.mrb[102].mxu1  ;;  %v20316_v3 = vld [vmem:[#allocation13 + $0xb84] ss:$16 sps:$4 sm:$0xff]   ;;  %v20317_v19 = vld [vmem:[#allocation13 + $0xb88] ss:$16 sps:$4 sm:$0xff]  }
0x11e1   :  { %v9725_v31 = vpack.c.bf16 %v9678_v45, %v9674_v39  ;;  %v24524_v58 = vpack.c.bf16 %v9719_v8, %v9715_v42  ;;  %v9721_v43 = vpop.f32.mrb[103].mxu1  ;;  %v20319_v39 = vld [vmem:[#allocation13 + $0xb8c] ss:$16 sps:$4 sm:$0xff]   ;;  %v20314_v42 = vld [vmem:[#allocation13 + $0xb80] ss:$16 sps:$4 sm:$0xff]  }
0x11e2   :  { %v9727_v44 = vpack.c.bf16 %v9721_v43, %v9717_v15  ;;  %v20322_v15 = vld [vmem:[#allocation13 + $0xba4] ss:$16 sps:$4 sm:$0xff]   ;;  %v20320_v45 = vld [vmem:[#allocation13 + $0xba0] ss:$16 sps:$4 sm:$0xff]   ;;  %v20323_v8 = vld [vmem:[#allocation13 + $0xba8] ss:$16 sps:$4 sm:$0xff]  }
0x11e3   :  { %10529 = vmatprep.mubr.bf16.mxu0 %v9725_v31  ;;  %10615 = vmatprep.mubr.bf16.mxu1 %v9725_v31  ;;  %v20328_v31 = vld [vmem:[#allocation13 + $0xbc4] ss:$16 sps:$4 sm:$0xff]   ;;  %v20329_v43 = vld [vmem:[#allocation13 + $0xbc8] ss:$16 sps:$4 sm:$0xff]  }
0x11e4   :  { %10530 = vmatmul.mubr.bf16.vlgmr.msra.gmra.mrb[100].mxu0 %v9724_v4  ;;  %10616 = vmatmul.mubr.bf16.vlgmr.msra.gmra.mrb[96].mxu1 %v9724_v4  ;;  %v20325_v4 = vld [vmem:[#allocation13 + $0xbac] ss:$16 sps:$4 sm:$0xff]  }
0x11e5   :  { %10541 = vmatpush1.bf16.msra.mxu0 %v20242_v63  ;;  %10627 = vmatpush1.bf16.msra.mxu1 %v20245_v9  ;;  %v20331_v63 = vld [vmem:[#allocation13 + $0xbcc] ss:$16 sps:$4 sm:$0xff]   ;;  %v20326_v9 = vld [vmem:[#allocation13 + $0xbc0] ss:$16 sps:$4 sm:$0xff]  }
0x11e6   :  { %10542 = vmatprep.subr.bf16.mxu0 %v20250_v1  ;;  %10628 = vmatprep.subr.bf16.mxu1 %v20253_v22  ;;  %v20334_v1 = vld [vmem:[#allocation13 + $0xbe4] ss:$16 sps:$4 sm:$0xff]   ;;  %v20337_v22 = vld [vmem:[#allocation13 + $0xbec] ss:$16 sps:$4 sm:$0xff]  }
0x11e7   :  { %10572 = vmatprep.mubr.bf16.mxu0 %v9727_v44  ;;  %10658 = vmatprep.mubr.bf16.mxu1 %v9727_v44  ;;  %v10775_v44 = vld [vmem:[%s25565_s13 + $0x80] sm:$0xff] }
0x11e9   :  { %10543 = vmatpush1.bf16.msra.mxu0 %v20248_v23  ;;  %10629 = vmatpush1.bf16.msra.mxu1 %v20251_v41  ;;  %v10776_v23 = vld [vmem:[%s25565_s13 + $0x88] sm:$0xff]  ;;  %v10807_v41 = vld [vmem:[%s25565_s13 + $0x180] sm:$0xff] }
0x11ea   :  { %10544 = vmatprep.subr.bf16.mxu0 %v20256_v40  ;;  %10630 = vmatprep.subr.bf16.mxu1 %v20259_v55  ;;  %v10808_v40 = vld [vmem:[%s25565_s13 + $0x188] sm:$0xff] }
0x11eb   :  { %v20332_v55 = vld [vmem:[#allocation13 + $0xbe0] ss:$16 sps:$4 sm:$0xff]  }
0x11ed   :  { %10545 = vmatpush1.bf16.msra.mxu0 %v20254_v14  ;;  %10631 = vmatpush1.bf16.msra.mxu1 %v20257_v12  ;;  %v20335_v14 = vld [vmem:[#allocation13 + $0xbe8] ss:$16 sps:$4 sm:$0xff]  }
0x11ee   :  { %10546 = vmatprep.subr.bf16.mxu0 %v20262_v56  ;;  %10632 = vmatprep.subr.bf16.mxu1 %v20265_v24  ;;  %v10759_v12 = vld [vmem:[%s25565_s13] sm:$0xff]  ;;  %v10760_v56 = vld [vmem:[%s25565_s13 + $0x8] sm:$0xff]  ;;  %v24544_v24 = vpack.c.bf16 %v10776_v23, %v10775_v44 }
0x11ef   :  { %v10799_v23 = vld [vmem:[%s25565_s13 + $0x140] sm:$0xff] }
0x11f1   :  { %10547 = vmatpush1.bf16.msra.mxu0 %v20260_v62  ;;  %10633 = vmatpush1.bf16.msra.mxu1 %v20263_v20  ;;  %v24546_v62 = vpack.c.bf16 %v10808_v40, %v10807_v41  ;;  %v10791_v20 = vld [vmem:[%s25565_s13 + $0x100] sm:$0xff]  ;;  %v10800_v41 = vld [vmem:[%s25565_s13 + $0x148] sm:$0xff] }
0x11f2   :  { %10548 = vmatprep.subr.bf16.mxu0 %v20268_v51  ;;  %10634 = vmatprep.subr.bf16.mxu1 %v20271_v6  ;;  %v10792_v51 = vld [vmem:[%s25565_s13 + $0x108] sm:$0xff]  ;;  %v10777_v6 = vld [vmem:[%s25565_s13 + $0x90] sm:$0xff]  ;;  %v24703_v40 = vpack.c.bf16 %v10800_v41, %v10799_v23 }
0x11f3   :  { %v10965_v23 = vld [vmem:[%s25566_s14 + $0x8] sm:$0xff] }
0x11f4   :  { %v10969_v41 = vld [vmem:[%s25566_s14 + $0x28] sm:$0xff] }
0x11f5   :  { %10549 = vmatpush1.bf16.msra.mxu0 %v20266_v54  ;;  %10635 = vmatpush1.bf16.msra.mxu1 %v20269_v29  ;;  %v10778_v54 = vld [vmem:[%s25565_s13 + $0x98] sm:$0xff]  ;;  %v10809_v29 = vld [vmem:[%s25565_s13 + $0x190] sm:$0xff] }
0x11f6   :  { %10550 = vmatprep.subr.bf16.mxu0 %v20274_v35  ;;  %10636 = vmatprep.subr.bf16.mxu1 %v20277_v33  ;;  %v10810_v35 = vld [vmem:[%s25565_s13 + $0x198] sm:$0xff]  ;;  %v24566_v33 = vpack.c.bf16 %v10760_v56, %v10759_v12  ;;  %v10817_v12 = vld [vmem:[%s25565_s13 + $0x1d0] sm:$0xff] }
0x11f9   :  { %10551 = vmatpush1.bf16.msra.mxu0 %v20272_v49  ;;  %10637 = vmatpush1.bf16.msra.mxu1 %v20275_v53  ;;  %v24568_v49 = vpack.c.bf16 %v10792_v51, %v10791_v20  ;;  %v10761_v53 = vld [vmem:[%s25565_s13 + $0x10] sm:$0xff]  ;;  %v10818_v20 = vld [vmem:[%s25565_s13 + $0x1d8] sm:$0xff] }
0x11fa   :  { %10552 = vmatprep.subr.bf16.mxu0 %v20280_v37  ;;  %10638 = vmatprep.subr.bf16.mxu1 %v20283_v16  ;;  %v24575_v37 = vpack.c.bf16 %v10778_v54, %v10777_v6  ;;  %v24577_v16 = vpack.c.bf16 %v10810_v35, %v10809_v29  ;;  %v10769_v51 = vld [vmem:[%s25565_s13 + $0x50] sm:$0xff]  ;;  %v10770_v6 = vld [vmem:[%s25565_s13 + $0x58] sm:$0xff]  ;;  %v24728_v54 = vpack.c.bf16 %v10818_v20, %v10817_v12 }
0x11fb   :  { %v24730_v29 = vpack.c.bf16 %v10770_v6, %v10769_v51  ;;  %v10801_v35 = vld [vmem:[%s25565_s13 + $0x150] sm:$0xff]  ;;  %v10971_v12 = vld [vmem:[%s25566_s14 + $0x38] sm:$0xff] }
0x11fc   :  { %v10677_v51 = vld [vmem:[#allocation14] ss:$4 sm:$0xf] }
0x11fd   :  { %10553 = vmatpush1.bf16.msra.mxu0 %v20278_v21  ;;  %10639 = vmatpush1.bf16.msra.mxu1 %v20281_v5  ;;  %v10762_v21 = vld [vmem:[%s25565_s13 + $0x18] sm:$0xff]  ;;  %v10793_v5 = vld [vmem:[%s25565_s13 + $0x110] sm:$0xff]  ;;  %v10682_v6 = vrot.slane %v10677_v51, %v25713_v26 }
0x11fe   :  { %10554 = vmatprep.subr.bf16.mxu0 %v20286_v60  ;;  %10640 = vmatprep.subr.bf16.mxu1 %v20289_v18  ;;  %v10794_v60 = vld [vmem:[%s25565_s13 + $0x118] sm:$0xff]  ;;  %v24592_v18 = vpack.c.bf16 %v10762_v21, %v10761_v53 }
0x11ff   :  { %v10802_v53 = vld [vmem:[%s25565_s13 + $0x158] sm:$0xff] }
0x1200   :  { %v24739_v21 = vpack.c.bf16 %v10802_v53, %v10801_v35  ;;  %v10690_v35 = vrot.slane %v10677_v51, %v25768_v36  ;;  %v10686_v53 = vrot.slane %v10677_v51, %v25769_v2 }
0x1201   :  { %10555 = vmatpush1.bf16.msra.mxu0 %v20284_v59  ;;  %10641 = vmatpush1.bf16.msra.mxu1 %v20287_v34  ;;  %v24594_v59 = vpack.c.bf16 %v10794_v60, %v10793_v5  ;;  %v10780_v34 = vld [vmem:[%s25565_s13 + $0xa8] sm:$0xff]  ;;  %v10787_v5 = vld [vmem:[%s25565_s13 + $0xe0] sm:$0xff] }
0x1202   :  { %10556 = vmatprep.subr.bf16.mxu0 %v20292_v30  ;;  %10642 = vmatprep.subr.bf16.mxu1 %v20295_v61  ;;  %v10811_v61 = vld [vmem:[%s25565_s13 + $0x1a0] sm:$0xff]  ;;  %v10788_v60 = vld [vmem:[%s25565_s13 + $0xe8] sm:$0xff] }
0x1205   :  { %10557 = vmatpush1.bf16.msra.mxu0 %v20290_v27  ;;  %10643 = vmatpush1.bf16.msra.mxu1 %v20293_v57  ;;  %v10812_v27 = vld [vmem:[%s25565_s13 + $0x1a8] sm:$0xff]  ;;  %v10763_v57 = vld [vmem:[%s25565_s13 + $0x20] sm:$0xff] }
0x1206   :  { %10558 = vmatprep.subr.bf16.mxu0 %v20298_v17  ;;  %10644 = vmatprep.subr.bf16.mxu1 %v20301_v46  ;;  %v24617_v17 = vpack.c.bf16 %v10812_v27, %v10811_v61  ;;  %v10764_v46 = vld [vmem:[%s25565_s13 + $0x28] sm:$0xff]  ;;  %v10771_v27 = vld [vmem:[%s25565_s13 + $0x60] sm:$0xff] }
0x1207   :  { %v10820_v61 = vld [vmem:[%s25565_s13 + $0x1e8] sm:$0xff] }
0x1209   :  { %10559 = vmatpush1.bf16.msra.mxu0 %v20296_v38  ;;  %10645 = vmatpush1.bf16.msra.mxu1 %v20299_v10  ;;  %v10795_v38 = vld [vmem:[%s25565_s13 + $0x120] sm:$0xff]  ;;  %v10796_v10 = vld [vmem:[%s25565_s13 + $0x128] sm:$0xff] }
0x120a   :  { %10560 = vmatprep.subr.bf16.mxu0 %v20304_v50  ;;  %10646 = vmatprep.subr.bf16.mxu1 %v20307_v7  ;;  %v24629_v50 = vpack.c.bf16 %v10764_v46, %v10763_v57  ;;  %v24631_v7 = vpack.c.bf16 %v10796_v10, %v10795_v38  ;;  %v10772_v57 = vld [vmem:[%s25565_s13 + $0x68] sm:$0xff]  ;;  %v10803_v10 = vld [vmem:[%s25565_s13 + $0x160] sm:$0xff] }
0x120b   :  { %v24766_v38 = vpack.c.bf16 %v10772_v57, %v10771_v27 }
0x120d   :  { %10561 = vmatpush1.bf16.msra.mxu0 %v20302_v28  ;;  %10647 = vmatpush1.bf16.msra.mxu1 %v20305_v13  ;;  %v10781_v28 = vld [vmem:[%s25565_s13 + $0xb0] sm:$0xff]  ;;  %v10782_v13 = vld [vmem:[%s25565_s13 + $0xb8] sm:$0xff] }
0x120e   :  { %10562 = vmatprep.subr.bf16.mxu0 %v20310_v25  ;;  %10648 = vmatprep.subr.bf16.mxu1 %v20313_v47  ;;  %v10813_v25 = vld [vmem:[%s25565_s13 + $0x1b0] sm:$0xff]  ;;  %v24645_v47 = vpack.c.bf16 %v10782_v13, %v10781_v28  ;;  %v10804_v28 = vld [vmem:[%s25565_s13 + $0x168] sm:$0xff] }
0x120f   :  { %v10789_v13 = vld [vmem:[%s25565_s13 + $0xf0] sm:$0xff] }
0x1211   :  { %10563 = vmatpush1.bf16.msra.mxu0 %v20308_v0  ;;  %10649 = vmatpush1.bf16.msra.mxu1 %v20311_v32  ;;  %v10814_v0 = vld [vmem:[%s25565_s13 + $0x1b8] sm:$0xff]  ;;  %v10765_v32 = vld [vmem:[%s25565_s13 + $0x30] sm:$0xff] }
0x1212   :  { %10564 = vmatprep.subr.bf16.mxu0 %v20316_v3  ;;  %10650 = vmatprep.subr.bf16.mxu1 %v20319_v39  ;;  %v10766_v3 = vld [vmem:[%s25565_s13 + $0x38] sm:$0xff]  ;;  %v24656_v39 = vpack.c.bf16 %v10814_v0, %v10813_v25  ;;  %v24778_v25 = vpack.c.bf16 %v10804_v28, %v10803_v10 }
0x1213   :  { %v10790_v0 = vld [vmem:[%s25565_s13 + $0xf8] sm:$0xff] }
0x1215   :  { %10565 = vmatpush1.bf16.msra.mxu0 %v20314_v42  ;;  %10651 = vmatpush1.bf16.msra.mxu1 %v20317_v19  ;;  %v24658_v42 = vpack.c.bf16 %v10766_v3, %v10765_v32  ;;  %v10797_v19 = vld [vmem:[%s25565_s13 + $0x130] sm:$0xff]  ;;  %v10822_v3 = vld [vmem:[%s25565_s13 + $0x1f8] sm:$0xff] }
0x1216   :  { %10566 = vmatprep.subr.bf16.mxu0 %v20322_v15  ;;  %10652 = vmatprep.subr.bf16.mxu1 %v20325_v4  ;;  %v10798_v15 = vld [vmem:[%s25565_s13 + $0x138] sm:$0xff]  ;;  %v10821_v32 = vld [vmem:[%s25565_s13 + $0x1f0] sm:$0xff] }
0x1217   :  { %v24667_v4 = vpack.c.bf16 %v10798_v15, %v10797_v19  ;;  %v24790_v19 = vpack.c.bf16 %v10790_v0, %v10789_v13  ;;  %v24792_v15 = vpack.c.bf16 %v10822_v3, %v10821_v32 }
0x1219   :  { %10567 = vmatpush1.bf16.msra.mxu0 %v20320_v45  ;;  %10653 = vmatpush1.bf16.msra.mxu1 %v20323_v8  ;;  %v10783_v45 = vld [vmem:[%s25565_s13 + $0xc0] sm:$0xff]  ;;  %v10784_v8 = vld [vmem:[%s25565_s13 + $0xc8] sm:$0xff] }
0x121a   :  { %10568 = vmatprep.subr.bf16.mxu0 %v20328_v31  ;;  %10654 = vmatprep.subr.bf16.mxu1 %v20331_v63  ;;  %v10815_v31 = vld [vmem:[%s25565_s13 + $0x1c0] sm:$0xff]  ;;  %v24681_v63 = vpack.c.bf16 %v10784_v8, %v10783_v45  ;;  %v10773_v45 = vld [vmem:[%s25565_s13 + $0x70] sm:$0xff]  ;;  %v10774_v8 = vld [vmem:[%s25565_s13 + $0x78] sm:$0xff] }
0x121d   :  { %10569 = vmatpush1.bf16.msra.mxu0 %v20326_v9  ;;  %10655 = vmatpush1.bf16.msra.mxu1 %v20329_v43  ;;  %v10816_v9 = vld [vmem:[%s25565_s13 + $0x1c8] sm:$0xff]  ;;  %v10767_v43 = vld [vmem:[%s25565_s13 + $0x40] sm:$0xff] }
0x121e   :  { %10570 = vmatprep.subr.bf16.mxu0 %v20334_v1  ;;  %10656 = vmatprep.subr.bf16.mxu1 %v20337_v22  ;;  %v10768_v1 = vld [vmem:[%s25565_s13 + $0x48] sm:$0xff]  ;;  %v24692_v22 = vpack.c.bf16 %v10816_v9, %v10815_v31  ;;  %v10805_v31 = vld [vmem:[%s25565_s13 + $0x170] sm:$0xff]  ;;  %v24805_v9 = vpack.c.bf16 %v10774_v8, %v10773_v45 }
0x121f   :  { %v24694_v44 = vpack.c.bf16 %v10768_v1, %v10767_v43  ;;  %v10806_v43 = vld [vmem:[%s25565_s13 + $0x178] sm:$0xff] }
0x1220   :  { %v24812_v1 = vpack.c.bf16 %v10806_v43, %v10805_v31 }
0x1221   :  { %10571 = vmatpush1.bf16.msra.mxu0 %v20332_v55  ;;  %10657 = vmatpush1.bf16.msra.mxu1 %v20335_v14  ;;  %v10785_v55 = vld [vmem:[%s25565_s13 + $0xd0] sm:$0xff]  ;;  %v10786_v14 = vld [vmem:[%s25565_s13 + $0xd8] sm:$0xff] }
0x1222   :  { %18272 = vmatprep.subr.bf16.mxu0 %v24544_v24  ;;  %18304 = vmatprep.subr.bf16.mxu1 %v24546_v62  ;;  %v24717_v56 = vpack.c.bf16 %v10786_v14, %v10785_v55  ;;  %v10967_v55 = vld [vmem:[%s25566_s14 + $0x18] sm:$0xff]  ;;  %v24825_v14 = vpack.c.bf16 %v10969_v41, %v10965_v23 }
0x1223   :  { %v24830_v20 = vpack.c.bf16 %v10971_v12, %v10967_v55 }
0x1224   :  { %10573 = vmatmul.mubr.bf16.vlgmr.msra.gmra.mrb[100].mxu0 %v24524_v58  ;;  %10659 = vmatmul.mubr.bf16.vlgmr.msra.gmra.mrb[96].mxu1 %v24524_v58  ;;  %v10779_v58 = vld [vmem:[%s25565_s13 + $0xa0] sm:$0xff] }
0x1225   :  { %18274 = vmatpush3.bf16.msra.mxu0 %v24566_v33  ;;  %18306 = vmatpush3.bf16.msra.mxu1 %v24568_v49  ;;  %v24606_v30 = vpack.c.bf16 %v10780_v34, %v10779_v58  ;;  %v10819_v58 = vld [vmem:[%s25565_s13 + $0x1e0] sm:$0xff]  ;;  %v24753_v34 = vpack.c.bf16 %v10788_v60, %v10787_v5  ;;  %v10694_v5 = vrot.slane %v10677_v51, %v25770_v48 }
0x1226   :  { %18276 = vmatprep.subr.bf16.mxu0 %v24575_v37  ;;  %18308 = vmatprep.subr.bf16.mxu1 %v24577_v16  ;;  %v24764_v46 = vpack.c.bf16 %v10820_v61, %v10819_v58 }
0x1229   :  { %18278 = vmatpush3.bf16.msra.mxu0 %v24592_v18  ;;  %18310 = vmatpush3.bf16.msra.mxu1 %v24594_v59 }
0x122a   :  { %18280 = vmatprep.subr.bf16.mxu0 %v24606_v30  ;;  %18312 = vmatprep.subr.bf16.mxu1 %v24617_v17 }
0x122d   :  { %18282 = vmatpush3.bf16.msra.mxu0 %v24629_v50  ;;  %18314 = vmatpush3.bf16.msra.mxu1 %v24631_v7 }
0x122e   :  { %18284 = vmatprep.subr.bf16.mxu0 %v24645_v47  ;;  %18316 = vmatprep.subr.bf16.mxu1 %v24656_v39 }
0x1231   :  { %18286 = vmatpush3.bf16.msra.mxu0 %v24658_v42  ;;  %18318 = vmatpush3.bf16.msra.mxu1 %v24667_v4 }
0x1232   :  { %18288 = vmatprep.subr.bf16.mxu0 %v24681_v63  ;;  %18320 = vmatprep.subr.bf16.mxu1 %v24692_v22 }
0x1235   :  { %18290 = vmatpush3.bf16.msra.mxu0 %v24694_v44  ;;  %18322 = vmatpush3.bf16.msra.mxu1 %v24703_v40 }
0x1236   :  { %18292 = vmatprep.subr.bf16.mxu0 %v24717_v56  ;;  %18324 = vmatprep.subr.bf16.mxu1 %v24728_v54 }
0x1239   :  { %18294 = vmatpush3.bf16.msra.mxu0 %v24730_v29  ;;  %18326 = vmatpush3.bf16.msra.mxu1 %v24739_v21 }
0x123a   :  { %18296 = vmatprep.subr.bf16.mxu0 %v24753_v34  ;;  %18328 = vmatprep.subr.bf16.mxu1 %v24764_v46 }
0x123d   :  { %18298 = vmatpush3.bf16.msra.mxu0 %v24766_v38  ;;  %18330 = vmatpush3.bf16.msra.mxu1 %v24778_v25 }
0x123e   :  { %18300 = vmatprep.subr.bf16.mxu0 %v24790_v19  ;;  %18332 = vmatprep.subr.bf16.mxu1 %v24792_v15 }
0x1241   :  { %18302 = vmatpush3.bf16.msra.mxu0 %v24805_v9  ;;  %18334 = vmatpush3.bf16.msra.mxu1 %v24812_v1 }
0x1242   :  { %18336 = vmatprep.subr.bf16.mxu0 %v24825_v14  ;;  %18352 = vmatprep.subr.bf16.mxu1 %v24830_v20 }
0x12f7   :  { %v10574_v60 = vpop.f32.mrb[100].mxu0  ;;  %v10660_v58 = vpop.f32.mrb[96].mxu1 }
0x12f8   :  { %v10699_v61 = vadd.f32 %v10682_v6, %v10574_v60  ;;  %v10701_v27 = vadd.f32 %v10690_v35, %v10660_v58  ;;  %v10576_v57 = vpop.f32.mrb[101].mxu0  ;;  %v10662_v10 = vpop.f32.mrb[97].mxu1 }
0x12f9   :  { %v10700_v28 = vadd.f32 %v10686_v53, %v10576_v57  ;;  %v10702_v13 = vadd.f32 %v10694_v5, %v10662_v10  ;;  %v10578_v0 = vpop.f32.mrb[102].mxu0  ;;  %v10664_v32 = vpop.f32.mrb[98].mxu1 }
0x12fa   :  { %vm10707_vm7 = vcmp.gt.f32.partialorder %v10699_v61, 0.0  ;;  %v10715_v3 = vmul.f32 0.2, %v10699_v61  ;;  %vm10709_vm8 = vcmp.gt.f32.partialorder %v10701_v27, 0.0  ;;  %v10717_v45 = vmul.f32 0.2, %v10701_v27 }
0x12fb   :  { %vm10708_vm9 = vcmp.gt.f32.partialorder %v10700_v28, 0.0  ;;  %v10716_v8 = vmul.f32 0.2, %v10700_v28  ;;  %vm10710_vm10 = vcmp.gt.f32.partialorder %v10702_v13, 0.0  ;;  %v10718_v31 = vmul.f32 0.2, %v10702_v13 }
0x12fc   :  { %v10703_v43 = vadd.f32 %v10682_v6, %v10578_v0  ;;  %v10705_v23 = vadd.f32 %v10690_v35, %v10664_v32  ;;  %v10580_v41 = vpop.f32.mrb[103].mxu0  ;;  %v10666_v55 = vpop.f32.mrb[99].mxu1  ;;  %v24838_v12 = vsel %vm10707_vm7, %v10699_v61, %v10715_v3  ;;  %v24840_v51 = vsel %vm10709_vm8, %v10701_v27, %v10717_v45 }
0x12fd   :  { %25771 = vst [vmem:[#allocation50_spill] sm:$0xff] %v24840_v51  ;;  %v10704_v60 = vadd.f32 %v10686_v53, %v10580_v41  ;;  %v10706_v58 = vadd.f32 %v10694_v5, %v10666_v55  ;;  %v24843_v36 = vsel %vm10708_vm9, %v10700_v28, %v10716_v8  ;;  %v24846_v6 = vsel %vm10710_vm10, %v10702_v13, %v10718_v31 }
0x12fe   :  { %vm10711_vm11 = vcmp.gt.f32.partialorder %v10703_v43, 0.0  ;;  %v10719_v57 = vmul.f32 0.2, %v10703_v43  ;;  %vm10713_vm12 = vcmp.gt.f32.partialorder %v10705_v23, 0.0  ;;  %v10721_v10 = vmul.f32 0.2, %v10705_v23 }
0x12ff   :  { %vm10712_vm13 = vcmp.gt.f32.partialorder %v10704_v60, 0.0  ;;  %v10720_v48 = vmul.f32 0.2, %v10704_v60  ;;  %vm10714_vm14 = vcmp.gt.f32.partialorder %v10706_v58, 0.0  ;;  %v10722_v2 = vmul.f32 0.2, %v10706_v58 }
0x1300   :  { %25772 = vst [vmem:[#allocation37_spill] sm:$0xff] %v24843_v36  ;;  %25773 = vst [vmem:[#allocation41_spill] sm:$0xff] %v24846_v6  ;;  %v24848_v35 = vsel %vm10711_vm11, %v10703_v43, %v10719_v57  ;;  %v24850_v61 = vsel %vm10713_vm12, %v10705_v23, %v10721_v10 }
0x1301   :  { %25774 = vst [vmem:[#allocation45_spill] sm:$0xff] %v24850_v61  ;;  %v10731_v53 = vadd.f32 %v24848_v35, %v24838_v12  ;;  %v10745_v5 = vadd.f32 %v24850_v61, %v24840_v51  ;;  %v24856_v27 = vsel %vm10712_vm13, %v10704_v60, %v10720_v48  ;;  %v24858_v0 = vsel %vm10714_vm14, %v10706_v58, %v10722_v2  ;;  %v10976_v51 = vld [vmem:[%s25566_s14 + $0x60] sm:$0xff] }
0x1302   :  { %25775 = vst [vmem:[#allocation49_spill] sm:$0xff] %v24856_v27  ;;  %25776 = vst [vmem:[#allocation35_spill] sm:$0xff] %v24858_v0  ;;  %v10738_v28 = vadd.f32 %v24856_v27, %v24843_v36  ;;  %v10752_v13 = vadd.f32 %v24858_v0, %v24846_v6  ;;  %v10964_v0 = vld [vmem:[%s25566_s14] sm:$0xff] }
0x1303   :  { %v10732_v32 = vrot.slane %v10731_v53, 4  ;;  %v10746_v3 = vrot.slane %v10745_v5, 4  ;;  %v10968_v6 = vld [vmem:[%s25566_s14 + $0x20] sm:$0xff] }
0x1304   :  { %v10739_v45 = vrot.slane %v10738_v28, 4  ;;  %v10753_v8 = vrot.slane %v10752_v13, 4 }
0x1305   :  { %v10733_v31 = vadd.f32 %v10732_v32, %v10731_v53  ;;  %v10747_v43 = vadd.f32 %v10746_v3, %v10745_v5  ;;  %v10973_v32 = vld [vmem:[%s25566_s14 + $0x48] sm:$0xff] }
0x1306   :  { %v10740_v23 = vadd.f32 %v10739_v45, %v10738_v28  ;;  %v10754_v41 = vadd.f32 %v10753_v8, %v10752_v13  ;;  %v10966_v28 = vld [vmem:[%s25566_s14 + $0x10] sm:$0xff]  ;;  %v10977_v8 = vld [vmem:[%s25566_s14 + $0x68] sm:$0xff] }
0x1307   :  { %v10734_v55 = vrot.slane %v10733_v31, 2  ;;  %v10748_v57 = vrot.slane %v10747_v43, 2  ;;  %v10970_v13 = vld [vmem:[%s25566_s14 + $0x30] sm:$0xff]  ;;  %v24895_v36 = vpack.c.bf16 %v10977_v8, %v10973_v32 }
0x1308   :  { %v10741_v48 = vrot.slane %v10740_v23, 2  ;;  %v10755_v60 = vrot.slane %v10754_v41, 2 }
0x1309   :  { %v10735_v2 = vadd.f32 %v10734_v55, %v10733_v31  ;;  %v10749_v58 = vadd.f32 %v10748_v57, %v10747_v43  ;;  %v10975_v31 = vld [vmem:[%s25566_s14 + $0x58] sm:$0xff]  ;;  %v24888_v55 = vpack.c.bf16 %v10968_v6, %v10964_v0  ;;  %v24890_v57 = vpack.c.bf16 %v10970_v13, %v10966_v28  ;;  %v10978_v6 = vld [vmem:[%s25566_s14 + $0x70] sm:$0xff]  ;;  %v10984_v28 = vld [vmem:[%s25566_s14 + $0xa0] sm:$0xff] }
0x130a   :  { %v10742_v10 = vadd.f32 %v10741_v48, %v10740_v23  ;;  %v10756_v52 = vadd.f32 %v10755_v60, %v10754_v41  ;;  %v10979_v43 = vld [vmem:[%s25566_s14 + $0x78] sm:$0xff]  ;;  %v10972_v48 = vld [vmem:[%s25566_s14 + $0x40] sm:$0xff] }
0x130b   :  { %v10736_v53 = vrot.slane %v10735_v2, 1  ;;  %v10750_v5 = vrot.slane %v10749_v58, 1  ;;  %v24897_v61 = vpack.c.bf16 %v10979_v43, %v10975_v31  ;;  %v24910_v0 = vpack.c.bf16 %v10976_v51, %v10972_v48  ;;  %v10985_v51 = vld [vmem:[%s25566_s14 + $0xa8] sm:$0xff]  ;;  %v10995_v48 = vld [vmem:[%s25566_s14 + $0xf8] sm:$0xff] }
0x130c   :  { %v10743_v3 = vrot.slane %v10742_v10, 1  ;;  %v10757_v45 = vrot.slane %v10756_v52, 1  ;;  %v10989_v31 = vld [vmem:[%s25566_s14 + $0xc8] sm:$0xff] }
0x130d   :  { %v10737_v60 = vadd.f32 %v10736_v53, %v10735_v2  ;;  %v10751_v27 = vadd.f32 %v10750_v5, %v10749_v58  ;;  %v10983_v58 = vld [vmem:[%s25566_s14 + $0x98] sm:$0xff]  ;;  %v10980_v5 = vld [vmem:[%s25566_s14 + $0x80] sm:$0xff]  ;;  %v10993_v43 = vld [vmem:[%s25566_s14 + $0xe8] sm:$0xff] }
0x130e   :  { %v10744_v23 = vadd.f32 %v10743_v3, %v10742_v10  ;;  %v10758_v41 = vadd.f32 %v10757_v45, %v10756_v52  ;;  %v10974_v52 = vld [vmem:[%s25566_s14 + $0x50] sm:$0xff]  ;;  %v10987_v53 = vld [vmem:[%s25566_s14 + $0xb8] sm:$0xff]  ;;  %v24942_v32 = vpack.c.bf16 %v10984_v28, %v10980_v5 }
0x130f   :  { %v24912_v2 = vpack.c.bf16 %v10978_v6, %v10974_v52  ;;  %v24940_v13 = vpack.c.bf16 %v10987_v53, %v10983_v58  ;;  %v10982_v3 = vld [vmem:[%s25566_s14 + $0x90] sm:$0xff]  ;;  %v10992_v52 = vld [vmem:[%s25566_s14 + $0xe0] sm:$0xff] }
0x1310   :  { %10887 = vmatprep.mubr.f32.mxu0 %v10744_v23  ;;  %10957 = vmatprep.mubr.f32.mxu1 %v10758_v41  ;;  %v10986_v45 = vld [vmem:[%s25566_s14 + $0xb0] sm:$0xff]  ;;  %v10991_v23 = vld [vmem:[%s25566_s14 + $0xd8] sm:$0xff]  ;;  %v24965_v41 = vpack.c.bf16 %v10993_v43, %v10989_v31 }
0x1311   :  { %10888 = vmatmul.mubr.f32.vlgmr.msra.gmra.mrb[90].mxu0 %v10737_v60  ;;  %10958 = vmatmul.mubr.f32.vlgmr.msra.gmra.mrb[86].mxu1 %v10751_v27  ;;  %v10981_v27 = vld [vmem:[%s25566_s14 + $0x88] sm:$0xff]  ;;  %v24951_v8 = vpack.c.bf16 %v10986_v45, %v10982_v3  ;;  %v10988_v60 = vld [vmem:[%s25566_s14 + $0xc0] sm:$0xff]  ;;  %v24976_v6 = vpack.c.bf16 %v10995_v48, %v10991_v23  ;;  %v10994_v58 = vld [vmem:[%s25566_s14 + $0xf0] sm:$0xff] }
0x1312   :  { %18338 = vmatpush1.bf16.msra.mxu0 %v24888_v55  ;;  %18354 = vmatpush1.bf16.msra.mxu1 %v24890_v57  ;;  %v24929_v10 = vpack.c.bf16 %v10985_v51, %v10981_v27  ;;  %v24978_v27 = vpack.c.bf16 %v10992_v52, %v10988_v60  ;;  %v10990_v51 = vld [vmem:[%s25566_s14 + $0xd0] sm:$0xff] }
0x1313   :  { %18340 = vmatprep.subr.bf16.mxu0 %v24895_v36  ;;  %18356 = vmatprep.subr.bf16.mxu1 %v24897_v61  ;;  %v24987_v53 = vpack.c.bf16 %v10994_v58, %v10990_v51 }
0x1314   :  { %11063 = vmatprep.mubr.f32.mxu0 %v25755_v11  ;;  %11134 = vmatprep.mubr.f32.mxu1 %v25755_v11 }
0x1316   :  { %18342 = vmatpush1.bf16.msra.mxu0 %v24910_v0  ;;  %18358 = vmatpush1.bf16.msra.mxu1 %v24912_v2 }
0x1317   :  { %18344 = vmatprep.subr.bf16.mxu0 %v24929_v10  ;;  %18360 = vmatprep.subr.bf16.mxu1 %v24940_v13 }
0x131a   :  { %18346 = vmatpush1.bf16.msra.mxu0 %v24942_v32  ;;  %18362 = vmatpush1.bf16.msra.mxu1 %v24951_v8 }
0x131b   :  { %18348 = vmatprep.subr.bf16.mxu0 %v24965_v41  ;;  %18364 = vmatprep.subr.bf16.mxu1 %v24976_v6 }
0x131e   :  { %18350 = vmatpush1.bf16.msra.mxu0 %v24978_v27  ;;  %18366 = vmatpush1.bf16.msra.mxu1 %v24987_v53 }
0x131f   :  { %18368 = vmatprep.subr.bf16.mxu0 %v24544_v24  ;;  %18400 = vmatprep.subr.bf16.mxu1 %v24546_v62 }
0x13e4   :  { %v17719_v5 = vpop.f32.mrb[90].mxu0  ;;  %v17754_v28 = vpop.f32.mrb[86].mxu1 }
0x13e5   :  { %v17720_v3 = vpop.f32.mrb[91].mxu0  ;;  %v17755_v45 = vpop.f32.mrb[87].mxu1 }
0x13e6   :  { %v17721_v31 = vadd.f32 %v17720_v3, %v17719_v5  ;;  %v17756_v43 = vadd.f32 %v17755_v45, %v17754_v28 }
0x13e8   :  { %v10960_v23 = vadd.f32 %v17756_v43, %v17721_v31 }
0x13ea   :  { %v10963_v48 = vmul.f32 0.0078125, %v10960_v23 }
0x13ec   :  { %17008 = vmatmul.mubr.msk.f32.vlgmr.msra.gmra.mrb[108].mxu0 %vm897_vm0, %v10963_v48  ;;  %17009 = vmatmul.mubr.msk.f32.vlgmr.msra.gmra.mrb[104].mxu1 %vm897_vm0, %v10963_v48 }
0x13ed   :  { %18370 = vmatpush3.bf16.msra.mxu0 %v24566_v33  ;;  %18402 = vmatpush3.bf16.msra.mxu1 %v24568_v49 }
0x13ee   :  { %18372 = vmatprep.subr.bf16.mxu0 %v24575_v37  ;;  %18404 = vmatprep.subr.bf16.mxu1 %v24577_v16 }
0x13f1   :  { %18374 = vmatpush3.bf16.msra.mxu0 %v24592_v18  ;;  %18406 = vmatpush3.bf16.msra.mxu1 %v24594_v59 }
0x13f2   :  { %18376 = vmatprep.subr.bf16.mxu0 %v24606_v30  ;;  %18408 = vmatprep.subr.bf16.mxu1 %v24617_v17 }
0x13f5   :  { %18378 = vmatpush3.bf16.msra.mxu0 %v24629_v50  ;;  %18410 = vmatpush3.bf16.msra.mxu1 %v24631_v7  ;;  %v25777_v50 = vld [vmem:[#allocation50_spill] sm:$0xff] }
0x13f6   :  { %18380 = vmatprep.subr.bf16.mxu0 %v24645_v47  ;;  %18412 = vmatprep.subr.bf16.mxu1 %v24656_v39  ;;  %v25778_v47 = vld [vmem:[#allocation45_spill] sm:$0xff] }
0x13f9   :  { %18382 = vmatpush3.bf16.msra.mxu0 %v24658_v42  ;;  %18414 = vmatpush3.bf16.msra.mxu1 %v24667_v4  ;;  %v25779_v42 = vld [vmem:[#allocation37_spill] sm:$0xff] }
0x13fa   :  { %18384 = vmatprep.subr.bf16.mxu0 %v24681_v63  ;;  %18416 = vmatprep.subr.bf16.mxu1 %v24692_v22  ;;  %v25780_v63 = vld [vmem:[#allocation49_spill] sm:$0xff] }
0x13fd   :  { %18386 = vmatpush3.bf16.msra.mxu0 %v24694_v44  ;;  %18418 = vmatpush3.bf16.msra.mxu1 %v24703_v40  ;;  %v25781_v44 = vld [vmem:[#allocation41_spill] sm:$0xff] }
0x13fe   :  { %18388 = vmatprep.subr.bf16.mxu0 %v24717_v56  ;;  %18420 = vmatprep.subr.bf16.mxu1 %v24728_v54  ;;  %v25782_v56 = vld [vmem:[#allocation35_spill] sm:$0xff] }
0x1401   :  { %18390 = vmatpush3.bf16.msra.mxu0 %v24730_v29  ;;  %18422 = vmatpush3.bf16.msra.mxu1 %v24739_v21 }
0x1402   :  { %18392 = vmatprep.subr.bf16.mxu0 %v24753_v34  ;;  %18424 = vmatprep.subr.bf16.mxu1 %v24764_v46 }
0x1405   :  { %18394 = vmatpush3.bf16.msra.mxu0 %v24766_v38  ;;  %18426 = vmatpush3.bf16.msra.mxu1 %v24778_v25 }
0x1406   :  { %18396 = vmatprep.subr.bf16.mxu0 %v24790_v19  ;;  %18428 = vmatprep.subr.bf16.mxu1 %v24792_v15 }
0x1409   :  { %18398 = vmatpush3.bf16.msra.mxu0 %v24805_v9  ;;  %18430 = vmatpush3.bf16.msra.mxu1 %v24812_v1 }
0x140a   :  { %18432 = vmatprep.subr.bf16.mxu0 %v24825_v14  ;;  %18448 = vmatprep.subr.bf16.mxu1 %v24830_v20 }
0x14bf   :  { %v11065_v24 = vpop.f32.mrb[108].mxu0  ;;  %v11136_v62 = vpop.f32.mrb[104].mxu1 }
0x14c0   :  { %v11144_v33 = vrot.slane %v11065_v24, %v25713_v26  ;;  %v11152_v49 = vrot.slane %v11136_v62, %v25713_v26  ;;  %v11067_v37 = vpop.f32.mrb[109].mxu0  ;;  %v11138_v16 = vpop.f32.mrb[105].mxu1 }
0x14c1   :  { %v11148_v18 = vrot.slane %v11067_v37, %v25713_v26  ;;  %v11156_v59 = vrot.slane %v11138_v16, %v25713_v26 }
0x14c2   :  { %v25033_v30 = vsub.f32 %v24838_v12, %v11144_v33  ;;  %v25036_v17 = vsub.f32 %v24848_v35, %v11144_v33  ;;  %v25039_v7 = vsub.f32 %v25777_v50, %v11152_v49  ;;  %v25042_v39 = vsub.f32 %v25778_v47, %v11152_v49 }
0x14c3   :  { %v25045_v4 = vsub.f32 %v25779_v42, %v11148_v18  ;;  %v25048_v22 = vsub.f32 %v25780_v63, %v11148_v18  ;;  %v25051_v40 = vsub.f32 %v25781_v44, %v11156_v59  ;;  %v25054_v54 = vsub.f32 %v25782_v56, %v11156_v59  ;;  %v25784_v56 = vld [vmem:[#allocation31_spill] sm:$0xff] }
0x14c4   :  { %v11165_v29 = vmul.f32 %v25033_v30, %v25033_v30  ;;  %v11169_v21 = vmul.f32 %v25036_v17, %v25036_v17  ;;  %v11167_v34 = vmul.f32 %v25039_v7, %v25039_v7  ;;  %v11171_v46 = vmul.f32 %v25042_v39, %v25042_v39 }
0x14c5   :  { %v11166_v38 = vmul.f32 %v25045_v4, %v25045_v4  ;;  %v11170_v25 = vmul.f32 %v25048_v22, %v25048_v22  ;;  %v11168_v19 = vmul.f32 %v25051_v40, %v25051_v40  ;;  %v11172_v15 = vmul.f32 %v25054_v54, %v25054_v54 }
0x14c6   :  { %v11173_v9 = vadd.f32 %v11169_v21, %v11165_v29  ;;  %v11187_v1 = vadd.f32 %v11171_v46, %v11167_v34  ;;  %v25785_v21 = vld [vmem:[#allocation32_spill] sm:$0xff]  ;;  %v25786_v46 = vld [vmem:[#allocation33_spill] sm:$0xff] }
0x14c7   :  { %v11180_v14 = vadd.f32 %v11170_v25, %v11166_v38  ;;  %v11194_v20 = vadd.f32 %v11172_v15, %v11168_v19 }
0x14c8   :  { %v11174_v12 = vrot.slane %v11173_v9, 4  ;;  %v11188_v35 = vrot.slane %v11187_v1, 4 }
0x14c9   :  { %v11181_v60 = vrot.slane %v11180_v14, 4  ;;  %v11195_v52 = vrot.slane %v11194_v20, 4 }
0x14ca   :  { %v11175_v51 = vadd.f32 %v11174_v12, %v11173_v9  ;;  %v11189_v58 = vadd.f32 %v11188_v35, %v11187_v1 }
0x14cb   :  { %v11182_v5 = vadd.f32 %v11181_v60, %v11180_v14  ;;  %v11196_v28 = vadd.f32 %v11195_v52, %v11194_v20 }
0x14cc   :  { %v11176_v3 = vrot.slane %v11175_v51, 2  ;;  %v11190_v45 = vrot.slane %v11189_v58, 2 }
0x14cd   :  { %v11183_v31 = vrot.slane %v11182_v5, 2  ;;  %v11197_v43 = vrot.slane %v11196_v28, 2 }
0x14ce   :  { %v11177_v23 = vadd.f32 %v11176_v3, %v11175_v51  ;;  %v11191_v48 = vadd.f32 %v11190_v45, %v11189_v58 }
0x14cf   :  { %v11184_v24 = vadd.f32 %v11183_v31, %v11182_v5  ;;  %v11198_v62 = vadd.f32 %v11197_v43, %v11196_v28 }
0x14d0   :  { %v11178_v33 = vrot.slane %v11177_v23, 1  ;;  %v11192_v49 = vrot.slane %v11191_v48, 1 }
0x14d1   :  { %v11185_v37 = vrot.slane %v11184_v24, 1  ;;  %v11199_v16 = vrot.slane %v11198_v62, 1 }
0x14d2   :  { %v11179_v50 = vadd.f32 %v11178_v33, %v11177_v23  ;;  %v11193_v47 = vadd.f32 %v11192_v49, %v11191_v48 }
0x14d3   :  { %v11186_v18 = vadd.f32 %v11185_v37, %v11184_v24  ;;  %v11200_v59 = vadd.f32 %v11199_v16, %v11198_v62 }
0x14d5   :  { %11265 = vmatprep.mubr.f32.mxu0 %v11186_v18  ;;  %11335 = vmatprep.mubr.f32.mxu1 %v11200_v59 }
0x14d6   :  { %11266 = vmatmul.mubr.f32.vlgmr.msra.gmra.mrb[110].mxu0 %v11179_v50  ;;  %11336 = vmatmul.mubr.f32.vlgmr.msra.gmra.mrb[106].mxu1 %v11193_v47  ;;  %v11580_v47 = vld [vmem:[#allocation16] sm:$0xf] }
0x14d7   :  { %18434 = vmatpush1.bf16.msra.mxu0 %v24888_v55  ;;  %18450 = vmatpush1.bf16.msra.mxu1 %v24890_v57 }
0x14d8   :  { %18436 = vmatprep.subr.bf16.mxu0 %v24895_v36  ;;  %18452 = vmatprep.subr.bf16.mxu1 %v24897_v61 }
0x14d9   :  { %11412 = vmatprep.mubr.f32.mxu0 %v25755_v11  ;;  %11483 = vmatprep.mubr.f32.mxu1 %v25755_v11 }
0x14db   :  { %18438 = vmatpush1.bf16.msra.mxu0 %v24910_v0  ;;  %18454 = vmatpush1.bf16.msra.mxu1 %v24912_v2 }
0x14dc   :  { %18440 = vmatprep.subr.bf16.mxu0 %v24929_v10  ;;  %18456 = vmatprep.subr.bf16.mxu1 %v24940_v13 }
0x14df   :  { %18442 = vmatpush1.bf16.msra.mxu0 %v24942_v32  ;;  %18458 = vmatpush1.bf16.msra.mxu1 %v24951_v8 }
0x14e0   :  { %18444 = vmatprep.subr.bf16.mxu0 %v24965_v41  ;;  %18460 = vmatprep.subr.bf16.mxu1 %v24976_v6  ;;  %v25783_v41 = vmov 0   ;;  %v11515_v6 = vld [vmem:[#allocation14 + $0x1] ss:$4 sm:$0xf] }
0x14e1   :  { %v11520_v63 = vrot.slane %v11515_v6, %v25713_v26  ;;  %v11528_v29 = vrot.slane %v11515_v6, %v25784_v56  ;;  %v11524_v34 = vrot.slane %v11515_v6, %v25785_v21  ;;  %v11532_v38 = vrot.slane %v11515_v6, %v25786_v46  ;;  %v20350_v6 = vld [vmem:[#allocation17 + $0x440] ss:$16 sps:$4 sm:$0xff]  }
0x14e3   :  { %18446 = vmatpush1.bf16.msra.mxu0 %v24978_v27  ;;  %18462 = vmatpush1.bf16.msra.mxu1 %v24987_v53  ;;  %v11546_v27 = vld [vmem:[#allocation14 + $0x2] ss:$4 sm:$0xf] }
0x14e4   :  { %v11551_v19 = vrot.slane %v11546_v27, %v25713_v26  ;;  %v11559_v9 = vrot.slane %v11546_v27, %v25784_v56  ;;  %v11555_v35 = vrot.slane %v11546_v27, %v25785_v21  ;;  %v11563_v60 = vrot.slane %v11546_v27, %v25786_v46  ;;  %v20353_v27 = vld [vmem:[#allocation17 + $0x640] ss:$16 sps:$4 sm:$0xff]  }
0x15a9   :  { %v17789_v36 = vpop.f32.mrb[110].mxu0  ;;  %v17824_v61 = vpop.f32.mrb[106].mxu1 }
0x15aa   :  { %v17790_v55 = vpop.f32.mrb[111].mxu0  ;;  %v17825_v57 = vpop.f32.mrb[107].mxu1 }
0x15ab   :  { %v17791_v0 = vadd.f32 %v17790_v55, %v17789_v36  ;;  %v17826_v2 = vadd.f32 %v17825_v57, %v17824_v61  ;;  %v20340_v36 = vld [vmem:[#allocation17 + $0x404] ss:$16 sps:$4 sm:$0xff]   ;;  %v11799_v55 = vld [vmem:[#allocation16 + $0x4] sm:$0xf]  ;;  %v20338_v57 = vld [vmem:[#allocation17 + $0x400] ss:$16 sps:$4 sm:$0xff]  }
0x15ac   :  { %v20343_v61 = vld [vmem:[#allocation17 + $0x604] ss:$16 sps:$4 sm:$0xff]  }
0x15ad   :  { %v11338_v10 = vadd.f32 %v17826_v2, %v17791_v0  ;;  %v20341_v0 = vld [vmem:[#allocation17 + $0x600] ss:$16 sps:$4 sm:$0xff]   ;;  %v20346_v2 = vld [vmem:[#allocation17 + $0x424] ss:$16 sps:$4 sm:$0xff]  }
0x15af   :  { %v11341_v13 = vmul.f32 0.0078125, %v11338_v10  ;;  %v20349_v10 = vld [vmem:[#allocation17 + $0x624] ss:$16 sps:$4 sm:$0xff]  }
0x15b1   :  { %v11342_v42 = vmax.f32 %v11341_v13, 0.0  ;;  %v20344_v13 = vld [vmem:[#allocation17 + $0x420] ss:$16 sps:$4 sm:$0xff]  }
0x15b3   :  { %v11343_v32 = vadd.f32 1e-05, %v11342_v42  ;;  %v20347_v42 = vld [vmem:[#allocation17 + $0x620] ss:$16 sps:$4 sm:$0xff]  }
0x15b5   :  { %20918 = vrsqrt.f32 %v11343_v32  ;;  %v20352_v32 = vld [vmem:[#allocation17 + $0x444] ss:$16 sps:$4 sm:$0xff]  }
0x15bf   :  { %v20919_v8 = vpop.eup %20918 }
0x15c0   :  { %17010 = vmatmul.mubr.msk.f32.vlgmr.msra.gmra.mrb[112].mxu0 %vm897_vm0, %v20919_v8  ;;  %17011 = vmatmul.mubr.msk.f32.vlgmr.msra.gmra.mrb[108].mxu1 %vm897_vm0, %v20919_v8  ;;  %v20355_v8 = vld [vmem:[#allocation17 + $0x644] ss:$16 sps:$4 sm:$0xff]  }
0x15c1   :  { %11616 = vmatprep.mubr.bf16.mxu0 %v25783_v41  ;;  %11657 = vmatprep.mubr.bf16.mxu1 %v25783_v41 }
0x1693   :  { %v11414_v53 = vpop.f32.mrb[112].mxu0  ;;  %v11485_v44 = vpop.f32.mrb[108].mxu1 }
0x1694   :  { %v11493_v25 = vrot.slane %v11414_v53, %v25713_v26  ;;  %v11501_v15 = vrot.slane %v11485_v44, %v25713_v26  ;;  %v11416_v1 = vpop.f32.mrb[113].mxu0  ;;  %v11487_v14 = vpop.f32.mrb[109].mxu1  ;;  %v20358_v53 = vld [vmem:[#allocation17 + $0x464] ss:$16 sps:$4 sm:$0xff]   ;;  %v20356_v44 = vld [vmem:[#allocation17 + $0x460] ss:$16 sps:$4 sm:$0xff]  }
0x1695   :  { %v11497_v20 = vrot.slane %v11416_v1, %v25713_v26  ;;  %v11505_v12 = vrot.slane %v11487_v14, %v25713_v26  ;;  %v20368_v1 = vld [vmem:[#allocation17 + $0x4a0] ss:$16 sps:$4 sm:$0xff]  }
0x1696   :  { %v11506_v52 = vmul.f32 %v11493_v25, %v25033_v30  ;;  %v11510_v51 = vmul.f32 %v11493_v25, %v25036_v17  ;;  %v11508_v58 = vmul.f32 %v11501_v15, %v25039_v7  ;;  %v11512_v5 = vmul.f32 %v11501_v15, %v25042_v39  ;;  %v20362_v25 = vld [vmem:[#allocation17 + $0x480] ss:$16 sps:$4 sm:$0xff]   ;;  %v20370_v15 = vld [vmem:[#allocation17 + $0x4a4] ss:$16 sps:$4 sm:$0xff]  }
0x1697   :  { %v11507_v28 = vmul.f32 %v11497_v20, %v25045_v4  ;;  %v11511_v3 = vmul.f32 %v11497_v20, %v25048_v22  ;;  %v11509_v45 = vmul.f32 %v11505_v12, %v25051_v40  ;;  %v11513_v31 = vmul.f32 %v11505_v12, %v25054_v54  ;;  %v20371_v14 = vld [vmem:[#allocation17 + $0x6a0] ss:$16 sps:$4 sm:$0xff]   ;;  %v20376_v20 = vld [vmem:[#allocation17 + $0x4c4] ss:$16 sps:$4 sm:$0xff]  }
0x1698   :  { %v11537_v43 = vmul.f32 %v11520_v63, %v11506_v52  ;;  %v11541_v23 = vmul.f32 %v11520_v63, %v11510_v51  ;;  %v11539_v48 = vmul.f32 %v11528_v29, %v11508_v58  ;;  %v11543_v24 = vmul.f32 %v11528_v29, %v11512_v5  ;;  %v20361_v63 = vld [vmem:[#allocation17 + $0x664] ss:$16 sps:$4 sm:$0xff]   ;;  %v20359_v29 = vld [vmem:[#allocation17 + $0x660] ss:$16 sps:$4 sm:$0xff]  }
0x1699   :  { %v11538_v62 = vmul.f32 %v11524_v34, %v11507_v28  ;;  %v11542_v30 = vmul.f32 %v11524_v34, %v11511_v3  ;;  %v11540_v33 = vmul.f32 %v11532_v38, %v11509_v45  ;;  %v11544_v17 = vmul.f32 %v11532_v38, %v11513_v31  ;;  %v20364_v34 = vld [vmem:[#allocation17 + $0x484] ss:$16 sps:$4 sm:$0xff]   ;;  %v20380_v58 = vld [vmem:[#allocation17 + $0x4e0] ss:$16 sps:$4 sm:$0xff]  }
0x169a   :  { %v11568_v49 = vadd.f32 %v11551_v19, %v11537_v43  ;;  %v11572_v7 = vadd.f32 %v11551_v19, %v11541_v23  ;;  %v11570_v37 = vadd.f32 %v11559_v9, %v11539_v48  ;;  %v11574_v39 = vadd.f32 %v11559_v9, %v11543_v24  ;;  %v20367_v38 = vld [vmem:[#allocation17 + $0x684] ss:$16 sps:$4 sm:$0xff]   ;;  %v20365_v19 = vld [vmem:[#allocation17 + $0x680] ss:$16 sps:$4 sm:$0xff]  }
0x169b   :  { %v11569_v16 = vadd.f32 %v11555_v35, %v11538_v62  ;;  %v11573_v4 = vadd.f32 %v11555_v35, %v11542_v30  ;;  %v11571_v18 = vadd.f32 %v11563_v60, %v11540_v33  ;;  %v11575_v22 = vadd.f32 %v11563_v60, %v11544_v17  ;;  %v20373_v9 = vld [vmem:[#allocation17 + $0x6a4] ss:$16 sps:$4 sm:$0xff]   ;;  %v20374_v35 = vld [vmem:[#allocation17 + $0x4c0] ss:$16 sps:$4 sm:$0xff]  }
0x169c   :  { %v25116_v54 = vpack.c.bf16 %v11572_v7, %v11568_v49  ;;  %v25118_v50 = vpack.c.bf16 %v11574_v39, %v11570_v37  ;;  %v20379_v12 = vld [vmem:[#allocation17 + $0x6c4] ss:$16 sps:$4 sm:$0xff]   ;;  %v20377_v60 = vld [vmem:[#allocation17 + $0x6c0] ss:$16 sps:$4 sm:$0xff]  }
0x169d   :  { %v25112_v59 = vpack.c.bf16 %v11573_v4, %v11569_v16  ;;  %v25114_v40 = vpack.c.bf16 %v11575_v22, %v11571_v18  ;;  %v20382_v52 = vld [vmem:[#allocation17 + $0x4e4] ss:$16 sps:$4 sm:$0xff]   ;;  %v20383_v5 = vld [vmem:[#allocation17 + $0x6e0] ss:$16 sps:$4 sm:$0xff]  }
0x169e   :  { %v20385_v51 = vld [vmem:[#allocation17 + $0x6e4] ss:$16 sps:$4 sm:$0xff]   ;;  %v20386_v45 = vld [vmem:[#allocation17 + $0x500] ss:$16 sps:$4 sm:$0xff]  }
0x169f   :  { %11584 = vmatprep.subr.bf16.mxu0 %v25112_v59  ;;  %11625 = vmatprep.subr.bf16.mxu1 %v25114_v40  ;;  %v20388_v28 = vld [vmem:[#allocation17 + $0x504] ss:$16 sps:$4 sm:$0xff]   ;;  %v20389_v31 = vld [vmem:[#allocation17 + $0x700] ss:$16 sps:$4 sm:$0xff]  }
0x16a0   :  { %11585 = vmatpush1.bf16.msra.mxu0 %v25116_v54  ;;  %11626 = vmatpush1.bf16.msra.mxu1 %v25118_v50  ;;  %v20391_v3 = vld [vmem:[#allocation17 + $0x704] ss:$16 sps:$4 sm:$0xff]   ;;  %v20392_v48 = vld [vmem:[#allocation17 + $0x520] ss:$16 sps:$4 sm:$0xff]  }
0x16a1   :  { %11803 = vmatprep.subr.bf16.mxu0 %v25112_v59  ;;  %11844 = vmatprep.subr.bf16.mxu1 %v25114_v40  ;;  %v20394_v43 = vld [vmem:[#allocation17 + $0x524] ss:$16 sps:$4 sm:$0xff]   ;;  %v20395_v24 = vld [vmem:[#allocation17 + $0x720] ss:$16 sps:$4 sm:$0xff]  }
0x16a2   :  { %v20397_v23 = vld [vmem:[#allocation17 + $0x724] ss:$16 sps:$4 sm:$0xff]   ;;  %v20398_v33 = vld [vmem:[#allocation17 + $0x540] ss:$16 sps:$4 sm:$0xff]  }
0x16a3   :  { %17012 = vmatmul.mubr.msk.bf16.vlgmr.msra.gmra.mrb[116].mxu0 %vm2462_vm3, %v11580_v47  ;;  %17013 = vmatmul.mubr.msk.bf16.vlgmr.msra.gmra.mrb[112].mxu1 %vm2462_vm3, %v11580_v47  ;;  %v20400_v62 = vld [vmem:[#allocation17 + $0x544] ss:$16 sps:$4 sm:$0xff]   ;;  %v20401_v17 = vld [vmem:[#allocation17 + $0x740] ss:$16 sps:$4 sm:$0xff]  }
0x16a4   :  { %11804 = vmatpush1.bf16.msra.mxu0 %v25116_v54  ;;  %11845 = vmatpush1.bf16.msra.mxu1 %v25118_v50  ;;  %v20403_v30 = vld [vmem:[#allocation17 + $0x744] ss:$16 sps:$4 sm:$0xff]   ;;  %v20404_v37 = vld [vmem:[#allocation17 + $0x560] ss:$16 sps:$4 sm:$0xff]  }
0x16a5   :  { %11835 = vmatprep.mubr.bf16.mxu0 %v25783_v41  ;;  %11876 = vmatprep.mubr.bf16.mxu1 %v25783_v41  ;;  %v20406_v49 = vld [vmem:[#allocation17 + $0x564] ss:$16 sps:$4 sm:$0xff]   ;;  %v20407_v39 = vld [vmem:[#allocation17 + $0x760] ss:$16 sps:$4 sm:$0xff]  }
0x16a6   :  { %12658 = vmatprep.subr.bf16.mxu0 %v20340_v36  ;;  %12699 = vmatprep.subr.bf16.mxu1 %v20343_v61  ;;  %v20409_v7 = vld [vmem:[#allocation17 + $0x764] ss:$16 sps:$4 sm:$0xff]   ;;  %v20410_v18 = vld [vmem:[#allocation17 + $0x580] ss:$16 sps:$4 sm:$0xff]  }
0x16a7   :  { %v20412_v16 = vld [vmem:[#allocation17 + $0x584] ss:$16 sps:$4 sm:$0xff]   ;;  %v20413_v22 = vld [vmem:[#allocation17 + $0x780] ss:$16 sps:$4 sm:$0xff]  }
0x16a8   :  { %v20415_v4 = vld [vmem:[#allocation17 + $0x784] ss:$16 sps:$4 sm:$0xff]   ;;  %v20416_v61 = vld [vmem:[#allocation17 + $0x5a0] ss:$16 sps:$4 sm:$0xff]  }
0x16a9   :  { %v20418_v47 = vld [vmem:[#allocation17 + $0x5a4] ss:$16 sps:$4 sm:$0xff]  }
0x16aa   :  { %v20421_v36 = vld [vmem:[#allocation17 + $0x7a4] ss:$16 sps:$4 sm:$0xff]  }
0x16ab   :  { %17014 = vmatmul.mubr.msk.bf16.vlgmr.msra.gmra.mrb[120].mxu0 %vm2462_vm3, %v11799_v55  ;;  %17015 = vmatmul.mubr.msk.bf16.vlgmr.msra.gmra.mrb[116].mxu1 %vm2462_vm3, %v11799_v55  ;;  %v20419_v55 = vld [vmem:[#allocation17 + $0x7a0] ss:$16 sps:$4 sm:$0xff]  }
0x16ac   :  { %12659 = vmatpush1.bf16.msra.mxu0 %v20338_v57  ;;  %12700 = vmatpush1.bf16.msra.mxu1 %v20341_v0  ;;  %v20422_v57 = vld [vmem:[#allocation17 + $0x5c0] ss:$16 sps:$4 sm:$0xff]   ;;  %v20424_v0 = vld [vmem:[#allocation17 + $0x5c4] ss:$16 sps:$4 sm:$0xff]  }
0x16ad   :  { %12660 = vmatprep.subr.bf16.mxu0 %v20346_v2  ;;  %12701 = vmatprep.subr.bf16.mxu1 %v20349_v10  ;;  %v20425_v2 = vld [vmem:[#allocation17 + $0x7c0] ss:$16 sps:$4 sm:$0xff]   ;;  %v20427_v10 = vld [vmem:[#allocation17 + $0x7c4] ss:$16 sps:$4 sm:$0xff]  }
0x16b0   :  { %12661 = vmatpush1.bf16.msra.mxu0 %v20344_v13  ;;  %12702 = vmatpush1.bf16.msra.mxu1 %v20347_v42  ;;  %v20430_v13 = vld [vmem:[#allocation17 + $0x5e4] ss:$16 sps:$4 sm:$0xff]  }
0x16b1   :  { %12662 = vmatprep.subr.bf16.mxu0 %v20352_v32  ;;  %12703 = vmatprep.subr.bf16.mxu1 %v20355_v8  ;;  %v20433_v42 = vld [vmem:[#allocation17 + $0x7e4] ss:$16 sps:$4 sm:$0xff]   ;;  %v20428_v32 = vld [vmem:[#allocation17 + $0x5e0] ss:$16 sps:$4 sm:$0xff]  }
0x16b2   :  { %v20431_v8 = vld [vmem:[#allocation17 + $0x7e0] ss:$16 sps:$4 sm:$0xff]  }
0x16b4   :  { %12663 = vmatpush1.bf16.msra.mxu0 %v20350_v6  ;;  %12704 = vmatpush1.bf16.msra.mxu1 %v20353_v27  ;;  %v20436_v6 = vld [vmem:[#allocation17 + $0x40c] ss:$16 sps:$4 sm:$0xff]  }
0x16b5   :  { %12664 = vmatprep.subr.bf16.mxu0 %v20358_v53  ;;  %12705 = vmatprep.subr.bf16.mxu1 %v20361_v63  ;;  %v20439_v27 = vld [vmem:[#allocation17 + $0x60c] ss:$16 sps:$4 sm:$0xff]  }
0x16b8   :  { %12665 = vmatpush1.bf16.msra.mxu0 %v20356_v44  ;;  %12706 = vmatpush1.bf16.msra.mxu1 %v20359_v29 }
0x16b9   :  { %12666 = vmatprep.subr.bf16.mxu0 %v20364_v34  ;;  %12707 = vmatprep.subr.bf16.mxu1 %v20367_v38 }
0x16bc   :  { %12667 = vmatpush1.bf16.msra.mxu0 %v20362_v25  ;;  %12708 = vmatpush1.bf16.msra.mxu1 %v20365_v19 }
0x16bd   :  { %12668 = vmatprep.subr.bf16.mxu0 %v20370_v15  ;;  %12709 = vmatprep.subr.bf16.mxu1 %v20373_v9 }
0x16c0   :  { %12669 = vmatpush1.bf16.msra.mxu0 %v20368_v1  ;;  %12710 = vmatpush1.bf16.msra.mxu1 %v20371_v14 }
0x16c1   :  { %12670 = vmatprep.subr.bf16.mxu0 %v20376_v20  ;;  %12711 = vmatprep.subr.bf16.mxu1 %v20379_v12 }
0x16c4   :  { %12671 = vmatpush1.bf16.msra.mxu0 %v20374_v35  ;;  %12712 = vmatpush1.bf16.msra.mxu1 %v20377_v60 }
0x16c5   :  { %12672 = vmatprep.subr.bf16.mxu0 %v20382_v52  ;;  %12713 = vmatprep.subr.bf16.mxu1 %v20385_v51  ;;  %v20434_v52 = vld [vmem:[#allocation17 + $0x408] ss:$16 sps:$4 sm:$0xff]  }
0x16c6   :  { %v20437_v51 = vld [vmem:[#allocation17 + $0x608] ss:$16 sps:$4 sm:$0xff]  }
0x16c8   :  { %12673 = vmatpush1.bf16.msra.mxu0 %v20380_v58  ;;  %12714 = vmatpush1.bf16.msra.mxu1 %v20383_v5 }
0x16c9   :  { %12674 = vmatprep.subr.bf16.mxu0 %v20388_v28  ;;  %12715 = vmatprep.subr.bf16.mxu1 %v20391_v3 }
0x16cc   :  { %12675 = vmatpush1.bf16.msra.mxu0 %v20386_v45  ;;  %12716 = vmatpush1.bf16.msra.mxu1 %v20389_v31  ;;  %v20442_v45 = vld [vmem:[#allocation17 + $0x42c] ss:$16 sps:$4 sm:$0xff]  }
0x16cd   :  { %12676 = vmatprep.subr.bf16.mxu0 %v20394_v43  ;;  %12717 = vmatprep.subr.bf16.mxu1 %v20397_v23  ;;  %v20445_v31 = vld [vmem:[#allocation17 + $0x62c] ss:$16 sps:$4 sm:$0xff]   ;;  %v20440_v43 = vld [vmem:[#allocation17 + $0x428] ss:$16 sps:$4 sm:$0xff]  }
0x16ce   :  { %v20443_v23 = vld [vmem:[#allocation17 + $0x628] ss:$16 sps:$4 sm:$0xff]  }
0x16d0   :  { %12677 = vmatpush1.bf16.msra.mxu0 %v20392_v48  ;;  %12718 = vmatpush1.bf16.msra.mxu1 %v20395_v24  ;;  %v20448_v48 = vld [vmem:[#allocation17 + $0x44c] ss:$16 sps:$4 sm:$0xff]  }
0x16d1   :  { %12678 = vmatprep.subr.bf16.mxu0 %v20400_v62  ;;  %12719 = vmatprep.subr.bf16.mxu1 %v20403_v30  ;;  %v20451_v24 = vld [vmem:[#allocation17 + $0x64c] ss:$16 sps:$4 sm:$0xff]   ;;  %v20446_v62 = vld [vmem:[#allocation17 + $0x448] ss:$16 sps:$4 sm:$0xff]  }
0x16d2   :  { %v20449_v30 = vld [vmem:[#allocation17 + $0x648] ss:$16 sps:$4 sm:$0xff]  }
0x16d4   :  { %12679 = vmatpush1.bf16.msra.mxu0 %v20398_v33  ;;  %12720 = vmatpush1.bf16.msra.mxu1 %v20401_v17  ;;  %v20454_v33 = vld [vmem:[#allocation17 + $0x46c] ss:$16 sps:$4 sm:$0xff]  }
0x16d5   :  { %12680 = vmatprep.subr.bf16.mxu0 %v20406_v49  ;;  %12721 = vmatprep.subr.bf16.mxu1 %v20409_v7  ;;  %v20457_v17 = vld [vmem:[#allocation17 + $0x66c] ss:$16 sps:$4 sm:$0xff]   ;;  %v20452_v49 = vld [vmem:[#allocation17 + $0x468] ss:$16 sps:$4 sm:$0xff]  }
0x16d6   :  { %v20455_v7 = vld [vmem:[#allocation17 + $0x668] ss:$16 sps:$4 sm:$0xff]  }
0x16d8   :  { %12681 = vmatpush1.bf16.msra.mxu0 %v20404_v37  ;;  %12722 = vmatpush1.bf16.msra.mxu1 %v20407_v39  ;;  %v20460_v37 = vld [vmem:[#allocation17 + $0x48c] ss:$16 sps:$4 sm:$0xff]  }
0x16d9   :  { %12682 = vmatprep.subr.bf16.mxu0 %v20412_v16  ;;  %12723 = vmatprep.subr.bf16.mxu1 %v20415_v4  ;;  %v20463_v39 = vld [vmem:[#allocation17 + $0x68c] ss:$16 sps:$4 sm:$0xff]   ;;  %v20458_v16 = vld [vmem:[#allocation17 + $0x488] ss:$16 sps:$4 sm:$0xff]  }
0x16da   :  { %v20461_v4 = vld [vmem:[#allocation17 + $0x688] ss:$16 sps:$4 sm:$0xff]  }
0x16dc   :  { %12683 = vmatpush1.bf16.msra.mxu0 %v20410_v18  ;;  %12724 = vmatpush1.bf16.msra.mxu1 %v20413_v22  ;;  %v20466_v18 = vld [vmem:[#allocation17 + $0x4ac] ss:$16 sps:$4 sm:$0xff]  }
0x16dd   :  { %12684 = vmatprep.subr.bf16.mxu0 %v20418_v47  ;;  %12725 = vmatprep.subr.bf16.mxu1 %v20421_v36  ;;  %v20469_v22 = vld [vmem:[#allocation17 + $0x6ac] ss:$16 sps:$4 sm:$0xff]   ;;  %v20464_v47 = vld [vmem:[#allocation17 + $0x4a8] ss:$16 sps:$4 sm:$0xff]  }
0x16de   :  { %v20467_v36 = vld [vmem:[#allocation17 + $0x6a8] ss:$16 sps:$4 sm:$0xff]  }
0x16e0   :  { %12685 = vmatpush1.bf16.msra.mxu0 %v20416_v61  ;;  %12726 = vmatpush1.bf16.msra.mxu1 %v20419_v55  ;;  %v20472_v61 = vld [vmem:[#allocation17 + $0x4cc] ss:$16 sps:$4 sm:$0xff]  }
0x16e1   :  { %12686 = vmatprep.subr.bf16.mxu0 %v20424_v0  ;;  %12727 = vmatprep.subr.bf16.mxu1 %v20427_v10  ;;  %v20475_v55 = vld [vmem:[#allocation17 + $0x6cc] ss:$16 sps:$4 sm:$0xff]   ;;  %v20473_v0 = vld [vmem:[#allocation17 + $0x6c8] ss:$16 sps:$4 sm:$0xff]  }
0x16e2   :  { %v20481_v10 = vld [vmem:[#allocation17 + $0x6ec] ss:$16 sps:$4 sm:$0xff]  }
0x16e4   :  { %12687 = vmatpush1.bf16.msra.mxu0 %v20422_v57  ;;  %12728 = vmatpush1.bf16.msra.mxu1 %v20425_v2  ;;  %v20470_v57 = vld [vmem:[#allocation17 + $0x4c8] ss:$16 sps:$4 sm:$0xff]   ;;  %v20478_v2 = vld [vmem:[#allocation17 + $0x4ec] ss:$16 sps:$4 sm:$0xff]  }
0x16e5   :  { %12688 = vmatprep.subr.bf16.mxu0 %v20430_v13  ;;  %12729 = vmatprep.subr.bf16.mxu1 %v20433_v42  ;;  %v20476_v13 = vld [vmem:[#allocation17 + $0x4e8] ss:$16 sps:$4 sm:$0xff]  }
0x16e6   :  { %v20479_v42 = vld [vmem:[#allocation17 + $0x6e8] ss:$16 sps:$4 sm:$0xff]  }
0x16e8   :  { %12689 = vmatpush1.bf16.msra.mxu0 %v20428_v32  ;;  %12730 = vmatpush1.bf16.msra.mxu1 %v20431_v8  ;;  %v20484_v32 = vld [vmem:[#allocation17 + $0x50c] ss:$16 sps:$4 sm:$0xff]  }
0x16e9   :  { %12740 = vmatprep.subr.bf16.mxu0 %v20436_v6  ;;  %12781 = vmatprep.subr.bf16.mxu1 %v20439_v27  ;;  %v20487_v8 = vld [vmem:[#allocation17 + $0x70c] ss:$16 sps:$4 sm:$0xff]   ;;  %v20482_v6 = vld [vmem:[#allocation17 + $0x508] ss:$16 sps:$4 sm:$0xff]  }
0x16ea   :  { %v20485_v27 = vld [vmem:[#allocation17 + $0x708] ss:$16 sps:$4 sm:$0xff]  }
0x1776   :  { %v25134_v53 = vpop.f32.mrb[116].mxu0  ;;  %v25136_v63 = vpop.f32.mrb[112].mxu1 }
0x1777   :  { %v25138_v44 = vpop.f32.mrb[117].mxu0  ;;  %v25140_v29 = vpop.f32.mrb[113].mxu1 }
0x1778   :  { %v11622_v34 = vpop.f32.mrb[118].mxu0  ;;  %v11663_v38 = vpop.f32.mrb[114].mxu1 }
0x1779   :  { %v11623_v25 = vpop.f32.mrb[119].mxu0  ;;  %v11664_v19 = vpop.f32.mrb[115].mxu1  ;;  %v20490_v34 = vld [vmem:[#allocation17 + $0x52c] ss:$16 sps:$4 sm:$0xff]  }
0x177a   :  { %v20493_v38 = vld [vmem:[#allocation17 + $0x72c] ss:$16 sps:$4 sm:$0xff]   ;;  %v20488_v25 = vld [vmem:[#allocation17 + $0x528] ss:$16 sps:$4 sm:$0xff]  }
0x177b   :  { %v20491_v19 = vld [vmem:[#allocation17 + $0x728] ss:$16 sps:$4 sm:$0xff]  }
0x177e   :  { %v11837_v15 = vpop.f32.mrb[120].mxu0  ;;  %v11878_v9 = vpop.f32.mrb[116].mxu1 }
0x177f   :  { %v11839_v1 = vpop.f32.mrb[121].mxu0  ;;  %v11880_v14 = vpop.f32.mrb[117].mxu1  ;;  %v25142_v58 = vpack.c.bf16 %v11837_v15, %v11837_v15  ;;  %v25144_v5 = vpack.c.bf16 %v11878_v9, %v11878_v9  ;;  %v20496_v15 = vld [vmem:[#allocation17 + $0x54c] ss:$16 sps:$4 sm:$0xff]  }
0x1780   :  { %v11886_v20 = vpack.c.bf16 %v11839_v1, %v11839_v1  ;;  %v11888_v12 = vpack.c.bf16 %v11880_v14, %v11880_v14  ;;  %v11841_v35 = vpop.f32.mrb[122].mxu0  ;;  %v11882_v60 = vpop.f32.mrb[118].mxu1  ;;  %v20499_v9 = vld [vmem:[#allocation17 + $0x74c] ss:$16 sps:$4 sm:$0xff]   ;;  %v20494_v1 = vld [vmem:[#allocation17 + $0x548] ss:$16 sps:$4 sm:$0xff]  }
0x1781   :  { %v11842_v28 = vpop.f32.mrb[123].mxu0  ;;  %v11883_v3 = vpop.f32.mrb[119].mxu1  ;;  %v20497_v14 = vld [vmem:[#allocation17 + $0x748] ss:$16 sps:$4 sm:$0xff]  }
0x1782   :  { %12690 = vmatprep.mubr.bf16.mxu0 %v11886_v20  ;;  %12731 = vmatprep.mubr.bf16.mxu1 %v11888_v12  ;;  %v20500_v35 = vld [vmem:[#allocation17 + $0x568] ss:$16 sps:$4 sm:$0xff]  }
0x1783   :  { %12691 = vmatmul.mubr.bf16.vlgmr.msra.gmra.mrb[124].mxu0 %v25142_v58  ;;  %12732 = vmatmul.mubr.bf16.vlgmr.msra.gmra.mrb[120].mxu1 %v25144_v5  ;;  %v20503_v60 = vld [vmem:[#allocation17 + $0x768] ss:$16 sps:$4 sm:$0xff]  }
0x1784   :  { %12741 = vmatpush1.bf16.msra.mxu0 %v20434_v52  ;;  %12782 = vmatpush1.bf16.msra.mxu1 %v20437_v51  ;;  %v20508_v52 = vld [vmem:[#allocation17 + $0x58c] ss:$16 sps:$4 sm:$0xff]   ;;  %v20506_v28 = vld [vmem:[#allocation17 + $0x588] ss:$16 sps:$4 sm:$0xff]  }
0x1785   :  { %12772 = vmatprep.mubr.bf16.mxu0 %v11886_v20  ;;  %12813 = vmatprep.mubr.bf16.mxu1 %v11888_v12  ;;  %v20502_v20 = vld [vmem:[#allocation17 + $0x56c] ss:$16 sps:$4 sm:$0xff]   ;;  %v20509_v3 = vld [vmem:[#allocation17 + $0x788] ss:$16 sps:$4 sm:$0xff]  }
0x1786   :  { %12742 = vmatprep.subr.bf16.mxu0 %v20442_v45  ;;  %12783 = vmatprep.subr.bf16.mxu1 %v20445_v31  ;;  %v20505_v12 = vld [vmem:[#allocation17 + $0x76c] ss:$16 sps:$4 sm:$0xff]  }
0x1787   :  { %v20511_v51 = vld [vmem:[#allocation17 + $0x78c] ss:$16 sps:$4 sm:$0xff]  }
0x1788   :  { %12743 = vmatpush1.bf16.msra.mxu0 %v20440_v43  ;;  %12784 = vmatpush1.bf16.msra.mxu1 %v20443_v23  ;;  %v20514_v45 = vld [vmem:[#allocation17 + $0x5ac] ss:$16 sps:$4 sm:$0xff]   ;;  %v20512_v43 = vld [vmem:[#allocation17 + $0x5a8] ss:$16 sps:$4 sm:$0xff]  }
0x1789   :  { %12744 = vmatprep.subr.bf16.mxu0 %v20448_v48  ;;  %12785 = vmatprep.subr.bf16.mxu1 %v20451_v24  ;;  %v20517_v31 = vld [vmem:[#allocation17 + $0x7ac] ss:$16 sps:$4 sm:$0xff]   ;;  %v20515_v23 = vld [vmem:[#allocation17 + $0x7a8] ss:$16 sps:$4 sm:$0xff]  }
0x178a   :  { %v20520_v48 = vld [vmem:[#allocation17 + $0x5cc] ss:$16 sps:$4 sm:$0xff]  }
0x178b   :  { %v20523_v24 = vld [vmem:[#allocation17 + $0x7cc] ss:$16 sps:$4 sm:$0xff]  }
0x178c   :  { %12745 = vmatpush1.bf16.msra.mxu0 %v20446_v62  ;;  %12786 = vmatpush1.bf16.msra.mxu1 %v20449_v30  ;;  %v20518_v62 = vld [vmem:[#allocation17 + $0x5c8] ss:$16 sps:$4 sm:$0xff]  }
0x178d   :  { %12746 = vmatprep.subr.bf16.mxu0 %v20454_v33  ;;  %12787 = vmatprep.subr.bf16.mxu1 %v20457_v17  ;;  %v20521_v30 = vld [vmem:[#allocation17 + $0x7c8] ss:$16 sps:$4 sm:$0xff]   ;;  %v20526_v33 = vld [vmem:[#allocation17 + $0x5ec] ss:$16 sps:$4 sm:$0xff]  }
0x178e   :  { %v20529_v17 = vld [vmem:[#allocation17 + $0x7ec] ss:$16 sps:$4 sm:$0xff]  }
0x1790   :  { %12747 = vmatpush1.bf16.msra.mxu0 %v20452_v49  ;;  %12788 = vmatpush1.bf16.msra.mxu1 %v20455_v7  ;;  %v20524_v49 = vld [vmem:[#allocation17 + $0x5e8] ss:$16 sps:$4 sm:$0xff]  }
0x1791   :  { %12748 = vmatprep.subr.bf16.mxu0 %v20460_v37  ;;  %12789 = vmatprep.subr.bf16.mxu1 %v20463_v39  ;;  %v20527_v7 = vld [vmem:[#allocation17 + $0x7e8] ss:$16 sps:$4 sm:$0xff]   ;;  %v20532_v37 = vld [vmem:[#allocation17 + $0x4] ss:$16 sps:$4 sm:$0xff]  }
0x1792   :  { %v20535_v39 = vld [vmem:[#allocation17 + $0x204] ss:$16 sps:$4 sm:$0xff]  }
0x1794   :  { %12749 = vmatpush1.bf16.msra.mxu0 %v20458_v16  ;;  %12790 = vmatpush1.bf16.msra.mxu1 %v20461_v4  ;;  %v20530_v16 = vld [vmem:[#allocation17] ss:$16 sps:$4 sm:$0xff]  }
0x1795   :  { %12750 = vmatprep.subr.bf16.mxu0 %v20466_v18  ;;  %12791 = vmatprep.subr.bf16.mxu1 %v20469_v22  ;;  %v20533_v4 = vld [vmem:[#allocation17 + $0x200] ss:$16 sps:$4 sm:$0xff]   ;;  %v25150_v18 = vpack.c.bf16 %v25138_v44, %v25138_v44  ;;  %v20538_v22 = vld [vmem:[#allocation17 + $0x24] ss:$16 sps:$4 sm:$0xff]  }
0x1796   :  { %v20544_v44 = vld [vmem:[#allocation17 + $0x44] ss:$16 sps:$4 sm:$0xff]  }
0x1798   :  { %12751 = vmatpush1.bf16.msra.mxu0 %v20464_v47  ;;  %12792 = vmatpush1.bf16.msra.mxu1 %v20467_v36  ;;  %v20541_v47 = vld [vmem:[#allocation17 + $0x224] ss:$16 sps:$4 sm:$0xff]   ;;  %v25154_v36 = vpack.c.bf16 %v25140_v29, %v25140_v29  ;;  %v20545_v29 = vld [vmem:[#allocation17 + $0x240] ss:$16 sps:$4 sm:$0xff]  }
0x1799   :  { %12752 = vmatprep.subr.bf16.mxu0 %v20472_v61  ;;  %12793 = vmatprep.subr.bf16.mxu1 %v20475_v55  ;;  %v20536_v61 = vld [vmem:[#allocation17 + $0x20] ss:$16 sps:$4 sm:$0xff]  }
0x179a   :  { %v20539_v55 = vld [vmem:[#allocation17 + $0x220] ss:$16 sps:$4 sm:$0xff]  }
0x179c   :  { %12753 = vmatpush1.bf16.msra.mxu0 %v20470_v57  ;;  %12794 = vmatpush1.bf16.msra.mxu1 %v20473_v0  ;;  %v20547_v57 = vld [vmem:[#allocation17 + $0x244] ss:$16 sps:$4 sm:$0xff]   ;;  %v20542_v0 = vld [vmem:[#allocation17 + $0x40] ss:$16 sps:$4 sm:$0xff]  }
0x179d   :  { %12754 = vmatprep.subr.bf16.mxu0 %v20478_v2  ;;  %12795 = vmatprep.subr.bf16.mxu1 %v20481_v10  ;;  %v20548_v2 = vld [vmem:[#allocation17 + $0x60] ss:$16 sps:$4 sm:$0xff]  }
0x179e   :  { %v20551_v10 = vld [vmem:[#allocation17 + $0x260] ss:$16 sps:$4 sm:$0xff]  }
0x17a0   :  { %12755 = vmatpush1.bf16.msra.mxu0 %v20476_v13  ;;  %12796 = vmatpush1.bf16.msra.mxu1 %v20479_v42  ;;  %v20556_v13 = vld [vmem:[#allocation17 + $0x84] ss:$16 sps:$4 sm:$0xff]  }
0x17a1   :  { %12756 = vmatprep.subr.bf16.mxu0 %v20484_v32  ;;  %12797 = vmatprep.subr.bf16.mxu1 %v20487_v8  ;;  %v20559_v42 = vld [vmem:[#allocation17 + $0x284] ss:$16 sps:$4 sm:$0xff]   ;;  %v20554_v32 = vld [vmem:[#allocation17 + $0x80] ss:$16 sps:$4 sm:$0xff]  }
0x17a2   :  { %v20557_v8 = vld [vmem:[#allocation17 + $0x280] ss:$16 sps:$4 sm:$0xff]  }
0x17a4   :  { %12757 = vmatpush1.bf16.msra.mxu0 %v20482_v6  ;;  %12798 = vmatpush1.bf16.msra.mxu1 %v20485_v27  ;;  %v20562_v6 = vld [vmem:[#allocation17 + $0xa4] ss:$16 sps:$4 sm:$0xff]  }
0x17a5   :  { %12758 = vmatprep.subr.bf16.mxu0 %v20490_v34  ;;  %12799 = vmatprep.subr.bf16.mxu1 %v20493_v38  ;;  %v20565_v27 = vld [vmem:[#allocation17 + $0x2a4] ss:$16 sps:$4 sm:$0xff]   ;;  %v20560_v34 = vld [vmem:[#allocation17 + $0xa0] ss:$16 sps:$4 sm:$0xff]  }
0x17a6   :  { %v20563_v38 = vld [vmem:[#allocation17 + $0x2a0] ss:$16 sps:$4 sm:$0xff]  }
0x17a8   :  { %12759 = vmatpush1.bf16.msra.mxu0 %v20488_v25  ;;  %12800 = vmatpush1.bf16.msra.mxu1 %v20491_v19  ;;  %v20568_v25 = vld [vmem:[#allocation17 + $0xc4] ss:$16 sps:$4 sm:$0xff]  }
0x17a9   :  { %12760 = vmatprep.subr.bf16.mxu0 %v20496_v15  ;;  %12801 = vmatprep.subr.bf16.mxu1 %v20499_v9  ;;  %v20571_v19 = vld [vmem:[#allocation17 + $0x2c4] ss:$16 sps:$4 sm:$0xff]   ;;  %v20566_v15 = vld [vmem:[#allocation17 + $0xc0] ss:$16 sps:$4 sm:$0xff]  }
0x17aa   :  { %v20569_v9 = vld [vmem:[#allocation17 + $0x2c0] ss:$16 sps:$4 sm:$0xff]  }
0x17ac   :  { %12761 = vmatpush1.bf16.msra.mxu0 %v20494_v1  ;;  %12802 = vmatpush1.bf16.msra.mxu1 %v20497_v14  ;;  %v20574_v1 = vld [vmem:[#allocation17 + $0xe4] ss:$16 sps:$4 sm:$0xff]  }
0x17ad   :  { %12762 = vmatprep.subr.bf16.mxu0 %v20502_v20  ;;  %12803 = vmatprep.subr.bf16.mxu1 %v20505_v12  ;;  %v20577_v14 = vld [vmem:[#allocation17 + $0x2e4] ss:$16 sps:$4 sm:$0xff]   ;;  %v20572_v20 = vld [vmem:[#allocation17 + $0xe0] ss:$16 sps:$4 sm:$0xff]  }
0x17ae   :  { %v20575_v12 = vld [vmem:[#allocation17 + $0x2e0] ss:$16 sps:$4 sm:$0xff]  }
0x17b0   :  { %12763 = vmatpush1.bf16.msra.mxu0 %v20500_v35  ;;  %12804 = vmatpush1.bf16.msra.mxu1 %v20503_v60  ;;  %v20580_v35 = vld [vmem:[#allocation17 + $0x104] ss:$16 sps:$4 sm:$0xff]  }
0x17b1   :  { %12764 = vmatprep.subr.bf16.mxu0 %v20508_v52  ;;  %12805 = vmatprep.subr.bf16.mxu1 %v20511_v51  ;;  %v20583_v60 = vld [vmem:[#allocation17 + $0x304] ss:$16 sps:$4 sm:$0xff]   ;;  %v20578_v52 = vld [vmem:[#allocation17 + $0x100] ss:$16 sps:$4 sm:$0xff]  }
0x17b2   :  { %v20581_v51 = vld [vmem:[#allocation17 + $0x300] ss:$16 sps:$4 sm:$0xff]  }
0x17b4   :  { %12765 = vmatpush1.bf16.msra.mxu0 %v20506_v28  ;;  %12806 = vmatpush1.bf16.msra.mxu1 %v20509_v3  ;;  %v20586_v28 = vld [vmem:[#allocation17 + $0x124] ss:$16 sps:$4 sm:$0xff]  }
0x17b5   :  { %12766 = vmatprep.subr.bf16.mxu0 %v20514_v45  ;;  %12807 = vmatprep.subr.bf16.mxu1 %v20517_v31  ;;  %v20589_v3 = vld [vmem:[#allocation17 + $0x324] ss:$16 sps:$4 sm:$0xff]   ;;  %v20584_v45 = vld [vmem:[#allocation17 + $0x120] ss:$16 sps:$4 sm:$0xff]  }
0x17b6   :  { %v20587_v31 = vld [vmem:[#allocation17 + $0x320] ss:$16 sps:$4 sm:$0xff]  }
0x17b8   :  { %12767 = vmatpush1.bf16.msra.mxu0 %v20512_v43  ;;  %12808 = vmatpush1.bf16.msra.mxu1 %v20515_v23  ;;  %v20592_v43 = vld [vmem:[#allocation17 + $0x144] ss:$16 sps:$4 sm:$0xff]  }
0x17b9   :  { %12768 = vmatprep.subr.bf16.mxu0 %v20520_v48  ;;  %12809 = vmatprep.subr.bf16.mxu1 %v20523_v24  ;;  %v20595_v23 = vld [vmem:[#allocation17 + $0x344] ss:$16 sps:$4 sm:$0xff]   ;;  %v20590_v48 = vld [vmem:[#allocation17 + $0x140] ss:$16 sps:$4 sm:$0xff]  }
0x17ba   :  { %v20593_v24 = vld [vmem:[#allocation17 + $0x340] ss:$16 sps:$4 sm:$0xff]  }
0x17bc   :  { %12769 = vmatpush1.bf16.msra.mxu0 %v20518_v62  ;;  %12810 = vmatpush1.bf16.msra.mxu1 %v20521_v30  ;;  %v20598_v62 = vld [vmem:[#allocation17 + $0x164] ss:$16 sps:$4 sm:$0xff]  }
0x17bd   :  { %12770 = vmatprep.subr.bf16.mxu0 %v20526_v33  ;;  %12811 = vmatprep.subr.bf16.mxu1 %v20529_v17  ;;  %v20601_v30 = vld [vmem:[#allocation17 + $0x364] ss:$16 sps:$4 sm:$0xff]   ;;  %v20596_v33 = vld [vmem:[#allocation17 + $0x160] ss:$16 sps:$4 sm:$0xff]  }
0x17be   :  { %v20599_v17 = vld [vmem:[#allocation17 + $0x360] ss:$16 sps:$4 sm:$0xff]  }
0x17c0   :  { %12771 = vmatpush1.bf16.msra.mxu0 %v20524_v49  ;;  %12812 = vmatpush1.bf16.msra.mxu1 %v20527_v7  ;;  %v20604_v49 = vld [vmem:[#allocation17 + $0x184] ss:$16 sps:$4 sm:$0xff]  }
0x17c1   :  { %13462 = vmatprep.subr.bf16.mxu0 %v20532_v37  ;;  %13503 = vmatprep.subr.bf16.mxu1 %v20535_v39  ;;  %v20607_v7 = vld [vmem:[#allocation17 + $0x384] ss:$16 sps:$4 sm:$0xff]   ;;  %v20602_v37 = vld [vmem:[#allocation17 + $0x180] ss:$16 sps:$4 sm:$0xff]  }
0x17c2   :  { %v20605_v39 = vld [vmem:[#allocation17 + $0x380] ss:$16 sps:$4 sm:$0xff]  }
0x17c3   :  { %12773 = vmatmul.mubr.bf16.vlgmr.msra.gmra.mrb[128].mxu0 %v25142_v58  ;;  %12814 = vmatmul.mubr.bf16.vlgmr.msra.gmra.mrb[124].mxu1 %v25144_v5  ;;  %v20550_v58 = vld [vmem:[#allocation17 + $0x64] ss:$16 sps:$4 sm:$0xff]  }
0x17c4   :  { %13463 = vmatpush1.bf16.msra.mxu0 %v20530_v16  ;;  %13494 = vmatprep.mubr.bf16.mxu0 %v25150_v18  ;;  %v20553_v5 = vld [vmem:[#allocation17 + $0x264] ss:$16 sps:$4 sm:$0xff]  }
0x17c5   :  { %13504 = vmatpush1.bf16.msra.mxu1 %v20533_v4  ;;  %13535 = vmatprep.mubr.bf16.mxu1 %v25154_v36  ;;  %v20610_v16 = vld [vmem:[#allocation17 + $0x1a4] ss:$16 sps:$4 sm:$0xff]  }
0x17c6   :  { %13464 = vmatprep.subr.bf16.mxu0 %v20538_v22  ;;  %13505 = vmatprep.subr.bf16.mxu1 %v20541_v47  ;;  %v20613_v4 = vld [vmem:[#allocation17 + $0x3a4] ss:$16 sps:$4 sm:$0xff]   ;;  %v20608_v22 = vld [vmem:[#allocation17 + $0x1a0] ss:$16 sps:$4 sm:$0xff]  }
0x17c7   :  { %v20611_v47 = vld [vmem:[#allocation17 + $0x3a0] ss:$16 sps:$4 sm:$0xff]  }
0x17c8   :  { %13465 = vmatpush1.bf16.msra.mxu0 %v20536_v61  ;;  %v20616_v61 = vld [vmem:[#allocation17 + $0x1c4] ss:$16 sps:$4 sm:$0xff]  }
0x17c9   :  { %13506 = vmatpush1.bf16.msra.mxu1 %v20539_v55  ;;  %13466 = vmatprep.subr.bf16.mxu0 %v20544_v44  ;;  %v20619_v55 = vld [vmem:[#allocation17 + $0x3c4] ss:$16 sps:$4 sm:$0xff]   ;;  %v20614_v44 = vld [vmem:[#allocation17 + $0x1c0] ss:$16 sps:$4 sm:$0xff]  }
0x17ca   :  { %13507 = vmatprep.subr.bf16.mxu1 %v20547_v57  ;;  %v20617_v57 = vld [vmem:[#allocation17 + $0x3c0] ss:$16 sps:$4 sm:$0xff]  }
0x17cc   :  { %13467 = vmatpush1.bf16.msra.mxu0 %v20542_v0  ;;  %v20622_v0 = vld [vmem:[#allocation17 + $0x1e4] ss:$16 sps:$4 sm:$0xff]  }
0x17cd   :  { %13508 = vmatpush1.bf16.msra.mxu1 %v20545_v29  ;;  %13468 = vmatprep.subr.bf16.mxu0 %v20550_v58  ;;  %v20625_v29 = vld [vmem:[#allocation17 + $0x3e4] ss:$16 sps:$4 sm:$0xff]   ;;  %v20620_v58 = vld [vmem:[#allocation17 + $0x1e0] ss:$16 sps:$4 sm:$0xff]  }
0x17ce   :  { %13509 = vmatprep.subr.bf16.mxu1 %v20553_v5  ;;  %v20623_v5 = vld [vmem:[#allocation17 + $0x3e0] ss:$16 sps:$4 sm:$0xff]  }
0x17d0   :  { %13469 = vmatpush1.bf16.msra.mxu0 %v20548_v2  ;;  %v20628_v2 = vld [vmem:[#allocation17 + $0xc] ss:$16 sps:$4 sm:$0xff]  }
0x17d1   :  { %13510 = vmatpush1.bf16.msra.mxu1 %v20551_v10  ;;  %13470 = vmatprep.subr.bf16.mxu0 %v20556_v13  ;;  %v20631_v10 = vld [vmem:[#allocation17 + $0x20c] ss:$16 sps:$4 sm:$0xff]   ;;  %v20626_v13 = vld [vmem:[#allocation17 + $0x8] ss:$16 sps:$4 sm:$0xff]  }
0x17d2   :  { %13511 = vmatprep.subr.bf16.mxu1 %v20559_v42  ;;  %v25162_v42 = vpack.c.bf16 %v25134_v53, %v25134_v53  ;;  %v20635_v53 = vld [vmem:[#allocation17 + $0x228] ss:$16 sps:$4 sm:$0xff]  }
0x17d4   :  { %13471 = vmatpush1.bf16.msra.mxu0 %v20554_v32  ;;  %v20629_v32 = vld [vmem:[#allocation17 + $0x208] ss:$16 sps:$4 sm:$0xff]  }
0x17d5   :  { %13512 = vmatpush1.bf16.msra.mxu1 %v20557_v8  ;;  %13472 = vmatprep.subr.bf16.mxu0 %v20562_v6  ;;  %v25166_v8 = vpack.c.bf16 %v25136_v63, %v25136_v63  ;;  %v20634_v6 = vld [vmem:[#allocation17 + $0x2c] ss:$16 sps:$4 sm:$0xff]   ;;  %v20638_v63 = vld [vmem:[#allocation17 + $0x48] ss:$16 sps:$4 sm:$0xff]  }
0x17d6   :  { %13513 = vmatprep.subr.bf16.mxu1 %v20565_v27  ;;  %v20637_v27 = vld [vmem:[#allocation17 + $0x22c] ss:$16 sps:$4 sm:$0xff]  }
0x17d8   :  { %13473 = vmatpush1.bf16.msra.mxu0 %v20560_v34  ;;  %v20632_v34 = vld [vmem:[#allocation17 + $0x28] ss:$16 sps:$4 sm:$0xff]  }
0x17d9   :  { %13514 = vmatpush1.bf16.msra.mxu1 %v20563_v38  ;;  %13474 = vmatprep.subr.bf16.mxu0 %v20568_v25  ;;  %v20640_v38 = vld [vmem:[#allocation17 + $0x4c] ss:$16 sps:$4 sm:$0xff]  }
0x17da   :  { %13515 = vmatprep.subr.bf16.mxu1 %v20571_v19  ;;  %v20643_v25 = vld [vmem:[#allocation17 + $0x24c] ss:$16 sps:$4 sm:$0xff]   ;;  %v20641_v19 = vld [vmem:[#allocation17 + $0x248] ss:$16 sps:$4 sm:$0xff]  }
0x17dc   :  { %13475 = vmatpush1.bf16.msra.mxu0 %v20566_v15  ;;  %v20646_v15 = vld [vmem:[#allocation17 + $0x6c] ss:$16 sps:$4 sm:$0xff]  }
0x17dd   :  { %13516 = vmatpush1.bf16.msra.mxu1 %v20569_v9  ;;  %13476 = vmatprep.subr.bf16.mxu0 %v20574_v1  ;;  %v20649_v9 = vld [vmem:[#allocation17 + $0x26c] ss:$16 sps:$4 sm:$0xff]   ;;  %v20644_v1 = vld [vmem:[#allocation17 + $0x68] ss:$16 sps:$4 sm:$0xff]  }
0x17de   :  { %13517 = vmatprep.subr.bf16.mxu1 %v20577_v14  ;;  %v20652_v14 = vld [vmem:[#allocation17 + $0x8c] ss:$16 sps:$4 sm:$0xff]  }
0x17e0   :  { %13477 = vmatpush1.bf16.msra.mxu0 %v20572_v20  ;;  %v20655_v20 = vld [vmem:[#allocation17 + $0x28c] ss:$16 sps:$4 sm:$0xff]  }
0x17e1   :  { %13518 = vmatpush1.bf16.msra.mxu1 %v20575_v12  ;;  %13478 = vmatprep.subr.bf16.mxu0 %v20580_v35  ;;  %v20653_v12 = vld [vmem:[#allocation17 + $0x288] ss:$16 sps:$4 sm:$0xff]   ;;  %v20658_v35 = vld [vmem:[#allocation17 + $0xac] ss:$16 sps:$4 sm:$0xff]  }
0x17e2   :  { %13519 = vmatprep.subr.bf16.mxu1 %v20583_v60  ;;  %v20661_v60 = vld [vmem:[#allocation17 + $0x2ac] ss:$16 sps:$4 sm:$0xff]  }
0x17e4   :  { %13479 = vmatpush1.bf16.msra.mxu0 %v20578_v52  ;;  %v20656_v52 = vld [vmem:[#allocation17 + $0xa8] ss:$16 sps:$4 sm:$0xff]  }
0x17e5   :  { %13520 = vmatpush1.bf16.msra.mxu1 %v20581_v51  ;;  %13480 = vmatprep.subr.bf16.mxu0 %v20586_v28  ;;  %v20659_v51 = vld [vmem:[#allocation17 + $0x2a8] ss:$16 sps:$4 sm:$0xff]   ;;  %v20664_v28 = vld [vmem:[#allocation17 + $0xcc] ss:$16 sps:$4 sm:$0xff]  }
0x17e6   :  { %13521 = vmatprep.subr.bf16.mxu1 %v20589_v3  ;;  %v20667_v3 = vld [vmem:[#allocation17 + $0x2cc] ss:$16 sps:$4 sm:$0xff]  }
0x17e8   :  { %13481 = vmatpush1.bf16.msra.mxu0 %v20584_v45  ;;  %v20662_v45 = vld [vmem:[#allocation17 + $0xc8] ss:$16 sps:$4 sm:$0xff]  }
0x17e9   :  { %13522 = vmatpush1.bf16.msra.mxu1 %v20587_v31  ;;  %13482 = vmatprep.subr.bf16.mxu0 %v20592_v43  ;;  %v20665_v31 = vld [vmem:[#allocation17 + $0x2c8] ss:$16 sps:$4 sm:$0xff]   ;;  %v20670_v43 = vld [vmem:[#allocation17 + $0xec] ss:$16 sps:$4 sm:$0xff]  }
0x17ea   :  { %13523 = vmatprep.subr.bf16.mxu1 %v20595_v23  ;;  %v20673_v23 = vld [vmem:[#allocation17 + $0x2ec] ss:$16 sps:$4 sm:$0xff]  }
0x17ec   :  { %13483 = vmatpush1.bf16.msra.mxu0 %v20590_v48  ;;  %v20668_v48 = vld [vmem:[#allocation17 + $0xe8] ss:$16 sps:$4 sm:$0xff]  }
0x17ed   :  { %13524 = vmatpush1.bf16.msra.mxu1 %v20593_v24  ;;  %13484 = vmatprep.subr.bf16.mxu0 %v20598_v62  ;;  %v20671_v24 = vld [vmem:[#allocation17 + $0x2e8] ss:$16 sps:$4 sm:$0xff]   ;;  %v20676_v62 = vld [vmem:[#allocation17 + $0x10c] ss:$16 sps:$4 sm:$0xff]  }
0x17ee   :  { %13525 = vmatprep.subr.bf16.mxu1 %v20601_v30  ;;  %v20679_v30 = vld [vmem:[#allocation17 + $0x30c] ss:$16 sps:$4 sm:$0xff]  }
0x17f0   :  { %13485 = vmatpush1.bf16.msra.mxu0 %v20596_v33  ;;  %v20674_v33 = vld [vmem:[#allocation17 + $0x108] ss:$16 sps:$4 sm:$0xff]  }
0x17f1   :  { %13526 = vmatpush1.bf16.msra.mxu1 %v20599_v17  ;;  %13486 = vmatprep.subr.bf16.mxu0 %v20604_v49  ;;  %v20677_v17 = vld [vmem:[#allocation17 + $0x308] ss:$16 sps:$4 sm:$0xff]   ;;  %v20682_v49 = vld [vmem:[#allocation17 + $0x12c] ss:$16 sps:$4 sm:$0xff]  }
0x17f2   :  { %13527 = vmatprep.subr.bf16.mxu1 %v20607_v7  ;;  %v20685_v7 = vld [vmem:[#allocation17 + $0x32c] ss:$16 sps:$4 sm:$0xff]  }
0x17f4   :  { %13487 = vmatpush1.bf16.msra.mxu0 %v20602_v37  ;;  %v20680_v37 = vld [vmem:[#allocation17 + $0x128] ss:$16 sps:$4 sm:$0xff]  }
0x17f5   :  { %13528 = vmatpush1.bf16.msra.mxu1 %v20605_v39  ;;  %13488 = vmatprep.subr.bf16.mxu0 %v20610_v16  ;;  %v20683_v39 = vld [vmem:[#allocation17 + $0x328] ss:$16 sps:$4 sm:$0xff]   ;;  %v20688_v16 = vld [vmem:[#allocation17 + $0x14c] ss:$16 sps:$4 sm:$0xff]  }
0x17f6   :  { %13529 = vmatprep.subr.bf16.mxu1 %v20613_v4  ;;  %v20691_v4 = vld [vmem:[#allocation17 + $0x34c] ss:$16 sps:$4 sm:$0xff]  }
0x17f8   :  { %13489 = vmatpush1.bf16.msra.mxu0 %v20608_v22  ;;  %v20686_v22 = vld [vmem:[#allocation17 + $0x148] ss:$16 sps:$4 sm:$0xff]  }
0x17f9   :  { %13530 = vmatpush1.bf16.msra.mxu1 %v20611_v47  ;;  %13490 = vmatprep.subr.bf16.mxu0 %v20616_v61  ;;  %v20689_v47 = vld [vmem:[#allocation17 + $0x348] ss:$16 sps:$4 sm:$0xff]   ;;  %v20694_v61 = vld [vmem:[#allocation17 + $0x16c] ss:$16 sps:$4 sm:$0xff]  }
0x17fa   :  { %13531 = vmatprep.subr.bf16.mxu1 %v20619_v55  ;;  %v20697_v55 = vld [vmem:[#allocation17 + $0x36c] ss:$16 sps:$4 sm:$0xff]  }
0x17fc   :  { %13491 = vmatpush1.bf16.msra.mxu0 %v20614_v44  ;;  %v20692_v44 = vld [vmem:[#allocation17 + $0x168] ss:$16 sps:$4 sm:$0xff]  }
0x17fd   :  { %13532 = vmatpush1.bf16.msra.mxu1 %v20617_v57  ;;  %13492 = vmatprep.subr.bf16.mxu0 %v20622_v0  ;;  %v20695_v57 = vld [vmem:[#allocation17 + $0x368] ss:$16 sps:$4 sm:$0xff]   ;;  %v20700_v0 = vld [vmem:[#allocation17 + $0x18c] ss:$16 sps:$4 sm:$0xff]  }
0x17fe   :  { %13533 = vmatprep.subr.bf16.mxu1 %v20625_v29  ;;  %v20703_v29 = vld [vmem:[#allocation17 + $0x38c] ss:$16 sps:$4 sm:$0xff]  }
0x1800   :  { %13493 = vmatpush1.bf16.msra.mxu0 %v20620_v58  ;;  %v20698_v58 = vld [vmem:[#allocation17 + $0x188] ss:$16 sps:$4 sm:$0xff]  }
0x1801   :  { %13534 = vmatpush1.bf16.msra.mxu1 %v20623_v5  ;;  %13544 = vmatprep.subr.bf16.mxu0 %v20628_v2  ;;  %v20701_v5 = vld [vmem:[#allocation17 + $0x388] ss:$16 sps:$4 sm:$0xff]   ;;  %v20706_v2 = vld [vmem:[#allocation17 + $0x1ac] ss:$16 sps:$4 sm:$0xff]  }
0x1802   :  { %13585 = vmatprep.subr.bf16.mxu1 %v20631_v10  ;;  %v20709_v10 = vld [vmem:[#allocation17 + $0x3ac] ss:$16 sps:$4 sm:$0xff]  }
0x1803   :  { %13495 = vmatmul.mubr.bf16.vlgmr.msra.gmra.mrb[132].mxu0 %v25162_v42 }
0x1804   :  { %13536 = vmatmul.mubr.bf16.vlgmr.msra.gmra.mrb[128].mxu1 %v25166_v8  ;;  %13545 = vmatpush1.bf16.msra.mxu0 %v20626_v13  ;;  %v20704_v13 = vld [vmem:[#allocation17 + $0x1a8] ss:$16 sps:$4 sm:$0xff]  }
0x1805   :  { %13576 = vmatprep.mubr.bf16.mxu0 %v25150_v18  ;;  %13586 = vmatpush1.bf16.msra.mxu1 %v20629_v32  ;;  %v20647_v18 = vld [vmem:[#allocation17 + $0x268] ss:$16 sps:$4 sm:$0xff]  }
0x1806   :  { %13617 = vmatprep.mubr.bf16.mxu1 %v25154_v36  ;;  %13546 = vmatprep.subr.bf16.mxu0 %v20634_v6  ;;  %v20650_v36 = vld [vmem:[#allocation17 + $0x88] ss:$16 sps:$4 sm:$0xff]   ;;  %v20712_v6 = vld [vmem:[#allocation17 + $0x1cc] ss:$16 sps:$4 sm:$0xff]  }
0x1807   :  { %13587 = vmatprep.subr.bf16.mxu1 %v20637_v27  ;;  %v20707_v32 = vld [vmem:[#allocation17 + $0x3a8] ss:$16 sps:$4 sm:$0xff]   ;;  %v20715_v27 = vld [vmem:[#allocation17 + $0x3cc] ss:$16 sps:$4 sm:$0xff]  }
0x1808   :  { %13547 = vmatpush1.bf16.msra.mxu0 %v20632_v34  ;;  %v20710_v34 = vld [vmem:[#allocation17 + $0x1c8] ss:$16 sps:$4 sm:$0xff]  }
0x1809   :  { %13588 = vmatpush1.bf16.msra.mxu1 %v20635_v53  ;;  %13548 = vmatprep.subr.bf16.mxu0 %v20640_v38  ;;  %v20713_v53 = vld [vmem:[#allocation17 + $0x3c8] ss:$16 sps:$4 sm:$0xff]   ;;  %v20718_v38 = vld [vmem:[#allocation17 + $0x1ec] ss:$16 sps:$4 sm:$0xff]  }
0x180a   :  { %13589 = vmatprep.subr.bf16.mxu1 %v20643_v25  ;;  %v20721_v25 = vld [vmem:[#allocation17 + $0x3ec] ss:$16 sps:$4 sm:$0xff]  }
0x180c   :  { %13549 = vmatpush1.bf16.msra.mxu0 %v20638_v63  ;;  %v20716_v63 = vld [vmem:[#allocation17 + $0x1e8] ss:$16 sps:$4 sm:$0xff]  }
0x180d   :  { %13590 = vmatpush1.bf16.msra.mxu1 %v20641_v19  ;;  %13550 = vmatprep.subr.bf16.mxu0 %v20646_v15  ;;  %v20719_v19 = vld [vmem:[#allocation17 + $0x3e8] ss:$16 sps:$4 sm:$0xff]   ;;  %v13627_v15 = vld [vmem:[#allocation16 + $0x8] sm:$0xf] }
0x180e   :  { %13591 = vmatprep.subr.bf16.mxu1 %v20649_v9 }
0x1810   :  { %13551 = vmatpush1.bf16.msra.mxu0 %v20644_v1 }
0x1811   :  { %13592 = vmatpush1.bf16.msra.mxu1 %v20647_v18  ;;  %13552 = vmatprep.subr.bf16.mxu0 %v20652_v14 }
0x1812   :  { %13593 = vmatprep.subr.bf16.mxu1 %v20655_v20  ;;  %v20722_v20 = vld [vmem:[#allocation17 + $0x800] ss:$16 sps:$4 sm:$0xff]  }
0x1814   :  { %13553 = vmatpush1.bf16.msra.mxu0 %v20650_v36  ;;  %v20724_v36 = vld [vmem:[#allocation17 + $0x804] ss:$16 sps:$4 sm:$0xff]  }
0x1815   :  { %13594 = vmatpush1.bf16.msra.mxu1 %v20653_v12  ;;  %13554 = vmatprep.subr.bf16.mxu0 %v20658_v35  ;;  %v20727_v12 = vld [vmem:[#allocation17 + $0xa04] ss:$16 sps:$4 sm:$0xff]  }
0x1816   :  { %13595 = vmatprep.subr.bf16.mxu1 %v20661_v60  ;;  %v20730_v35 = vld [vmem:[#allocation17 + $0x824] ss:$16 sps:$4 sm:$0xff]  }
0x1817   :  { %v20733_v60 = vld [vmem:[#allocation17 + $0xa24] ss:$16 sps:$4 sm:$0xff]  }
0x1818   :  { %13555 = vmatpush1.bf16.msra.mxu0 %v20656_v52  ;;  %v20728_v52 = vld [vmem:[#allocation17 + $0x820] ss:$16 sps:$4 sm:$0xff]  }
0x1819   :  { %13596 = vmatpush1.bf16.msra.mxu1 %v20659_v51  ;;  %13556 = vmatprep.subr.bf16.mxu0 %v20664_v28  ;;  %v20731_v51 = vld [vmem:[#allocation17 + $0xa20] ss:$16 sps:$4 sm:$0xff]   ;;  %v20736_v28 = vld [vmem:[#allocation17 + $0x844] ss:$16 sps:$4 sm:$0xff]  }
0x181a   :  { %13597 = vmatprep.subr.bf16.mxu1 %v20667_v3  ;;  %v20739_v3 = vld [vmem:[#allocation17 + $0xa44] ss:$16 sps:$4 sm:$0xff]  }
0x181c   :  { %13557 = vmatpush1.bf16.msra.mxu0 %v20662_v45  ;;  %v20734_v45 = vld [vmem:[#allocation17 + $0x840] ss:$16 sps:$4 sm:$0xff]  }
0x181d   :  { %13598 = vmatpush1.bf16.msra.mxu1 %v20665_v31  ;;  %13558 = vmatprep.subr.bf16.mxu0 %v20670_v43  ;;  %v20737_v31 = vld [vmem:[#allocation17 + $0xa40] ss:$16 sps:$4 sm:$0xff]   ;;  %v20742_v43 = vld [vmem:[#allocation17 + $0x864] ss:$16 sps:$4 sm:$0xff]  }
0x181e   :  { %13599 = vmatprep.subr.bf16.mxu1 %v20673_v23  ;;  %v20745_v23 = vld [vmem:[#allocation17 + $0xa64] ss:$16 sps:$4 sm:$0xff]  }
0x1820   :  { %13559 = vmatpush1.bf16.msra.mxu0 %v20668_v48  ;;  %v20740_v48 = vld [vmem:[#allocation17 + $0x860] ss:$16 sps:$4 sm:$0xff]  }
0x1821   :  { %13600 = vmatpush1.bf16.msra.mxu1 %v20671_v24  ;;  %13560 = vmatprep.subr.bf16.mxu0 %v20676_v62  ;;  %v20743_v24 = vld [vmem:[#allocation17 + $0xa60] ss:$16 sps:$4 sm:$0xff]   ;;  %v20748_v62 = vld [vmem:[#allocation17 + $0x884] ss:$16 sps:$4 sm:$0xff]  }
0x1822   :  { %13601 = vmatprep.subr.bf16.mxu1 %v20679_v30  ;;  %v20751_v30 = vld [vmem:[#allocation17 + $0xa84] ss:$16 sps:$4 sm:$0xff]  }
0x1824   :  { %13561 = vmatpush1.bf16.msra.mxu0 %v20674_v33  ;;  %v20746_v33 = vld [vmem:[#allocation17 + $0x880] ss:$16 sps:$4 sm:$0xff]  }
0x1825   :  { %13602 = vmatpush1.bf16.msra.mxu1 %v20677_v17  ;;  %13562 = vmatprep.subr.bf16.mxu0 %v20682_v49  ;;  %v20749_v17 = vld [vmem:[#allocation17 + $0xa80] ss:$16 sps:$4 sm:$0xff]   ;;  %v20754_v49 = vld [vmem:[#allocation17 + $0x8a4] ss:$16 sps:$4 sm:$0xff]  }
0x1826   :  { %13603 = vmatprep.subr.bf16.mxu1 %v20685_v7  ;;  %v20757_v7 = vld [vmem:[#allocation17 + $0xaa4] ss:$16 sps:$4 sm:$0xff]  }
0x1828   :  { %13563 = vmatpush1.bf16.msra.mxu0 %v20680_v37  ;;  %v20752_v37 = vld [vmem:[#allocation17 + $0x8a0] ss:$16 sps:$4 sm:$0xff]  }
0x1829   :  { %13604 = vmatpush1.bf16.msra.mxu1 %v20683_v39  ;;  %13564 = vmatprep.subr.bf16.mxu0 %v20688_v16  ;;  %v20755_v39 = vld [vmem:[#allocation17 + $0xaa0] ss:$16 sps:$4 sm:$0xff]   ;;  %v20760_v16 = vld [vmem:[#allocation17 + $0x8c4] ss:$16 sps:$4 sm:$0xff]  }
0x182a   :  { %13605 = vmatprep.subr.bf16.mxu1 %v20691_v4  ;;  %v20763_v4 = vld [vmem:[#allocation17 + $0xac4] ss:$16 sps:$4 sm:$0xff]  }
0x182c   :  { %13565 = vmatpush1.bf16.msra.mxu0 %v20686_v22  ;;  %v20758_v22 = vld [vmem:[#allocation17 + $0x8c0] ss:$16 sps:$4 sm:$0xff]  }
0x182d   :  { %13606 = vmatpush1.bf16.msra.mxu1 %v20689_v47  ;;  %13566 = vmatprep.subr.bf16.mxu0 %v20694_v61  ;;  %v20761_v47 = vld [vmem:[#allocation17 + $0xac0] ss:$16 sps:$4 sm:$0xff]   ;;  %v20766_v61 = vld [vmem:[#allocation17 + $0x8e4] ss:$16 sps:$4 sm:$0xff]  }
0x182e   :  { %13607 = vmatprep.subr.bf16.mxu1 %v20697_v55  ;;  %v20769_v55 = vld [vmem:[#allocation17 + $0xae4] ss:$16 sps:$4 sm:$0xff]  }
0x1830   :  { %13567 = vmatpush1.bf16.msra.mxu0 %v20692_v44  ;;  %v20764_v44 = vld [vmem:[#allocation17 + $0x8e0] ss:$16 sps:$4 sm:$0xff]  }
0x1831   :  { %13608 = vmatpush1.bf16.msra.mxu1 %v20695_v57  ;;  %13568 = vmatprep.subr.bf16.mxu0 %v20700_v0  ;;  %v20767_v57 = vld [vmem:[#allocation17 + $0xae0] ss:$16 sps:$4 sm:$0xff]   ;;  %v20772_v0 = vld [vmem:[#allocation17 + $0x904] ss:$16 sps:$4 sm:$0xff]  }
0x1832   :  { %13609 = vmatprep.subr.bf16.mxu1 %v20703_v29  ;;  %v20775_v29 = vld [vmem:[#allocation17 + $0xb04] ss:$16 sps:$4 sm:$0xff]  }
0x1834   :  { %13569 = vmatpush1.bf16.msra.mxu0 %v20698_v58  ;;  %v20770_v58 = vld [vmem:[#allocation17 + $0x900] ss:$16 sps:$4 sm:$0xff]  }
0x1835   :  { %13610 = vmatpush1.bf16.msra.mxu1 %v20701_v5  ;;  %13570 = vmatprep.subr.bf16.mxu0 %v20706_v2  ;;  %v20773_v5 = vld [vmem:[#allocation17 + $0xb00] ss:$16 sps:$4 sm:$0xff]   ;;  %v20778_v2 = vld [vmem:[#allocation17 + $0x924] ss:$16 sps:$4 sm:$0xff]  }
0x1836   :  { %13611 = vmatprep.subr.bf16.mxu1 %v20709_v10  ;;  %v20781_v10 = vld [vmem:[#allocation17 + $0xb24] ss:$16 sps:$4 sm:$0xff]  }
0x1838   :  { %13571 = vmatpush1.bf16.msra.mxu0 %v20704_v13  ;;  %v20776_v13 = vld [vmem:[#allocation17 + $0x920] ss:$16 sps:$4 sm:$0xff]  }
0x1839   :  { %13612 = vmatpush1.bf16.msra.mxu1 %v20707_v32  ;;  %13572 = vmatprep.subr.bf16.mxu0 %v20712_v6  ;;  %v20779_v32 = vld [vmem:[#allocation17 + $0xb20] ss:$16 sps:$4 sm:$0xff]   ;;  %v20784_v6 = vld [vmem:[#allocation17 + $0x944] ss:$16 sps:$4 sm:$0xff]  }
0x183a   :  { %13613 = vmatprep.subr.bf16.mxu1 %v20715_v27  ;;  %v20787_v27 = vld [vmem:[#allocation17 + $0xb44] ss:$16 sps:$4 sm:$0xff]  }
0x183c   :  { %13573 = vmatpush1.bf16.msra.mxu0 %v20710_v34  ;;  %v20782_v34 = vld [vmem:[#allocation17 + $0x940] ss:$16 sps:$4 sm:$0xff]  }
0x183d   :  { %13614 = vmatpush1.bf16.msra.mxu1 %v20713_v53  ;;  %13574 = vmatprep.subr.bf16.mxu0 %v20718_v38  ;;  %v20785_v53 = vld [vmem:[#allocation17 + $0xb40] ss:$16 sps:$4 sm:$0xff]   ;;  %v20790_v38 = vld [vmem:[#allocation17 + $0x964] ss:$16 sps:$4 sm:$0xff]  }
0x183e   :  { %13615 = vmatprep.subr.bf16.mxu1 %v20721_v25  ;;  %v20793_v25 = vld [vmem:[#allocation17 + $0xb64] ss:$16 sps:$4 sm:$0xff]  }
0x1840   :  { %13575 = vmatpush1.bf16.msra.mxu0 %v20716_v63  ;;  %v20788_v63 = vld [vmem:[#allocation17 + $0x960] ss:$16 sps:$4 sm:$0xff]  }
0x1841   :  { %13616 = vmatpush1.bf16.msra.mxu1 %v20719_v19  ;;  %13631 = vmatprep.subr.bf16.mxu0 %v25112_v59  ;;  %v20791_v19 = vld [vmem:[#allocation17 + $0xb60] ss:$16 sps:$4 sm:$0xff]  }
0x1842   :  { %13672 = vmatprep.subr.bf16.mxu1 %v25114_v40 }
0x1843   :  { %13577 = vmatmul.mubr.bf16.vlgmr.msra.gmra.mrb[136].mxu0 %v25162_v42 }
0x1844   :  { %13618 = vmatmul.mubr.bf16.vlgmr.msra.gmra.mrb[132].mxu1 %v25166_v8  ;;  %13632 = vmatpush1.bf16.msra.mxu0 %v25116_v54 }
0x1845   :  { %13673 = vmatpush1.bf16.msra.mxu1 %v25118_v50  ;;  %13663 = vmatprep.mubr.bf16.mxu0 %v25783_v41 }
0x1846   :  { %13704 = vmatprep.mubr.bf16.mxu1 %v25783_v41  ;;  %v20725_v41 = vld [vmem:[#allocation17 + $0xa00] ss:$16 sps:$4 sm:$0xff]   ;;  %14486 = vmatprep.subr.bf16.mxu0 %v20724_v36 }
0x1847   :  { %14527 = vmatprep.subr.bf16.mxu1 %v20727_v12  ;;  %v20803_v12 = vld [vmem:[#allocation17 + $0xba0] ss:$16 sps:$4 sm:$0xff]  }
0x184b   :  { %17272 = vmatmul.mubr.msk.bf16.vlgmr.msra.gmra.mrb[140].mxu0 %vm2462_vm3, %v13627_v15 }
0x184c   :  { %17273 = vmatmul.mubr.msk.bf16.vlgmr.msra.gmra.mrb[136].mxu1 %vm2462_vm3, %v13627_v15  ;;  %14487 = vmatpush1.bf16.msra.mxu0 %v20722_v20  ;;  %v20796_v15 = vld [vmem:[#allocation17 + $0x984] ss:$16 sps:$4 sm:$0xff]  }
0x184d   :  { %14528 = vmatpush1.bf16.msra.mxu1 %v20725_v41  ;;  %14488 = vmatprep.subr.bf16.mxu0 %v20730_v35  ;;  %v20800_v41 = vld [vmem:[#allocation17 + $0x9a0] ss:$16 sps:$4 sm:$0xff]  }
0x184e   :  { %14529 = vmatprep.subr.bf16.mxu1 %v20733_v60 }
0x1850   :  { %14489 = vmatpush1.bf16.msra.mxu0 %v20728_v52 }
0x1851   :  { %14530 = vmatpush1.bf16.msra.mxu1 %v20731_v51  ;;  %14490 = vmatprep.subr.bf16.mxu0 %v20736_v28 }
0x1852   :  { %14531 = vmatprep.subr.bf16.mxu1 %v20739_v3  ;;  %v20806_v3 = vld [vmem:[#allocation17 + $0x9c0] ss:$16 sps:$4 sm:$0xff]  }
0x1854   :  { %14491 = vmatpush1.bf16.msra.mxu0 %v20734_v45  ;;  %v20808_v45 = vld [vmem:[#allocation17 + $0x9c4] ss:$16 sps:$4 sm:$0xff]  }
0x1855   :  { %14532 = vmatpush1.bf16.msra.mxu1 %v20737_v31  ;;  %14492 = vmatprep.subr.bf16.mxu0 %v20742_v43  ;;  %v20809_v31 = vld [vmem:[#allocation17 + $0xbc0] ss:$16 sps:$4 sm:$0xff]   ;;  %v20811_v43 = vld [vmem:[#allocation17 + $0xbc4] ss:$16 sps:$4 sm:$0xff]  }
0x1856   :  { %v12692_v59 = vpop.f32.mrb[124].mxu0  ;;  %v12733_v9 = vpop.f32.mrb[120].mxu1  ;;  %14533 = vmatprep.subr.bf16.mxu1 %v20745_v23  ;;  %v20814_v23 = vld [vmem:[#allocation17 + $0x9e4] ss:$16 sps:$4 sm:$0xff]  }
0x1857   :  { %v25182_v40 = vadd.f32 %v12733_v9, %v12692_v59  ;;  %v12694_v42 = vpop.f32.mrb[125].mxu0  ;;  %v12735_v1 = vpop.f32.mrb[121].mxu1  ;;  %v20799_v59 = vld [vmem:[#allocation17 + $0xb84] ss:$16 sps:$4 sm:$0xff]   ;;  %v20794_v9 = vld [vmem:[#allocation17 + $0x980] ss:$16 sps:$4 sm:$0xff]  }
0x1858   :  { %v25184_v8 = vadd.f32 %v12735_v1, %v12694_v42  ;;  %v12696_v54 = vpop.f32.mrb[126].mxu0  ;;  %v12737_v18 = vpop.f32.mrb[122].mxu1  ;;  %14493 = vmatpush1.bf16.msra.mxu0 %v20740_v48  ;;  %v20797_v42 = vld [vmem:[#allocation17 + $0xb80] ss:$16 sps:$4 sm:$0xff]   ;;  %v20817_v48 = vld [vmem:[#allocation17 + $0xbe4] ss:$16 sps:$4 sm:$0xff]  }
0x1859   :  { %v12697_v50 = vpop.f32.mrb[127].mxu0  ;;  %v12738_v14 = vpop.f32.mrb[123].mxu1  ;;  %14534 = vmatpush1.bf16.msra.mxu1 %v20743_v24  ;;  %14494 = vmatprep.subr.bf16.mxu0 %v20748_v62  ;;  %v20802_v18 = vld [vmem:[#allocation17 + $0x9a4] ss:$16 sps:$4 sm:$0xff]   ;;  %v20812_v24 = vld [vmem:[#allocation17 + $0x9e0] ss:$16 sps:$4 sm:$0xff]  }
0x185a   :  { %14535 = vmatprep.subr.bf16.mxu1 %v20751_v30  ;;  %v20805_v50 = vld [vmem:[#allocation17 + $0xba4] ss:$16 sps:$4 sm:$0xff]   ;;  %v20815_v62 = vld [vmem:[#allocation17 + $0xbe0] ss:$16 sps:$4 sm:$0xff]   ;;  %v20820_v30 = vld [vmem:[#allocation17 + $0x80c] ss:$16 sps:$4 sm:$0xff]  }
0x185c   :  { %14495 = vmatpush1.bf16.msra.mxu0 %v20746_v33  ;;  %v20823_v33 = vld [vmem:[#allocation17 + $0xa0c] ss:$16 sps:$4 sm:$0xff]  }
0x185d   :  { %14536 = vmatpush1.bf16.msra.mxu1 %v20749_v17  ;;  %14496 = vmatprep.subr.bf16.mxu0 %v20754_v49 }
0x185e   :  { %14537 = vmatprep.subr.bf16.mxu1 %v20757_v7 }
0x1860   :  { %14497 = vmatpush1.bf16.msra.mxu0 %v20752_v37 }
0x1861   :  { %14538 = vmatpush1.bf16.msra.mxu1 %v20755_v39  ;;  %14498 = vmatprep.subr.bf16.mxu0 %v20760_v16 }
0x1862   :  { %14539 = vmatprep.subr.bf16.mxu1 %v20763_v4 }
0x1864   :  { %14499 = vmatpush1.bf16.msra.mxu0 %v20758_v22 }
0x1865   :  { %14540 = vmatpush1.bf16.msra.mxu1 %v20761_v47  ;;  %14500 = vmatprep.subr.bf16.mxu0 %v20766_v61 }
0x1866   :  { %14541 = vmatprep.subr.bf16.mxu1 %v20769_v55 }
0x1868   :  { %14501 = vmatpush1.bf16.msra.mxu0 %v20764_v44 }
0x1869   :  { %14542 = vmatpush1.bf16.msra.mxu1 %v20767_v57  ;;  %14502 = vmatprep.subr.bf16.mxu0 %v20772_v0 }
0x186a   :  { %14543 = vmatprep.subr.bf16.mxu1 %v20775_v29 }
0x186c   :  { %14503 = vmatpush1.bf16.msra.mxu0 %v20770_v58 }
0x186d   :  { %14544 = vmatpush1.bf16.msra.mxu1 %v20773_v5  ;;  %14504 = vmatprep.subr.bf16.mxu0 %v20778_v2 }
0x186e   :  { %14545 = vmatprep.subr.bf16.mxu1 %v20781_v10 }
0x1870   :  { %14505 = vmatpush1.bf16.msra.mxu0 %v20776_v13 }
0x1871   :  { %14546 = vmatpush1.bf16.msra.mxu1 %v20779_v32  ;;  %14506 = vmatprep.subr.bf16.mxu0 %v20784_v6 }
0x1872   :  { %14547 = vmatprep.subr.bf16.mxu1 %v20787_v27 }
0x1874   :  { %14507 = vmatpush1.bf16.msra.mxu0 %v20782_v34 }
0x1875   :  { %14548 = vmatpush1.bf16.msra.mxu1 %v20785_v53  ;;  %14508 = vmatprep.subr.bf16.mxu0 %v20790_v38 }
0x1876   :  { %14549 = vmatprep.subr.bf16.mxu1 %v20793_v25 }
0x1878   :  { %14509 = vmatpush1.bf16.msra.mxu0 %v20788_v63 }
0x1879   :  { %14550 = vmatpush1.bf16.msra.mxu1 %v20791_v19  ;;  %14510 = vmatprep.subr.bf16.mxu0 %v20796_v15  ;;  %v20818_v19 = vld [vmem:[#allocation17 + $0x808] ss:$16 sps:$4 sm:$0xff]  }
0x187a   :  { %14551 = vmatprep.subr.bf16.mxu1 %v20799_v59 }
0x187c   :  { %14511 = vmatpush1.bf16.msra.mxu0 %v20794_v9 }
0x187d   :  { %14552 = vmatpush1.bf16.msra.mxu1 %v20797_v42  ;;  %14512 = vmatprep.subr.bf16.mxu0 %v20802_v18 }
0x187e   :  { %14553 = vmatprep.subr.bf16.mxu1 %v20805_v50  ;;  %v20826_v50 = vld [vmem:[#allocation17 + $0x82c] ss:$16 sps:$4 sm:$0xff]  }
0x1880   :  { %14513 = vmatpush1.bf16.msra.mxu0 %v20800_v41  ;;  %v20832_v41 = vld [vmem:[#allocation17 + $0x84c] ss:$16 sps:$4 sm:$0xff]  }
0x1881   :  { %14554 = vmatpush1.bf16.msra.mxu1 %v20803_v12  ;;  %14514 = vmatprep.subr.bf16.mxu0 %v20808_v45  ;;  %v20835_v12 = vld [vmem:[#allocation17 + $0xa4c] ss:$16 sps:$4 sm:$0xff]  }
0x1882   :  { %14555 = vmatprep.subr.bf16.mxu1 %v20811_v43  ;;  %v20844_v45 = vld [vmem:[#allocation17 + $0x88c] ss:$16 sps:$4 sm:$0xff]   ;;  %v20842_v43 = vld [vmem:[#allocation17 + $0x888] ss:$16 sps:$4 sm:$0xff]  }
0x1884   :  { %14515 = vmatpush1.bf16.msra.mxu0 %v20806_v3  ;;  %v20839_v3 = vld [vmem:[#allocation17 + $0xa68] ss:$16 sps:$4 sm:$0xff]  }
0x1885   :  { %14556 = vmatpush1.bf16.msra.mxu1 %v20809_v31  ;;  %14516 = vmatprep.subr.bf16.mxu0 %v20814_v23  ;;  %v20847_v31 = vld [vmem:[#allocation17 + $0xa8c] ss:$16 sps:$4 sm:$0xff]   ;;  %v20845_v23 = vld [vmem:[#allocation17 + $0xa88] ss:$16 sps:$4 sm:$0xff]  }
0x1886   :  { %14557 = vmatprep.subr.bf16.mxu1 %v20817_v48  ;;  %v20850_v48 = vld [vmem:[#allocation17 + $0x8ac] ss:$16 sps:$4 sm:$0xff]  }
0x1888   :  { %14517 = vmatpush1.bf16.msra.mxu0 %v20812_v24  ;;  %v20853_v24 = vld [vmem:[#allocation17 + $0xaac] ss:$16 sps:$4 sm:$0xff]  }
0x1889   :  { %14558 = vmatpush1.bf16.msra.mxu1 %v20815_v62  ;;  %14568 = vmatprep.subr.bf16.mxu0 %v20820_v30  ;;  %v20848_v62 = vld [vmem:[#allocation17 + $0x8a8] ss:$16 sps:$4 sm:$0xff]  }
0x188a   :  { %14609 = vmatprep.subr.bf16.mxu1 %v20823_v33  ;;  %v20851_v30 = vld [vmem:[#allocation17 + $0xaa8] ss:$16 sps:$4 sm:$0xff]   ;;  %v20856_v33 = vld [vmem:[#allocation17 + $0x8cc] ss:$16 sps:$4 sm:$0xff]  }
0x1896   :  { %v12774_v1 = vpop.f32.mrb[128].mxu0  ;;  %v12815_v54 = vpop.f32.mrb[124].mxu1 }
0x1897   :  { %v12816_v14 = vadd.f32 %v12815_v54, %v12774_v1  ;;  %v12776_v20 = vpop.f32.mrb[129].mxu0  ;;  %v12817_v36 = vpop.f32.mrb[125].mxu1  ;;  %v20821_v1 = vld [vmem:[#allocation17 + $0xa08] ss:$16 sps:$4 sm:$0xff]  }
0x1898   :  { %v12818_v35 = vadd.f32 %v12817_v36, %v12776_v20  ;;  %v12778_v60 = vpop.f32.mrb[130].mxu0  ;;  %v12819_v52 = vpop.f32.mrb[126].mxu1  ;;  %v20824_v20 = vld [vmem:[#allocation17 + $0x828] ss:$16 sps:$4 sm:$0xff]  }
0x1899   :  { %v12779_v51 = vpop.f32.mrb[131].mxu0  ;;  %v12820_v28 = vpop.f32.mrb[127].mxu1  ;;  %v20827_v36 = vld [vmem:[#allocation17 + $0xa28] ss:$16 sps:$4 sm:$0xff]   ;;  %v20838_v52 = vld [vmem:[#allocation17 + $0x86c] ss:$16 sps:$4 sm:$0xff]  }
0x189a   :  { %v20833_v60 = vld [vmem:[#allocation17 + $0xa48] ss:$16 sps:$4 sm:$0xff]   ;;  %v20841_v51 = vld [vmem:[#allocation17 + $0xa6c] ss:$16 sps:$4 sm:$0xff]  }
0x189b   :  { %v20836_v28 = vld [vmem:[#allocation17 + $0x868] ss:$16 sps:$4 sm:$0xff]  }
0x18d6   :  { %v13496_v17 = vpop.f32.mrb[132].mxu0 }
0x18d7   :  { %v13497_v49 = vadd.f32 %v13496_v17, %v25182_v40  ;;  %v13537_v7 = vpop.f32.mrb[128].mxu1  ;;  %v13498_v37 = vpop.f32.mrb[133].mxu0  ;;  %v20859_v17 = vld [vmem:[#allocation17 + $0xacc] ss:$16 sps:$4 sm:$0xff]  }
0x18d8   :  { %v13499_v39 = vadd.f32 %v13498_v37, %v25184_v8  ;;  %v13539_v16 = vpop.f32.mrb[129].mxu1  ;;  %v13500_v4 = vpop.f32.mrb[134].mxu0  ;;  %v20862_v37 = vld [vmem:[#allocation17 + $0x8ec] ss:$16 sps:$4 sm:$0xff]  }
0x18d9   :  { %v25188_v22 = vadd.f32 %v13537_v7, %v13497_v49  ;;  %v13541_v47 = vpop.f32.mrb[130].mxu1  ;;  %v13501_v61 = vpop.f32.mrb[135].mxu0  ;;  %v20854_v49 = vld [vmem:[#allocation17 + $0x8c8] ss:$16 sps:$4 sm:$0xff]  }
0x18da   :  { %v25190_v55 = vadd.f32 %v13539_v16, %v13499_v39  ;;  %v13542_v44 = vpop.f32.mrb[131].mxu1  ;;  %v20857_v7 = vld [vmem:[#allocation17 + $0xac8] ss:$16 sps:$4 sm:$0xff]   ;;  %v20865_v39 = vld [vmem:[#allocation17 + $0xaec] ss:$16 sps:$4 sm:$0xff]  }
0x18db   :  { %v20860_v16 = vld [vmem:[#allocation17 + $0x8e8] ss:$16 sps:$4 sm:$0xff]   ;;  %v20868_v47 = vld [vmem:[#allocation17 + $0x90c] ss:$16 sps:$4 sm:$0xff]  }
0x18dc   :  { %v20863_v4 = vld [vmem:[#allocation17 + $0xae8] ss:$16 sps:$4 sm:$0xff]   ;;  %v20871_v61 = vld [vmem:[#allocation17 + $0xb0c] ss:$16 sps:$4 sm:$0xff]  }
0x18dd   :  { %v20866_v44 = vld [vmem:[#allocation17 + $0x908] ss:$16 sps:$4 sm:$0xff]  }
0x1916   :  { %v13578_v57 = vpop.f32.mrb[136].mxu0 }
0x1917   :  { %v13579_v0 = vadd.f32 %v13578_v57, %v12816_v14  ;;  %v13619_v29 = vpop.f32.mrb[132].mxu1  ;;  %v13580_v58 = vpop.f32.mrb[137].mxu0  ;;  %v20829_v14 = vld [vmem:[#allocation17 + $0xa2c] ss:$16 sps:$4 sm:$0xff]   ;;  %v20869_v57 = vld [vmem:[#allocation17 + $0xb08] ss:$16 sps:$4 sm:$0xff]  }
0x1918   :  { %v13581_v5 = vadd.f32 %v13580_v58, %v12818_v35  ;;  %v13621_v2 = vpop.f32.mrb[133].mxu1  ;;  %v13582_v40 = vpop.f32.mrb[138].mxu0  ;;  %v20830_v35 = vld [vmem:[#allocation17 + $0x848] ss:$16 sps:$4 sm:$0xff]  }
0x1919   :  { %v25192_v10 = vadd.f32 %v13619_v29, %v13579_v0  ;;  %v13623_v13 = vpop.f32.mrb[134].mxu1  ;;  %v13583_v8 = vpop.f32.mrb[139].mxu0  ;;  %v20874_v0 = vld [vmem:[#allocation17 + $0x92c] ss:$16 sps:$4 sm:$0xff]   ;;  %v20872_v58 = vld [vmem:[#allocation17 + $0x928] ss:$16 sps:$4 sm:$0xff]  }
0x191a   :  { %v25194_v32 = vadd.f32 %v13621_v2, %v13581_v5  ;;  %v13624_v6 = vpop.f32.mrb[135].mxu1  ;;  %v20877_v29 = vld [vmem:[#allocation17 + $0xb2c] ss:$16 sps:$4 sm:$0xff]   ;;  %v20875_v5 = vld [vmem:[#allocation17 + $0xb28] ss:$16 sps:$4 sm:$0xff]  }
0x191b   :  { %v20880_v2 = vld [vmem:[#allocation17 + $0x94c] ss:$16 sps:$4 sm:$0xff]   ;;  %v20878_v13 = vld [vmem:[#allocation17 + $0x948] ss:$16 sps:$4 sm:$0xff]  }
0x191c   :  { %v20883_v40 = vld [vmem:[#allocation17 + $0xb4c] ss:$16 sps:$4 sm:$0xff]   ;;  %v20881_v8 = vld [vmem:[#allocation17 + $0xb48] ss:$16 sps:$4 sm:$0xff]  }
0x191d   :  { %v20886_v6 = vld [vmem:[#allocation17 + $0x96c] ss:$16 sps:$4 sm:$0xff]  }
0x191e   :  { %v13665_v27 = vpop.f32.mrb[140].mxu0 }
0x191f   :  { %v13706_v34 = vpop.f32.mrb[136].mxu1  ;;  %v13667_v53 = vpop.f32.mrb[141].mxu0  ;;  %v25196_v15 = vpack.c.bf16 %v13665_v27, %v13665_v27  ;;  %v20889_v27 = vld [vmem:[#allocation17 + $0xb6c] ss:$16 sps:$4 sm:$0xff]  }
0x1920   :  { %v13714_v38 = vpack.c.bf16 %v13667_v53, %v13667_v53  ;;  %v13708_v25 = vpop.f32.mrb[137].mxu1  ;;  %v13669_v63 = vpop.f32.mrb[142].mxu0  ;;  %v25198_v54 = vpack.c.bf16 %v13706_v34, %v13706_v34  ;;  %v20884_v34 = vld [vmem:[#allocation17 + $0x968] ss:$16 sps:$4 sm:$0xff]  }
0x1921   :  { %v13716_v59 = vpack.c.bf16 %v13708_v25, %v13708_v25  ;;  %v13710_v9 = vpop.f32.mrb[138].mxu1  ;;  %v13670_v42 = vpop.f32.mrb[143].mxu0  ;;  %v20887_v53 = vld [vmem:[#allocation17 + $0xb68] ss:$16 sps:$4 sm:$0xff]   ;;  %v20895_v25 = vld [vmem:[#allocation17 + $0xb8c] ss:$16 sps:$4 sm:$0xff]  }
0x1922   :  { %v13711_v18 = vpop.f32.mrb[139].mxu1  ;;  %14518 = vmatprep.mubr.bf16.mxu0 %v13714_v38  ;;  %v20890_v63 = vld [vmem:[#allocation17 + $0x988] ss:$16 sps:$4 sm:$0xff]   ;;  %v20901_v9 = vld [vmem:[#allocation17 + $0xbac] ss:$16 sps:$4 sm:$0xff]  }
0x1923   :  { %14559 = vmatprep.mubr.bf16.mxu1 %v13716_v59  ;;  %14519 = vmatmul.mubr.bf16.vlgmr.msra.gmra.mrb[144].mxu0 %v25196_v15  ;;  %v20896_v42 = vld [vmem:[#allocation17 + $0x9a8] ss:$16 sps:$4 sm:$0xff]   ;;  %v20904_v18 = vld [vmem:[#allocation17 + $0x9cc] ss:$16 sps:$4 sm:$0xff]  }
0x1924   :  { %14560 = vmatmul.mubr.bf16.vlgmr.msra.gmra.mrb[140].mxu1 %v25198_v54  ;;  %14569 = vmatpush1.bf16.msra.mxu0 %v20818_v19  ;;  %v20893_v19 = vld [vmem:[#allocation17 + $0xb88] ss:$16 sps:$4 sm:$0xff]  }
0x1925   :  { %14610 = vmatpush1.bf16.msra.mxu1 %v20821_v1  ;;  %14600 = vmatprep.mubr.bf16.mxu0 %v13714_v38  ;;  %v20892_v38 = vld [vmem:[#allocation17 + $0x98c] ss:$16 sps:$4 sm:$0xff]   ;;  %v20899_v1 = vld [vmem:[#allocation17 + $0xba8] ss:$16 sps:$4 sm:$0xff]  }
0x1926   :  { %14641 = vmatprep.mubr.bf16.mxu1 %v13716_v59  ;;  %14570 = vmatprep.subr.bf16.mxu0 %v20826_v50  ;;  %v20898_v59 = vld [vmem:[#allocation17 + $0x9ac] ss:$16 sps:$4 sm:$0xff]  }
0x1927   :  { %14611 = vmatprep.subr.bf16.mxu1 %v20829_v14  ;;  %v20907_v50 = vld [vmem:[#allocation17 + $0xbcc] ss:$16 sps:$4 sm:$0xff]   ;;  %v20902_v14 = vld [vmem:[#allocation17 + $0x9c8] ss:$16 sps:$4 sm:$0xff]  }
0x1928   :  { %14571 = vmatpush1.bf16.msra.mxu0 %v20824_v20  ;;  %v20905_v20 = vld [vmem:[#allocation17 + $0xbc8] ss:$16 sps:$4 sm:$0xff]  }
0x1929   :  { %14612 = vmatpush1.bf16.msra.mxu1 %v20827_v36  ;;  %14572 = vmatprep.subr.bf16.mxu0 %v20832_v41  ;;  %v20910_v36 = vld [vmem:[#allocation17 + $0x9ec] ss:$16 sps:$4 sm:$0xff]  }
0x192a   :  { %14613 = vmatprep.subr.bf16.mxu1 %v20835_v12  ;;  %v20913_v41 = vld [vmem:[#allocation17 + $0xbec] ss:$16 sps:$4 sm:$0xff]   ;;  %v14732_v12 = vld [vmem:[#allocation19 + $0x80] sm:$0xff] }
0x192c   :  { %14573 = vmatpush1.bf16.msra.mxu0 %v20830_v35  ;;  %v14733_v35 = vld [vmem:[#allocation19 + $0x88] sm:$0xff] }
0x192d   :  { %14614 = vmatpush1.bf16.msra.mxu1 %v20833_v60  ;;  %14574 = vmatprep.subr.bf16.mxu0 %v20838_v52  ;;  %v20908_v60 = vld [vmem:[#allocation17 + $0x9e8] ss:$16 sps:$4 sm:$0xff]  }
0x192e   :  { %14615 = vmatprep.subr.bf16.mxu1 %v20841_v51  ;;  %v20911_v52 = vld [vmem:[#allocation17 + $0xbe8] ss:$16 sps:$4 sm:$0xff]   ;;  %v25202_v51 = vpack.c.bf16 %v14733_v35, %v14732_v12  ;;  %v14766_v12 = vld [vmem:[#allocation19 + $0x190] sm:$0xff] }
0x192f   :  { %v14767_v35 = vld [vmem:[#allocation19 + $0x198] sm:$0xff] }
0x1930   :  { %14575 = vmatpush1.bf16.msra.mxu0 %v20836_v28  ;;  %v14716_v28 = vld [vmem:[#allocation19] sm:$0xff] }
0x1931   :  { %14616 = vmatpush1.bf16.msra.mxu1 %v20839_v3  ;;  %14576 = vmatprep.subr.bf16.mxu0 %v20844_v45  ;;  %v14717_v3 = vld [vmem:[#allocation19 + $0x8] sm:$0xff]  ;;  %v14734_v45 = vld [vmem:[#allocation19 + $0x90] sm:$0xff] }
0x1932   :  { %14617 = vmatprep.subr.bf16.mxu1 %v20847_v31  ;;  %v14735_v31 = vld [vmem:[#allocation19 + $0x98] sm:$0xff] }
0x1934   :  { %14577 = vmatpush1.bf16.msra.mxu0 %v20842_v43  ;;  %v25204_v43 = vpack.c.bf16 %v14717_v3, %v14716_v28  ;;  %v14750_v28 = vld [vmem:[#allocation19 + $0x110] sm:$0xff]  ;;  %v14751_v3 = vld [vmem:[#allocation19 + $0x118] sm:$0xff] }
0x1935   :  { %14618 = vmatpush1.bf16.msra.mxu1 %v20845_v23  ;;  %14578 = vmatprep.subr.bf16.mxu0 %v20850_v48  ;;  %v25207_v23 = vpack.c.bf16 %v14735_v31, %v14734_v45  ;;  %v14718_v48 = vld [vmem:[#allocation19 + $0x10] sm:$0xff]  ;;  %v25260_v45 = vpack.c.bf16 %v14751_v3, %v14750_v28  ;;  %v14768_v31 = vld [vmem:[#allocation19 + $0x1a0] sm:$0xff]  ;;  %v14763_v3 = vld [vmem:[#allocation19 + $0x178] sm:$0xff] }
0x1936   :  { %14619 = vmatprep.subr.bf16.mxu1 %v20853_v24  ;;  %v14719_v24 = vld [vmem:[#allocation19 + $0x18] sm:$0xff]  ;;  %v14762_v28 = vld [vmem:[#allocation19 + $0x170] sm:$0xff] }
0x1938   :  { %14579 = vmatpush1.bf16.msra.mxu0 %v20848_v62  ;;  %v25212_v62 = vpack.c.bf16 %v14719_v24, %v14718_v48  ;;  %v14769_v48 = vld [vmem:[#allocation19 + $0x1a8] sm:$0xff] }
0x1939   :  { %14620 = vmatpush1.bf16.msra.mxu1 %v20851_v30  ;;  %14580 = vmatprep.subr.bf16.mxu0 %v20856_v33  ;;  %v14736_v30 = vld [vmem:[#allocation19 + $0xa0] sm:$0xff]  ;;  %v14737_v33 = vld [vmem:[#allocation19 + $0xa8] sm:$0xff]  ;;  %v25264_v24 = vpack.c.bf16 %v14769_v48, %v14768_v31  ;;  %v25296_v31 = vpack.c.bf16 %v14763_v3, %v14762_v28 }
0x193a   :  { %14621 = vmatprep.subr.bf16.mxu1 %v20859_v17  ;;  %v25216_v17 = vpack.c.bf16 %v14737_v33, %v14736_v30  ;;  %v14752_v30 = vld [vmem:[#allocation19 + $0x120] sm:$0xff]  ;;  %v14753_v33 = vld [vmem:[#allocation19 + $0x128] sm:$0xff] }
0x193b   :  { %v14654_v48 = vld [vmem:[%s25572_s20] ss:$4 sm:$0xf] }
0x193c   :  { %14581 = vmatpush1.bf16.msra.mxu0 %v20854_v49  ;;  %v14720_v49 = vld [vmem:[#allocation19 + $0x20] sm:$0xff] }
0x193d   :  { %14622 = vmatpush1.bf16.msra.mxu1 %v20857_v7  ;;  %14582 = vmatprep.subr.bf16.mxu0 %v20862_v37  ;;  %v14721_v7 = vld [vmem:[#allocation19 + $0x28] sm:$0xff] }
0x193e   :  { %14623 = vmatprep.subr.bf16.mxu1 %v20865_v39  ;;  %v25218_v37 = vpack.c.bf16 %v14721_v7, %v14720_v49  ;;  %v25266_v49 = vpack.c.bf16 %v14753_v33, %v14752_v30  ;;  %v14770_v7 = vld [vmem:[#allocation19 + $0x1b0] sm:$0xff] }
0x1940   :  { %14583 = vmatpush1.bf16.msra.mxu0 %v20860_v16  ;;  %v14722_v16 = vld [vmem:[#allocation19 + $0x30] sm:$0xff] }
0x1941   :  { %14624 = vmatpush1.bf16.msra.mxu1 %v20863_v4  ;;  %14584 = vmatprep.subr.bf16.mxu0 %v20868_v47  ;;  %v14723_v4 = vld [vmem:[#allocation19 + $0x38] sm:$0xff] }
0x1942   :  { %14625 = vmatprep.subr.bf16.mxu1 %v20871_v61  ;;  %v25224_v47 = vpack.c.bf16 %v14723_v4, %v14722_v16  ;;  %v14740_v61 = vld [vmem:[#allocation19 + $0xc0] sm:$0xff]  ;;  %v14754_v16 = vld [vmem:[#allocation19 + $0x130] sm:$0xff]  ;;  %v14755_v4 = vld [vmem:[#allocation19 + $0x138] sm:$0xff] }
0x1944   :  { %14585 = vmatpush1.bf16.msra.mxu0 %v20866_v44  ;;  %v14741_v44 = vld [vmem:[#allocation19 + $0xc8] sm:$0xff] }
0x1945   :  { %14626 = vmatpush1.bf16.msra.mxu1 %v20869_v57  ;;  %14586 = vmatprep.subr.bf16.mxu0 %v20874_v0  ;;  %v25228_v57 = vpack.c.bf16 %v14741_v44, %v14740_v61  ;;  %v14724_v0 = vld [vmem:[#allocation19 + $0x40] sm:$0xff]  ;;  %v25272_v61 = vpack.c.bf16 %v14755_v4, %v14754_v16  ;;  %v14659_v16 = vrot.slane %v14654_v48, %v25713_v26 }
0x1946   :  { %14627 = vmatprep.subr.bf16.mxu1 %v20877_v29  ;;  %v14725_v29 = vld [vmem:[#allocation19 + $0x48] sm:$0xff]  ;;  %v14772_v44 = vld [vmem:[#allocation19 + $0x1c0] sm:$0xff] }
0x1948   :  { %14587 = vmatpush1.bf16.msra.mxu0 %v20872_v58  ;;  %v25230_v58 = vpack.c.bf16 %v14725_v29, %v14724_v0  ;;  %v14773_v0 = vld [vmem:[#allocation19 + $0x1c8] sm:$0xff] }
0x1949   :  { %14628 = vmatpush1.bf16.msra.mxu1 %v20875_v5  ;;  %14588 = vmatprep.subr.bf16.mxu0 %v20880_v2  ;;  %v14742_v5 = vld [vmem:[#allocation19 + $0xd0] sm:$0xff]  ;;  %v14743_v2 = vld [vmem:[#allocation19 + $0xd8] sm:$0xff]  ;;  %v25276_v29 = vpack.c.bf16 %v14773_v0, %v14772_v44 }
0x194a   :  { %14629 = vmatprep.subr.bf16.mxu1 %v20883_v40  ;;  %v25234_v40 = vpack.c.bf16 %v14743_v2, %v14742_v5  ;;  %v14756_v5 = vld [vmem:[#allocation19 + $0x140] sm:$0xff]  ;;  %v14757_v2 = vld [vmem:[#allocation19 + $0x148] sm:$0xff] }
0x194c   :  { %14589 = vmatpush1.bf16.msra.mxu0 %v20878_v13  ;;  %v14726_v13 = vld [vmem:[#allocation19 + $0x50] sm:$0xff] }
0x194d   :  { %14630 = vmatpush1.bf16.msra.mxu1 %v20881_v8  ;;  %14590 = vmatprep.subr.bf16.mxu0 %v20886_v6  ;;  %v14727_v8 = vld [vmem:[#allocation19 + $0x58] sm:$0xff] }
0x194e   :  { %14631 = vmatprep.subr.bf16.mxu1 %v20889_v27  ;;  %v25236_v6 = vpack.c.bf16 %v14727_v8, %v14726_v13  ;;  %v14744_v27 = vld [vmem:[#allocation19 + $0xe0] sm:$0xff]  ;;  %v25278_v13 = vpack.c.bf16 %v14757_v2, %v14756_v5  ;;  %v14774_v8 = vld [vmem:[#allocation19 + $0x1d0] sm:$0xff]  ;;  %v14663_v5 = vrot.slane %v14654_v48, %v25785_v21  ;;  %v14954_v21 = vld [vmem:[#allocation20 + $0x108] sm:$0xff] }
0x1950   :  { %14591 = vmatpush1.bf16.msra.mxu0 %v20884_v34  ;;  %v14745_v34 = vld [vmem:[#allocation19 + $0xe8] sm:$0xff] }
0x1951   :  { %14632 = vmatpush1.bf16.msra.mxu1 %v20887_v53  ;;  %14592 = vmatprep.subr.bf16.mxu0 %v20892_v38  ;;  %v14728_v53 = vld [vmem:[#allocation19 + $0x60] sm:$0xff]  ;;  %v25239_v38 = vpack.c.bf16 %v14745_v34, %v14744_v27  ;;  %v14775_v27 = vld [vmem:[#allocation19 + $0x1d8] sm:$0xff] }
0x1952   :  { %14633 = vmatprep.subr.bf16.mxu1 %v20895_v25  ;;  %v14729_v25 = vld [vmem:[#allocation19 + $0x68] sm:$0xff]  ;;  %v25282_v34 = vpack.c.bf16 %v14775_v27, %v14774_v8 }
0x1954   :  { %14593 = vmatpush1.bf16.msra.mxu0 %v20890_v63  ;;  %v14746_v63 = vld [vmem:[#allocation19 + $0xf0] sm:$0xff] }
0x1955   :  { %14634 = vmatpush1.bf16.msra.mxu1 %v20893_v19  ;;  %14594 = vmatprep.subr.bf16.mxu0 %v20898_v59  ;;  %v14747_v19 = vld [vmem:[#allocation19 + $0xf8] sm:$0xff]  ;;  %v25242_v59 = vpack.c.bf16 %v14729_v25, %v14728_v53  ;;  %v14758_v53 = vld [vmem:[#allocation19 + $0x150] sm:$0xff] }
0x1956   :  { %14635 = vmatprep.subr.bf16.mxu1 %v20901_v9  ;;  %v25245_v9 = vpack.c.bf16 %v14747_v19, %v14746_v63  ;;  %v14759_v25 = vld [vmem:[#allocation19 + $0x158] sm:$0xff]  ;;  %v14776_v19 = vld [vmem:[#allocation19 + $0x1e0] sm:$0xff] }
0x1957   :  { %v25284_v63 = vpack.c.bf16 %v14759_v25, %v14758_v53 }
0x1958   :  { %14595 = vmatpush1.bf16.msra.mxu0 %v20896_v42  ;;  %v14730_v42 = vld [vmem:[#allocation19 + $0x70] sm:$0xff] }
0x1959   :  { %14636 = vmatpush1.bf16.msra.mxu1 %v20899_v1  ;;  %14596 = vmatprep.subr.bf16.mxu0 %v20904_v18  ;;  %v14731_v1 = vld [vmem:[#allocation19 + $0x78] sm:$0xff] }
0x195a   :  { %14637 = vmatprep.subr.bf16.mxu1 %v20907_v50  ;;  %v25248_v18 = vpack.c.bf16 %v14731_v1, %v14730_v42  ;;  %v14764_v50 = vld [vmem:[#allocation19 + $0x180] sm:$0xff]  ;;  %v14777_v42 = vld [vmem:[#allocation19 + $0x1e8] sm:$0xff] }
0x195b   :  { %v14760_v1 = vld [vmem:[#allocation19 + $0x160] sm:$0xff] }
0x195c   :  { %14597 = vmatpush1.bf16.msra.mxu0 %v20902_v14  ;;  %v14765_v14 = vld [vmem:[#allocation19 + $0x188] sm:$0xff] }
0x195d   :  { %14638 = vmatpush1.bf16.msra.mxu1 %v20905_v20  ;;  %14598 = vmatprep.subr.bf16.mxu0 %v20910_v36  ;;  %v14748_v20 = vld [vmem:[#allocation19 + $0x100] sm:$0xff]  ;;  %v25252_v36 = vpack.c.bf16 %v14765_v14, %v14764_v50  ;;  %v25288_v50 = vpack.c.bf16 %v14777_v42, %v14776_v19  ;;  %v14761_v14 = vld [vmem:[#allocation19 + $0x168] sm:$0xff] }
0x195e   :  { %14639 = vmatprep.subr.bf16.mxu1 %v20913_v41  ;;  %v14749_v41 = vld [vmem:[#allocation19 + $0x108] sm:$0xff] }
0x1960   :  { %14599 = vmatpush1.bf16.msra.mxu0 %v20908_v60  ;;  %v25254_v60 = vpack.c.bf16 %v14749_v41, %v14748_v20  ;;  %v14778_v20 = vld [vmem:[#allocation19 + $0x1f0] sm:$0xff]  ;;  %v14779_v41 = vld [vmem:[#allocation19 + $0x1f8] sm:$0xff] }
0x1961   :  { %14640 = vmatpush1.bf16.msra.mxu1 %v20911_v52  ;;  %18464 = vmatprep.subr.bf16.mxu0 %v25202_v51  ;;  %v25256_v52 = vpack.c.bf16 %v14767_v35, %v14766_v12  ;;  %v25290_v12 = vpack.c.bf16 %v14761_v14, %v14760_v1  ;;  %v25292_v35 = vpack.c.bf16 %v14779_v41, %v14778_v20 }
0x1962   :  { %18496 = vmatprep.subr.bf16.mxu1 %v25252_v36 }
0x1963   :  { %14601 = vmatmul.mubr.bf16.vlgmr.msra.gmra.mrb[148].mxu0 %v25196_v15  ;;  %v14738_v15 = vld [vmem:[#allocation19 + $0xb0] sm:$0xff] }
0x1964   :  { %14642 = vmatmul.mubr.bf16.vlgmr.msra.gmra.mrb[144].mxu1 %v25198_v54  ;;  %18466 = vmatpush3.bf16.msra.mxu0 %v25204_v43  ;;  %v14739_v54 = vld [vmem:[#allocation19 + $0xb8] sm:$0xff] }
0x1965   :  { %18468 = vmatprep.subr.bf16.mxu0 %v25207_v23  ;;  %v25222_v39 = vpack.c.bf16 %v14739_v54, %v14738_v15  ;;  %18498 = vmatpush3.bf16.msra.mxu1 %v25254_v60  ;;  %v14771_v15 = vld [vmem:[#allocation19 + $0x1b8] sm:$0xff] }
0x1966   :  { %18500 = vmatprep.subr.bf16.mxu1 %v25256_v52  ;;  %v25270_v54 = vpack.c.bf16 %v14771_v15, %v14770_v7 }
0x1968   :  { %18470 = vmatpush3.bf16.msra.mxu0 %v25212_v62 }
0x1969   :  { %18472 = vmatprep.subr.bf16.mxu0 %v25216_v17  ;;  %18502 = vmatpush3.bf16.msra.mxu1 %v25260_v45 }
0x196a   :  { %18504 = vmatprep.subr.bf16.mxu1 %v25264_v24 }
0x196c   :  { %18474 = vmatpush3.bf16.msra.mxu0 %v25218_v37 }
0x196d   :  { %18476 = vmatprep.subr.bf16.mxu0 %v25222_v39  ;;  %18506 = vmatpush3.bf16.msra.mxu1 %v25266_v49 }
0x196e   :  { %18508 = vmatprep.subr.bf16.mxu1 %v25270_v54 }
0x1970   :  { %18478 = vmatpush3.bf16.msra.mxu0 %v25224_v47 }
0x1971   :  { %18480 = vmatprep.subr.bf16.mxu0 %v25228_v57  ;;  %18510 = vmatpush3.bf16.msra.mxu1 %v25272_v61 }
0x1972   :  { %18512 = vmatprep.subr.bf16.mxu1 %v25276_v29 }
0x1974   :  { %18482 = vmatpush3.bf16.msra.mxu0 %v25230_v58 }
0x1975   :  { %18484 = vmatprep.subr.bf16.mxu0 %v25234_v40  ;;  %18514 = vmatpush3.bf16.msra.mxu1 %v25278_v13 }
0x1976   :  { %18516 = vmatprep.subr.bf16.mxu1 %v25282_v34 }
0x1978   :  { %18486 = vmatpush3.bf16.msra.mxu0 %v25236_v6 }
0x1979   :  { %18488 = vmatprep.subr.bf16.mxu0 %v25239_v38  ;;  %18518 = vmatpush3.bf16.msra.mxu1 %v25284_v63 }
0x197a   :  { %18520 = vmatprep.subr.bf16.mxu1 %v25288_v50 }
0x197c   :  { %18490 = vmatpush3.bf16.msra.mxu0 %v25242_v59 }
0x197d   :  { %18492 = vmatprep.subr.bf16.mxu0 %v25245_v9  ;;  %18522 = vmatpush3.bf16.msra.mxu1 %v25290_v12 }
0x197e   :  { %18524 = vmatprep.subr.bf16.mxu1 %v25292_v35 }
0x1980   :  { %18494 = vmatpush3.bf16.msra.mxu0 %v25248_v18 }
0x1981   :  { %18526 = vmatpush3.bf16.msra.mxu1 %v25296_v31 }
0x19f6   :  { %v14520_v30 = vpop.f32.mrb[144].mxu0 }
0x19f7   :  { %v14561_v33 = vpop.f32.mrb[140].mxu1  ;;  %v14522_v7 = vpop.f32.mrb[145].mxu0 }
0x19f8   :  { %v14562_v15 = vadd.f32 %v14561_v33, %v14520_v30  ;;  %v14563_v4 = vpop.f32.mrb[141].mxu1  ;;  %v14524_v44 = vpop.f32.mrb[146].mxu0 }
0x19f9   :  { %v14564_v0 = vadd.f32 %v14563_v4, %v14522_v7  ;;  %v14565_v2 = vpop.f32.mrb[142].mxu1  ;;  %v14525_v8 = vpop.f32.mrb[147].mxu0 }
0x19fa   :  { %v14650_v27 = vadd.f32 %v14562_v15, %v25188_v22  ;;  %v14566_v53 = vpop.f32.mrb[143].mxu1 }
0x19fb   :  { %v14651_v25 = vadd.f32 %v14564_v0, %v25190_v55  ;;  %v14667_v53 = vrot.slane %v14654_v48, %v25784_v56  ;;  %v14958_v56 = vld [vmem:[#allocation20 + $0x128] sm:$0xff] }
0x19fc   :  { %v14676_v19 = vadd.f32 %v14659_v16, %v14650_v27 }
0x19fd   :  { %v14677_v42 = vadd.f32 %v14663_v5, %v14651_v25 }
0x19fe   :  { %vm14680_vm0 = vcmp.gt.f32.partialorder %v14676_v19, 0.0  ;;  %v14684_v1 = vmul.f32 0.2, %v14676_v19 }
0x19ff   :  { %vm14681_vm3 = vcmp.gt.f32.partialorder %v14677_v42, 0.0  ;;  %v14685_v14 = vmul.f32 0.2, %v14677_v42 }
0x1a00   :  { %v25307_v20 = vsel %vm14680_vm0, %v14676_v19, %v14684_v1  ;;  %v14671_v1 = vrot.slane %v14654_v48, %v25786_v46  ;;  %v14948_v46 = vld [vmem:[#allocation20 + $0xd8] sm:$0xff] }
0x1a01   :  { %v14692_v41 = vrot.slane %v25307_v20, 4  ;;  %v25310_v28 = vsel %vm14681_vm3, %v14677_v42, %v14685_v14 }
0x1a02   :  { %v14698_v3 = vrot.slane %v25310_v28, 4 }
0x1a03   :  { %v14693_v30 = vadd.f32 %v14692_v41, %v25307_v20 }
0x1a04   :  { %v14699_v22 = vadd.f32 %v14698_v3, %v25310_v28 }
0x1a05   :  { %v14694_v33 = vrot.slane %v14693_v30, 2 }
0x1a06   :  { %v14700_v55 = vrot.slane %v14699_v22, 2 }
0x1a07   :  { %v14695_v7 = vadd.f32 %v14694_v33, %v14693_v30 }
0x1a08   :  { %v14701_v15 = vadd.f32 %v14700_v55, %v14699_v22 }
0x1a09   :  { %v14696_v16 = vrot.slane %v14695_v7, 1 }
0x1a0a   :  { %v14702_v4 = vrot.slane %v14701_v15, 1 }
0x1a0b   :  { %v14697_v0 = vadd.f32 %v14696_v16, %v14695_v7 }
0x1a0c   :  { %v14703_v44 = vadd.f32 %v14702_v4, %v14701_v15 }
0x1a0e   :  { %14844 = vmatprep.mubr.f32.mxu0 %v14703_v44 }
0x1a0f   :  { %14845 = vmatmul.mubr.f32.vlgmr.msra.gmra.mrb[114].mxu0 %v14697_v0 }
0x1a10   :  { %15049 = vmatprep.mubr.f32.mxu0 %v25755_v11 }
0x1a36   :  { %v14602_v5 = vpop.f32.mrb[148].mxu0 }
0x1a37   :  { %v14643_v2 = vpop.f32.mrb[144].mxu1  ;;  %v14604_v8 = vpop.f32.mrb[149].mxu0 }
0x1a38   :  { %v14644_v27 = vadd.f32 %v14643_v2, %v14602_v5  ;;  %v14645_v25 = vpop.f32.mrb[145].mxu1  ;;  %v14606_v19 = vpop.f32.mrb[150].mxu0 }
0x1a39   :  { %v14646_v42 = vadd.f32 %v14645_v25, %v14604_v8  ;;  %v14647_v14 = vpop.f32.mrb[146].mxu1  ;;  %v14607_v41 = vpop.f32.mrb[151].mxu0 }
0x1a3a   :  { %v14652_v3 = vadd.f32 %v14644_v27, %v25192_v10  ;;  %v14648_v30 = vpop.f32.mrb[147].mxu1  ;;  %v14924_v14 = vld [vmem:[#allocation20 + $0x18] sm:$0xff] }
0x1a3b   :  { %v14653_v22 = vadd.f32 %v14646_v42, %v25194_v32  ;;  %v14922_v42 = vld [vmem:[#allocation20 + $0x8] sm:$0xff]  ;;  %v14921_v30 = vld [vmem:[#allocation20] sm:$0xff] }
0x1a3c   :  { %v14678_v33 = vadd.f32 %v14667_v53, %v14652_v3  ;;  %v14928_v3 = vld [vmem:[#allocation20 + $0x38] sm:$0xff] }
0x1a3d   :  { %v14679_v55 = vadd.f32 %v14671_v1, %v14653_v22  ;;  %v14926_v1 = vld [vmem:[#allocation20 + $0x28] sm:$0xff]  ;;  %v14925_v22 = vld [vmem:[#allocation20 + $0x20] sm:$0xff] }
0x1a3e   :  { %vm14682_vm15 = vcmp.gt.f32.partialorder %v14678_v33, 0.0  ;;  %v14686_v7 = vmul.f32 0.2, %v14678_v33  ;;  %v25329_v41 = vpack.c.bf16 %v14926_v1, %v14922_v42  ;;  %v14938_v42 = vld [vmem:[#allocation20 + $0x88] sm:$0xff] }
0x1a3f   :  { %vm14683_vm1 = vcmp.gt.f32.partialorder %v14679_v55, 0.0  ;;  %v14687_v15 = vmul.f32 0.2, %v14679_v55  ;;  %v14942_v1 = vld [vmem:[#allocation20 + $0xa8] sm:$0xff] }
0x1a40   :  { %v25320_v16 = vsel %vm14682_vm15, %v14678_v33, %v14686_v7  ;;  %v25331_v33 = vpack.c.bf16 %v14928_v3, %v14924_v14  ;;  %v14923_v7 = vld [vmem:[#allocation20 + $0x10] sm:$0xff]  ;;  %18528 = vmatprep.subr.bf16.mxu0 %v25329_v41  ;;  %v25351_v3 = vpack.c.bf16 %v14942_v1, %v14938_v42  ;;  %v14952_v42 = vld [vmem:[#allocation20 + $0xf8] sm:$0xff]  ;;  %v14945_v1 = vld [vmem:[#allocation20 + $0xc0] sm:$0xff] }
0x1a41   :  { %v14704_v4 = vrot.slane %v25320_v16, 4  ;;  %v25323_v44 = vsel %vm14683_vm1, %v14679_v55, %v14687_v15  ;;  %v25333_v55 = vpack.c.bf16 %v14925_v22, %v14921_v30  ;;  %v14927_v15 = vld [vmem:[#allocation20 + $0x30] sm:$0xff]  ;;  %v14940_v30 = vld [vmem:[#allocation20 + $0x98] sm:$0xff] }
0x1a42   :  { %v14710_v48 = vrot.slane %v25323_v44, 4  ;;  %18560 = vmatprep.subr.bf16.mxu1 %v25331_v33  ;;  %25789 = vst [vmem:[#allocation43_spill] sm:$0xff] %v25351_v3  ;;  %v14944_v22 = vld [vmem:[#allocation20 + $0xb8] sm:$0xff] }
0x1a43   :  { %v14705_v0 = vadd.f32 %v14704_v4, %v25320_v16  ;;  %v14930_v4 = vld [vmem:[#allocation20 + $0x48] sm:$0xff]  ;;  %18530 = vmatpush1.bf16.msra.mxu0 %v25333_v55 }
0x1a44   :  { %v14711_v10 = vadd.f32 %v14710_v48, %v25323_v44  ;;  %v25336_v48 = vpack.c.bf16 %v14927_v15, %v14923_v7  ;;  %v14937_v7 = vld [vmem:[#allocation20 + $0x80] sm:$0xff]  ;;  %v25353_v15 = vpack.c.bf16 %v14944_v22, %v14940_v30  ;;  %v25365_v22 = vpack.c.bf16 %v14952_v42, %v14948_v46 }
0x1a45   :  { %v14706_v5 = vrot.slane %v14705_v0, 2  ;;  %v14949_v30 = vld [vmem:[#allocation20 + $0xe0] sm:$0xff] }
0x1a46   :  { %v14712_v32 = vrot.slane %v14711_v10, 2  ;;  %25790 = vst [vmem:[#allocation47_spill] sm:$0xff] %v25353_v15  ;;  %25793 = vst [vmem:[#allocation54_spill] sm:$0xff] %v25365_v22  ;;  %v14953_v46 = vld [vmem:[#allocation20 + $0x100] sm:$0xff] }
0x1a47   :  { %v14707_v2 = vadd.f32 %v14706_v5, %v14705_v0  ;;  %v14934_v0 = vld [vmem:[#allocation20 + $0x68] sm:$0xff]  ;;  %v14936_v5 = vld [vmem:[#allocation20 + $0x78] sm:$0xff] }
0x1a48   :  { %v14713_v8 = vadd.f32 %v14712_v32, %v14711_v10  ;;  %v14932_v10 = vld [vmem:[#allocation20 + $0x58] sm:$0xff]  ;;  %v25340_v32 = vpack.c.bf16 %v14934_v0, %v14930_v4  ;;  %v14941_v4 = vld [vmem:[#allocation20 + $0xa0] sm:$0xff]  ;;  %v14939_v0 = vld [vmem:[#allocation20 + $0x90] sm:$0xff] }
0x1a49   :  { %v14708_v27 = vrot.slane %v14707_v2, 1 }
0x1a4a   :  { %v14714_v53 = vrot.slane %v14713_v8, 1  ;;  %18532 = vmatprep.subr.bf16.mxu0 %v25340_v32 }
0x1a4b   :  { %v14709_v19 = vadd.f32 %v14708_v27, %v14707_v2  ;;  %v25342_v2 = vpack.c.bf16 %v14936_v5, %v14932_v10  ;;  %v14933_v27 = vld [vmem:[#allocation20 + $0x60] sm:$0xff]  ;;  %v14943_v10 = vld [vmem:[#allocation20 + $0xb0] sm:$0xff]  ;;  %v25356_v5 = vpack.c.bf16 %v14941_v4, %v14937_v7 }
0x1a4c   :  { %v14715_v25 = vadd.f32 %v14714_v53, %v14713_v8  ;;  %v14929_v8 = vld [vmem:[#allocation20 + $0x40] sm:$0xff]  ;;  %v14931_v53 = vld [vmem:[#allocation20 + $0x50] sm:$0xff] }
0x1a4d   :  { %25791 = vst [vmem:[#allocation51_spill] sm:$0xff] %v25356_v5  ;;  %v14947_v7 = vld [vmem:[#allocation20 + $0xd0] sm:$0xff] }
0x1a4e   :  { %14914 = vmatprep.mubr.f32.mxu1 %v14715_v25  ;;  %v25345_v25 = vpack.c.bf16 %v14933_v27, %v14929_v8  ;;  %v14946_v8 = vld [vmem:[#allocation20 + $0xc8] sm:$0xff]  ;;  %v14951_v4 = vld [vmem:[#allocation20 + $0xf0] sm:$0xff] }
0x1a4f   :  { %14915 = vmatmul.mubr.f32.vlgmr.msra.gmra.mrb[110].mxu1 %v14709_v19  ;;  %v14935_v19 = vld [vmem:[#allocation20 + $0x70] sm:$0xff]  ;;  %v14950_v27 = vld [vmem:[#allocation20 + $0xe8] sm:$0xff] }
0x1a50   :  { %15120 = vmatprep.mubr.f32.mxu1 %v25755_v11  ;;  %18562 = vmatpush1.bf16.msra.mxu1 %v25336_v48  ;;  %25787 = vst [vmem:[#allocation39_spill] sm:$0xff] %v25345_v25  ;;  %v25349_v14 = vpack.c.bf16 %v14935_v19, %v14931_v53  ;;  %v25360_v53 = vpack.c.bf16 %v14943_v10, %v14939_v0  ;;  %v14960_v11 = vld [vmem:[#allocation20 + $0x138] sm:$0xff] }
0x1a51   :  { %18564 = vmatprep.subr.bf16.mxu1 %v25342_v2  ;;  %18534 = vmatpush1.bf16.msra.mxu0 %v25345_v25  ;;  %v25362_v19 = vpack.c.bf16 %v14950_v27, %v14946_v8  ;;  %v14956_v25 = vld [vmem:[#allocation20 + $0x118] sm:$0xff]  ;;  %v25372_v0 = vpack.c.bf16 %v14951_v4, %v14947_v7  ;;  %v25374_v10 = vpack.c.bf16 %v14958_v56, %v14954_v21  ;;  %v14957_v8 = vld [vmem:[#allocation20 + $0x120] sm:$0xff]  ;;  %v14955_v27 = vld [vmem:[#allocation20 + $0x110] sm:$0xff] }
0x1a52   :  { %25788 = vst [vmem:[#allocation55_spill] sm:$0xff] %v25349_v14  ;;  %18536 = vmatprep.subr.bf16.mxu0 %v25351_v3  ;;  %25792 = vst [vmem:[#allocation53_spill] sm:$0xff] %v25360_v53  ;;  %v25368_v3 = vpack.c.bf16 %v14949_v30, %v14945_v1  ;;  %v25377_v42 = vpack.c.bf16 %v14960_v11, %v14956_v25  ;;  %v14964_v1 = vld [vmem:[#allocation20 + $0x158] sm:$0xff]  ;;  %v14961_v7 = vld [vmem:[#allocation20 + $0x140] sm:$0xff] }
0x1a53   :  { %v14968_v30 = vld [vmem:[#allocation20 + $0x178] sm:$0xff]  ;;  %v14965_v11 = vld [vmem:[#allocation20 + $0x160] sm:$0xff]  ;;  %v14963_v4 = vld [vmem:[#allocation20 + $0x150] sm:$0xff] }
0x1a54   :  { %18566 = vmatpush1.bf16.msra.mxu1 %v25349_v14  ;;  %v14962_v14 = vld [vmem:[#allocation20 + $0x148] sm:$0xff]  ;;  %v25389_v25 = vpack.c.bf16 %v14968_v30, %v14964_v1  ;;  %v14976_v1 = vld [vmem:[#allocation20 + $0x1b8] sm:$0xff]  ;;  %v14969_v30 = vld [vmem:[#allocation20 + $0x180] sm:$0xff] }
0x1a55   :  { %18568 = vmatprep.subr.bf16.mxu1 %v25353_v15  ;;  %18538 = vmatpush1.bf16.msra.mxu0 %v25356_v5  ;;  %v14959_v15 = vld [vmem:[#allocation20 + $0x130] sm:$0xff]  ;;  %v14966_v5 = vld [vmem:[#allocation20 + $0x168] sm:$0xff] }
0x1a56   :  { %18540 = vmatprep.subr.bf16.mxu0 %v25362_v19  ;;  %v25384_v56 = vpack.c.bf16 %v14959_v15, %v14955_v27  ;;  %v25386_v21 = vpack.c.bf16 %v14966_v5, %v14962_v14  ;;  %25796 = vst [vmem:[#allocation48_spill] sm:$0xff] %v25389_v25  ;;  %v14970_v14 = vld [vmem:[#allocation20 + $0x188] sm:$0xff] }
0x1a57   :  { %v14974_v5 = vld [vmem:[#allocation20 + $0x1a8] sm:$0xff] }
0x1a58   :  { %18570 = vmatpush1.bf16.msra.mxu1 %v25360_v53  ;;  %v25380_v53 = vpack.c.bf16 %v14957_v8, %v14953_v46  ;;  %25794 = vst [vmem:[#allocation56_spill] sm:$0xff] %v25384_v56  ;;  %25795 = vst [vmem:[#allocation30_spill] sm:$0xff] %v25386_v21  ;;  %v25392_v46 = vpack.c.bf16 %v14965_v11, %v14961_v7  ;;  %v14972_v8 = vld [vmem:[#allocation20 + $0x198] sm:$0xff]  ;;  %v25401_v27 = vpack.c.bf16 %v14974_v5, %v14970_v14  ;;  %v14973_v7 = vld [vmem:[#allocation20 + $0x1a0] sm:$0xff] }
0x1a59   :  { %18572 = vmatprep.subr.bf16.mxu1 %v25365_v22  ;;  %18542 = vmatpush1.bf16.msra.mxu0 %v25368_v3  ;;  %v14967_v22 = vld [vmem:[#allocation20 + $0x170] sm:$0xff]  ;;  %v25403_v11 = vpack.c.bf16 %v14976_v1, %v14972_v8  ;;  %v14982_v14 = vld [vmem:[#allocation20 + $0x1e8] sm:$0xff]  ;;  %v14980_v5 = vld [vmem:[#allocation20 + $0x1d8] sm:$0xff] }
0x1a5a   :  { %18544 = vmatprep.subr.bf16.mxu0 %v25374_v10  ;;  %25797 = vst [vmem:[#allocation52_spill] sm:$0xff] %v25392_v46  ;;  %v25396_v15 = vpack.c.bf16 %v14967_v22, %v14963_v4  ;;  %v14971_v22 = vld [vmem:[#allocation20 + $0x190] sm:$0xff]  ;;  %v14984_v8 = vld [vmem:[#allocation20 + $0x1f8] sm:$0xff]  ;;  %v14977_v1 = vld [vmem:[#allocation20 + $0x1c0] sm:$0xff] }
0x1a5b   :  { %25799 = vst [vmem:[#allocation29_spill] sm:$0xff] %v25403_v11  ;;  %v14975_v4 = vld [vmem:[#allocation20 + $0x1b0] sm:$0xff] }
0x1a5c   :  { %18574 = vmatpush1.bf16.msra.mxu1 %v25372_v0  ;;  %25798 = vst [vmem:[#allocation46_spill] sm:$0xff] %v25396_v15 }
0x1a5d   :  { %18576 = vmatprep.subr.bf16.mxu1 %v25377_v42  ;;  %18546 = vmatpush1.bf16.msra.mxu0 %v25380_v53 }
0x1a5e   :  { %18548 = vmatprep.subr.bf16.mxu0 %v25386_v21 }
0x1a60   :  { %18578 = vmatpush1.bf16.msra.mxu1 %v25384_v56  ;;  %v25405_v56 = vpack.c.bf16 %v14973_v7, %v14969_v30  ;;  %v14981_v30 = vld [vmem:[#allocation20 + $0x1e0] sm:$0xff]  ;;  %v25415_v7 = vpack.c.bf16 %v14984_v8, %v14980_v5 }
0x1a61   :  { %18580 = vmatprep.subr.bf16.mxu1 %v25389_v25  ;;  %18550 = vmatpush1.bf16.msra.mxu0 %v25392_v46  ;;  %v25408_v25 = vpack.c.bf16 %v14975_v4, %v14971_v22  ;;  %v25417_v21 = vpack.c.bf16 %v14981_v30, %v14977_v1  ;;  %v14979_v22 = vld [vmem:[#allocation20 + $0x1d0] sm:$0xff] }
0x1a62   :  { %18552 = vmatprep.subr.bf16.mxu0 %v25401_v27  ;;  %v14983_v4 = vld [vmem:[#allocation20 + $0x1f0] sm:$0xff] }
0x1a63   :  { %25800 = vst [vmem:[#allocation36_spill] sm:$0xff] %v25408_v25 }
0x1a64   :  { %18582 = vmatpush1.bf16.msra.mxu1 %v25396_v15  ;;  %v14978_v15 = vld [vmem:[#allocation20 + $0x1c8] sm:$0xff] }
0x1a65   :  { %18584 = vmatprep.subr.bf16.mxu1 %v25403_v11  ;;  %18554 = vmatpush1.bf16.msra.mxu0 %v25405_v56  ;;  %v25413_v46 = vpack.c.bf16 %v14982_v14, %v14978_v15  ;;  %v25420_v11 = vpack.c.bf16 %v14983_v4, %v14979_v22  ;;  %v25802_v22 = vmov 0.0   ;;  %v25803_v4 = vld [vmem:[#allocation39_spill] sm:$0xff] }
0x1a67   :  { %25801 = vst [vmem:[#allocation34_spill] sm:$0xff] %v25413_v46  ;;  %18556 = vmatprep.subr.bf16.mxu0 %v25413_v46 }
0x1a68   :  { %18586 = vmatpush1.bf16.msra.mxu1 %v25408_v25 }
0x1a69   :  { %18588 = vmatprep.subr.bf16.mxu1 %v25415_v7  ;;  %18558 = vmatpush1.bf16.msra.mxu0 %v25417_v21 }
0x1a6a   :  { %18592 = vmatprep.subr.bf16.mxu0 %v25202_v51 }
0x1a6c   :  { %18590 = vmatpush1.bf16.msra.mxu1 %v25420_v11 }
0x1a6d   :  { %18624 = vmatprep.subr.bf16.mxu1 %v25252_v36 }
0x1ae2   :  { %v17859_v15 = vpop.f32.mrb[114].mxu0 }
0x1ae3   :  { %v17860_v14 = vpop.f32.mrb[115].mxu0 }
0x1ae4   :  { %v17861_v5 = vadd.f32 %v17860_v14, %v17859_v15  ;;  %v25804_v15 = vld [vmem:[#allocation55_spill] sm:$0xff] }
0x1ae5   :  { %v25805_v14 = vld [vmem:[#allocation43_spill] sm:$0xff] }
0x1b22   :  { %v17894_v8 = vpop.f32.mrb[110].mxu1 }
0x1b23   :  { %v17895_v1 = vpop.f32.mrb[111].mxu1 }
0x1b24   :  { %v17896_v30 = vadd.f32 %v17895_v1, %v17894_v8  ;;  %v25807_v8 = vld [vmem:[#allocation51_spill] sm:$0xff]  ;;  %v25812_v1 = vld [vmem:[#allocation48_spill] sm:$0xff] }
0x1b26   :  { %v14917_v25 = vadd.f32 %v17896_v30, %v17861_v5  ;;  %v25806_v5 = vld [vmem:[#allocation47_spill] sm:$0xff]  ;;  %v25813_v30 = vld [vmem:[#allocation52_spill] sm:$0xff] }
0x1b28   :  { %v14920_v46 = vmul.f32 0.03125, %v14917_v25 }
0x1b2a   :  { %15050 = vmatmul.mubr.f32.vlgmr.msra.gmra.mrb[152].mxu0 %v14920_v46  ;;  %15121 = vmatmul.mubr.f32.vlgmr.msra.gmra.mrb[148].mxu1 %v14920_v46 }
0x1b2b   :  { %18594 = vmatpush3.bf16.msra.mxu0 %v25204_v43  ;;  %18626 = vmatpush3.bf16.msra.mxu1 %v25254_v60 }
0x1b2c   :  { %18596 = vmatprep.subr.bf16.mxu0 %v25207_v23  ;;  %18628 = vmatprep.subr.bf16.mxu1 %v25256_v52 }
0x1b2f   :  { %18598 = vmatpush3.bf16.msra.mxu0 %v25212_v62  ;;  %18630 = vmatpush3.bf16.msra.mxu1 %v25260_v45 }
0x1b30   :  { %18600 = vmatprep.subr.bf16.mxu0 %v25216_v17  ;;  %18632 = vmatprep.subr.bf16.mxu1 %v25264_v24 }
0x1b33   :  { %18602 = vmatpush3.bf16.msra.mxu0 %v25218_v37  ;;  %18634 = vmatpush3.bf16.msra.mxu1 %v25266_v49 }
0x1b34   :  { %18604 = vmatprep.subr.bf16.mxu0 %v25222_v39  ;;  %18636 = vmatprep.subr.bf16.mxu1 %v25270_v54 }
0x1b37   :  { %18606 = vmatpush3.bf16.msra.mxu0 %v25224_v47  ;;  %18638 = vmatpush3.bf16.msra.mxu1 %v25272_v61 }
0x1b38   :  { %18608 = vmatprep.subr.bf16.mxu0 %v25228_v57  ;;  %18640 = vmatprep.subr.bf16.mxu1 %v25276_v29 }
0x1b3b   :  { %18610 = vmatpush3.bf16.msra.mxu0 %v25230_v58  ;;  %18642 = vmatpush3.bf16.msra.mxu1 %v25278_v13 }
0x1b3c   :  { %18612 = vmatprep.subr.bf16.mxu0 %v25234_v40  ;;  %18644 = vmatprep.subr.bf16.mxu1 %v25282_v34 }
0x1b3f   :  { %18614 = vmatpush3.bf16.msra.mxu0 %v25236_v6  ;;  %18646 = vmatpush3.bf16.msra.mxu1 %v25284_v63 }
0x1b40   :  { %18616 = vmatprep.subr.bf16.mxu0 %v25239_v38  ;;  %18648 = vmatprep.subr.bf16.mxu1 %v25288_v50 }
0x1b43   :  { %18618 = vmatpush3.bf16.msra.mxu0 %v25242_v59  ;;  %18650 = vmatpush3.bf16.msra.mxu1 %v25290_v12 }
0x1b44   :  { %18620 = vmatprep.subr.bf16.mxu0 %v25245_v9  ;;  %18652 = vmatprep.subr.bf16.mxu1 %v25292_v35 }
0x1b47   :  { %18622 = vmatpush3.bf16.msra.mxu0 %v25248_v18  ;;  %18654 = vmatpush3.bf16.msra.mxu1 %v25296_v31 }
0x1b48   :  { %18656 = vmatprep.subr.bf16.mxu0 %v25329_v41  ;;  %18688 = vmatprep.subr.bf16.mxu1 %v25331_v33 }
0x1bfd   :  { %v15051_v51 = vpop.f32.mrb[152].mxu0  ;;  %v15122_v43 = vpop.f32.mrb[148].mxu1 }
0x1bfe   :  { %v15130_v23 = vrot.slane %v15051_v51, %v25713_v26  ;;  %v15138_v62 = vrot.slane %v15122_v43, %v25713_v26  ;;  %v15053_v17 = vpop.f32.mrb[153].mxu0  ;;  %v15124_v37 = vpop.f32.mrb[149].mxu1 }
0x1bff   :  { %v15134_v39 = vrot.slane %v15053_v17, %v25713_v26  ;;  %v15142_v47 = vrot.slane %v15124_v37, %v25713_v26 }
0x1c00   :  { %v25464_v57 = vsub.f32 %v25307_v20, %v15130_v23  ;;  %v25467_v58 = vsub.f32 %v25320_v16, %v15138_v62 }
0x1c01   :  { %v25470_v40 = vsub.f32 %v25310_v28, %v15134_v39  ;;  %v25473_v6 = vsub.f32 %v25323_v44, %v15142_v47 }
0x1c02   :  { %v15147_v38 = vmul.f32 %v25464_v57, %v25464_v57  ;;  %v15149_v59 = vmul.f32 %v25467_v58, %v25467_v58 }
0x1c03   :  { %v15148_v9 = vmul.f32 %v25470_v40, %v25470_v40  ;;  %v15150_v18 = vmul.f32 %v25473_v6, %v25473_v6 }
0x1c04   :  { %v15151_v36 = vrot.slane %v15147_v38, 4  ;;  %v15163_v60 = vrot.slane %v15149_v59, 4 }
0x1c05   :  { %v15157_v52 = vrot.slane %v15148_v9, 4  ;;  %v15169_v45 = vrot.slane %v15150_v18, 4 }
0x1c06   :  { %v15152_v24 = vadd.f32 %v15151_v36, %v15147_v38  ;;  %v15164_v49 = vadd.f32 %v15163_v60, %v15149_v59  ;;  %v17403_v59 = vld [vmem:[%s25572_s20 + $0x2] ss:$4 sm:$0xf] }
0x1c07   :  { %v15158_v54 = vadd.f32 %v15157_v52, %v15148_v9  ;;  %v15170_v61 = vadd.f32 %v15169_v45, %v15150_v18  ;;  %v25818_v18 = vld [vmem:[#allocation31_spill] sm:$0xff] }
0x1c08   :  { %v15153_v29 = vrot.slane %v15152_v24, 2  ;;  %v15165_v13 = vrot.slane %v15164_v49, 2 }
0x1c09   :  { %v15159_v34 = vrot.slane %v15158_v54, 2  ;;  %v15171_v63 = vrot.slane %v15170_v61, 2 }
0x1c0a   :  { %v15154_v50 = vadd.f32 %v15153_v29, %v15152_v24  ;;  %v15166_v12 = vadd.f32 %v15165_v13, %v15164_v49  ;;  %v25819_v24 = vld [vmem:[#allocation32_spill] sm:$0xff] }
0x1c0b   :  { %v15160_v35 = vadd.f32 %v15159_v34, %v15158_v54  ;;  %v15172_v31 = vadd.f32 %v15171_v63, %v15170_v61  ;;  %v25820_v61 = vld [vmem:[#allocation33_spill] sm:$0xff] }
0x1c0c   :  { %v15155_v20 = vrot.slane %v15154_v50, 1  ;;  %v15167_v28 = vrot.slane %v15166_v12, 1 }
0x1c0d   :  { %v15161_v16 = vrot.slane %v15160_v35, 1  ;;  %v15173_v44 = vrot.slane %v15172_v31, 1 }
0x1c0e   :  { %v15156_v25 = vadd.f32 %v15155_v20, %v15154_v50  ;;  %v15168_v46 = vadd.f32 %v15167_v28, %v15166_v12  ;;  %v15518_v12 = vrot.slane %v17403_v59, %v25819_v24  ;;  %v15514_v20 = vrot.slane %v17403_v59, %v25713_v26 }
0x1c0f   :  { %v15162_v41 = vadd.f32 %v15161_v16, %v15160_v35  ;;  %v15174_v33 = vadd.f32 %v15173_v44, %v15172_v31  ;;  %v15526_v35 = vrot.slane %v17403_v59, %v25820_v61  ;;  %v15522_v16 = vrot.slane %v17403_v59, %v25818_v18 }
0x1c11   :  { %15239 = vmatprep.mubr.f32.mxu0 %v15162_v41  ;;  %15309 = vmatprep.mubr.f32.mxu1 %v15174_v33 }
0x1c12   :  { %15240 = vmatmul.mubr.f32.vlgmr.msra.gmra.mrb[154].mxu0 %v15156_v25  ;;  %15310 = vmatmul.mubr.f32.vlgmr.msra.gmra.mrb[150].mxu1 %v15168_v46 }
0x1c13   :  { %18658 = vmatpush1.bf16.msra.mxu0 %v25333_v55  ;;  %18690 = vmatpush1.bf16.msra.mxu1 %v25336_v48  ;;  %v25808_v55 = vld [vmem:[#allocation53_spill] sm:$0xff]  ;;  %v25809_v48 = vld [vmem:[#allocation54_spill] sm:$0xff] }
0x1c14   :  { %18660 = vmatprep.subr.bf16.mxu0 %v25340_v32  ;;  %18692 = vmatprep.subr.bf16.mxu1 %v25342_v2  ;;  %v25810_v32 = vld [vmem:[#allocation56_spill] sm:$0xff]  ;;  %v25811_v2 = vld [vmem:[#allocation30_spill] sm:$0xff] }
0x1c15   :  { %15383 = vmatprep.mubr.f32.mxu0 %v25802_v22  ;;  %15454 = vmatprep.mubr.f32.mxu1 %v25802_v22 }
0x1c17   :  { %18662 = vmatpush1.bf16.msra.mxu0 %v25803_v4  ;;  %18694 = vmatpush1.bf16.msra.mxu1 %v25804_v15 }
0x1c18   :  { %18664 = vmatprep.subr.bf16.mxu0 %v25805_v14  ;;  %18696 = vmatprep.subr.bf16.mxu1 %v25806_v5 }
0x1c1b   :  { %18666 = vmatpush1.bf16.msra.mxu0 %v25807_v8  ;;  %18698 = vmatpush1.bf16.msra.mxu1 %v25808_v55 }
0x1c1c   :  { %18668 = vmatprep.subr.bf16.mxu0 %v25362_v19  ;;  %18700 = vmatprep.subr.bf16.mxu1 %v25809_v48  ;;  %v25814_v19 = vld [vmem:[#allocation46_spill] sm:$0xff] }
0x1c1f   :  { %18670 = vmatpush1.bf16.msra.mxu0 %v25368_v3  ;;  %18702 = vmatpush1.bf16.msra.mxu1 %v25372_v0  ;;  %v25815_v3 = vld [vmem:[#allocation29_spill] sm:$0xff]  ;;  %v25816_v0 = vld [vmem:[#allocation36_spill] sm:$0xff] }
0x1c20   :  { %18672 = vmatprep.subr.bf16.mxu0 %v25374_v10  ;;  %18704 = vmatprep.subr.bf16.mxu1 %v25377_v42  ;;  %v25817_v10 = vld [vmem:[#allocation34_spill] sm:$0xff] }
0x1c23   :  { %18674 = vmatpush1.bf16.msra.mxu0 %v25380_v53  ;;  %18706 = vmatpush1.bf16.msra.mxu1 %v25810_v32 }
0x1c24   :  { %18676 = vmatprep.subr.bf16.mxu0 %v25811_v2  ;;  %18708 = vmatprep.subr.bf16.mxu1 %v25812_v1 }
0x1c27   :  { %18678 = vmatpush1.bf16.msra.mxu0 %v25813_v30  ;;  %18710 = vmatpush1.bf16.msra.mxu1 %v25814_v19 }
0x1c28   :  { %18680 = vmatprep.subr.bf16.mxu0 %v25401_v27  ;;  %18712 = vmatprep.subr.bf16.mxu1 %v25815_v3 }
0x1c2b   :  { %18682 = vmatpush1.bf16.msra.mxu0 %v25405_v56  ;;  %18714 = vmatpush1.bf16.msra.mxu1 %v25816_v0 }
0x1c2c   :  { %18684 = vmatprep.subr.bf16.mxu0 %v25817_v10  ;;  %18716 = vmatprep.subr.bf16.mxu1 %v25415_v7 }
0x1c2f   :  { %18686 = vmatpush1.bf16.msra.mxu0 %v25417_v21  ;;  %18718 = vmatpush1.bf16.msra.mxu1 %v25420_v11  ;;  %v17402_v21 = vld [vmem:[%s25572_s20 + $0x1] ss:$4 sm:$0xf] }
0x1c30   :  { %v15487_v38 = vrot.slane %v17402_v21, %v25713_v26  ;;  %v15495_v36 = vrot.slane %v17402_v21, %v25818_v18  ;;  %v15491_v49 = vrot.slane %v17402_v21, %v25819_v24  ;;  %v15499_v29 = vrot.slane %v17402_v21, %v25820_v61 }
0x1ce5   :  { %v17929_v53 = vpop.f32.mrb[154].mxu0  ;;  %v17964_v42 = vpop.f32.mrb[150].mxu1 }
0x1ce6   :  { %v17930_v51 = vpop.f32.mrb[155].mxu0  ;;  %v17965_v43 = vpop.f32.mrb[151].mxu1 }
0x1ce7   :  { %v17931_v23 = vadd.f32 %v17930_v51, %v17929_v53  ;;  %v17966_v27 = vadd.f32 %v17965_v43, %v17964_v42  ;;  %v17406_v42 = vld [vmem:[#allocation2] ss:$0 sm:$0xff] }
0x1ce9   :  { %v15312_v62 = vadd.f32 %v17966_v27, %v17931_v23 }
0x1ceb   :  { %v15315_v17 = vmul.f32 0.03125, %v15312_v62 }
0x1ced   :  { %v15316_v37 = vmax.f32 %v15315_v17, 0.0 }
0x1cef   :  { %v15317_v56 = vadd.f32 1e-05, %v15316_v37 }
0x1cf1   :  { %20920 = vrsqrt.f32 %v15317_v56 }
0x1cfb   :  { %v20921_v39 = vpop.eup %20920 }
0x1cfc   :  { %15384 = vmatmul.mubr.f32.vlgmr.msra.gmra.mrb[156].mxu0 %v20921_v39  ;;  %15455 = vmatmul.mubr.f32.vlgmr.msra.gmra.mrb[152].mxu1 %v20921_v39 }
0x1cfd   :  { %15604 = vmatprep.mubr.f32.mxu0 %v25802_v22  ;;  %15675 = vmatprep.mubr.f32.mxu1 %v25802_v22 }
0x1dcf   :  { %v15385_v11 = vpop.f32.mrb[156].mxu0  ;;  %v15456_v7 = vpop.f32.mrb[152].mxu1 }
0x1dd0   :  { %v15464_v47 = vrot.slane %v15385_v11, %v25713_v26  ;;  %v15472_v9 = vrot.slane %v15456_v7, %v25713_v26  ;;  %v15387_v60 = vpop.f32.mrb[157].mxu0  ;;  %v15458_v52 = vpop.f32.mrb[153].mxu1 }
0x1dd1   :  { %v15468_v45 = vrot.slane %v15387_v60, %v25713_v26  ;;  %v15476_v54 = vrot.slane %v15458_v52, %v25713_v26 }
0x1dd2   :  { %v15477_v13 = vmul.f32 %v15464_v47, %v25464_v57  ;;  %v15479_v34 = vmul.f32 %v15472_v9, %v25467_v58 }
0x1dd3   :  { %v15478_v63 = vmul.f32 %v15468_v45, %v25470_v40  ;;  %v15480_v50 = vmul.f32 %v15476_v54, %v25473_v6  ;;  %v15535_v40 = vld [vmem:[%s25573_s21] sm:$0x3] }
0x1dd4   :  { %v15504_v31 = vmul.f32 %v15487_v38, %v15477_v13  ;;  %v15506_v28 = vmul.f32 %v15495_v36, %v15479_v34  ;;  %v15682_v6 = vld [vmem:[%s25574_s22] sm:$0xf] }
0x1dd5   :  { %v15505_v44 = vmul.f32 %v15491_v49, %v15478_v63  ;;  %v15507_v41 = vmul.f32 %v15499_v29, %v15480_v50  ;;  %v15687_v46 = vrot.slane %v15682_v6, %v25713_v26  ;;  %v15695_v22 = vrot.slane %v15682_v6, %v25818_v18 }
0x1dd6   :  { %v15531_v25 = vadd.f32 %v15514_v20, %v15504_v31  ;;  %v15533_v58 = vadd.f32 %v15522_v16, %v15506_v28  ;;  %v15691_v4 = vrot.slane %v15682_v6, %v25819_v24  ;;  %v15699_v5 = vrot.slane %v15682_v6, %v25820_v61 }
0x1dd7   :  { %v15532_v33 = vadd.f32 %v15518_v12, %v15505_v44  ;;  %v15534_v57 = vadd.f32 %v15526_v35, %v15507_v41 }
0x1dd9   :  { %15540 = vmatprep.subr.mxu0 %v15532_v33  ;;  %15611 = vmatprep.subr.mxu1 %v15534_v57 }
0x1dda   :  { %15541 = vmatpush1.msra.mxu0 %v15531_v25  ;;  %15612 = vmatpush1.msra.mxu1 %v15533_v58 }
0x1ddb   :  { %17404 = vmatmul.mubr.msk.f32.vlgmr.msra.gmra.mrb[158].mxu0 %vm15536_vm2, %v15535_v40  ;;  %17405 = vmatmul.mubr.msk.f32.vlgmr.msra.gmra.mrb[154].mxu1 %vm15536_vm2, %v15535_v40 }
0x1eae   :  { %v15606_v15 = vpop.f32.mrb[158].mxu0  ;;  %v15677_v14 = vpop.f32.mrb[154].mxu1 }
0x1eaf   :  { %v15704_v8 = vmul.f32 %v15687_v46, %v15606_v15  ;;  %v15608_v55 = vpop.f32.mrb[159].mxu0  ;;  %v15706_v48 = vmul.f32 %v15695_v22, %v15677_v14  ;;  %v15679_v32 = vpop.f32.mrb[155].mxu1 }
0x1eb0   :  { %v15705_v2 = vmul.f32 %v15691_v4, %v15608_v55  ;;  %v15707_v3 = vmul.f32 %v15699_v5, %v15679_v32 }
0x1eb1   :  { %v15709_v1 = vsel %vm15708_vm4, %v15704_v8, 0.0  ;;  %v15712_v19 = vsel %vm15708_vm4, %v15706_v48, 0.0 }
0x1eb2   :  { %v15710_v30 = vsel %vm15708_vm4, %v15705_v2, 0.0  ;;  %v15714_v10 = vsel %vm15708_vm4, %v15707_v3, 0.0 }
0x1eb3   :  { %v15711_v0 = vadd.f32 %v15710_v30, %v15709_v1 }
0x1eb5   :  { %v15713_v26 = vadd.f32 %v15712_v19, %v15711_v0 }
0x1eb7   :  { %v15715_v53 = vadd.f32 %v15714_v10, %v15713_v26 }
0x1eb9   :  { %15716 = vadd.xlane.f32.xlu0 %v15715_v53 }
0x1f46   :  { %v15717_v51 = vpop.xlane.xlu0 %15716 }
0x1f47   :  { %v15725_v43 = vadd.f32 %v17406_v42, %v15717_v51 }
0x1f49   :  { %v15726_v23 = vsub.f32 0.0, %v15725_v43 }
0x1f4b   :  { %v15727_v27 = vmul.f32 1.442695, %v15726_v23 }
0x1f4d   :  { %20922 = vpow2.f32 %v15727_v27 }
0x1f57   :  { %v20923_v62 = vpop.eup %20922 }
0x1f58   :  { %v15729_v17 = vadd.f32 1.0, %v20923_v62 }
0x1f5a   :  { %20924 = vrcp.f32 %v15729_v17 }
0x1f64   :  { %v20925_v37 = vpop.eup %20924 }
0x1f65   :  { %15733 = vst.msk [vmem:[%s25821_s1] sm:$0x3] %vm15732_vm5, %v20925_v37 }
0x1f66   :  { %15738 = vsyncpa [#allocation4], 1 }
0x1f67   :  { %15739 = vsyncpa [#allocation6], 1 }
0x1f68   :  { %15740 = vsyncpa [#allocation9], 1 }
0x1f69   :  { %15741 = vsyncpa [#allocation12], 1 }
0x1f6a   :  { %15742 = vsyncpa [#allocation15], 1 }
0x1f6b   :  { %15743 = vsyncpa [#allocation18], 1 }
0x1f6c   :  { %15744 = vsyncpa [#allocation21], 1 }

</bundles_post_ra>
